<compile_context>
chip_gen: v6e
topology: v6e:2x2x1
jax: 0.10.0
libtpu: 0.0.40
codegen_flags: <defaults>
</compile_context>

<pallas_src>
import functools

import jax
import jax.numpy as jnp
from jax.experimental import pallas as pl
from jax.experimental.pallas import tpu as pltpu


def _mlp_kernel(x_ref, w1_ref, b1_ref, w2_ref, b2_ref, w3r_ref, b3_ref, o_ref):
    x = x_ref[...]                      # (tm, 3)  f32
    w1 = w1_ref[...]                    # (3, H)   f32

    # Layer 1 on the VPU: K=3 would waste the MXU's systolic K dimension.
    h1 = (x[:, 0:1] * w1[0:1, :]
          + x[:, 1:2] * w1[1:2, :]
          + x[:, 2:3] * w1[2:3, :]
          + b1_ref[...])
    h1 = jnp.maximum(h1, 0.0)           # (tm, H)

    # Layer 2: dominant matmul on the MXU, bf16 inputs / f32 accumulation.
    h2 = jnp.dot(h1.astype(w2_ref.dtype), w2_ref[...],
                 preferred_element_type=jnp.float32)
    h2 = jnp.maximum(h2 + b2_ref[...], 0.0)   # (tm, H)

    # Output head (N=1): VPU multiply + lane reduction instead of a 1-column
    # matmul that would waste the MXU and pay full push/pop latency.
    out = jnp.sum(h2 * w3r_ref[...], axis=-1, keepdims=True) + b3_ref[...]
    o_ref[...] = out.astype(o_ref.dtype)


def discriminator_forward(x, params, *, tile_m=2048, w2_bf16=True):
    """x: (N, 3) float32 points. Returns (N, 1) real/fake scores.

    tile_m: rows per grid step.  2048 is a safe default on all generations
    (v7x: 64 MiB VMEM, 2 TCs); on v5e/v6e it can be raised to 4096-8192.
    """
    w1, b1, w2, b2, w3, b3 = params
    n, f_in = x.shape
    assert f_in == 3
    hidden = w1.shape[1]

    # w3 as a (1, hidden) row so the head is a VPU mul + lane reduce.
    w3_row = w3.reshape(1, hidden)
    if w2_bf16:
        w2 = w2.astype(jnp.bfloat16)

    # Clamp the tile for tiny inputs, keeping sublane alignment (multiple of
    # 8).  No padding of x: Pallas handles the ragged last block and masks
    # out-of-range output stores.
    tm = min(tile_m, max(8, pl.cdiv(n, 8) * 8))
    grid = (pl.cdiv(n, tm),)

    out = pl.pallas_call(
        _mlp_kernel,
        out_shape=jax.ShapeDtypeStruct((n, 1), jnp.float32),
        grid_spec=pltpu.PrefetchScalarGridSpec(
            num_scalar_prefetch=0,
            grid=grid,
            in_specs=[
                # x tile: rows tiled, full (=3) feature dim.
                pl.BlockSpec((tm, 3), lambda i: (i, 0)),
                # Weights/biases: whole arrays, constant block index -> the
                # pipeline does not re-DMA them across grid steps.
                pl.BlockSpec((3, hidden), lambda i: (0, 0)),
                pl.BlockSpec((1, hidden), lambda i: (0, 0)),
                pl.BlockSpec((hidden, hidden), lambda i: (0, 0)),
                pl.BlockSpec((1, hidden), lambda i: (0, 0)),
                pl.BlockSpec((1, hidden), lambda i: (0, 0)),   # w3 as a row
                pl.BlockSpec((1, 1), lambda i: (0, 0)),
            ],
            out_specs=pl.BlockSpec((tm, 1), lambda i: (i, 0)),
        ),
        compiler_params=pltpu.CompilerParams(
            dimension_semantics=("parallel",),
        ),
    )(x, w1, b1, w2, b2, w3_row, b3)

    return out


def init_discriminator_params(key, hidden_dim=256):
    """Deterministic init mimicking nn.Linear's uniform(-1/sqrt(fan_in), +)."""
    ks = jax.random.split(key, 6)

    def linear(kw, kb, fan_in, fan_out):
        bound = 1.0 / jnp.sqrt(jnp.asarray(fan_in, jnp.float32))
        w = jax.random.uniform(kw, (fan_in, fan_out), jnp.float32, -bound, bound)
        b = jax.random.uniform(kb, (1, fan_out), jnp.float32, -bound, bound)
        return w, b

    w1, b1 = linear(ks[0], ks[1], 3, hidden_dim)
    w2, b2 = linear(ks[2], ks[3], hidden_dim, hidden_dim)
    w3, b3 = linear(ks[4], ks[5], hidden_dim, 1)
    return (w1, b1, w2, b2, w3, b3)


def _reference_forward(x, params, *, w2_bf16=False):
    w1, b1, w2, b2, w3, b3 = params
    h1 = jnp.maximum(x @ w1 + b1, 0.0)
    if w2_bf16:
        h2 = jnp.dot(h1.astype(jnp.bfloat16), w2.astype(jnp.bfloat16),
                     preferred_element_type=jnp.float32)
    else:
        h2 = h1 @ w2
    h2 = jnp.maximum(h2 + b2, 0.0)
    return h2 @ w3 + b3


if __name__ == "__main__":
    key = jax.random.PRNGKey(0)
    k_param, k_x = jax.random.split(key)

    hidden_dim = 256
    n_points = 3000  # not a multiple of the tile -> exercises the ragged tail
    params = init_discriminator_params(k_param, hidden_dim=hidden_dim)
    x = jax.random.normal(k_x, (n_points, 3), jnp.float32)

    fwd = jax.jit(functools.partial(discriminator_forward,
                                    tile_m=1024, w2_bf16=True))
    scores = fwd(x, params)
    jax.block_until_ready(scores)

    assert scores.shape == (n_points, 1), scores.shape

    # Tight check vs a reference that uses the same bf16 layer-2 precision.
    ref_mixed = _reference_forward(x, params, w2_bf16=True)
    err_mixed = float(jnp.max(jnp.abs(scores - ref_mixed)))
    assert err_mixed < 1e-3, f"max abs err vs mixed-precision ref {err_mixed}"

    # Loose check vs the full-f32 reference (bf16 layer 2 costs a little).
    ref_f32 = _reference_forward(x, params, w2_bf16=False)
    err_f32 = float(jnp.max(jnp.abs(scores - ref_f32)))
    assert err_f32 < 3e-2, f"max abs err vs f32 ref {err_f32}"

    print("KERNEL_OK")
</pallas_src>

<mosaic_0001>
module attributes {stable_mosaic.version = 11 : i64} {
  func.func @_mlp_kernel(%arg0: i32, %arg1: memref<1024x3xf32, #tpu.memory_space<vmem>>, %arg2: memref<3x256xf32, #tpu.memory_space<vmem>>, %arg3: memref<1x256xf32, #tpu.memory_space<vmem>>, %arg4: memref<256x256xbf16, #tpu.memory_space<vmem>>, %arg5: memref<1x256xf32, #tpu.memory_space<vmem>>, %arg6: memref<1x256xf32, #tpu.memory_space<vmem>>, %arg7: memref<1x1xf32, #tpu.memory_space<vmem>>, %arg8: memref<1024x1xf32, #tpu.memory_space<vmem>>) attributes {dimension_semantics = [#tpu.dimension_semantics<parallel>], iteration_bounds = array<i64: 3>, scalar_prefetch = 0 : i64, scratch_operands = 0 : i64, tpu.core_type = #tpu.core_type<tc>, window_params = [{transform_indices = @transform_0, window_bounds = array<i64: 1024, 3>}, {pipeline_mode = #tpu.pipeline_mode<synchronous>, transform_indices = @transform_1, window_bounds = array<i64: 3, 256>}, {pipeline_mode = #tpu.pipeline_mode<synchronous>, transform_indices = @transform_2, window_bounds = array<i64: 1, 256>}, {pipeline_mode = #tpu.pipeline_mode<synchronous>, transform_indices = @transform_3, window_bounds = array<i64: 256, 256>}, {pipeline_mode = #tpu.pipeline_mode<synchronous>, transform_indices = @transform_4, window_bounds = array<i64: 1, 256>}, {pipeline_mode = #tpu.pipeline_mode<synchronous>, transform_indices = @transform_5, window_bounds = array<i64: 1, 256>}, {pipeline_mode = #tpu.pipeline_mode<synchronous>, transform_indices = @transform_6, window_bounds = array<i64: 1, 1>}, {transform_indices = @transform_7, window_bounds = array<i64: 1024, 1>}]} {
    %c0 = arith.constant 0 : index
    %c0_0 = arith.constant 0 : index
    %0 = vector.load %arg1[%c0, %c0_0] : memref<1024x3xf32, #tpu.memory_space<vmem>>, vector<1024x3xf32>
    %c0_1 = arith.constant 0 : index
    %c0_2 = arith.constant 0 : index
    %1 = vector.load %arg2[%c0_1, %c0_2] : memref<3x256xf32, #tpu.memory_space<vmem>>, vector<3x256xf32>
    %2 = vector.extract_strided_slice %0 {offsets = [0, 0], sizes = [1024, 1], strides = [1, 1]} : vector<1024x3xf32> to vector<1024x1xf32>
    %3 = vector.extract_strided_slice %1 {offsets = [0, 0], sizes = [1, 256], strides = [1, 1]} : vector<3x256xf32> to vector<1x256xf32>
    %4 = vector.broadcast %2 : vector<1024x1xf32> to vector<1024x256xf32>
    %5 = vector.broadcast %3 : vector<1x256xf32> to vector<1024x256xf32>
    %6 = arith.mulf %4, %5 : vector<1024x256xf32>
    %7 = vector.extract_strided_slice %0 {offsets = [0, 1], sizes = [1024, 1], strides = [1, 1]} : vector<1024x3xf32> to vector<1024x1xf32>
    %8 = vector.extract_strided_slice %1 {offsets = [1, 0], sizes = [1, 256], strides = [1, 1]} : vector<3x256xf32> to vector<1x256xf32>
    %9 = vector.broadcast %7 : vector<1024x1xf32> to vector<1024x256xf32>
    %10 = vector.broadcast %8 : vector<1x256xf32> to vector<1024x256xf32>
    %11 = arith.mulf %9, %10 : vector<1024x256xf32>
    %12 = arith.addf %6, %11 : vector<1024x256xf32>
    %13 = vector.extract_strided_slice %0 {offsets = [0, 2], sizes = [1024, 1], strides = [1, 1]} : vector<1024x3xf32> to vector<1024x1xf32>
    %14 = vector.extract_strided_slice %1 {offsets = [2, 0], sizes = [1, 256], strides = [1, 1]} : vector<3x256xf32> to vector<1x256xf32>
    %15 = vector.broadcast %13 : vector<1024x1xf32> to vector<1024x256xf32>
    %16 = vector.broadcast %14 : vector<1x256xf32> to vector<1024x256xf32>
    %17 = arith.mulf %15, %16 : vector<1024x256xf32>
    %18 = arith.addf %12, %17 : vector<1024x256xf32>
    %c0_3 = arith.constant 0 : index
    %c0_4 = arith.constant 0 : index
    %19 = vector.load %arg3[%c0_3, %c0_4] : memref<1x256xf32, #tpu.memory_space<vmem>>, vector<1x256xf32>
    %20 = vector.broadcast %19 : vector<1x256xf32> to vector<1024x256xf32>
    %21 = arith.addf %18, %20 : vector<1024x256xf32>
    %cst = arith.constant 0.000000e+00 : f32
    %22 = vector.broadcast %cst : f32 to vector<1024x256xf32>
    %23 = arith.maximumf %21, %22 : vector<1024x256xf32>
    %24 = arith.truncf %23 : vector<1024x256xf32> to vector<1024x256xbf16>
    %c0_5 = arith.constant 0 : index
    %c0_6 = arith.constant 0 : index
    %25 = vector.load %arg4[%c0_5, %c0_6] : memref<256x256xbf16, #tpu.memory_space<vmem>>, vector<256x256xbf16>
    %cst_7 = arith.constant dense<0.000000e+00> : vector<1024x256xf32>
    %26 = tpu.matmul %24, %25, %cst_7 {dimension_numbers = #tpu.dot_dimension_numbers<[1], [0], [0], [1], [0, 0, 1, 1], [], []>} : vector<1024x256xbf16>, vector<256x256xbf16>, vector<1024x256xf32> -> vector<1024x256xf32>
    %c0_8 = arith.constant 0 : index
    %c0_9 = arith.constant 0 : index
    %27 = vector.load %arg5[%c0_8, %c0_9] : memref<1x256xf32, #tpu.memory_space<vmem>>, vector<1x256xf32>
    %28 = vector.broadcast %27 : vector<1x256xf32> to vector<1024x256xf32>
    %29 = arith.addf %26, %28 : vector<1024x256xf32>
    %cst_10 = arith.constant 0.000000e+00 : f32
    %30 = vector.broadcast %cst_10 : f32 to vector<1024x256xf32>
    %31 = arith.maximumf %29, %30 : vector<1024x256xf32>
    %c0_11 = arith.constant 0 : index
    %c0_12 = arith.constant 0 : index
    %32 = vector.load %arg6[%c0_11, %c0_12] : memref<1x256xf32, #tpu.memory_space<vmem>>, vector<1x256xf32>
    %33 = vector.broadcast %32 : vector<1x256xf32> to vector<1024x256xf32>
    %34 = arith.mulf %31, %33 : vector<1024x256xf32>
    %cst_13 = arith.constant dense<0.000000e+00> : vector<1024xf32>
    %35 = vector.multi_reduction <add>, %34, %cst_13 [1] : vector<1024x256xf32> to vector<1024xf32>
    %36 = vector.shape_cast %35 : vector<1024xf32> to vector<1024x1xf32>
    %c0_14 = arith.constant 0 : index
    %c0_15 = arith.constant 0 : index
    %37 = vector.load %arg7[%c0_14, %c0_15] : memref<1x1xf32, #tpu.memory_space<vmem>>, vector<1x1xf32>
    %38 = vector.broadcast %37 : vector<1x1xf32> to vector<1024x1xf32>
    %39 = arith.addf %36, %38 : vector<1024x1xf32>
    %c0_16 = arith.constant 0 : index
    %c0_17 = arith.constant 0 : index
    %40 = vector.load %arg8[%c0_16, %c0_17] : memref<1024x1xf32, #tpu.memory_space<vmem>>, vector<1024x1xf32>
    tpu.vector_store %arg8[%c0_16, %c0_17], %39 {strides = array<i32>} : memref<1024x1xf32, #tpu.memory_space<vmem>>, vector<1024x1xf32>,
    return
  }
  func.func @transform_0(%arg0: i32) -> (i32, i32) {
    %c0_i32 = arith.constant 0 : i32
    %c0_i32_0 = arith.constant 0 : i32
    return %arg0, %c0_i32 : i32, i32
  }
  func.func @transform_1(%arg0: i32) -> (i32, i32) {
    %c0_i32 = arith.constant 0 : i32
    %c0_i32_0 = arith.constant 0 : i32
    %c0_i32_1 = arith.constant 0 : i32
    return %c0_i32, %c0_i32_0 : i32, i32
  }
  func.func @transform_2(%arg0: i32) -> (i32, i32) {
    %c0_i32 = arith.constant 0 : i32
    %c0_i32_0 = arith.constant 0 : i32
    %c0_i32_1 = arith.constant 0 : i32
    return %c0_i32, %c0_i32_0 : i32, i32
  }
  func.func @transform_3(%arg0: i32) -> (i32, i32) {
    %c0_i32 = arith.constant 0 : i32
    %c0_i32_0 = arith.constant 0 : i32
    %c0_i32_1 = arith.constant 0 : i32
    return %c0_i32, %c0_i32_0 : i32, i32
  }
  func.func @transform_4(%arg0: i32) -> (i32, i32) {
    %c0_i32 = arith.constant 0 : i32
    %c0_i32_0 = arith.constant 0 : i32
    %c0_i32_1 = arith.constant 0 : i32
    return %c0_i32, %c0_i32_0 : i32, i32
  }
  func.func @transform_5(%arg0: i32) -> (i32, i32) {
    %c0_i32 = arith.constant 0 : i32
    %c0_i32_0 = arith.constant 0 : i32
    %c0_i32_1 = arith.constant 0 : i32
    return %c0_i32, %c0_i32_0 : i32, i32
  }
  func.func @transform_6(%arg0: i32) -> (i32, i32) {
    %c0_i32 = arith.constant 0 : i32
    %c0_i32_0 = arith.constant 0 : i32
    %c0_i32_1 = arith.constant 0 : i32
    return %c0_i32, %c0_i32_0 : i32, i32
  }
  func.func @transform_7(%arg0: i32) -> (i32, i32) {
    %c0_i32 = arith.constant 0 : i32
    %c0_i32_0 = arith.constant 0 : i32
    return %arg0, %c0_i32 : i32, i32
  }
}

</mosaic_0001>

<bundles_post_ra>
// kernel: discriminator_forward.1
= control target key start
LH: loop header
LB: loop body
LE: loop exit
PB: predicated region body
PF: predicated region fallthrough
CT: control target
= control target key end

     0   :  { %s14314_s0 = inlined_call_operand.vmem [shape: f32[3000,3], index: 0, kind: input, shape index: {}]   ;;  %s14315_s1 = inlined_call_operand.vmem [shape: f32[3,256], index: 1, kind: input, shape index: {}]   ;;  %s14316_s2 = inlined_call_operand.vmem [shape: f32[1,256], index: 2, kind: input, shape index: {}]   ;;  %s14317_s3 = inlined_call_operand.vmem [shape: bf16[256,256], index: 3, kind: input, shape index: {}]   ;;  %s14318_s4 = inlined_call_operand.vmem [shape: f32[1,256], index: 4, kind: input, shape index: {}]   ;;  %s14319_s5 = inlined_call_operand.vmem [shape: f32[1,256], index: 5, kind: input, shape index: {}]   ;;  %s14320_s6 = inlined_call_operand.<no memory space> [shape: f32[1,1], index: 6, kind: input, shape index: {}]   ;;  %s14321_s7 = inlined_call_operand.vmem [shape: f32[3000,1], index: 7, kind: output, shape index: {}]  }
   0x1   :  { %v12_v0 = vstv %s14320_s6 }
   0x2   :  { %13 = vst [vmem:[#allocation2] sm:$0x1] %v12_v0 }
   0x3   :  { %s7113_s26 = smov 0   ;;  %s7115_s27 = smov 0  }
   0x4   :  { %s7117_s28 = smov 0  }
   0x5 LB: > { %s7126_s6 = sadd.s32 4294967295, %s7033_s28   ;;  %s7128_s29 = sadd.s32 1, %s7033_s28   ;;  %s7033_s28 = sphi %s7117_s28, %s16111_s28   ;;  %s7029_s27 = sphi %s7115_s27, %s16110_s27   ;;  %s7025_s26 = sphi %s7113_s26, %s16109_s26  }
   0x6   : > { %s175_s30 = ssub.s32 %s7033_s28, %s7128_s29  ;;  %s178_s8 = sadd.s32 1, %s7029_s27 }
   0x7   : > { %p176_p0 = scmp.eq.s32.totalorder %s175_s30, 0  ;;  %p188_p1 = scmp.ne.s32.totalorder %s7029_s27, %s7025_s26 }
   0x8   : > { %p189_p2 = scmp.eq.s32.totalorder %s7126_s6, 2  ;;  %p6602_p3 = scmp.ge.s32.totalorder %s7033_s28, 1 }
   0x9   : > { %s7136_s9 = scalar_select %p176_p0, %s7029_s27, %s178_s8  }
   0xa   : > { %p7138_p4 = por %p189_p2, %p188_p1  ;;  %p248_p5 = scmp.lt.s32.totalorder %s7033_s28, 4 }
   0xc   : > { %p249_p6 = pnand %p6602_p3, %p248_p5 }
   0xe   : > { %252 = sbr.rel (%p249_p6) target bundleno = 1609 (0x649), region = 48 }
  0x13   : > { %s7143_s11 = sshll.u32 %s7126_s6, 7  ;;  %v7067_v1 = vmov 0   ;;  %vm6002_vm0 = vcmask 7168   ;;  %s280_s28 = sand.u32 1, %s7025_s26  }
  0x14   : > { %6783 = vset.pattern.permute.xlu1 %v7067_v1  ;;  %6782 = vset.pattern.permute.xlu0 %v7067_v1  ;;  %p288_p7 = scmp.lt.s32.totalorder %s7143_s11, 374  ;;  %s12877_s26 = sshll.u32 %s280_s28, 10 }
  0x15   : > { %s12920_s30 = scalar_lea.vmem [#allocation3], %s12877_s26   ;;  %s6139_s8 = ssub.s32 (%p7138_p4), 375, %s7143_s11 }
  0x16   : > { %s289_s12 = scalar_select %p288_p7, %s7143_s11, 374 }
  0x17   : > { %p6140_p8 = scmp.lt.s32.totalorder (%p7138_p4), %s6139_s8, 128 }
  0x18   : > { %s6605_s13 = sshll.u32 %s289_s12, 3  ;;  %s6656_s12 = sshll.u32 (%p7138_p4), %s7126_s6, 10 }
  0x19   : > { %s7150_s16 = scalar_lea.vmem %s14314_s0, %s6605_s13  ;;  %s14115_s15 = scalar_lea.vmem (%p7138_p4), %s14321_s7, %s6656_s12  }
  0x1a   : > { %v7153_v2 = vld [vmem:[%s7150_s16 + $0x10] sm:$0xff]  ;;  %v7156_v3 = vld [vmem:[%s7150_s16] sm:$0xff]  ;;  %v7161_v4 = vld [vmem:[%s7150_s16 + $0x18] sm:$0xff] }
  0x1b   : > { %443 = vperm.xlu1 %6783, %v7153_v2   ;;  %433 = vperm.xlu0 %6782, %v7156_v3   ;;  %v7164_v5 = vld [vmem:[%s7150_s16 + $0x8] sm:$0xff]  ;;  %v7172_v7 = vld [vmem:[%s7150_s16 + $0x20] sm:$0xff]  ;;  %v7177_v8 = vld [vmem:[%s7150_s16 + $0x38] sm:$0xff] }
  0x1c   : > { %v7169_v6 = vld [vmem:[%s7150_s16 + $0x28] sm:$0xff]  ;;  %v7180_v9 = vld [vmem:[%s7150_s16 + $0x30] sm:$0xff]  ;;  %v7188_v11 = vld [vmem:[%s7150_s16 + $0x40] sm:$0xff] }
  0x1d   : > { %v7185_v10 = vld [vmem:[%s7150_s16 + $0x48] sm:$0xff]  ;;  %v7193_v12 = vld [vmem:[%s7150_s16 + $0x58] sm:$0xff]  ;;  %v7196_v13 = vld [vmem:[%s7150_s16 + $0x50] sm:$0xff] }
  0x1e   : > { %v7201_v14 = vld [vmem:[%s7150_s16 + $0x68] sm:$0xff]  ;;  %v7204_v15 = vld [vmem:[%s7150_s16 + $0x60] sm:$0xff]  ;;  %v7209_v16 = vld [vmem:[%s7150_s16 + $0x78] sm:$0xff] }
  0x1f   : > { %448 = vperm.xlu1 %6783, %v7161_v4   ;;  %438 = vperm.xlu0 %6782, %v7164_v5   ;;  %v7212_v17 = vld [vmem:[%s7150_s16 + $0x70] sm:$0xff]  ;;  %v7217_v18 = vld [vmem:[%s7150_s16 + $0x88] sm:$0xff]  ;;  %v7220_v19 = vld [vmem:[%s7150_s16 + $0x80] sm:$0xff] }
  0x20   : > { %v7225_v20 = vld [vmem:[%s7150_s16 + $0x98] sm:$0xff]  ;;  %v7228_v21 = vld [vmem:[%s7150_s16 + $0x90] sm:$0xff]  ;;  %v7233_v22 = vld [vmem:[%s7150_s16 + $0xa8] sm:$0xff] }
  0x21   : > { %v7236_v23 = vld [vmem:[%s7150_s16 + $0xa0] sm:$0xff]  ;;  %v7241_v24 = vld [vmem:[%s7150_s16 + $0xb8] sm:$0xff]  ;;  %v7244_v25 = vld [vmem:[%s7150_s16 + $0xb0] sm:$0xff] }
  0x22   : > { %v7249_v26 = vld [vmem:[%s7150_s16 + $0xc8] sm:$0xff]  ;;  %v7252_v27 = vld [vmem:[%s7150_s16 + $0xc0] sm:$0xff]  ;;  %v7257_v28 = vld [vmem:[%s7150_s16 + $0xd8] sm:$0xff] }
  0x23   : > { %458 = vperm.xlu1 %6783, %v7169_v6   ;;  %453 = vperm.xlu0 %6782, %v7172_v7   ;;  %v7260_v29 = vld [vmem:[%s7150_s16 + $0xd0] sm:$0xff]  ;;  %v7265_v30 = vld [vmem:[%s7150_s16 + $0xe8] sm:$0xff]  ;;  %v7268_v31 = vld [vmem:[%s7150_s16 + $0xe0] sm:$0xff] }
  0x24   : > { %v7273_v32 = vld [vmem:[%s7150_s16 + $0xf8] sm:$0xff]  ;;  %v7276_v33 = vld [vmem:[%s7150_s16 + $0xf0] sm:$0xff]  ;;  %v7281_v34 = vld [vmem:[%s7150_s16 + $0x108] sm:$0xff] }
  0x25   : > { %v7284_v35 = vld [vmem:[%s7150_s16 + $0x100] sm:$0xff]  ;;  %v7289_v36 = vld [vmem:[%s7150_s16 + $0x118] sm:$0xff]  ;;  %v7292_v37 = vld [vmem:[%s7150_s16 + $0x110] sm:$0xff] }
  0x26   : > { %v7297_v38 = vld [vmem:[%s7150_s16 + $0x128] sm:$0xff]  ;;  %v7300_v39 = vld [vmem:[%s7150_s16 + $0x120] sm:$0xff]  ;;  %v7305_v40 = vld [vmem:[%s7150_s16 + $0x138] sm:$0xff] }
  0x27   : > { %468 = vperm.xlu1 %6783, %v7177_v8   ;;  %463 = vperm.xlu0 %6782, %v7180_v9   ;;  %v7308_v41 = vld [vmem:[%s7150_s16 + $0x130] sm:$0xff]  ;;  %v7313_v42 = vld [vmem:[%s7150_s16 + $0x148] sm:$0xff]  ;;  %v7316_v43 = vld [vmem:[%s7150_s16 + $0x140] sm:$0xff] }
  0x28   : > { %v7321_v44 = vld [vmem:[%s7150_s16 + $0x158] sm:$0xff]  ;;  %v7324_v45 = vld [vmem:[%s7150_s16 + $0x150] sm:$0xff]  ;;  %v7329_v46 = vld [vmem:[%s7150_s16 + $0x168] sm:$0xff] }
  0x29   : > { %v7332_v47 = vld [vmem:[%s7150_s16 + $0x160] sm:$0xff]  ;;  %v7337_v48 = vld [vmem:[%s7150_s16 + $0x178] sm:$0xff]  ;;  %v7340_v49 = vld [vmem:[%s7150_s16 + $0x170] sm:$0xff] }
  0x2a   : > { %v7345_v50 = vld [vmem:[%s7150_s16 + $0x188] sm:$0xff]  ;;  %v7348_v51 = vld [vmem:[%s7150_s16 + $0x180] sm:$0xff]  ;;  %v7353_v52 = vld [vmem:[%s7150_s16 + $0x198] sm:$0xff] }
  0x2b   : > { %478 = vperm.xlu1 %6783, %v7185_v10   ;;  %473 = vperm.xlu0 %6782, %v7188_v11   ;;  %v7356_v53 = vld [vmem:[%s7150_s16 + $0x190] sm:$0xff]  ;;  %v7361_v54 = vld [vmem:[%s7150_s16 + $0x1a8] sm:$0xff]  ;;  %v7364_v55 = vld [vmem:[%s7150_s16 + $0x1a0] sm:$0xff] }
  0x2c   : > { %14538 = vst [vmem:[#allocation4_spill] sm:$0xff] %v7361_v54  ;;  %14539 = vst [vmem:[#allocation5_spill] sm:$0xff] %v7364_v55  ;;  %v7369_v56 = vld [vmem:[%s7150_s16 + $0x1b8] sm:$0xff]  ;;  %v7372_v57 = vld [vmem:[%s7150_s16 + $0x1b0] sm:$0xff] }
  0x2d   : > { %14540 = vst [vmem:[#allocation6_spill] sm:$0xff] %v7369_v56  ;;  %14541 = vst [vmem:[#allocation7_spill] sm:$0xff] %v7372_v57  ;;  %v7377_v58 = vld [vmem:[%s7150_s16 + $0x1c8] sm:$0xff]  ;;  %v7380_v59 = vld [vmem:[%s7150_s16 + $0x1c0] sm:$0xff] }
  0x2e   : > { %14542 = vst [vmem:[#allocation8_spill] sm:$0xff] %v7377_v58  ;;  %14543 = vst [vmem:[#allocation9_spill] sm:$0xff] %v7380_v59  ;;  %v7385_v60 = vld [vmem:[%s7150_s16 + $0x1d8] sm:$0xff]  ;;  %v7388_v61 = vld [vmem:[%s7150_s16 + $0x1d0] sm:$0xff] }
  0x2f   : > { %488 = vperm.xlu1 %6783, %v7193_v12   ;;  %483 = vperm.xlu0 %6782, %v7196_v13   ;;  %14544 = vst [vmem:[#allocation10_spill] sm:$0xff] %v7385_v60  ;;  %14545 = vst [vmem:[#allocation11_spill] sm:$0xff] %v7388_v61  ;;  %v7393_v62 = vld [vmem:[%s7150_s16 + $0x1e8] sm:$0xff]  ;;  %v7396_v63 = vld [vmem:[%s7150_s16 + $0x1e0] sm:$0xff] }
  0x30   : > { %14546 = vst [vmem:[#allocation12_spill] sm:$0xff] %v7393_v62  ;;  %14547 = vst [vmem:[#allocation13_spill] sm:$0xff] %v7396_v63  ;;  %v7401_v0 = vld [vmem:[%s7150_s16 + $0x1f8] sm:$0xff]  ;;  %v7404_v1 = vld [vmem:[%s7150_s16 + $0x1f0] sm:$0xff] }
  0x31   : > { %14548 = vst [vmem:[#allocation14_spill] sm:$0xff] %v7401_v0  ;;  %14549 = vst [vmem:[#allocation15_spill] sm:$0xff] %v7404_v1 }
  0x33   : > { %498 = vperm.xlu1 %6783, %v7201_v14   ;;  %493 = vperm.xlu0 %6782, %v7204_v15  }
  0x37   : > { %508 = vperm.xlu1 %6783, %v7209_v16   ;;  %503 = vperm.xlu0 %6782, %v7212_v17  }
  0x3b   : > { %518 = vperm.xlu1 %6783, %v7217_v18   ;;  %513 = vperm.xlu0 %6782, %v7220_v19  }
  0x3f   : > { %528 = vperm.xlu1 %6783, %v7225_v20   ;;  %523 = vperm.xlu0 %6782, %v7228_v21  }
  0x43   : > { %538 = vperm.xlu1 %6783, %v7233_v22   ;;  %533 = vperm.xlu0 %6782, %v7236_v23  }
  0x47   : > { %548 = vperm.xlu1 %6783, %v7241_v24   ;;  %543 = vperm.xlu0 %6782, %v7244_v25  }
  0x4b   : > { %558 = vperm.xlu1 %6783, %v7249_v26   ;;  %553 = vperm.xlu0 %6782, %v7252_v27  }
  0x4f   : > { %568 = vperm.xlu1 %6783, %v7257_v28   ;;  %563 = vperm.xlu0 %6782, %v7260_v29  }
  0x53   : > { %578 = vperm.xlu1 %6783, %v7265_v30   ;;  %573 = vperm.xlu0 %6782, %v7268_v31  }
  0x57   : > { %588 = vperm.xlu1 %6783, %v7273_v32   ;;  %583 = vperm.xlu0 %6782, %v7276_v33  }
  0x5b   : > { %598 = vperm.xlu1 %6783, %v7281_v34   ;;  %593 = vperm.xlu0 %6782, %v7284_v35  }
  0x5f   : > { %608 = vperm.xlu1 %6783, %v7289_v36   ;;  %603 = vperm.xlu0 %6782, %v7292_v37  }
  0x63   : > { %618 = vperm.xlu1 %6783, %v7297_v38   ;;  %613 = vperm.xlu0 %6782, %v7300_v39  }
  0x67   : > { %628 = vperm.xlu1 %6783, %v7305_v40   ;;  %623 = vperm.xlu0 %6782, %v7308_v41  }
  0x6b   : > { %638 = vperm.xlu1 %6783, %v7313_v42   ;;  %633 = vperm.xlu0 %6782, %v7316_v43  }
  0x6f   : > { %648 = vperm.xlu1 %6783, %v7321_v44   ;;  %643 = vperm.xlu0 %6782, %v7324_v45  }
  0x73   : > { %658 = vperm.xlu1 %6783, %v7329_v46   ;;  %653 = vperm.xlu0 %6782, %v7332_v47  }
  0x77   : > { %668 = vperm.xlu1 %6783, %v7337_v48   ;;  %663 = vperm.xlu0 %6782, %v7340_v49  }
  0x7b   : > { %678 = vperm.xlu1 %6783, %v7345_v50   ;;  %673 = vperm.xlu0 %6782, %v7348_v51  }
  0x7f   : > { %688 = vperm.xlu1 %6783, %v7353_v52   ;;  %683 = vperm.xlu0 %6782, %v7356_v53  }
  0x83   : > { %698 = vperm.xlu1 %6783, %v7361_v54   ;;  %693 = vperm.xlu0 %6782, %v7364_v55  }
  0x87   : > { %708 = vperm.xlu1 %6783, %v7369_v56   ;;  %703 = vperm.xlu0 %6782, %v7372_v57  }
  0x8b   : > { %718 = vperm.xlu1 %6783, %v7377_v58   ;;  %713 = vperm.xlu0 %6782, %v7380_v59   ;;  %v7416_v59 = vld [vmem:[%s7150_s16 + $0x200] sm:$0xff] }
  0x8c   : > { %14553 = vst [vmem:[#allocation19_spill] sm:$0xff] %v7416_v59 }
  0x8f   : > { %728 = vperm.xlu1 %6783, %v7385_v60   ;;  %723 = vperm.xlu0 %6782, %v7388_v61   ;;  %v7413_v61 = vld [vmem:[%s7150_s16 + $0x208] sm:$0xff] }
  0x90   : > { %14552 = vst [vmem:[#allocation18_spill] sm:$0xff] %v7413_v61 }
  0x93   : > { %738 = vperm.xlu1 %6783, %v7393_v62   ;;  %733 = vperm.xlu0 %6782, %v7396_v63  }
  0x96   : > { %v7406_v58 = vpop.permute.xlu1 %443  ;;  %v7408_v60 = vpop.permute.xlu0 %433 }
  0x97   : > { %14550 = vst [vmem:[#allocation16_spill] sm:$0xff] %v7406_v58  ;;  %14551 = vst [vmem:[#allocation17_spill] sm:$0xff] %v7408_v60  ;;  %748 = vperm.xlu1 %6783, %v7401_v0   ;;  %743 = vperm.xlu0 %6782, %v7404_v1   ;;  %v7425_v60 = vld [vmem:[%s7150_s16 + $0x218] sm:$0xff]  ;;  %v7428_v58 = vld [vmem:[%s7150_s16 + $0x210] sm:$0xff] }
  0x98   : > { %14556 = vst [vmem:[#allocation22_spill] sm:$0xff] %v7425_v60  ;;  %14557 = vst [vmem:[#allocation23_spill] sm:$0xff] %v7428_v58 }
  0x9a   : > { %v7418_v62 = vpop.permute.xlu1 %448  ;;  %v7420_v63 = vpop.permute.xlu0 %438 }
  0x9b   : > { %14554 = vst [vmem:[#allocation20_spill] sm:$0xff] %v7418_v62  ;;  %14555 = vst [vmem:[#allocation21_spill] sm:$0xff] %v7420_v63  ;;  %758 = vperm.xlu1 %6783, %v7413_v61   ;;  %753 = vperm.xlu0 %6782, %v7416_v59   ;;  %v7437_v63 = vld [vmem:[%s7150_s16 + $0x228] sm:$0xff]  ;;  %v7440_v62 = vld [vmem:[%s7150_s16 + $0x220] sm:$0xff] }
  0x9c   : > { %14560 = vst [vmem:[#allocation26_spill] sm:$0xff] %v7437_v63  ;;  %14561 = vst [vmem:[#allocation27_spill] sm:$0xff] %v7440_v62 }
  0x9e   : > { %v7430_v0 = vpop.permute.xlu1 %458  ;;  %v7432_v1 = vpop.permute.xlu0 %453 }
  0x9f   : > { %14558 = vst [vmem:[#allocation24_spill] sm:$0xff] %v7430_v0  ;;  %14559 = vst [vmem:[#allocation25_spill] sm:$0xff] %v7432_v1  ;;  %768 = vperm.xlu1 %6783, %v7425_v60   ;;  %763 = vperm.xlu0 %6782, %v7428_v58   ;;  %v7449_v1 = vld [vmem:[%s7150_s16 + $0x238] sm:$0xff]  ;;  %v7452_v0 = vld [vmem:[%s7150_s16 + $0x230] sm:$0xff] }
  0xa0   : > { %14564 = vst [vmem:[#allocation30_spill] sm:$0xff] %v7449_v1  ;;  %14565 = vst [vmem:[#allocation31_spill] sm:$0xff] %v7452_v0 }
  0xa2   : > { %v7442_v61 = vpop.permute.xlu1 %468  ;;  %v7444_v59 = vpop.permute.xlu0 %463 }
  0xa3   : > { %14562 = vst [vmem:[#allocation28_spill] sm:$0xff] %v7442_v61  ;;  %14563 = vst [vmem:[#allocation29_spill] sm:$0xff] %v7444_v59  ;;  %778 = vperm.xlu1 %6783, %v7437_v63   ;;  %773 = vperm.xlu0 %6782, %v7440_v62   ;;  %v7461_v59 = vld [vmem:[%s7150_s16 + $0x248] sm:$0xff]  ;;  %v7464_v61 = vld [vmem:[%s7150_s16 + $0x240] sm:$0xff] }
  0xa4   : > { %14568 = vst [vmem:[#allocation34_spill] sm:$0xff] %v7461_v59  ;;  %14569 = vst [vmem:[#allocation35_spill] sm:$0xff] %v7464_v61 }
  0xa6   : > { %v7454_v60 = vpop.permute.xlu1 %478  ;;  %v7456_v58 = vpop.permute.xlu0 %473 }
  0xa7   : > { %14566 = vst [vmem:[#allocation32_spill] sm:$0xff] %v7454_v60  ;;  %14567 = vst [vmem:[#allocation33_spill] sm:$0xff] %v7456_v58  ;;  %788 = vperm.xlu1 %6783, %v7449_v1   ;;  %783 = vperm.xlu0 %6782, %v7452_v0   ;;  %v7473_v58 = vld [vmem:[%s7150_s16 + $0x258] sm:$0xff]  ;;  %v7476_v60 = vld [vmem:[%s7150_s16 + $0x250] sm:$0xff] }
  0xa8   : > { %14572 = vst [vmem:[#allocation38_spill] sm:$0xff] %v7473_v58  ;;  %14573 = vst [vmem:[#allocation39_spill] sm:$0xff] %v7476_v60 }
  0xaa   : > { %v7466_v63 = vpop.permute.xlu1 %488  ;;  %v7468_v62 = vpop.permute.xlu0 %483 }
  0xab   : > { %14570 = vst [vmem:[#allocation36_spill] sm:$0xff] %v7466_v63  ;;  %14571 = vst [vmem:[#allocation37_spill] sm:$0xff] %v7468_v62  ;;  %798 = vperm.xlu1 %6783, %v7461_v59   ;;  %793 = vperm.xlu0 %6782, %v7464_v61   ;;  %v7485_v62 = vld [vmem:[%s7150_s16 + $0x268] sm:$0xff]  ;;  %v7488_v63 = vld [vmem:[%s7150_s16 + $0x260] sm:$0xff] }
  0xac   : > { %14576 = vst [vmem:[#allocation42_spill] sm:$0xff] %v7485_v62  ;;  %14577 = vst [vmem:[#allocation43_spill] sm:$0xff] %v7488_v63 }
  0xae   : > { %v7478_v1 = vpop.permute.xlu1 %498  ;;  %v7480_v0 = vpop.permute.xlu0 %493 }
  0xaf   : > { %14574 = vst [vmem:[#allocation40_spill] sm:$0xff] %v7478_v1  ;;  %14575 = vst [vmem:[#allocation41_spill] sm:$0xff] %v7480_v0  ;;  %808 = vperm.xlu1 %6783, %v7473_v58   ;;  %803 = vperm.xlu0 %6782, %v7476_v60   ;;  %v7497_v0 = vld [vmem:[%s7150_s16 + $0x278] sm:$0xff]  ;;  %v7500_v1 = vld [vmem:[%s7150_s16 + $0x270] sm:$0xff] }
  0xb0   : > { %14580 = vst [vmem:[#allocation46_spill] sm:$0xff] %v7497_v0  ;;  %14581 = vst [vmem:[#allocation47_spill] sm:$0xff] %v7500_v1 }
  0xb2   : > { %v7490_v59 = vpop.permute.xlu1 %508  ;;  %v7492_v61 = vpop.permute.xlu0 %503 }
  0xb3   : > { %14578 = vst [vmem:[#allocation44_spill] sm:$0xff] %v7490_v59  ;;  %14579 = vst [vmem:[#allocation45_spill] sm:$0xff] %v7492_v61  ;;  %818 = vperm.xlu1 %6783, %v7485_v62   ;;  %813 = vperm.xlu0 %6782, %v7488_v63   ;;  %v7509_v61 = vld [vmem:[%s7150_s16 + $0x288] sm:$0xff]  ;;  %v7512_v59 = vld [vmem:[%s7150_s16 + $0x280] sm:$0xff] }
  0xb4   : > { %14584 = vst [vmem:[#allocation50_spill] sm:$0xff] %v7509_v61  ;;  %14585 = vst [vmem:[#allocation51_spill] sm:$0xff] %v7512_v59 }
  0xb6   : > { %v7502_v58 = vpop.permute.xlu1 %518  ;;  %v7504_v60 = vpop.permute.xlu0 %513 }
  0xb7   : > { %14582 = vst [vmem:[#allocation48_spill] sm:$0xff] %v7502_v58  ;;  %14583 = vst [vmem:[#allocation49_spill] sm:$0xff] %v7504_v60  ;;  %828 = vperm.xlu1 %6783, %v7497_v0   ;;  %823 = vperm.xlu0 %6782, %v7500_v1   ;;  %v7521_v60 = vld [vmem:[%s7150_s16 + $0x298] sm:$0xff]  ;;  %v7524_v58 = vld [vmem:[%s7150_s16 + $0x290] sm:$0xff] }
  0xb8   : > { %14588 = vst [vmem:[#allocation54_spill] sm:$0xff] %v7521_v60  ;;  %14589 = vst [vmem:[#allocation55_spill] sm:$0xff] %v7524_v58 }
  0xba   : > { %v7514_v62 = vpop.permute.xlu1 %528  ;;  %v7516_v63 = vpop.permute.xlu0 %523 }
  0xbb   : > { %14586 = vst [vmem:[#allocation52_spill] sm:$0xff] %v7514_v62  ;;  %14587 = vst [vmem:[#allocation53_spill] sm:$0xff] %v7516_v63  ;;  %838 = vperm.xlu1 %6783, %v7509_v61   ;;  %833 = vperm.xlu0 %6782, %v7512_v59   ;;  %v7533_v63 = vld [vmem:[%s7150_s16 + $0x2a8] sm:$0xff]  ;;  %v7536_v62 = vld [vmem:[%s7150_s16 + $0x2a0] sm:$0xff] }
  0xbc   : > { %14592 = vst [vmem:[#allocation58_spill] sm:$0xff] %v7533_v63  ;;  %14593 = vst [vmem:[#allocation59_spill] sm:$0xff] %v7536_v62 }
  0xbe   : > { %v7526_v0 = vpop.permute.xlu1 %538  ;;  %v7528_v1 = vpop.permute.xlu0 %533 }
  0xbf   : > { %14590 = vst [vmem:[#allocation56_spill] sm:$0xff] %v7526_v0  ;;  %14591 = vst [vmem:[#allocation57_spill] sm:$0xff] %v7528_v1  ;;  %848 = vperm.xlu1 %6783, %v7521_v60   ;;  %843 = vperm.xlu0 %6782, %v7524_v58   ;;  %v7545_v1 = vld [vmem:[%s7150_s16 + $0x2b8] sm:$0xff]  ;;  %v7548_v0 = vld [vmem:[%s7150_s16 + $0x2b0] sm:$0xff] }
  0xc0   : > { %14596 = vst [vmem:[#allocation62_spill] sm:$0xff] %v7545_v1  ;;  %14597 = vst [vmem:[#allocation63_spill] sm:$0xff] %v7548_v0 }
  0xc2   : > { %v7538_v61 = vpop.permute.xlu1 %548  ;;  %v7540_v59 = vpop.permute.xlu0 %543 }
  0xc3   : > { %14594 = vst [vmem:[#allocation60_spill] sm:$0xff] %v7538_v61  ;;  %14595 = vst [vmem:[#allocation61_spill] sm:$0xff] %v7540_v59  ;;  %858 = vperm.xlu1 %6783, %v7533_v63   ;;  %853 = vperm.xlu0 %6782, %v7536_v62   ;;  %v7557_v59 = vld [vmem:[%s7150_s16 + $0x2c8] sm:$0xff]  ;;  %v7560_v61 = vld [vmem:[%s7150_s16 + $0x2c0] sm:$0xff] }
  0xc4   : > { %14600 = vst [vmem:[#allocation66_spill] sm:$0xff] %v7557_v59  ;;  %14601 = vst [vmem:[#allocation67_spill] sm:$0xff] %v7560_v61 }
  0xc6   : > { %v7550_v60 = vpop.permute.xlu1 %558  ;;  %v7552_v58 = vpop.permute.xlu0 %553 }
  0xc7   : > { %14598 = vst [vmem:[#allocation64_spill] sm:$0xff] %v7550_v60  ;;  %14599 = vst [vmem:[#allocation65_spill] sm:$0xff] %v7552_v58  ;;  %868 = vperm.xlu1 %6783, %v7545_v1   ;;  %863 = vperm.xlu0 %6782, %v7548_v0   ;;  %v7569_v58 = vld [vmem:[%s7150_s16 + $0x2d8] sm:$0xff]  ;;  %v7572_v60 = vld [vmem:[%s7150_s16 + $0x2d0] sm:$0xff] }
  0xc8   : > { %14604 = vst [vmem:[#allocation70_spill] sm:$0xff] %v7569_v58  ;;  %14605 = vst [vmem:[#allocation71_spill] sm:$0xff] %v7572_v60 }
  0xca   : > { %v7562_v63 = vpop.permute.xlu1 %568  ;;  %v7564_v62 = vpop.permute.xlu0 %563 }
  0xcb   : > { %14602 = vst [vmem:[#allocation68_spill] sm:$0xff] %v7562_v63  ;;  %14603 = vst [vmem:[#allocation69_spill] sm:$0xff] %v7564_v62  ;;  %878 = vperm.xlu1 %6783, %v7557_v59   ;;  %873 = vperm.xlu0 %6782, %v7560_v61   ;;  %v7581_v62 = vld [vmem:[%s7150_s16 + $0x2e8] sm:$0xff]  ;;  %v7584_v63 = vld [vmem:[%s7150_s16 + $0x2e0] sm:$0xff] }
  0xcc   : > { %14608 = vst [vmem:[#allocation74_spill] sm:$0xff] %v7581_v62  ;;  %14609 = vst [vmem:[#allocation75_spill] sm:$0xff] %v7584_v63 }
  0xce   : > { %v7574_v1 = vpop.permute.xlu1 %578  ;;  %v7576_v0 = vpop.permute.xlu0 %573 }
  0xcf   : > { %14606 = vst [vmem:[#allocation72_spill] sm:$0xff] %v7574_v1  ;;  %14607 = vst [vmem:[#allocation73_spill] sm:$0xff] %v7576_v0  ;;  %888 = vperm.xlu1 %6783, %v7569_v58   ;;  %883 = vperm.xlu0 %6782, %v7572_v60   ;;  %v7593_v0 = vld [vmem:[%s7150_s16 + $0x2f8] sm:$0xff]  ;;  %v7596_v1 = vld [vmem:[%s7150_s16 + $0x2f0] sm:$0xff] }
  0xd0   : > { %14612 = vst [vmem:[#allocation78_spill] sm:$0xff] %v7593_v0  ;;  %14613 = vst [vmem:[#allocation79_spill] sm:$0xff] %v7596_v1 }
  0xd2   : > { %v7586_v59 = vpop.permute.xlu1 %588  ;;  %v7588_v61 = vpop.permute.xlu0 %583 }
  0xd3   : > { %14610 = vst [vmem:[#allocation76_spill] sm:$0xff] %v7586_v59  ;;  %14611 = vst [vmem:[#allocation77_spill] sm:$0xff] %v7588_v61  ;;  %898 = vperm.xlu1 %6783, %v7581_v62   ;;  %893 = vperm.xlu0 %6782, %v7584_v63   ;;  %v7605_v61 = vld [vmem:[%s7150_s16 + $0x308] sm:$0xff]  ;;  %v7608_v59 = vld [vmem:[%s7150_s16 + $0x300] sm:$0xff] }
  0xd4   : > { %14616 = vst [vmem:[#allocation82_spill] sm:$0xff] %v7605_v61  ;;  %14617 = vst [vmem:[#allocation83_spill] sm:$0xff] %v7608_v59 }
  0xd6   : > { %v7598_v58 = vpop.permute.xlu1 %598  ;;  %v7600_v60 = vpop.permute.xlu0 %593 }
  0xd7   : > { %14614 = vst [vmem:[#allocation80_spill] sm:$0xff] %v7598_v58  ;;  %14615 = vst [vmem:[#allocation81_spill] sm:$0xff] %v7600_v60  ;;  %908 = vperm.xlu1 %6783, %v7593_v0   ;;  %903 = vperm.xlu0 %6782, %v7596_v1   ;;  %v7617_v60 = vld [vmem:[%s7150_s16 + $0x318] sm:$0xff]  ;;  %v7620_v58 = vld [vmem:[%s7150_s16 + $0x310] sm:$0xff] }
  0xd8   : > { %14620 = vst [vmem:[#allocation86_spill] sm:$0xff] %v7617_v60  ;;  %14621 = vst [vmem:[#allocation87_spill] sm:$0xff] %v7620_v58 }
  0xda   : > { %v7610_v62 = vpop.permute.xlu1 %608  ;;  %v7612_v63 = vpop.permute.xlu0 %603 }
  0xdb   : > { %14618 = vst [vmem:[#allocation84_spill] sm:$0xff] %v7610_v62  ;;  %14619 = vst [vmem:[#allocation85_spill] sm:$0xff] %v7612_v63  ;;  %918 = vperm.xlu1 %6783, %v7605_v61   ;;  %913 = vperm.xlu0 %6782, %v7608_v59   ;;  %v7629_v63 = vld [vmem:[%s7150_s16 + $0x328] sm:$0xff]  ;;  %v7632_v62 = vld [vmem:[%s7150_s16 + $0x320] sm:$0xff] }
  0xdc   : > { %14624 = vst [vmem:[#allocation90_spill] sm:$0xff] %v7629_v63  ;;  %14625 = vst [vmem:[#allocation91_spill] sm:$0xff] %v7632_v62 }
  0xde   : > { %v7622_v0 = vpop.permute.xlu1 %618  ;;  %v7624_v1 = vpop.permute.xlu0 %613 }
  0xdf   : > { %14622 = vst [vmem:[#allocation88_spill] sm:$0xff] %v7622_v0  ;;  %14623 = vst [vmem:[#allocation89_spill] sm:$0xff] %v7624_v1  ;;  %928 = vperm.xlu1 %6783, %v7617_v60   ;;  %923 = vperm.xlu0 %6782, %v7620_v58   ;;  %v7641_v1 = vld [vmem:[%s7150_s16 + $0x338] sm:$0xff]  ;;  %v7644_v0 = vld [vmem:[%s7150_s16 + $0x330] sm:$0xff] }
  0xe0   : > { %14628 = vst [vmem:[#allocation94_spill] sm:$0xff] %v7641_v1  ;;  %14629 = vst [vmem:[#allocation95_spill] sm:$0xff] %v7644_v0 }
  0xe2   : > { %v7634_v61 = vpop.permute.xlu1 %628  ;;  %v7636_v59 = vpop.permute.xlu0 %623 }
  0xe3   : > { %14626 = vst [vmem:[#allocation92_spill] sm:$0xff] %v7634_v61  ;;  %14627 = vst [vmem:[#allocation93_spill] sm:$0xff] %v7636_v59  ;;  %938 = vperm.xlu1 %6783, %v7629_v63   ;;  %933 = vperm.xlu0 %6782, %v7632_v62   ;;  %v7653_v59 = vld [vmem:[%s7150_s16 + $0x348] sm:$0xff]  ;;  %v7656_v61 = vld [vmem:[%s7150_s16 + $0x340] sm:$0xff] }
  0xe4   : > { %14632 = vst [vmem:[#allocation98_spill] sm:$0xff] %v7653_v59  ;;  %14633 = vst [vmem:[#allocation99_spill] sm:$0xff] %v7656_v61 }
  0xe6   : > { %v7646_v60 = vpop.permute.xlu1 %638  ;;  %v7648_v58 = vpop.permute.xlu0 %633 }
  0xe7   : > { %14630 = vst [vmem:[#allocation96_spill] sm:$0xff] %v7646_v60  ;;  %14631 = vst [vmem:[#allocation97_spill] sm:$0xff] %v7648_v58  ;;  %948 = vperm.xlu1 %6783, %v7641_v1   ;;  %943 = vperm.xlu0 %6782, %v7644_v0   ;;  %v7665_v58 = vld [vmem:[%s7150_s16 + $0x358] sm:$0xff]  ;;  %v7668_v60 = vld [vmem:[%s7150_s16 + $0x350] sm:$0xff] }
  0xe8   : > { %14636 = vst [vmem:[#allocation102_spill] sm:$0xff] %v7665_v58  ;;  %14637 = vst [vmem:[#allocation103_spill] sm:$0xff] %v7668_v60 }
  0xea   : > { %v7658_v63 = vpop.permute.xlu1 %648  ;;  %v7660_v62 = vpop.permute.xlu0 %643 }
  0xeb   : > { %14634 = vst [vmem:[#allocation100_spill] sm:$0xff] %v7658_v63  ;;  %14635 = vst [vmem:[#allocation101_spill] sm:$0xff] %v7660_v62  ;;  %958 = vperm.xlu1 %6783, %v7653_v59   ;;  %953 = vperm.xlu0 %6782, %v7656_v61   ;;  %v7677_v62 = vld [vmem:[%s7150_s16 + $0x368] sm:$0xff]  ;;  %v7680_v63 = vld [vmem:[%s7150_s16 + $0x360] sm:$0xff] }
  0xec   : > { %14640 = vst [vmem:[#allocation106_spill] sm:$0xff] %v7677_v62  ;;  %14641 = vst [vmem:[#allocation107_spill] sm:$0xff] %v7680_v63 }
  0xee   : > { %v7670_v1 = vpop.permute.xlu1 %658  ;;  %v7672_v0 = vpop.permute.xlu0 %653 }
  0xef   : > { %14638 = vst [vmem:[#allocation104_spill] sm:$0xff] %v7670_v1  ;;  %14639 = vst [vmem:[#allocation105_spill] sm:$0xff] %v7672_v0  ;;  %968 = vperm.xlu1 %6783, %v7665_v58   ;;  %963 = vperm.xlu0 %6782, %v7668_v60   ;;  %v7689_v0 = vld [vmem:[%s7150_s16 + $0x378] sm:$0xff]  ;;  %v7692_v1 = vld [vmem:[%s7150_s16 + $0x370] sm:$0xff] }
  0xf0   : > { %14644 = vst [vmem:[#allocation110_spill] sm:$0xff] %v7689_v0  ;;  %14645 = vst [vmem:[#allocation111_spill] sm:$0xff] %v7692_v1 }
  0xf2   : > { %v7682_v59 = vpop.permute.xlu1 %668  ;;  %v7684_v61 = vpop.permute.xlu0 %663 }
  0xf3   : > { %14642 = vst [vmem:[#allocation108_spill] sm:$0xff] %v7682_v59  ;;  %14643 = vst [vmem:[#allocation109_spill] sm:$0xff] %v7684_v61  ;;  %978 = vperm.xlu1 %6783, %v7677_v62   ;;  %973 = vperm.xlu0 %6782, %v7680_v63   ;;  %v7701_v61 = vld [vmem:[%s7150_s16 + $0x388] sm:$0xff]  ;;  %v7704_v59 = vld [vmem:[%s7150_s16 + $0x380] sm:$0xff] }
  0xf4   : > { %14648 = vst [vmem:[#allocation114_spill] sm:$0xff] %v7701_v61  ;;  %14649 = vst [vmem:[#allocation115_spill] sm:$0xff] %v7704_v59 }
  0xf6   : > { %v7694_v58 = vpop.permute.xlu1 %678  ;;  %v7696_v60 = vpop.permute.xlu0 %673 }
  0xf7   : > { %14646 = vst [vmem:[#allocation112_spill] sm:$0xff] %v7694_v58  ;;  %14647 = vst [vmem:[#allocation113_spill] sm:$0xff] %v7696_v60  ;;  %988 = vperm.xlu1 %6783, %v7689_v0   ;;  %983 = vperm.xlu0 %6782, %v7692_v1   ;;  %v7713_v60 = vld [vmem:[%s7150_s16 + $0x398] sm:$0xff]  ;;  %v7716_v58 = vld [vmem:[%s7150_s16 + $0x390] sm:$0xff] }
  0xf8   : > { %14652 = vst [vmem:[#allocation118_spill] sm:$0xff] %v7713_v60  ;;  %14653 = vst [vmem:[#allocation119_spill] sm:$0xff] %v7716_v58 }
  0xfa   : > { %v7706_v62 = vpop.permute.xlu1 %688  ;;  %v7708_v63 = vpop.permute.xlu0 %683 }
  0xfb   : > { %14650 = vst [vmem:[#allocation116_spill] sm:$0xff] %v7706_v62  ;;  %14651 = vst [vmem:[#allocation117_spill] sm:$0xff] %v7708_v63  ;;  %998 = vperm.xlu1 %6783, %v7701_v61   ;;  %993 = vperm.xlu0 %6782, %v7704_v59   ;;  %v419_v63 = vld [vmem:[%s7150_s16 + $0x3a8] sm:$0xff]  ;;  %v418_v62 = vld [vmem:[%s7150_s16 + $0x3a0] sm:$0xff] }
  0xfc   : > { %v421_v59 = vld [vmem:[%s7150_s16 + $0x3b8] sm:$0xff] }
  0xfe   : > { %v7718_v0 = vpop.permute.xlu1 %698  ;;  %v7720_v1 = vpop.permute.xlu0 %693 }
  0xff   : > { %14654 = vst [vmem:[#allocation120_spill] sm:$0xff] %v7718_v0  ;;  %14655 = vst [vmem:[#allocation121_spill] sm:$0xff] %v7720_v1  ;;  %1008 = vperm.xlu1 %6783, %v7713_v60   ;;  %1003 = vperm.xlu0 %6782, %v7716_v58   ;;  %v420_v0 = vld [vmem:[%s7150_s16 + $0x3b0] sm:$0xff]  ;;  %v423_v60 = vld [vmem:[%s7150_s16 + $0x3c8] sm:$0xff] }
 0x100   : > { %v422_v58 = vld [vmem:[%s7150_s16 + $0x3c0] sm:$0xff] }
 0x102   : > { %v7726_v56 = vpop.permute.xlu1 %708  ;;  %v7728_v61 = vpop.permute.xlu0 %703 }
 0x103   : > { %14656 = vst [vmem:[#allocation122_spill] sm:$0xff] %v7726_v56  ;;  %14657 = vst [vmem:[#allocation123_spill] sm:$0xff] %v7728_v61  ;;  %1018 = vperm.xlu1 %6783, %v419_v63   ;;  %1013 = vperm.xlu0 %6782, %v418_v62   ;;  %v425_v62 = vld [vmem:[%s7150_s16 + $0x3d8] sm:$0xff]  ;;  %v424_v63 = vld [vmem:[%s7150_s16 + $0x3d0] sm:$0xff] }
 0x106   : > { %v7732_v57 = vpop.permute.xlu1 %718  ;;  %v7734_v1 = vpop.permute.xlu0 %713 }
 0x107   : > { %14658 = vst [vmem:[#allocation124_spill] sm:$0xff] %v7732_v57  ;;  %14659 = vst [vmem:[#allocation125_spill] sm:$0xff] %v7734_v1  ;;  %1028 = vperm.xlu1 %6783, %v421_v59   ;;  %1023 = vperm.xlu0 %6782, %v420_v0   ;;  %v427_v59 = vld [vmem:[%s7150_s16 + $0x3e8] sm:$0xff]  ;;  %v426_v0 = vld [vmem:[%s7150_s16 + $0x3e0] sm:$0xff] }
 0x10a   : > { %v7738_v54 = vpop.permute.xlu1 %728  ;;  %v7740_v56 = vpop.permute.xlu0 %723 }
 0x10b   : > { %14660 = vst [vmem:[#allocation126_spill] sm:$0xff] %v7738_v54  ;;  %14661 = vst [vmem:[#allocation127_spill] sm:$0xff] %v7740_v56  ;;  %1038 = vperm.xlu1 %6783, %v423_v60   ;;  %1033 = vperm.xlu0 %6782, %v422_v58   ;;  %v429_v56 = vld [vmem:[%s7150_s16 + $0x3f8] sm:$0xff]  ;;  %v428_v54 = vld [vmem:[%s7150_s16 + $0x3f0] sm:$0xff] }
 0x10e   : > { %v7744_v61 = vpop.permute.xlu1 %738  ;;  %v7746_v57 = vpop.permute.xlu0 %733 }
 0x10f   : > { %14662 = vst [vmem:[#allocation128_spill] sm:$0xff] %v7744_v61  ;;  %1048 = vperm.xlu1 %6783, %v425_v62   ;;  %1043 = vperm.xlu0 %6782, %v424_v63   ;;  %v7068_v63 = vmov 1  }
 0x112   : > { %v7750_v1 = vpop.permute.xlu1 %748  ;;  %v7752_v55 = vpop.permute.xlu0 %743 }
 0x113   : > { %1058 = vperm.xlu1 %6783, %v427_v59   ;;  %1053 = vperm.xlu0 %6782, %v426_v0  }
 0x116   : > { %v7756_v60 = vpop.permute.xlu1 %758  ;;  %v7758_v58 = vpop.permute.xlu0 %753 }
 0x117   : > { %1068 = vperm.xlu1 %6783, %v429_v56   ;;  %1063 = vperm.xlu0 %6782, %v428_v54  }
 0x11a   : > { %v7760_v61 = vpop.permute.xlu1 %768  ;;  %v7762_v62 = vpop.permute.xlu0 %763 }
 0x11b   : > { %6785 = vset.pattern.permute.xlu1 %v7068_v63  ;;  %6784 = vset.pattern.permute.xlu0 %v7068_v63 }
 0x11c   : > { %1351 = vperm.xlu1 %6785, %v7164_v5   ;;  %1347 = vperm.xlu0 %6784, %v7156_v3  }
 0x11e   : > { %v7766_v59 = vpop.permute.xlu1 %778  ;;  %v7768_v0 = vpop.permute.xlu0 %773 }
 0x120   : > { %1355 = vperm.xlu1 %6785, %v7153_v2   ;;  %1359 = vperm.xlu0 %6784, %v7161_v4  }
 0x122   : > { %v7772_v54 = vpop.permute.xlu1 %788  ;;  %v7774_v56 = vpop.permute.xlu0 %783 }
 0x124   : > { %1363 = vperm.xlu1 %6785, %v7172_v7   ;;  %1367 = vperm.xlu0 %6784, %v7169_v6  }
 0x126   : > { %v7778_v63 = vpop.permute.xlu1 %798  ;;  %v7780_v5 = vpop.permute.xlu0 %793 }
 0x128   : > { %1371 = vperm.xlu1 %6785, %v7180_v9   ;;  %1375 = vperm.xlu0 %6784, %v7177_v8  }
 0x12a   : > { %v7784_v3 = vpop.permute.xlu1 %808  ;;  %v7786_v2 = vpop.permute.xlu0 %803 }
 0x12c   : > { %1379 = vperm.xlu1 %6785, %v7188_v11   ;;  %1383 = vperm.xlu0 %6784, %v7185_v10  }
 0x12e   : > { %v7790_v4 = vpop.permute.xlu1 %818  ;;  %v7792_v7 = vpop.permute.xlu0 %813 }
 0x130   : > { %1387 = vperm.xlu1 %6785, %v7196_v13   ;;  %1391 = vperm.xlu0 %6784, %v7193_v12  }
 0x132   : > { %v7796_v6 = vpop.permute.xlu1 %828  ;;  %v7798_v9 = vpop.permute.xlu0 %823 }
 0x134   : > { %1395 = vperm.xlu1 %6785, %v7204_v15   ;;  %1399 = vperm.xlu0 %6784, %v7201_v14  }
 0x136   : > { %v7802_v8 = vpop.permute.xlu1 %838  ;;  %v7804_v11 = vpop.permute.xlu0 %833 }
 0x138   : > { %1403 = vperm.xlu1 %6785, %v7212_v17   ;;  %1407 = vperm.xlu0 %6784, %v7209_v16  }
 0x13a   : > { %v7808_v10 = vpop.permute.xlu1 %848  ;;  %v7810_v13 = vpop.permute.xlu0 %843 }
 0x13c   : > { %1411 = vperm.xlu1 %6785, %v7220_v19   ;;  %1415 = vperm.xlu0 %6784, %v7217_v18  }
 0x13e   : > { %v7814_v12 = vpop.permute.xlu1 %858  ;;  %v7816_v15 = vpop.permute.xlu0 %853 }
 0x140   : > { %1419 = vperm.xlu1 %6785, %v7228_v21   ;;  %1423 = vperm.xlu0 %6784, %v7225_v20  }
 0x142   : > { %v7820_v14 = vpop.permute.xlu1 %868  ;;  %v7822_v17 = vpop.permute.xlu0 %863 }
 0x144   : > { %1427 = vperm.xlu1 %6785, %v7236_v23   ;;  %1431 = vperm.xlu0 %6784, %v7233_v22  }
 0x146   : > { %v7826_v16 = vpop.permute.xlu1 %878  ;;  %v7828_v19 = vpop.permute.xlu0 %873 }
 0x148   : > { %1435 = vperm.xlu1 %6785, %v7244_v25   ;;  %1439 = vperm.xlu0 %6784, %v7241_v24  }
 0x14a   : > { %v7832_v18 = vpop.permute.xlu1 %888  ;;  %v7834_v21 = vpop.permute.xlu0 %883 }
 0x14c   : > { %1443 = vperm.xlu1 %6785, %v7252_v27   ;;  %1447 = vperm.xlu0 %6784, %v7249_v26  }
 0x14e   : > { %v7838_v20 = vpop.permute.xlu1 %898  ;;  %v7840_v23 = vpop.permute.xlu0 %893 }
 0x150   : > { %1451 = vperm.xlu1 %6785, %v7260_v29   ;;  %1455 = vperm.xlu0 %6784, %v7257_v28  }
 0x152   : > { %v7844_v22 = vpop.permute.xlu1 %908  ;;  %v7846_v25 = vpop.permute.xlu0 %903 }
 0x154   : > { %1459 = vperm.xlu1 %6785, %v7268_v31   ;;  %1463 = vperm.xlu0 %6784, %v7265_v30  }
 0x156   : > { %v7850_v24 = vpop.permute.xlu1 %918  ;;  %v7852_v27 = vpop.permute.xlu0 %913 }
 0x158   : > { %1467 = vperm.xlu1 %6785, %v7276_v33   ;;  %1471 = vperm.xlu0 %6784, %v7273_v32  }
 0x15a   : > { %v7856_v26 = vpop.permute.xlu1 %928  ;;  %v7858_v29 = vpop.permute.xlu0 %923 }
 0x15c   : > { %1475 = vperm.xlu1 %6785, %v7284_v35   ;;  %1479 = vperm.xlu0 %6784, %v7281_v34  }
 0x15e   : > { %v7862_v28 = vpop.permute.xlu1 %938  ;;  %v7864_v31 = vpop.permute.xlu0 %933 }
 0x160   : > { %1483 = vperm.xlu1 %6785, %v7292_v37   ;;  %1487 = vperm.xlu0 %6784, %v7289_v36  }
 0x162   : > { %v7868_v30 = vpop.permute.xlu1 %948  ;;  %v7870_v33 = vpop.permute.xlu0 %943 }
 0x164   : > { %1491 = vperm.xlu1 %6785, %v7300_v39   ;;  %1495 = vperm.xlu0 %6784, %v7297_v38  }
 0x166   : > { %v7874_v32 = vpop.permute.xlu1 %958  ;;  %v7876_v35 = vpop.permute.xlu0 %953 }
 0x168   : > { %1499 = vperm.xlu1 %6785, %v7308_v41   ;;  %1503 = vperm.xlu0 %6784, %v7305_v40  }
 0x16a   : > { %v7880_v34 = vpop.permute.xlu1 %968  ;;  %v7882_v37 = vpop.permute.xlu0 %963 }
 0x16c   : > { %1507 = vperm.xlu1 %6785, %v7316_v43   ;;  %1511 = vperm.xlu0 %6784, %v7313_v42  }
 0x16e   : > { %v7886_v36 = vpop.permute.xlu1 %978  ;;  %v7888_v39 = vpop.permute.xlu0 %973 }
 0x16f   : > { %14663 = vst [vmem:[#allocation129_spill] sm:$0xff] %v7888_v39 }
 0x170   : > { %1515 = vperm.xlu1 %6785, %v7324_v45   ;;  %1519 = vperm.xlu0 %6784, %v7321_v44  }
 0x172   : > { %v7892_v38 = vpop.permute.xlu1 %988  ;;  %v7894_v41 = vpop.permute.xlu0 %983 }
 0x173   : > { %14664 = vst [vmem:[#allocation130_spill] sm:$0xff] %v7892_v38  ;;  %14665 = vst [vmem:[#allocation131_spill] sm:$0xff] %v7894_v41  ;;  %v14752_v38 = vld [vmem:[#allocation71_spill] sm:$0xff] }
 0x174   : > { %1523 = vperm.xlu1 %6785, %v7332_v47   ;;  %1527 = vperm.xlu0 %6784, %v7329_v46  }
 0x176   : > { %v7898_v40 = vpop.permute.xlu1 %998  ;;  %v7900_v43 = vpop.permute.xlu0 %993 }
 0x177   : > { %14666 = vst [vmem:[#allocation132_spill] sm:$0xff] %v7898_v40  ;;  %14667 = vst [vmem:[#allocation133_spill] sm:$0xff] %v7900_v43  ;;  %v14749_v40 = vld [vmem:[#allocation66_spill] sm:$0xff] }
 0x178   : > { %1531 = vperm.xlu1 %6785, %v7340_v49   ;;  %1535 = vperm.xlu0 %6784, %v7337_v48   ;;  %v14674_v48 = vld [vmem:[#allocation5_spill] sm:$0xff] }
 0x17a   : > { %v7904_v42 = vpop.permute.xlu1 %1008  ;;  %v7906_v45 = vpop.permute.xlu0 %1003 }
 0x17b   : > { %14668 = vst [vmem:[#allocation134_spill] sm:$0xff] %v7904_v42  ;;  %14669 = vst [vmem:[#allocation135_spill] sm:$0xff] %v7906_v45  ;;  %v14675_v42 = vld [vmem:[#allocation4_spill] sm:$0xff] }
 0x17c   : > { %1539 = vperm.xlu1 %6785, %v7348_v51   ;;  %1543 = vperm.xlu0 %6784, %v7345_v50   ;;  %v14678_v50 = vld [vmem:[#allocation7_spill] sm:$0xff] }
 0x17e   : > { %v7910_v44 = vpop.permute.xlu1 %1018  ;;  %v7912_v47 = vpop.permute.xlu0 %1013 }
 0x17f   : > { %14670 = vst [vmem:[#allocation136_spill] sm:$0xff] %v7910_v44  ;;  %14671 = vst [vmem:[#allocation137_spill] sm:$0xff] %v7912_v47  ;;  %v14679_v44 = vld [vmem:[#allocation6_spill] sm:$0xff] }
 0x180   : > { %1547 = vperm.xlu1 %6785, %v7356_v53   ;;  %1551 = vperm.xlu0 %6784, %v7353_v52   ;;  %v14682_v52 = vld [vmem:[#allocation9_spill] sm:$0xff] }
 0x182   : > { %v7916_v46 = vpop.permute.xlu1 %1028  ;;  %v7918_v49 = vpop.permute.xlu0 %1023 }
 0x183   : > { %14672 = vst [vmem:[#allocation138_spill] sm:$0xff] %v7916_v46  ;;  %14673 = vst [vmem:[#allocation139_spill] sm:$0xff] %v7918_v49  ;;  %v14683_v46 = vld [vmem:[#allocation8_spill] sm:$0xff] }
 0x184   : > { %1555 = vperm.xlu1 %6785, %v14674_v48   ;;  %1559 = vperm.xlu0 %6784, %v14675_v42   ;;  %v14686_v42 = vld [vmem:[#allocation11_spill] sm:$0xff] }
 0x186   : > { %v7922_v45 = vpop.permute.xlu1 %1038  ;;  %v7924_v51 = vpop.permute.xlu0 %1033 }
 0x187   : > { %14676 = vst [vmem:[#allocation5_spill] sm:$0xff] %v7922_v45  ;;  %14677 = vst [vmem:[#allocation4_spill] sm:$0xff] %v7924_v51  ;;  %v14687_v45 = vld [vmem:[#allocation10_spill] sm:$0xff] }
 0x188   : > { %1563 = vperm.xlu1 %6785, %v14678_v50   ;;  %1567 = vperm.xlu0 %6784, %v14679_v44   ;;  %v14690_v44 = vld [vmem:[#allocation13_spill] sm:$0xff] }
 0x18a   : > { %v7928_v47 = vpop.permute.xlu1 %1048  ;;  %v7930_v53 = vpop.permute.xlu0 %1043 }
 0x18b   : > { %14680 = vst [vmem:[#allocation7_spill] sm:$0xff] %v7928_v47  ;;  %14681 = vst [vmem:[#allocation6_spill] sm:$0xff] %v7930_v53  ;;  %v14691_v47 = vld [vmem:[#allocation12_spill] sm:$0xff] }
 0x18c   : > { %1571 = vperm.xlu1 %6785, %v14682_v52   ;;  %1575 = vperm.xlu0 %6784, %v14683_v46   ;;  %v14694_v46 = vld [vmem:[#allocation15_spill] sm:$0xff] }
 0x18e   : > { %v7934_v49 = vpop.permute.xlu1 %1058  ;;  %v7936_v48 = vpop.permute.xlu0 %1053 }
 0x18f   : > { %14684 = vst [vmem:[#allocation9_spill] sm:$0xff] %v7934_v49  ;;  %14685 = vst [vmem:[#allocation8_spill] sm:$0xff] %v7936_v48  ;;  %v14695_v49 = vld [vmem:[#allocation14_spill] sm:$0xff] }
 0x190   : > { %1579 = vperm.xlu1 %6785, %v14686_v42   ;;  %1583 = vperm.xlu0 %6784, %v14687_v45   ;;  %v14698_v45 = vld [vmem:[#allocation19_spill] sm:$0xff] }
 0x192   : > { %v7940_v51 = vpop.permute.xlu1 %1068  ;;  %v7942_v50 = vpop.permute.xlu0 %1063 }
 0x193   : > { %14688 = vst [vmem:[#allocation11_spill] sm:$0xff] %v7940_v51  ;;  %14689 = vst [vmem:[#allocation10_spill] sm:$0xff] %v7942_v50  ;;  %v14699_v51 = vld [vmem:[#allocation18_spill] sm:$0xff] }
 0x194   : > { %1587 = vperm.xlu1 %6785, %v14690_v44   ;;  %1591 = vperm.xlu0 %6784, %v14691_v47   ;;  %v14702_v47 = vld [vmem:[#allocation23_spill] sm:$0xff] }
 0x197   : > { %v7946_v53 = vpop.permute.xlu1 %1351  ;;  %v7948_v52 = vpop.permute.xlu0 %1347 }
 0x198   : > { %14692 = vst [vmem:[#allocation13_spill] sm:$0xff] %v7946_v53  ;;  %14693 = vst [vmem:[#allocation12_spill] sm:$0xff] %v7948_v52  ;;  %1595 = vperm.xlu1 %6785, %v14694_v46   ;;  %1599 = vperm.xlu0 %6784, %v14695_v49   ;;  %v14703_v53 = vld [vmem:[#allocation22_spill] sm:$0xff]  ;;  %v14706_v49 = vld [vmem:[#allocation27_spill] sm:$0xff] }
 0x19b   : > { %v7952_v48 = vpop.permute.xlu1 %1355  ;;  %v7954_v42 = vpop.permute.xlu0 %1359 }
 0x19c   : > { %14696 = vst [vmem:[#allocation15_spill] sm:$0xff] %v7952_v48  ;;  %14697 = vst [vmem:[#allocation14_spill] sm:$0xff] %v7954_v42  ;;  %1603 = vperm.xlu1 %6785, %v14698_v45   ;;  %1607 = vperm.xlu0 %6784, %v14699_v51   ;;  %v14707_v48 = vld [vmem:[#allocation26_spill] sm:$0xff]  ;;  %v14710_v51 = vld [vmem:[#allocation31_spill] sm:$0xff] }
 0x19f   : > { %v7958_v50 = vpop.permute.xlu1 %1363  ;;  %v7960_v44 = vpop.permute.xlu0 %1367 }
 0x1a0   : > { %14700 = vst [vmem:[#allocation19_spill] sm:$0xff] %v7958_v50  ;;  %14701 = vst [vmem:[#allocation18_spill] sm:$0xff] %v7960_v44  ;;  %1611 = vperm.xlu1 %6785, %v14702_v47   ;;  %1615 = vperm.xlu0 %6784, %v14703_v53   ;;  %v14711_v50 = vld [vmem:[#allocation30_spill] sm:$0xff]  ;;  %v14714_v53 = vld [vmem:[#allocation35_spill] sm:$0xff] }
 0x1a3   : > { %v7964_v52 = vpop.permute.xlu1 %1371  ;;  %v7966_v46 = vpop.permute.xlu0 %1375 }
 0x1a4   : > { %14704 = vst [vmem:[#allocation23_spill] sm:$0xff] %v7964_v52  ;;  %14705 = vst [vmem:[#allocation22_spill] sm:$0xff] %v7966_v46  ;;  %1619 = vperm.xlu1 %6785, %v14706_v49   ;;  %1623 = vperm.xlu0 %6784, %v14707_v48   ;;  %v14715_v52 = vld [vmem:[#allocation34_spill] sm:$0xff]  ;;  %v14718_v48 = vld [vmem:[#allocation39_spill] sm:$0xff] }
 0x1a7   : > { %v7970_v42 = vpop.permute.xlu1 %1379  ;;  %v7972_v45 = vpop.permute.xlu0 %1383 }
 0x1a8   : > { %14708 = vst [vmem:[#allocation27_spill] sm:$0xff] %v7970_v42  ;;  %14709 = vst [vmem:[#allocation26_spill] sm:$0xff] %v7972_v45  ;;  %1627 = vperm.xlu1 %6785, %v14710_v51   ;;  %1631 = vperm.xlu0 %6784, %v14711_v50   ;;  %v14719_v42 = vld [vmem:[#allocation38_spill] sm:$0xff]  ;;  %v14722_v50 = vld [vmem:[#allocation43_spill] sm:$0xff] }
 0x1ab   : > { %v7976_v44 = vpop.permute.xlu1 %1387  ;;  %v7978_v47 = vpop.permute.xlu0 %1391 }
 0x1ac   : > { %14712 = vst [vmem:[#allocation31_spill] sm:$0xff] %v7976_v44  ;;  %14713 = vst [vmem:[#allocation30_spill] sm:$0xff] %v7978_v47  ;;  %1635 = vperm.xlu1 %6785, %v14714_v53   ;;  %1639 = vperm.xlu0 %6784, %v14715_v52   ;;  %v14723_v44 = vld [vmem:[#allocation42_spill] sm:$0xff]  ;;  %v14726_v52 = vld [vmem:[#allocation47_spill] sm:$0xff] }
 0x1af   : > { %v7982_v46 = vpop.permute.xlu1 %1395  ;;  %v7984_v49 = vpop.permute.xlu0 %1399 }
 0x1b0   : > { %14716 = vst [vmem:[#allocation35_spill] sm:$0xff] %v7982_v46  ;;  %14717 = vst [vmem:[#allocation34_spill] sm:$0xff] %v7984_v49  ;;  %1643 = vperm.xlu1 %6785, %v14718_v48   ;;  %1647 = vperm.xlu0 %6784, %v14719_v42   ;;  %v14727_v46 = vld [vmem:[#allocation46_spill] sm:$0xff]  ;;  %v14730_v42 = vld [vmem:[#allocation51_spill] sm:$0xff] }
 0x1b3   : > { %v7988_v45 = vpop.permute.xlu1 %1403  ;;  %v7990_v51 = vpop.permute.xlu0 %1407 }
 0x1b4   : > { %14720 = vst [vmem:[#allocation39_spill] sm:$0xff] %v7988_v45  ;;  %14721 = vst [vmem:[#allocation38_spill] sm:$0xff] %v7990_v51  ;;  %1651 = vperm.xlu1 %6785, %v14722_v50   ;;  %1655 = vperm.xlu0 %6784, %v14723_v44   ;;  %v14731_v45 = vld [vmem:[#allocation50_spill] sm:$0xff]  ;;  %v1072_v51 = vlaneseq }
 0x1b7   : > { %v7994_v47 = vpop.permute.xlu1 %1411  ;;  %v7996_v53 = vpop.permute.xlu0 %1415 }
 0x1b8   : > { %14724 = vst [vmem:[#allocation43_spill] sm:$0xff] %v7994_v47  ;;  %14725 = vst [vmem:[#allocation42_spill] sm:$0xff] %v7996_v53  ;;  %1659 = vperm.xlu1 %6785, %v14726_v52   ;;  %1663 = vperm.xlu0 %6784, %v14727_v46   ;;  %v14734_v47 = vld [vmem:[#allocation55_spill] sm:$0xff]  ;;  %v14735_v53 = vld [vmem:[#allocation54_spill] sm:$0xff]  ;;  %v8012_v52 = vshrl.u32 %v1072_v51, 7 }
 0x1ba   : > { %14736 = vst [vmem:[#allocation55_spill] sm:$0xff] %v8012_v52 }
 0x1bb   : > { %v8000_v49 = vpop.permute.xlu1 %1419  ;;  %v8002_v48 = vpop.permute.xlu0 %1423 }
 0x1bc   : > { %14728 = vst [vmem:[#allocation47_spill] sm:$0xff] %v8000_v49  ;;  %14729 = vst [vmem:[#allocation46_spill] sm:$0xff] %v8002_v48  ;;  %1667 = vperm.xlu1 %6785, %v14730_v42   ;;  %1671 = vperm.xlu0 %6784, %v14731_v45   ;;  %v14739_v48 = vld [vmem:[#allocation59_spill] sm:$0xff]  ;;  %v14740_v42 = vld [vmem:[#allocation58_spill] sm:$0xff]  ;;  %v8021_v45 = vsub.s32 0, %v8012_v52 }
 0x1be   : > { %14741 = vst [vmem:[#allocation59_spill] sm:$0xff] %v8021_v45 }
 0x1bf   : > { %v8006_v50 = vpop.permute.xlu1 %1427  ;;  %v8008_v44 = vpop.permute.xlu0 %1431 }
 0x1c0   : > { %14732 = vst [vmem:[#allocation51_spill] sm:$0xff] %v8006_v50  ;;  %14733 = vst [vmem:[#allocation50_spill] sm:$0xff] %v8008_v44  ;;  %1675 = vperm.xlu1 %6785, %v14734_v47   ;;  %1679 = vperm.xlu0 %6784, %v14735_v53   ;;  %v1078_v50 = vsub.s32 4, %v8012_v52  ;;  %v8029_v47 = vld [vmem:[%s14315_s1] sm:$0x77] }
 0x1c1   : > { %v14744_v53 = vld [vmem:[#allocation63_spill] sm:$0xff] }
 0x1c3   : > { %v8014_v46 = vpop.permute.xlu1 %1435  ;;  %v8016_v49 = vpop.permute.xlu0 %1439 }
 0x1c4   : > { %14737 = vst [vmem:[#allocation54_spill] sm:$0xff] %v8014_v46  ;;  %14738 = vst [vmem:[#allocation140_spill] sm:$0xff] %v8016_v49  ;;  %1683 = vperm.xlu1 %6785, %v14739_v48   ;;  %1687 = vperm.xlu0 %6784, %v14740_v42   ;;  %v14745_v49 = vld [vmem:[#allocation62_spill] sm:$0xff]  ;;  %v1075_v48 = vrot.slane %v8029_v47, %v8021_v45  ;;  %v1079_v42 = vrot.slane %v8029_v47, %v1078_v50 }
 0x1c5   : > { %v14753_v50 = vld [vmem:[#allocation70_spill] sm:$0xff] }
 0x1c6   : > { %v8045_v41 = vrot.slane %v1075_v48, %v8021_v45 }
 0x1c7   : > { %v8024_v44 = vpop.permute.xlu1 %1443  ;;  %v8031_v51 = vpop.permute.xlu0 %1447 }
 0x1c8   : > { %14742 = vst [vmem:[#allocation58_spill] sm:$0xff] %v8024_v44  ;;  %14743 = vst [vmem:[#allocation141_spill] sm:$0xff] %v8031_v51  ;;  %1691 = vperm.xlu1 %6785, %v14744_v53   ;;  %1695 = vperm.xlu0 %6784, %v14745_v49   ;;  %v14748_v44 = vld [vmem:[#allocation67_spill] sm:$0xff]  ;;  %v8048_v53 = vrot.slane %v1079_v42, %v8021_v45 }
 0x1cb   : > { %v8038_v46 = vpop.permute.xlu1 %1451  ;;  %v8040_v43 = vpop.permute.xlu0 %1455 }
 0x1cc   : > { %14746 = vst [vmem:[#allocation63_spill] sm:$0xff] %v8038_v46  ;;  %14747 = vst [vmem:[#allocation62_spill] sm:$0xff] %v8040_v43  ;;  %1699 = vperm.xlu1 %6785, %v14748_v44   ;;  %1703 = vperm.xlu0 %6784, %v14749_v40   ;;  %v14754_v46 = vld [vmem:[#allocation16_spill] sm:$0xff]  ;;  %v14757_v44 = vld [vmem:[#allocation17_spill] sm:$0xff] }
 0x1cd   : > { %v8058_v43 = vmul.f32 %v8045_v41, %v14754_v46  ;;  %v8062_v40 = vmul.f32 %v8048_v53, %v14754_v46  ;;  %v8066_v48 = vmul.f32 %v8045_v41, %v14757_v44  ;;  %v8070_v42 = vmul.f32 %v8048_v53, %v14757_v44  ;;  %v14764_v46 = vld [vmem:[#allocation21_spill] sm:$0xff] }
 0x1cf   : > { %v8050_v49 = vpop.permute.xlu1 %1459  ;;  %v8052_v51 = vpop.permute.xlu0 %1463  ;;  %14755 = vst [vmem:[#allocation71_spill] sm:$0xff] %v8058_v43  ;;  %14756 = vst [vmem:[#allocation70_spill] sm:$0xff] %v8062_v40  ;;  %v8088_v40 = vmul.f32 %v8048_v53, %v14764_v46  ;;  %v14768_v43 = vld [vmem:[#allocation75_spill] sm:$0xff] }
 0x1d0   : > { %14750 = vst [vmem:[#allocation67_spill] sm:$0xff] %v8050_v49  ;;  %14751 = vst [vmem:[#allocation66_spill] sm:$0xff] %v8052_v51  ;;  %1707 = vperm.xlu1 %6785, %v14752_v38   ;;  %1711 = vperm.xlu0 %6784, %v14753_v50   ;;  %v14761_v38 = vld [vmem:[#allocation20_spill] sm:$0xff]  ;;  %v8084_v49 = vmul.f32 %v8045_v41, %v14764_v46 }
 0x1d1   : > { %14758 = vst [vmem:[#allocation16_spill] sm:$0xff] %v8066_v48  ;;  %14759 = vst [vmem:[#allocation17_spill] sm:$0xff] %v8070_v42  ;;  %v8076_v50 = vmul.f32 %v8045_v41, %v14761_v38  ;;  %v8080_v51 = vmul.f32 %v8048_v53, %v14761_v38  ;;  %v14775_v48 = vld [vmem:[#allocation74_spill] sm:$0xff] }
 0x1d2   : > { %14765 = vst [vmem:[#allocation21_spill] sm:$0xff] %v8084_v49  ;;  %14766 = vst [vmem:[#allocation144_spill] sm:$0xff] %v8088_v40 }
 0x1d3   : > { %v8072_v45 = vpop.permute.xlu1 %1467  ;;  %14762 = vst [vmem:[#allocation20_spill] sm:$0xff] %v8076_v50  ;;  %14763 = vst [vmem:[#allocation143_spill] sm:$0xff] %v8080_v51  ;;  %v8090_v44 = vpop.permute.xlu0 %1471  ;;  %v14772_v51 = vld [vmem:[#allocation25_spill] sm:$0xff] }
 0x1d4   : > { %14760 = vst [vmem:[#allocation142_spill] sm:$0xff] %v8072_v45  ;;  %14767 = vst [vmem:[#allocation145_spill] sm:$0xff] %v8090_v44  ;;  %1715 = vperm.xlu1 %6785, %v14768_v43   ;;  %v14769_v45 = vld [vmem:[#allocation24_spill] sm:$0xff]  ;;  %v8103_v50 = vmul.f32 %v8045_v41, %v14772_v51  ;;  %v8107_v46 = vmul.f32 %v8048_v53, %v14772_v51  ;;  %1719 = vperm.xlu0 %6784, %v14775_v48  }
 0x1d5   : > { %v8095_v42 = vmul.f32 %v8045_v41, %v14769_v45  ;;  %v8099_v38 = vmul.f32 %v8048_v53, %v14769_v45  ;;  %v14776_v44 = vld [vmem:[#allocation28_spill] sm:$0xff]  ;;  %v14779_v45 = vld [vmem:[#allocation29_spill] sm:$0xff] }
 0x1d6   : > { %14773 = vst [vmem:[#allocation25_spill] sm:$0xff] %v8103_v50  ;;  %14774 = vst [vmem:[#allocation146_spill] sm:$0xff] %v8107_v46  ;;  %v8112_v43 = vmul.f32 %v8045_v41, %v14776_v44  ;;  %v8124_v50 = vmul.f32 %v8048_v53, %v14779_v45  ;;  %v14782_v51 = vld [vmem:[#allocation32_spill] sm:$0xff] }
 0x1d7   : > { %14770 = vst [vmem:[#allocation75_spill] sm:$0xff] %v8095_v42  ;;  %14771 = vst [vmem:[#allocation24_spill] sm:$0xff] %v8099_v38  ;;  %v8116_v42 = vmul.f32 %v8048_v53, %v14776_v44  ;;  %v8120_v38 = vmul.f32 %v8045_v41, %v14779_v45  ;;  %v8128_v46 = vmul.f32 %v8045_v41, %v14782_v51  ;;  %v14789_v45 = vld [vmem:[#allocation36_spill] sm:$0xff] }
 0x1d8   : > { %14777 = vst [vmem:[#allocation74_spill] sm:$0xff] %v8112_v43  ;;  %14781 = vst [vmem:[#allocation147_spill] sm:$0xff] %v8124_v50  ;;  %v8132_v48 = vmul.f32 %v8048_v53, %v14782_v51  ;;  %v14785_v43 = vld [vmem:[#allocation33_spill] sm:$0xff]  ;;  %v8146_v50 = vmul.f32 %v8045_v41, %v14789_v45 }
 0x1d9   : > { %14778 = vst [vmem:[#allocation28_spill] sm:$0xff] %v8116_v42  ;;  %14780 = vst [vmem:[#allocation29_spill] sm:$0xff] %v8120_v38  ;;  %v8136_v44 = vmul.f32 %v8045_v41, %v14785_v43  ;;  %v8140_v42 = vmul.f32 %v8048_v53, %v14785_v43  ;;  %v8142_v38 = vpop.permute.xlu1 %1475  ;;  %v14792_v51 = vld [vmem:[#allocation37_spill] sm:$0xff]  ;;  %v8160_v43 = vpop.permute.xlu0 %1479 }
 0x1da   : > { %14783 = vst [vmem:[#allocation32_spill] sm:$0xff] %v8128_v46  ;;  %14784 = vst [vmem:[#allocation148_spill] sm:$0xff] %v8132_v48  ;;  %v8150_v46 = vmul.f32 %v8048_v53, %v14789_v45  ;;  %v8154_v48 = vmul.f32 %v8045_v41, %v14792_v51 }
 0x1db   : > { %14786 = vst [vmem:[#allocation33_spill] sm:$0xff] %v8136_v44  ;;  %14787 = vst [vmem:[#allocation149_spill] sm:$0xff] %v8140_v42  ;;  %v8158_v44 = vmul.f32 %v8048_v53, %v14792_v51  ;;  %v14796_v42 = vld [vmem:[#allocation79_spill] sm:$0xff] }
 0x1dc   : > { %14788 = vst [vmem:[#allocation150_spill] sm:$0xff] %v8142_v38  ;;  %14790 = vst [vmem:[#allocation36_spill] sm:$0xff] %v8146_v50  ;;  %1723 = vperm.xlu1 %6785, %v14796_v42   ;;  %v14797_v38 = vld [vmem:[#allocation40_spill] sm:$0xff] }
 0x1dd   : > { %14791 = vst [vmem:[#allocation151_spill] sm:$0xff] %v8150_v46  ;;  %14793 = vst [vmem:[#allocation37_spill] sm:$0xff] %v8154_v48  ;;  %v8165_v40 = vmul.f32 %v8045_v41, %v14797_v38  ;;  %v8169_v45 = vmul.f32 %v8048_v53, %v14797_v38  ;;  %v14800_v46 = vld [vmem:[#allocation41_spill] sm:$0xff] }
 0x1de   : > { %14794 = vst [vmem:[#allocation152_spill] sm:$0xff] %v8158_v44  ;;  %14795 = vst [vmem:[#allocation153_spill] sm:$0xff] %v8160_v43  ;;  %v8173_v50 = vmul.f32 %v8045_v41, %v14800_v46  ;;  %v8177_v51 = vmul.f32 %v8048_v53, %v14800_v46  ;;  %v14803_v44 = vld [vmem:[#allocation78_spill] sm:$0xff]  ;;  %v14804_v43 = vld [vmem:[#allocation44_spill] sm:$0xff] }
 0x1df   : > { %14798 = vst [vmem:[#allocation79_spill] sm:$0xff] %v8165_v40  ;;  %14799 = vst [vmem:[#allocation40_spill] sm:$0xff] %v8169_v45  ;;  %1727 = vperm.xlu0 %6784, %v14803_v44   ;;  %v8182_v42 = vmul.f32 %v8045_v41, %v14804_v43  ;;  %v8186_v40 = vmul.f32 %v8048_v53, %v14804_v43  ;;  %v14807_v38 = vld [vmem:[#allocation45_spill] sm:$0xff]  ;;  %v14810_v46 = vld [vmem:[#allocation48_spill] sm:$0xff] }
 0x1e0   : > { %14801 = vst [vmem:[#allocation41_spill] sm:$0xff] %v8173_v50  ;;  %14802 = vst [vmem:[#allocation154_spill] sm:$0xff] %v8177_v51  ;;  %v8190_v45 = vmul.f32 %v8045_v41, %v14807_v38  ;;  %v8194_v50 = vmul.f32 %v8048_v53, %v14807_v38  ;;  %v8198_v51 = vmul.f32 %v8045_v41, %v14810_v46  ;;  %v14817_v38 = vld [vmem:[#allocation52_spill] sm:$0xff] }
 0x1e1   : > { %14805 = vst [vmem:[#allocation78_spill] sm:$0xff] %v8182_v42  ;;  %14806 = vst [vmem:[#allocation44_spill] sm:$0xff] %v8186_v40  ;;  %v8202_v44 = vmul.f32 %v8048_v53, %v14810_v46  ;;  %v14813_v42 = vld [vmem:[#allocation49_spill] sm:$0xff] }
 0x1e2   : > { %14808 = vst [vmem:[#allocation45_spill] sm:$0xff] %v8190_v45  ;;  %14809 = vst [vmem:[#allocation155_spill] sm:$0xff] %v8194_v50  ;;  %v8206_v43 = vmul.f32 %v8045_v41, %v14813_v42  ;;  %v8210_v40 = vmul.f32 %v8048_v53, %v14813_v42  ;;  %v8212_v45 = vpop.permute.xlu1 %1483  ;;  %v8216_v50 = vmul.f32 %v8045_v41, %v14817_v38  ;;  %v14820_v46 = vld [vmem:[#allocation53_spill] sm:$0xff]  ;;  %v8230_v42 = vpop.permute.xlu0 %1487 }
 0x1e3   : > { %14811 = vst [vmem:[#allocation48_spill] sm:$0xff] %v8198_v51  ;;  %14812 = vst [vmem:[#allocation156_spill] sm:$0xff] %v8202_v44  ;;  %v8220_v51 = vmul.f32 %v8048_v53, %v14817_v38  ;;  %v8224_v44 = vmul.f32 %v8045_v41, %v14820_v46 }
 0x1e4   : > { %14814 = vst [vmem:[#allocation49_spill] sm:$0xff] %v8206_v43  ;;  %14815 = vst [vmem:[#allocation157_spill] sm:$0xff] %v8210_v40  ;;  %v8228_v43 = vmul.f32 %v8048_v53, %v14820_v46  ;;  %v14824_v40 = vld [vmem:[#allocation83_spill] sm:$0xff] }
 0x1e5   : > { %14816 = vst [vmem:[#allocation158_spill] sm:$0xff] %v8212_v45  ;;  %14818 = vst [vmem:[#allocation52_spill] sm:$0xff] %v8216_v50  ;;  %1731 = vperm.xlu1 %6785, %v14824_v40   ;;  %v14825_v45 = vld [vmem:[#allocation56_spill] sm:$0xff] }
 0x1e6   : > { %14819 = vst [vmem:[#allocation159_spill] sm:$0xff] %v8220_v51  ;;  %14821 = vst [vmem:[#allocation53_spill] sm:$0xff] %v8224_v44  ;;  %v8235_v48 = vmul.f32 %v8045_v41, %v14825_v45  ;;  %v8239_v38 = vmul.f32 %v8048_v53, %v14825_v45  ;;  %v14828_v51 = vld [vmem:[#allocation57_spill] sm:$0xff] }
 0x1e7   : > { %14822 = vst [vmem:[#allocation160_spill] sm:$0xff] %v8228_v43  ;;  %14823 = vst [vmem:[#allocation161_spill] sm:$0xff] %v8230_v42  ;;  %v8243_v50 = vmul.f32 %v8045_v41, %v14828_v51  ;;  %v8247_v46 = vmul.f32 %v8048_v53, %v14828_v51  ;;  %v14831_v43 = vld [vmem:[#allocation82_spill] sm:$0xff]  ;;  %v14832_v42 = vld [vmem:[#allocation60_spill] sm:$0xff] }
 0x1e8   : > { %14826 = vst [vmem:[#allocation83_spill] sm:$0xff] %v8235_v48  ;;  %14827 = vst [vmem:[#allocation56_spill] sm:$0xff] %v8239_v38  ;;  %1735 = vperm.xlu0 %6784, %v14831_v43   ;;  %v8252_v40 = vmul.f32 %v8045_v41, %v14832_v42  ;;  %v8256_v48 = vmul.f32 %v8048_v53, %v14832_v42  ;;  %v14835_v45 = vld [vmem:[#allocation61_spill] sm:$0xff]  ;;  %v14838_v51 = vld [vmem:[#allocation64_spill] sm:$0xff] }
 0x1e9   : > { %14829 = vst [vmem:[#allocation57_spill] sm:$0xff] %v8243_v50  ;;  %14830 = vst [vmem:[#allocation162_spill] sm:$0xff] %v8247_v46  ;;  %v8260_v38 = vmul.f32 %v8045_v41, %v14835_v45  ;;  %v8264_v50 = vmul.f32 %v8048_v53, %v14835_v45  ;;  %v8268_v46 = vmul.f32 %v8045_v41, %v14838_v51  ;;  %v14845_v45 = vld [vmem:[#allocation68_spill] sm:$0xff] }
 0x1ea   : > { %14833 = vst [vmem:[#allocation82_spill] sm:$0xff] %v8252_v40  ;;  %14834 = vst [vmem:[#allocation60_spill] sm:$0xff] %v8256_v48  ;;  %v8272_v43 = vmul.f32 %v8048_v53, %v14838_v51  ;;  %v14841_v40 = vld [vmem:[#allocation65_spill] sm:$0xff] }
 0x1eb   : > { %14836 = vst [vmem:[#allocation61_spill] sm:$0xff] %v8260_v38  ;;  %14837 = vst [vmem:[#allocation163_spill] sm:$0xff] %v8264_v50  ;;  %v8276_v42 = vmul.f32 %v8045_v41, %v14841_v40  ;;  %v8280_v48 = vmul.f32 %v8048_v53, %v14841_v40  ;;  %v8282_v38 = vpop.permute.xlu1 %1491  ;;  %v8286_v50 = vmul.f32 %v8045_v41, %v14845_v45  ;;  %v14848_v51 = vld [vmem:[#allocation69_spill] sm:$0xff]  ;;  %v8300_v40 = vpop.permute.xlu0 %1495 }
 0x1ec   : > { %14839 = vst [vmem:[#allocation64_spill] sm:$0xff] %v8268_v46  ;;  %14840 = vst [vmem:[#allocation164_spill] sm:$0xff] %v8272_v43  ;;  %v8290_v46 = vmul.f32 %v8048_v53, %v14845_v45  ;;  %v8294_v43 = vmul.f32 %v8045_v41, %v14848_v51 }
 0x1ed   : > { %14842 = vst [vmem:[#allocation65_spill] sm:$0xff] %v8276_v42  ;;  %14843 = vst [vmem:[#allocation165_spill] sm:$0xff] %v8280_v48  ;;  %v8298_v42 = vmul.f32 %v8048_v53, %v14848_v51  ;;  %v14852_v48 = vld [vmem:[#allocation87_spill] sm:$0xff] }
 0x1ee   : > { %14844 = vst [vmem:[#allocation166_spill] sm:$0xff] %v8282_v38  ;;  %14846 = vst [vmem:[#allocation68_spill] sm:$0xff] %v8286_v50  ;;  %1739 = vperm.xlu1 %6785, %v14852_v48   ;;  %v14853_v38 = vld [vmem:[#allocation72_spill] sm:$0xff] }
 0x1ef   : > { %14847 = vst [vmem:[#allocation167_spill] sm:$0xff] %v8290_v46  ;;  %14849 = vst [vmem:[#allocation69_spill] sm:$0xff] %v8294_v43  ;;  %v8305_v44 = vmul.f32 %v8045_v41, %v14853_v38  ;;  %v8309_v45 = vmul.f32 %v8048_v53, %v14853_v38  ;;  %v14856_v46 = vld [vmem:[#allocation73_spill] sm:$0xff]  ;;  %v14881_v43 = vld [vmem:[#allocation88_spill] sm:$0xff] }
 0x1f0   : > { %14850 = vst [vmem:[#allocation168_spill] sm:$0xff] %v8298_v42  ;;  %14851 = vst [vmem:[#allocation169_spill] sm:$0xff] %v8300_v40  ;;  %v8313_v50 = vmul.f32 %v8045_v41, %v14856_v46  ;;  %v8317_v51 = vmul.f32 %v8048_v53, %v14856_v46  ;;  %v14859_v42 = vld [vmem:[#allocation86_spill] sm:$0xff]  ;;  %v14860_v40 = vld [vmem:[#allocation76_spill] sm:$0xff] }
 0x1f1   : > { %14854 = vst [vmem:[#allocation87_spill] sm:$0xff] %v8305_v44  ;;  %14855 = vst [vmem:[#allocation72_spill] sm:$0xff] %v8309_v45  ;;  %1743 = vperm.xlu0 %6784, %v14859_v42   ;;  %v8322_v48 = vmul.f32 %v8045_v41, %v14860_v40  ;;  %v8326_v44 = vmul.f32 %v8048_v53, %v14860_v40  ;;  %v14863_v38 = vld [vmem:[#allocation77_spill] sm:$0xff]  ;;  %v14866_v46 = vld [vmem:[#allocation80_spill] sm:$0xff] }
 0x1f2   : > { %14857 = vst [vmem:[#allocation73_spill] sm:$0xff] %v8313_v50  ;;  %14858 = vst [vmem:[#allocation170_spill] sm:$0xff] %v8317_v51  ;;  %v8330_v45 = vmul.f32 %v8045_v41, %v14863_v38  ;;  %v8334_v50 = vmul.f32 %v8048_v53, %v14863_v38  ;;  %v8338_v51 = vmul.f32 %v8045_v41, %v14866_v46  ;;  %v6788_v38 = vld [vmem:[%s14317_s3 + $0x74] ss:$8 sps:$4 sm:$0xff]  }
 0x1f3   : > { %14861 = vst [vmem:[#allocation86_spill] sm:$0xff] %v8322_v48  ;;  %14862 = vst [vmem:[#allocation76_spill] sm:$0xff] %v8326_v44  ;;  %v8342_v42 = vmul.f32 %v8048_v53, %v14866_v46  ;;  %v14869_v48 = vld [vmem:[#allocation81_spill] sm:$0xff]  ;;  %4286 = vmatprep.subr.bf16.mxu0 %v6788_v38  ;;  %6659 = vmatprep.subr.bf16.mxu1 %v6788_v38 }
 0x1f4   : > { %14864 = vst [vmem:[#allocation77_spill] sm:$0xff] %v8330_v45  ;;  %14865 = vst [vmem:[#allocation171_spill] sm:$0xff] %v8334_v50  ;;  %v8346_v40 = vmul.f32 %v8045_v41, %v14869_v48  ;;  %v8350_v44 = vmul.f32 %v8048_v53, %v14869_v48  ;;  %v8352_v45 = vpop.permute.xlu1 %1499  ;;  %v14873_v50 = vld [vmem:[#allocation84_spill] sm:$0xff] }
 0x1f5   : > { %14867 = vst [vmem:[#allocation80_spill] sm:$0xff] %v8338_v51  ;;  %14868 = vst [vmem:[#allocation172_spill] sm:$0xff] %v8342_v42  ;;  %v8359_v51 = vmul.f32 %v8045_v41, %v14873_v50  ;;  %v8363_v46 = vmul.f32 %v8048_v53, %v14873_v50  ;;  %v14876_v42 = vld [vmem:[#allocation85_spill] sm:$0xff]  ;;  %v8381_v50 = vmul.f32 %v8045_v41, %v14881_v43 }
 0x1f6   : > { %14870 = vst [vmem:[#allocation81_spill] sm:$0xff] %v8346_v40  ;;  %14871 = vst [vmem:[#allocation173_spill] sm:$0xff] %v8350_v44  ;;  %v8367_v40 = vmul.f32 %v8045_v41, %v14876_v42  ;;  %v8371_v48 = vmul.f32 %v8048_v53, %v14876_v42  ;;  %v14880_v44 = vld [vmem:[#allocation91_spill] sm:$0xff]  ;;  %v6791_v38 = vld [vmem:[%s14317_s3 + $0x64] ss:$8 sps:$4 sm:$0xff]  }
 0x1f7   : > { %14872 = vst [vmem:[#allocation174_spill] sm:$0xff] %v8352_v45  ;;  %14874 = vst [vmem:[#allocation84_spill] sm:$0xff] %v8359_v51  ;;  %v8373_v45 = vpop.permute.xlu0 %1503  ;;  %1747 = vperm.xlu1 %6785, %v14880_v44   ;;  %v6790_v51 = vld [vmem:[%s14317_s3 + $0x70] ss:$8 sps:$4 sm:$0xff]  }
 0x1f8   : > { %14875 = vst [vmem:[#allocation175_spill] sm:$0xff] %v8363_v46  ;;  %14877 = vst [vmem:[#allocation85_spill] sm:$0xff] %v8367_v40  ;;  %v8385_v46 = vmul.f32 %v8048_v53, %v14881_v43  ;;  %v14884_v40 = vld [vmem:[#allocation89_spill] sm:$0xff]  ;;  %4287 = vmatpush1.bf16.msra.mxu0 %v6790_v51  ;;  %6675 = vmatpush1.bf16.msra.mxu1 %v6790_v51 }
 0x1f9   : > { %14878 = vst [vmem:[#allocation176_spill] sm:$0xff] %v8371_v48  ;;  %14879 = vst [vmem:[#allocation177_spill] sm:$0xff] %v8373_v45  ;;  %v8389_v42 = vmul.f32 %v8045_v41, %v14884_v40  ;;  %v14886_v48 = vld [vmem:[#allocation90_spill] sm:$0xff]  ;;  %v8394_v44 = vmul.f32 %v8048_v53, %v14884_v40  ;;  %v14888_v45 = vld [vmem:[#allocation92_spill] sm:$0xff]  ;;  %4288 = vmatprep.subr.bf16.mxu0 %v6791_v38  ;;  %6660 = vmatprep.subr.bf16.mxu1 %v6791_v38 }
 0x1fa   : > { %14882 = vst [vmem:[#allocation91_spill] sm:$0xff] %v8381_v50  ;;  %14883 = vst [vmem:[#allocation88_spill] sm:$0xff] %v8385_v46  ;;  %1751 = vperm.xlu0 %6784, %v14886_v48   ;;  %v8398_v49 = vmul.f32 %v8045_v41, %v14888_v45  ;;  %v8402_v50 = vmul.f32 %v8048_v53, %v14888_v45  ;;  %v14891_v43 = vld [vmem:[#allocation93_spill] sm:$0xff]  ;;  %v14894_v40 = vld [vmem:[#allocation96_spill] sm:$0xff]  ;;  %v8420_v45 = vpop.permute.xlu1 %1507 }
 0x1fb   : > { %14885 = vst [vmem:[#allocation89_spill] sm:$0xff] %v8389_v42  ;;  %14887 = vst [vmem:[#allocation90_spill] sm:$0xff] %v8394_v44  ;;  %v8406_v46 = vmul.f32 %v8045_v41, %v14891_v43  ;;  %v8410_v48 = vmul.f32 %v8048_v53, %v14891_v43  ;;  %v8414_v44 = vmul.f32 %v8045_v41, %v14894_v40  ;;  %v14905_v42 = vld [vmem:[#allocation95_spill] sm:$0xff] }
 0x1fc   : > { %14889 = vst [vmem:[#allocation92_spill] sm:$0xff] %v8398_v49  ;;  %14890 = vst [vmem:[#allocation178_spill] sm:$0xff] %v8402_v50  ;;  %v8418_v49 = vmul.f32 %v8048_v53, %v14894_v40  ;;  %v14898_v50 = vld [vmem:[#allocation97_spill] sm:$0xff]  ;;  %1755 = vperm.xlu1 %6785, %v14905_v42   ;;  %v6794_v38 = vld [vmem:[%s14317_s3 + $0x54] ss:$8 sps:$4 sm:$0xff]  }
 0x1fd   : > { %14892 = vst [vmem:[#allocation93_spill] sm:$0xff] %v8406_v46  ;;  %14893 = vst [vmem:[#allocation179_spill] sm:$0xff] %v8410_v48  ;;  %v8427_v46 = vmul.f32 %v8045_v41, %v14898_v50  ;;  %v8431_v43 = vmul.f32 %v8048_v53, %v14898_v50  ;;  %v6793_v51 = vld [vmem:[%s14317_s3 + $0x60] ss:$8 sps:$4 sm:$0xff]  }
 0x1fe   : > { %14895 = vst [vmem:[#allocation96_spill] sm:$0xff] %v8414_v44  ;;  %14896 = vst [vmem:[#allocation180_spill] sm:$0xff] %v8418_v49  ;;  %v14901_v44 = vld [vmem:[#allocation100_spill] sm:$0xff]  ;;  %v8441_v49 = vpop.permute.xlu0 %1511  ;;  %4289 = vmatpush1.bf16.msra.mxu0 %v6793_v51  ;;  %6676 = vmatpush1.bf16.msra.mxu1 %v6793_v51  ;;  %v6796_v51 = vld [vmem:[%s14317_s3 + $0x50] ss:$8 sps:$4 sm:$0xff]  }
 0x1ff   : > { %14897 = vst [vmem:[#allocation181_spill] sm:$0xff] %v8420_v45  ;;  %14899 = vst [vmem:[#allocation97_spill] sm:$0xff] %v8427_v46  ;;  %v8435_v48 = vmul.f32 %v8045_v41, %v14901_v44  ;;  %v8439_v40 = vmul.f32 %v8048_v53, %v14901_v44  ;;  %v14906_v46 = vld [vmem:[#allocation101_spill] sm:$0xff]  ;;  %4290 = vmatprep.subr.bf16.mxu0 %v6794_v38  ;;  %6661 = vmatprep.subr.bf16.mxu1 %v6794_v38  ;;  %v14946_v38 = vld [vmem:[#allocation122_spill] sm:$0xff] }
 0x200   : > { %14900 = vst [vmem:[#allocation182_spill] sm:$0xff] %v8431_v43  ;;  %14904 = vst [vmem:[#allocation184_spill] sm:$0xff] %v8441_v49  ;;  %v8449_v50 = vmul.f32 %v8045_v41, %v14906_v46  ;;  %v8453_v43 = vmul.f32 %v8048_v53, %v14906_v46  ;;  %v14913_v49 = vld [vmem:[#allocation105_spill] sm:$0xff]  ;;  %v14916_v46 = vld [vmem:[#allocation108_spill] sm:$0xff] }
 0x201   : > { %14902 = vst [vmem:[#allocation100_spill] sm:$0xff] %v8435_v48  ;;  %14903 = vst [vmem:[#allocation183_spill] sm:$0xff] %v8439_v40  ;;  %v14909_v48 = vld [vmem:[#allocation104_spill] sm:$0xff]  ;;  %v14911_v40 = vld [vmem:[#allocation94_spill] sm:$0xff]  ;;  %v8466_v45 = vmul.f32 %v8045_v41, %v14913_v49 }
 0x202   : > { %14907 = vst [vmem:[#allocation95_spill] sm:$0xff] %v8449_v50  ;;  %14908 = vst [vmem:[#allocation101_spill] sm:$0xff] %v8453_v43  ;;  %v8457_v44 = vmul.f32 %v8045_v41, %v14909_v48  ;;  %1759 = vperm.xlu0 %6784, %v14911_v40   ;;  %v8462_v42 = vmul.f32 %v8048_v53, %v14909_v48  ;;  %v8470_v50 = vmul.f32 %v8048_v53, %v14913_v49  ;;  %v14919_v48 = vld [vmem:[#allocation109_spill] sm:$0xff]  ;;  %v8488_v49 = vpop.permute.xlu1 %1515  ;;  %v14930_v43 = vld [vmem:[#allocation99_spill] sm:$0xff] }
 0x203   : > { %14914 = vst [vmem:[#allocation105_spill] sm:$0xff] %v8466_v45  ;;  %v8478_v40 = vmul.f32 %v8048_v53, %v14916_v46  ;;  %v8486_v45 = vmul.f32 %v8048_v53, %v14919_v48  ;;  %14922 = vst [vmem:[#allocation188_spill] sm:$0xff] %v8488_v49  ;;  %1763 = vperm.xlu1 %6785, %v14930_v43   ;;  %4291 = vmatpush1.bf16.msra.mxu0 %v6796_v51 }
 0x204   : > { %14910 = vst [vmem:[#allocation104_spill] sm:$0xff] %v8457_v44  ;;  %14912 = vst [vmem:[#allocation94_spill] sm:$0xff] %v8462_v42  ;;  %v8474_v44 = vmul.f32 %v8045_v41, %v14916_v46  ;;  %v8482_v42 = vmul.f32 %v8045_v41, %v14919_v48  ;;  %6677 = vmatpush1.bf16.msra.mxu1 %v6796_v51  ;;  %v6799_v51 = vld [vmem:[%s14317_s3 + $0x40] ss:$8 sps:$4 sm:$0xff]  }
 0x205   : > { %14915 = vst [vmem:[#allocation185_spill] sm:$0xff] %v8470_v50  ;;  %14918 = vst [vmem:[#allocation186_spill] sm:$0xff] %v8478_v40  ;;  %v14926_v40 = vld [vmem:[#allocation113_spill] sm:$0xff] }
 0x206   : > { %14917 = vst [vmem:[#allocation108_spill] sm:$0xff] %v8474_v44  ;;  %14920 = vst [vmem:[#allocation109_spill] sm:$0xff] %v8482_v42  ;;  %v14923_v44 = vld [vmem:[#allocation112_spill] sm:$0xff]  ;;  %v8503_v42 = vmul.f32 %v8045_v41, %v14926_v40  ;;  %v8507_v48 = vmul.f32 %v8048_v53, %v14926_v40 }
 0x207   : > { %14921 = vst [vmem:[#allocation187_spill] sm:$0xff] %v8486_v45  ;;  %v8495_v50 = vmul.f32 %v8045_v41, %v14923_v44  ;;  %v8499_v46 = vmul.f32 %v8048_v53, %v14923_v44  ;;  %v8509_v45 = vpop.permute.xlu0 %1519 }
 0x208   : > { %14927 = vst [vmem:[#allocation113_spill] sm:$0xff] %v8503_v42  ;;  %14928 = vst [vmem:[#allocation190_spill] sm:$0xff] %v8507_v48  ;;  %v14934_v42 = vld [vmem:[#allocation117_spill] sm:$0xff]  ;;  %v14936_v48 = vld [vmem:[#allocation98_spill] sm:$0xff] }
 0x209   : > { %14924 = vst [vmem:[#allocation112_spill] sm:$0xff] %v8495_v50  ;;  %14925 = vst [vmem:[#allocation189_spill] sm:$0xff] %v8499_v46  ;;  %v14931_v50 = vld [vmem:[#allocation116_spill] sm:$0xff]  ;;  %v8525_v40 = vmul.f32 %v8045_v41, %v14934_v42  ;;  %1767 = vperm.xlu0 %6784, %v14936_v48   ;;  %v8530_v43 = vmul.f32 %v8048_v53, %v14934_v42  ;;  %v8549_v42 = vsub.s32 1, %v8012_v52 }
 0x20a   : > { %14929 = vst [vmem:[#allocation191_spill] sm:$0xff] %v8509_v45  ;;  %v8517_v44 = vmul.f32 %v8045_v41, %v14931_v50  ;;  %v8521_v46 = vmul.f32 %v8048_v53, %v14931_v50  ;;  %v14938_v45 = vld [vmem:[#allocation120_spill] sm:$0xff]  ;;  %v14941_v50 = vld [vmem:[#allocation121_spill] sm:$0xff] }
 0x20b   : > { %14935 = vst [vmem:[#allocation117_spill] sm:$0xff] %v8525_v40  ;;  %14937 = vst [vmem:[#allocation98_spill] sm:$0xff] %v8530_v43  ;;  %v8534_v49 = vmul.f32 %v8045_v41, %v14938_v45  ;;  %v8546_v48 = vmul.f32 %v8048_v53, %v14941_v50  ;;  %v1864_v43 = vsub.s32 5, %v8012_v52  ;;  %v8573_v40 = vpop.permute.xlu0 %1527 }
 0x20c   : > { %14932 = vst [vmem:[#allocation99_spill] sm:$0xff] %v8517_v44  ;;  %14933 = vst [vmem:[#allocation116_spill] sm:$0xff] %v8521_v46  ;;  %v8538_v44 = vmul.f32 %v8048_v53, %v14938_v45  ;;  %v8542_v46 = vmul.f32 %v8045_v41, %v14941_v50  ;;  %v6797_v45 = vld [vmem:[%s14317_s3 + $0x44] ss:$8 sps:$4 sm:$0xff]   ;;  %v8563_v50 = vmul.f32 %v8048_v53, %v14946_v38 }
 0x20d   : > { %14939 = vst [vmem:[#allocation120_spill] sm:$0xff] %v8534_v49  ;;  %14943 = vst [vmem:[#allocation193_spill] sm:$0xff] %v8546_v48  ;;  %v8552_v49 = vpop.permute.xlu1 %1523  ;;  %v14949_v48 = vld [vmem:[#allocation123_spill] sm:$0xff]  ;;  %4292 = vmatprep.subr.bf16.mxu0 %v6797_v45  ;;  %6662 = vmatprep.subr.bf16.mxu1 %v6797_v45  ;;  %v14966_v45 = vld [vmem:[#allocation128_spill] sm:$0xff] }
 0x20e   : > { %14940 = vst [vmem:[#allocation192_spill] sm:$0xff] %v8538_v44  ;;  %14942 = vst [vmem:[#allocation121_spill] sm:$0xff] %v8542_v46  ;;  %v8559_v44 = vmul.f32 %v8045_v41, %v14946_v38  ;;  %v8567_v46 = vmul.f32 %v8045_v41, %v14949_v48  ;;  %v8571_v52 = vmul.f32 %v8048_v53, %v14949_v48  ;;  %4293 = vmatpush1.bf16.msra.mxu0 %v6799_v51 }
 0x20f   : > { %14944 = vst [vmem:[#allocation194_spill] sm:$0xff] %v8549_v42  ;;  %14945 = vst [vmem:[#allocation195_spill] sm:$0xff] %v8552_v49  ;;  %v14953_v49 = vld [vmem:[#allocation103_spill] sm:$0xff]  ;;  %6678 = vmatpush1.bf16.msra.mxu1 %v6799_v51 }
 0x210   : > { %14947 = vst [vmem:[#allocation122_spill] sm:$0xff] %v8559_v44  ;;  %14948 = vst [vmem:[#allocation196_spill] sm:$0xff] %v8563_v50  ;;  %1771 = vperm.xlu1 %6785, %v14953_v49   ;;  %v14954_v44 = vld [vmem:[#allocation124_spill] sm:$0xff]  ;;  %v6802_v51 = vld [vmem:[%s14317_s3 + $0x30] ss:$8 sps:$4 sm:$0xff]  }
 0x211   : > { %14950 = vst [vmem:[#allocation123_spill] sm:$0xff] %v8567_v46  ;;  %14951 = vst [vmem:[#allocation197_spill] sm:$0xff] %v8571_v52  ;;  %v8581_v38 = vmul.f32 %v8045_v41, %v14954_v44  ;;  %v8585_v50 = vmul.f32 %v8048_v53, %v14954_v44  ;;  %v14957_v46 = vld [vmem:[#allocation125_spill] sm:$0xff]  ;;  %v14958_v52 = vld [vmem:[#allocation102_spill] sm:$0xff] }
 0x212   : > { %14952 = vst [vmem:[#allocation198_spill] sm:$0xff] %v8573_v40  ;;  %v8589_v48 = vmul.f32 %v8045_v41, %v14957_v46  ;;  %1775 = vperm.xlu0 %6784, %v14958_v52   ;;  %v8594_v49 = vmul.f32 %v8048_v53, %v14957_v46  ;;  %v14960_v40 = vld [vmem:[#allocation126_spill] sm:$0xff]  ;;  %v14963_v44 = vld [vmem:[#allocation127_spill] sm:$0xff]  ;;  %v1861_v46 = vrot.slane %v8029_v47, %v8549_v42 }
 0x213   : > { %14955 = vst [vmem:[#allocation103_spill] sm:$0xff] %v8581_v38  ;;  %14956 = vst [vmem:[#allocation124_spill] sm:$0xff] %v8585_v50  ;;  %v8598_v39 = vmul.f32 %v8045_v41, %v14960_v40  ;;  %v8602_v38 = vmul.f32 %v8048_v53, %v14960_v40  ;;  %v8606_v50 = vmul.f32 %v8045_v41, %v14963_v44  ;;  %v6800_v40 = vld [vmem:[%s14317_s3 + $0x34] ss:$8 sps:$4 sm:$0xff]  }
 0x214   : > { %14959 = vst [vmem:[#allocation125_spill] sm:$0xff] %v8594_v49  ;;  %v8610_v52 = vmul.f32 %v8048_v53, %v14963_v44  ;;  %v1865_v49 = vrot.slane %v8029_v47, %v1864_v43  ;;  %v8626_v44 = vmul.f32 %v8048_v53, %v14966_v45  ;;  %v8634_v47 = vmul.f32 %v8048_v53, %v7746_v57  ;;  %v8636_v43 = vpop.permute.xlu0 %1535 }
 0x215   : > { %14961 = vst [vmem:[#allocation102_spill] sm:$0xff] %v8598_v39  ;;  %14962 = vst [vmem:[#allocation126_spill] sm:$0xff] %v8602_v38  ;;  %v8615_v39 = vpop.permute.xlu1 %1531  ;;  %v8622_v38 = vmul.f32 %v8045_v41, %v14966_v45  ;;  %v8644_v45 = vmul.f32 %v8045_v41, %v7750_v1  ;;  %4294 = vmatprep.subr.bf16.mxu0 %v6800_v40  ;;  %6663 = vmatprep.subr.bf16.mxu1 %v6800_v40 }
 0x216   : > { %14964 = vst [vmem:[#allocation127_spill] sm:$0xff] %v8606_v50  ;;  %14965 = vst [vmem:[#allocation199_spill] sm:$0xff] %v8610_v52  ;;  %v8630_v52 = vmul.f32 %v8045_v41, %v7746_v57  ;;  %v14970_v50 = vld [vmem:[#allocation107_spill] sm:$0xff]  ;;  %v8652_v57 = vmul.f32 %v8045_v41, %v7752_v55  ;;  %4295 = vmatpush1.bf16.msra.mxu0 %v6802_v51  ;;  %6679 = vmatpush1.bf16.msra.mxu1 %v6802_v51 }
 0x217   : > { %14967 = vst [vmem:[#allocation128_spill] sm:$0xff] %v8622_v38  ;;  %14968 = vst [vmem:[#allocation200_spill] sm:$0xff] %v8626_v44  ;;  %1779 = vperm.xlu1 %6785, %v14970_v50   ;;  %v8648_v44 = vmul.f32 %v8048_v53, %v7750_v1  ;;  %v14973_v38 = vld [vmem:[#allocation106_spill] sm:$0xff]  ;;  %v8657_v50 = vmul.f32 %v8048_v53, %v7752_v55  ;;  %v8669_v1 = vmul.f32 %v8045_v41, %v7758_v58  ;;  %v6805_v51 = vld [vmem:[%s14317_s3 + $0x20] ss:$8 sps:$4 sm:$0xff]  }
 0x218   : > { %14969 = vst [vmem:[#allocation201_spill] sm:$0xff] %v8634_v47  ;;  %14971 = vst [vmem:[#allocation107_spill] sm:$0xff] %v8644_v45  ;;  %1783 = vperm.xlu0 %6784, %v14973_v38   ;;  %v8661_v47 = vmul.f32 %v8045_v41, %v7756_v60  ;;  %v8665_v45 = vmul.f32 %v8048_v53, %v7756_v60  ;;  %v8673_v38 = vmul.f32 %v8048_v53, %v7758_v58  ;;  %v6803_v60 = vld [vmem:[%s14317_s3 + $0x24] ss:$8 sps:$4 sm:$0xff]  }
 0x219   : > { %14972 = vst [vmem:[#allocation202_spill] sm:$0xff] %v8648_v44  ;;  %v8676_v55 = vrot.slane %v1861_v46, %v8549_v42  ;;  %v8679_v44 = vrot.slane %v1865_v49, %v8549_v42  ;;  %v8688_v40 = vmul.f32 %v8045_v41, %v7760_v61  ;;  %v8692_v58 = vmul.f32 %v8048_v53, %v7760_v61  ;;  %v8702_v42 = vpop.permute.xlu0 %1543 }
 0x21a   : > { %14974 = vst [vmem:[#allocation106_spill] sm:$0xff] %v8661_v47  ;;  %14975 = vst [vmem:[#allocation203_spill] sm:$0xff] %v8665_v45  ;;  %v8681_v47 = vpop.permute.xlu1 %1539  ;;  %v8696_v46 = vmul.f32 %v8045_v41, %v7762_v62  ;;  %v8700_v49 = vmul.f32 %v8048_v53, %v7762_v62  ;;  %v14979_v45 = vld [vmem:[#allocation111_spill] sm:$0xff]  ;;  %v8710_v61 = vmul.f32 %v8045_v41, %v7766_v59  ;;  %4296 = vmatprep.subr.bf16.mxu0 %v6803_v60 }
 0x21b   : > { %14976 = vst [vmem:[#allocation204_spill] sm:$0xff] %v8688_v40  ;;  %14977 = vst [vmem:[#allocation205_spill] sm:$0xff] %v8692_v58  ;;  %1787 = vperm.xlu1 %6785, %v14979_v45   ;;  %v8714_v58 = vmul.f32 %v8048_v53, %v7766_v59  ;;  %v8718_v62 = vmul.f32 %v8045_v41, %v7768_v0  ;;  %v14981_v40 = vld [vmem:[#allocation110_spill] sm:$0xff]  ;;  %v8723_v45 = vmul.f32 %v8048_v53, %v7768_v0 }
 0x21c   : > { %14978 = vst [vmem:[#allocation206_spill] sm:$0xff] %v8700_v49  ;;  %14980 = vst [vmem:[#allocation111_spill] sm:$0xff] %v8710_v61  ;;  %1791 = vperm.xlu0 %6784, %v14981_v40   ;;  %v8727_v49 = vmul.f32 %v8045_v41, %v7772_v54  ;;  %v8731_v61 = vmul.f32 %v8048_v53, %v7772_v54  ;;  %4297 = vmatpush1.bf16.msra.mxu0 %v6805_v51 }
 0x21d   : > { %6664 = vmatprep.subr.bf16.mxu1 %v6803_v60  ;;  %v8735_v59 = vmul.f32 %v8045_v41, %v7774_v56  ;;  %v8739_v40 = vmul.f32 %v8048_v53, %v7774_v56  ;;  %v8743_v0 = vmul.f32 %v8045_v41, %v7778_v63  ;;  %v6806_v60 = vld [vmem:[%s14317_s3 + $0x14] ss:$8 sps:$4 sm:$0xff]   ;;  %v8760_v56 = vmul.f32 %v8048_v53, %v7780_v5 }
 0x21e   : > { %14982 = vst [vmem:[#allocation110_spill] sm:$0xff] %v8727_v49  ;;  %14983 = vst [vmem:[#allocation207_spill] sm:$0xff] %v8731_v61  ;;  %v8747_v49 = vmul.f32 %v8048_v53, %v7778_v63  ;;  %v8749_v54 = vpop.permute.xlu1 %1547  ;;  %6680 = vmatpush1.bf16.msra.mxu1 %v6805_v51  ;;  %v8756_v61 = vmul.f32 %v8045_v41, %v7780_v5  ;;  %v8768_v63 = vmul.f32 %v8048_v53, %v7784_v3  ;;  %v6808_v51 = vld [vmem:[%s14317_s3 + $0x10] ss:$8 sps:$4 sm:$0xff]  }
 0x21f   : > { %14984 = vst [vmem:[#allocation208_spill] sm:$0xff] %v8735_v59  ;;  %14985 = vst [vmem:[#allocation209_spill] sm:$0xff] %v8739_v40  ;;  %v14992_v40 = vld [vmem:[#allocation115_spill] sm:$0xff]  ;;  %v8778_v5 = vmul.f32 %v8045_v41, %v7786_v2  ;;  %4298 = vmatprep.subr.bf16.mxu0 %v6806_v60  ;;  %6665 = vmatprep.subr.bf16.mxu1 %v6806_v60  ;;  %v6809_v60 = vld [vmem:[%s14317_s3 + $0x4] ss:$8 sps:$4 sm:$0xff]  }
 0x220   : > { %14986 = vst [vmem:[#allocation210_spill] sm:$0xff] %v8743_v0  ;;  %14987 = vst [vmem:[#allocation211_spill] sm:$0xff] %v8747_v49  ;;  %v8764_v0 = vmul.f32 %v8045_v41, %v7784_v3  ;;  %v8770_v49 = vpop.permute.xlu0 %1551  ;;  %1795 = vperm.xlu1 %6785, %v14992_v40   ;;  %v8786_v3 = vmul.f32 %v8045_v41, %v7790_v4  ;;  %v8791_v40 = vmul.f32 %v8048_v53, %v7790_v4 }
 0x221   : > { %14988 = vst [vmem:[#allocation212_spill] sm:$0xff] %v8756_v61  ;;  %14989 = vst [vmem:[#allocation213_spill] sm:$0xff] %v8760_v56  ;;  %v8782_v56 = vmul.f32 %v8048_v53, %v7786_v2  ;;  %4299 = vmatpush1.bf16.msra.mxu0 %v6808_v51  ;;  %v8803_v2 = vmul.f32 %v8045_v41, %v7796_v6  ;;  %v8811_v4 = vmul.f32 %v8045_v41, %v7798_v9 }
 0x222   : > { %14990 = vst [vmem:[#allocation214_spill] sm:$0xff] %v8764_v0  ;;  %14991 = vst [vmem:[#allocation215_spill] sm:$0xff] %v8768_v63  ;;  %v14996_v63 = vld [vmem:[#allocation114_spill] sm:$0xff]  ;;  %v8795_v0 = vmul.f32 %v8045_v41, %v7792_v7  ;;  %6681 = vmatpush1.bf16.msra.mxu1 %v6808_v51  ;;  %v6811_v51 = vld [vmem:[%s14317_s3] ss:$8 sps:$4 sm:$0xff]   ;;  %4300 = vmatprep.subr.bf16.mxu0 %v6809_v60 }
 0x223   : > { %14993 = vst [vmem:[#allocation115_spill] sm:$0xff] %v8778_v5  ;;  %14994 = vst [vmem:[#allocation216_spill] sm:$0xff] %v8782_v56  ;;  %1799 = vperm.xlu0 %6784, %v14996_v63   ;;  %v8799_v5 = vmul.f32 %v8048_v53, %v7792_v7  ;;  %v8807_v63 = vmul.f32 %v8048_v53, %v7796_v6  ;;  %v8817_v7 = vpop.permute.xlu1 %1555  ;;  %v8828_v6 = vmul.f32 %v8048_v53, %v7802_v8 }
 0x224   : > { %14995 = vst [vmem:[#allocation217_spill] sm:$0xff] %v8786_v3  ;;  %14997 = vst [vmem:[#allocation114_spill] sm:$0xff] %v8791_v40  ;;  %v8815_v40 = vmul.f32 %v8048_v53, %v7798_v9  ;;  %v8836_v9 = vmul.f32 %v8048_v53, %v7804_v11  ;;  %6666 = vmatprep.subr.bf16.mxu1 %v6809_v60  ;;  %v6812_v60 = vld [vmem:[%s14317_s3 + $0xf4] ss:$8 sps:$4 sm:$0xff]  }
 0x225   : > { %14998 = vst [vmem:[#allocation218_spill] sm:$0xff] %v8795_v0  ;;  %14999 = vst [vmem:[#allocation219_spill] sm:$0xff] %v8799_v5  ;;  %4301 = vmatpush1.bf16.msra.mxu0 %v6811_v51  ;;  %v15148_v3 = vld [vmem:[#allocation146_spill] sm:$0xff]  ;;  %v15164_v0 = vld [vmem:[#allocation33_spill] sm:$0xff] }
 0x226   : > { %15000 = vst [vmem:[#allocation220_spill] sm:$0xff] %v8803_v2  ;;  %15001 = vst [vmem:[#allocation221_spill] sm:$0xff] %v8807_v63  ;;  %v8824_v2 = vmul.f32 %v8045_v41, %v7802_v8  ;;  %v8832_v63 = vmul.f32 %v8045_v41, %v7804_v11  ;;  %v8846_v8 = vmul.f32 %v8045_v41, %v7808_v10  ;;  %6682 = vmatpush1.bf16.msra.mxu1 %v6811_v51  ;;  %v6814_v51 = vld [vmem:[%s14317_s3 + $0xf0] ss:$8 sps:$4 sm:$0xff]  }
 0x227   : > { %15002 = vst [vmem:[#allocation222_spill] sm:$0xff] %v8811_v4  ;;  %15003 = vst [vmem:[#allocation223_spill] sm:$0xff] %v8815_v40  ;;  %v8838_v40 = vpop.permute.xlu0 %1559  ;;  %v15008_v4 = vld [vmem:[#allocation119_spill] sm:$0xff]  ;;  %v8854_v11 = vmul.f32 %v8045_v41, %v7810_v13  ;;  %4302 = vmatprep.subr.bf16.mxu0 %v6812_v60  ;;  %6667 = vmatprep.subr.bf16.mxu1 %v6812_v60  ;;  %v6815_v60 = vld [vmem:[%s14317_s3 + $0xe4] ss:$8 sps:$4 sm:$0xff]  }
 0x228   : > { %15004 = vst [vmem:[#allocation224_spill] sm:$0xff] %v8824_v2  ;;  %15005 = vst [vmem:[#allocation225_spill] sm:$0xff] %v8828_v6  ;;  %1803 = vperm.xlu1 %6785, %v15008_v4   ;;  %v8850_v6 = vmul.f32 %v8048_v53, %v7808_v10  ;;  %v15012_v2 = vld [vmem:[#allocation118_spill] sm:$0xff]  ;;  %v8859_v4 = vmul.f32 %v8048_v53, %v7810_v13  ;;  %v8867_v10 = vmul.f32 %v8048_v53, %v7814_v12 }
 0x229   : > { %15006 = vst [vmem:[#allocation226_spill] sm:$0xff] %v8832_v63  ;;  %15007 = vst [vmem:[#allocation227_spill] sm:$0xff] %v8836_v9  ;;  %1807 = vperm.xlu0 %6784, %v15012_v2   ;;  %v8863_v9 = vmul.f32 %v8045_v41, %v7814_v12  ;;  %v8875_v2 = vmul.f32 %v8048_v53, %v7816_v15  ;;  %v8879_v13 = vmul.f32 %v8045_v41, %v7820_v14  ;;  %v8885_v12 = vpop.permute.xlu1 %1563 }
 0x22a   : > { %15009 = vst [vmem:[#allocation119_spill] sm:$0xff] %v8846_v8  ;;  %15010 = vst [vmem:[#allocation228_spill] sm:$0xff] %v8850_v6  ;;  %v8871_v6 = vmul.f32 %v8045_v41, %v7816_v15  ;;  %v8892_v15 = vmul.f32 %v8045_v41, %v7822_v17  ;;  %4303 = vmatpush2.bf16.msra.mxu0 %v6814_v51  ;;  %6683 = vmatpush2.bf16.msra.mxu1 %v6814_v51  ;;  %v6817_v51 = vld [vmem:[%s14317_s3 + $0xe0] ss:$8 sps:$4 sm:$0xff]  }
 0x22b   : > { %15011 = vst [vmem:[#allocation229_spill] sm:$0xff] %v8854_v11  ;;  %15013 = vst [vmem:[#allocation118_spill] sm:$0xff] %v8859_v4  ;;  %4304 = vmatprep.subr.bf16.mxu0 %v6815_v60  ;;  %6668 = vmatprep.subr.bf16.mxu1 %v6815_v60  ;;  %v6818_v60 = vld [vmem:[%s14317_s3 + $0xd4] ss:$8 sps:$4 sm:$0xff]  }
 0x22c   : > { %15014 = vst [vmem:[#allocation230_spill] sm:$0xff] %v8863_v9  ;;  %15015 = vst [vmem:[#allocation231_spill] sm:$0xff] %v8867_v10  ;;  %v8883_v9 = vmul.f32 %v8048_v53, %v7820_v14  ;;  %v8896_v10 = vmul.f32 %v8048_v53, %v7822_v17  ;;  %v8904_v14 = vmul.f32 %v8048_v53, %v7826_v16  ;;  %v15133_v11 = vld [vmem:[#allocation19_spill] sm:$0xff] }
 0x22d   : > { %15016 = vst [vmem:[#allocation232_spill] sm:$0xff] %v8871_v6  ;;  %15017 = vst [vmem:[#allocation233_spill] sm:$0xff] %v8875_v2  ;;  %v6836_v2 = vld [vmem:[%s7150_s16 + $0x3a0] sm:$0xff]  ;;  %v8914_v17 = vmul.f32 %v8045_v41, %v7828_v19  ;;  %v15131_v6 = vld [vmem:[#allocation17_spill] sm:$0xff]  ;;  %v1884_v63 = vmul.f32 %v8676_v55, %v15133_v11 }
 0x22e   : > { %15018 = vst [vmem:[#allocation234_spill] sm:$0xff] %v8879_v13  ;;  %15019 = vst [vmem:[#allocation235_spill] sm:$0xff] %v8883_v9  ;;  %v8900_v13 = vmul.f32 %v8045_v41, %v7826_v16  ;;  %v8906_v9 = vpop.permute.xlu0 %1567  ;;  %1811 = vperm.xlu1 %6785, %v6836_v2   ;;  %v8922_v16 = vmul.f32 %v8045_v41, %v7832_v18  ;;  %v8927_v2 = vmul.f32 %v8048_v53, %v7832_v18 }
 0x22f   : > { %15020 = vst [vmem:[#allocation236_spill] sm:$0xff] %v8892_v15  ;;  %15021 = vst [vmem:[#allocation237_spill] sm:$0xff] %v8896_v10  ;;  %v8918_v10 = vmul.f32 %v8048_v53, %v7828_v19  ;;  %v8935_v19 = vmul.f32 %v8048_v53, %v7834_v21  ;;  %v8947_v18 = vmul.f32 %v8045_v41, %v7840_v23  ;;  %4305 = vmatpush2.bf16.msra.mxu0 %v6817_v51 }
 0x230   : > { %15022 = vst [vmem:[#allocation238_spill] sm:$0xff] %v8900_v13  ;;  %15023 = vst [vmem:[#allocation239_spill] sm:$0xff] %v8904_v14  ;;  %v6837_v14 = vld [vmem:[%s7150_s16 + $0x3a8] sm:$0xff]  ;;  %v8931_v13 = vmul.f32 %v8045_v41, %v7834_v21  ;;  %v8953_v21 = vpop.permute.xlu1 %1571  ;;  %6684 = vmatpush2.bf16.msra.mxu1 %v6817_v51  ;;  %v6820_v51 = vld [vmem:[%s14317_s3 + $0xd0] ss:$8 sps:$4 sm:$0xff]   ;;  %4306 = vmatprep.subr.bf16.mxu0 %v6818_v60 }
 0x231   : > { %15024 = vst [vmem:[#allocation240_spill] sm:$0xff] %v8914_v17  ;;  %15025 = vst [vmem:[#allocation241_spill] sm:$0xff] %v8918_v10  ;;  %1815 = vperm.xlu0 %6784, %v6837_v14   ;;  %v8943_v14 = vmul.f32 %v8048_v53, %v7838_v20  ;;  %6669 = vmatprep.subr.bf16.mxu1 %v6818_v60  ;;  %v6821_v60 = vld [vmem:[%s14317_s3 + $0xc4] ss:$8 sps:$4 sm:$0xff]   ;;  %v7069_v17 = vmov 2  }
 0x232   : > { %15026 = vst [vmem:[#allocation242_spill] sm:$0xff] %v8922_v16  ;;  %15027 = vst [vmem:[#allocation243_spill] sm:$0xff] %v8927_v2  ;;  %v8939_v16 = vmul.f32 %v8045_v41, %v7838_v20  ;;  %v8951_v2 = vmul.f32 %v8048_v53, %v7840_v23  ;;  %v8960_v20 = vmul.f32 %v8045_v41, %v7844_v22 }
 0x233   : > { %15028 = vst [vmem:[#allocation244_spill] sm:$0xff] %v8931_v13  ;;  %15029 = vst [vmem:[#allocation245_spill] sm:$0xff] %v8935_v19  ;;  %v8972_v23 = vmul.f32 %v8048_v53, %v7846_v25  ;;  %4307 = vmatpush2.bf16.msra.mxu0 %v6820_v51  ;;  %v15117_v19 = vld [vmem:[#allocation11_spill] sm:$0xff] }
 0x234   : > { %15030 = vst [vmem:[#allocation246_spill] sm:$0xff] %v8939_v16  ;;  %15031 = vst [vmem:[#allocation247_spill] sm:$0xff] %v8943_v14  ;;  %v8964_v14 = vmul.f32 %v8048_v53, %v7844_v22  ;;  %v8968_v16 = vmul.f32 %v8045_v41, %v7846_v25  ;;  %v8982_v22 = vmul.f32 %v8045_v41, %v7850_v24  ;;  %6685 = vmatpush2.bf16.msra.mxu1 %v6820_v51  ;;  %v6823_v51 = vld [vmem:[%s14317_s3 + $0xc0] ss:$8 sps:$4 sm:$0xff]  }
 0x235   : > { %15032 = vst [vmem:[#allocation248_spill] sm:$0xff] %v8947_v18  ;;  %15033 = vst [vmem:[#allocation249_spill] sm:$0xff] %v8951_v2  ;;  %v8974_v2 = vpop.permute.xlu0 %1575  ;;  %v6838_v18 = vld [vmem:[%s7150_s16 + $0x3b0] sm:$0xff]  ;;  %v8990_v25 = vmul.f32 %v8045_v41, %v7852_v27  ;;  %4308 = vmatprep.subr.bf16.mxu0 %v6821_v60  ;;  %6670 = vmatprep.subr.bf16.mxu1 %v6821_v60 }
 0x236   : > { %15034 = vst [vmem:[#allocation250_spill] sm:$0xff] %v8960_v20  ;;  %15035 = vst [vmem:[#allocation251_spill] sm:$0xff] %v8964_v14  ;;  %1819 = vperm.xlu1 %6785, %v6838_v18   ;;  %v8986_v14 = vmul.f32 %v8048_v53, %v7850_v24  ;;  %v6839_v20 = vld [vmem:[%s7150_s16 + $0x3b8] sm:$0xff]  ;;  %v8995_v18 = vmul.f32 %v8048_v53, %v7852_v27  ;;  %v9003_v24 = vmul.f32 %v8048_v53, %v7856_v26 }
 0x237   : > { %15036 = vst [vmem:[#allocation252_spill] sm:$0xff] %v8968_v16  ;;  %15037 = vst [vmem:[#allocation253_spill] sm:$0xff] %v8972_v23  ;;  %1823 = vperm.xlu0 %6784, %v6839_v20   ;;  %v8999_v23 = vmul.f32 %v8045_v41, %v7856_v26  ;;  %v9011_v20 = vmul.f32 %v8048_v53, %v7858_v29  ;;  %v9015_v27 = vmul.f32 %v8045_v41, %v7862_v28  ;;  %v9021_v26 = vpop.permute.xlu1 %1579  ;;  %v6824_v60 = vld [vmem:[%s14317_s3 + $0xb4] ss:$8 sps:$4 sm:$0xff]  }
 0x238   : > { %15038 = vst [vmem:[#allocation254_spill] sm:$0xff] %v8982_v22  ;;  %15039 = vst [vmem:[#allocation255_spill] sm:$0xff] %v8986_v14  ;;  %v9007_v14 = vmul.f32 %v8045_v41, %v7858_v29  ;;  %v9028_v29 = vmul.f32 %v8045_v41, %v7864_v31  ;;  %4309 = vmatpush2.bf16.msra.mxu0 %v6823_v51  ;;  %6686 = vmatpush2.bf16.msra.mxu1 %v6823_v51  ;;  %v6826_v51 = vld [vmem:[%s14317_s3 + $0xb0] ss:$8 sps:$4 sm:$0xff]  }
 0x239   : > { %15040 = vst [vmem:[#allocation256_spill] sm:$0xff] %v8990_v25  ;;  %15041 = vst [vmem:[#allocation257_spill] sm:$0xff] %v8995_v18  ;;  %4310 = vmatprep.subr.bf16.mxu0 %v6824_v60  ;;  %6671 = vmatprep.subr.bf16.mxu1 %v6824_v60  ;;  %v6846_v22 = vld [vmem:[%s7150_s16 + $0x3f0] sm:$0xff]  ;;  %v6847_v18 = vld [vmem:[%s7150_s16 + $0x3f8] sm:$0xff] }
 0x23a   : > { %15042 = vst [vmem:[#allocation258_spill] sm:$0xff] %v8999_v23  ;;  %15043 = vst [vmem:[#allocation259_spill] sm:$0xff] %v9003_v24  ;;  %v9019_v23 = vmul.f32 %v8048_v53, %v7862_v28  ;;  %v9032_v24 = vmul.f32 %v8048_v53, %v7864_v31  ;;  %v9040_v28 = vmul.f32 %v8048_v53, %v7868_v30  ;;  %v15111_v60 = vld [vmem:[#allocation13_spill] sm:$0xff] }
 0x23b   : > { %15044 = vst [vmem:[#allocation260_spill] sm:$0xff] %v9007_v14  ;;  %15045 = vst [vmem:[#allocation261_spill] sm:$0xff] %v9011_v20  ;;  %v6840_v20 = vld [vmem:[%s7150_s16 + $0x3c0] sm:$0xff]  ;;  %v9050_v31 = vmul.f32 %v8045_v41, %v7870_v33 }
 0x23c   : > { %15046 = vst [vmem:[#allocation262_spill] sm:$0xff] %v9015_v27  ;;  %15047 = vst [vmem:[#allocation263_spill] sm:$0xff] %v9019_v23  ;;  %v9036_v27 = vmul.f32 %v8045_v41, %v7868_v30  ;;  %v9042_v23 = vpop.permute.xlu0 %1583  ;;  %1827 = vperm.xlu1 %6785, %v6840_v20   ;;  %v9058_v30 = vmul.f32 %v8045_v41, %v7874_v32  ;;  %v9063_v20 = vmul.f32 %v8048_v53, %v7874_v32 }
 0x23d   : > { %15048 = vst [vmem:[#allocation264_spill] sm:$0xff] %v9028_v29  ;;  %15049 = vst [vmem:[#allocation265_spill] sm:$0xff] %v9032_v24  ;;  %v9054_v24 = vmul.f32 %v8048_v53, %v7870_v33  ;;  %v9071_v33 = vmul.f32 %v8048_v53, %v7876_v35  ;;  %v9083_v32 = vmul.f32 %v8045_v41, %v7882_v37  ;;  %4311 = vmatpush2.bf16.msra.mxu0 %v6826_v51 }
 0x23e   : > { %15050 = vst [vmem:[#allocation266_spill] sm:$0xff] %v9036_v27  ;;  %15051 = vst [vmem:[#allocation267_spill] sm:$0xff] %v9040_v28  ;;  %v6841_v28 = vld [vmem:[%s7150_s16 + $0x3c8] sm:$0xff]  ;;  %v9067_v27 = vmul.f32 %v8045_v41, %v7876_v35  ;;  %v9089_v35 = vpop.permute.xlu1 %1587  ;;  %6687 = vmatpush2.bf16.msra.mxu1 %v6826_v51  ;;  %v6830_v51 = vld [vmem:[%s14317_s3 + $0x94] ss:$8 sps:$4 sm:$0xff]  }
 0x23f   : > { %15052 = vst [vmem:[#allocation268_spill] sm:$0xff] %v9050_v31  ;;  %15053 = vst [vmem:[#allocation269_spill] sm:$0xff] %v9054_v24  ;;  %1831 = vperm.xlu0 %6784, %v6841_v28   ;;  %v9079_v28 = vmul.f32 %v8048_v53, %v7880_v34  ;;  %v15094_v31 = vld [vmem:[#allocation139_spill] sm:$0xff] }
 0x240   : > { %15054 = vst [vmem:[#allocation270_spill] sm:$0xff] %v9058_v30  ;;  %15055 = vst [vmem:[#allocation271_spill] sm:$0xff] %v9063_v20  ;;  %v9075_v30 = vmul.f32 %v8045_v41, %v7880_v34  ;;  %v9087_v20 = vmul.f32 %v8048_v53, %v7882_v37  ;;  %v9096_v34 = vmul.f32 %v8045_v41, %v7886_v36 }
 0x241   : > { %15056 = vst [vmem:[#allocation272_spill] sm:$0xff] %v9067_v27  ;;  %15057 = vst [vmem:[#allocation273_spill] sm:$0xff] %v9071_v33  ;;  %v6842_v33 = vld [vmem:[%s7150_s16 + $0x3d0] sm:$0xff]  ;;  %v15073_v27 = vld [vmem:[#allocation132_spill] sm:$0xff]  ;;  %v9203_v29 = vmul.f32 %v8045_v41, %v15094_v31 }
 0x242   : > { %15058 = vst [vmem:[#allocation274_spill] sm:$0xff] %v9075_v30  ;;  %15059 = vst [vmem:[#allocation275_spill] sm:$0xff] %v9079_v28  ;;  %v9100_v28 = vmul.f32 %v8048_v53, %v7886_v36  ;;  %v15064_v30 = vld [vmem:[#allocation129_spill] sm:$0xff]  ;;  %1835 = vperm.xlu1 %6785, %v6842_v33   ;;  %v9135_v24 = vmul.f32 %v8045_v41, %v15073_v27 }
 0x243   : > { %15060 = vst [vmem:[#allocation276_spill] sm:$0xff] %v9083_v32  ;;  %15061 = vst [vmem:[#allocation277_spill] sm:$0xff] %v9087_v20  ;;  %v9104_v32 = vmul.f32 %v8045_v41, %v15064_v30  ;;  %v9108_v37 = vmul.f32 %v8048_v53, %v15064_v30  ;;  %v9110_v20 = vpop.permute.xlu0 %1591 }
 0x244   : > { %15062 = vst [vmem:[#allocation278_spill] sm:$0xff] %v9096_v34  ;;  %15063 = vst [vmem:[#allocation279_spill] sm:$0xff] %v9100_v28  ;;  %v15067_v34 = vld [vmem:[#allocation130_spill] sm:$0xff] }
 0x245   : > { %15065 = vst [vmem:[#allocation129_spill] sm:$0xff] %v9104_v32  ;;  %15066 = vst [vmem:[#allocation280_spill] sm:$0xff] %v9108_v37  ;;  %v9118_v36 = vmul.f32 %v8045_v41, %v15067_v34  ;;  %v9122_v28 = vmul.f32 %v8048_v53, %v15067_v34  ;;  %v15070_v32 = vld [vmem:[#allocation131_spill] sm:$0xff]  ;;  %v9139_v34 = vmul.f32 %v8048_v53, %v15073_v27  ;;  %v9157_v27 = vpop.permute.xlu1 %1595 }
 0x246   : > { %v9126_v30 = vmul.f32 %v8045_v41, %v15070_v32  ;;  %v6843_v37 = vld [vmem:[%s7150_s16 + $0x3d8] sm:$0xff]  ;;  %v9131_v33 = vmul.f32 %v8048_v53, %v15070_v32  ;;  %15074 = vst [vmem:[#allocation132_spill] sm:$0xff] %v9135_v24  ;;  %15095 = vst [vmem:[#allocation139_spill] sm:$0xff] %v9203_v29 }
 0x247   : > { %15068 = vst [vmem:[#allocation130_spill] sm:$0xff] %v9118_v36  ;;  %15069 = vst [vmem:[#allocation281_spill] sm:$0xff] %v9122_v28  ;;  %1839 = vperm.xlu0 %6784, %v6843_v37   ;;  %v15076_v28 = vld [vmem:[#allocation133_spill] sm:$0xff]  ;;  %v15079_v32 = vld [vmem:[#allocation134_spill] sm:$0xff] }
 0x248   : > { %15071 = vst [vmem:[#allocation131_spill] sm:$0xff] %v9126_v30  ;;  %15072 = vst [vmem:[#allocation282_spill] sm:$0xff] %v9131_v33  ;;  %v9143_v36 = vmul.f32 %v8045_v41, %v15076_v28  ;;  %v9147_v37 = vmul.f32 %v8048_v53, %v15076_v28  ;;  %v9151_v33 = vmul.f32 %v8045_v41, %v15079_v32  ;;  %v6844_v30 = vld [vmem:[%s7150_s16 + $0x3e0] sm:$0xff] }
 0x249   : > { %15075 = vst [vmem:[#allocation283_spill] sm:$0xff] %v9139_v34  ;;  %v9155_v24 = vmul.f32 %v8048_v53, %v15079_v32  ;;  %v15082_v34 = vld [vmem:[#allocation135_spill] sm:$0xff]  ;;  %1843 = vperm.xlu1 %6785, %v6844_v30  }
 0x24a   : > { %15077 = vst [vmem:[#allocation133_spill] sm:$0xff] %v9143_v36  ;;  %15078 = vst [vmem:[#allocation284_spill] sm:$0xff] %v9147_v37  ;;  %v9164_v28 = vmul.f32 %v8045_v41, %v15082_v34  ;;  %v9168_v37 = vmul.f32 %v8048_v53, %v15082_v34  ;;  %v15103_v29 = vld [vmem:[#allocation7_spill] sm:$0xff] }
 0x24b   : > { %15080 = vst [vmem:[#allocation134_spill] sm:$0xff] %v9151_v33  ;;  %15081 = vst [vmem:[#allocation285_spill] sm:$0xff] %v9155_v24  ;;  %v15085_v33 = vld [vmem:[#allocation136_spill] sm:$0xff]  ;;  %v9178_v24 = vpop.permute.xlu0 %1599 }
 0x24c   : > { %15083 = vst [vmem:[#allocation135_spill] sm:$0xff] %v9164_v28  ;;  %15084 = vst [vmem:[#allocation286_spill] sm:$0xff] %v9168_v37  ;;  %v9172_v36 = vmul.f32 %v8045_v41, %v15085_v33  ;;  %v9176_v32 = vmul.f32 %v8048_v53, %v15085_v33  ;;  %v15088_v28 = vld [vmem:[#allocation137_spill] sm:$0xff] }
 0x24d   : > { %v9186_v34 = vmul.f32 %v8045_v41, %v15088_v28  ;;  %v9190_v37 = vmul.f32 %v8048_v53, %v15088_v28  ;;  %v9207_v28 = vmul.f32 %v8048_v53, %v15094_v31  ;;  %v9227_v31 = vmul.f32 %v8045_v41, %v15103_v29  ;;  %1851 = vperm.xlu1 %6785, %v6846_v22   ;;  %v15114_v22 = vld [vmem:[#allocation8_spill] sm:$0xff] }
 0x24e   : > { %15086 = vst [vmem:[#allocation136_spill] sm:$0xff] %v9172_v36  ;;  %15087 = vst [vmem:[#allocation287_spill] sm:$0xff] %v9176_v32  ;;  %v15091_v36 = vld [vmem:[#allocation138_spill] sm:$0xff]  ;;  %v6845_v32 = vld [vmem:[%s7150_s16 + $0x3e8] sm:$0xff]  ;;  %v9269_v25 = vmul.f32 %v8045_v41, %v15114_v22 }
 0x24f   : > { %15089 = vst [vmem:[#allocation137_spill] sm:$0xff] %v9186_v34  ;;  %15090 = vst [vmem:[#allocation288_spill] sm:$0xff] %v9190_v37  ;;  %v9194_v33 = vmul.f32 %v8045_v41, %v15091_v36  ;;  %1847 = vperm.xlu0 %6784, %v6845_v32   ;;  %v9199_v30 = vmul.f32 %v8048_v53, %v15091_v36  ;;  %v15097_v37 = vld [vmem:[#allocation5_spill] sm:$0xff]  ;;  %v15100_v36 = vld [vmem:[#allocation4_spill] sm:$0xff]  ;;  %v9250_v14 = vpop.permute.xlu0 %1607 }
 0x250   : > { %15096 = vst [vmem:[#allocation290_spill] sm:$0xff] %v9207_v28  ;;  %v9211_v34 = vmul.f32 %v8045_v41, %v15097_v37  ;;  %v9215_v32 = vmul.f32 %v8048_v53, %v15097_v37  ;;  %15104 = vst [vmem:[#allocation7_spill] sm:$0xff] %v9227_v31  ;;  %v9229_v28 = vpop.permute.xlu1 %1603  ;;  %v6827_v37 = vld [vmem:[%s14317_s3 + $0xa4] ss:$8 sps:$4 sm:$0xff]  }
 0x251   : > { %15092 = vst [vmem:[#allocation138_spill] sm:$0xff] %v9194_v33  ;;  %15093 = vst [vmem:[#allocation289_spill] sm:$0xff] %v9199_v30  ;;  %v9219_v30 = vmul.f32 %v8045_v41, %v15100_v36  ;;  %v9223_v33 = vmul.f32 %v8048_v53, %v15100_v36  ;;  %v15109_v31 = vld [vmem:[#allocation9_spill] sm:$0xff]  ;;  %4312 = vmatprep.subr.bf16.mxu0 %v6827_v37  ;;  %6672 = vmatprep.subr.bf16.mxu1 %v6827_v37 }
 0x252   : > { %15098 = vst [vmem:[#allocation5_spill] sm:$0xff] %v9211_v34  ;;  %15099 = vst [vmem:[#allocation291_spill] sm:$0xff] %v9215_v32  ;;  %v9236_v32 = vmul.f32 %v8048_v53, %v15103_v29  ;;  %v15106_v34 = vld [vmem:[#allocation6_spill] sm:$0xff]  ;;  %v6829_v29 = vld [vmem:[%s14317_s3 + $0xa0] ss:$8 sps:$4 sm:$0xff]   ;;  %6786 = vset.pattern.permute.xlu1 %v7069_v17 }
 0x253   : > { %15101 = vst [vmem:[#allocation4_spill] sm:$0xff] %v9219_v30  ;;  %15102 = vst [vmem:[#allocation292_spill] sm:$0xff] %v9223_v33  ;;  %v9240_v36 = vmul.f32 %v8045_v41, %v15106_v34  ;;  %v9244_v33 = vmul.f32 %v8048_v53, %v15106_v34  ;;  %v9248_v30 = vmul.f32 %v8045_v41, %v15109_v31  ;;  %v15112_v34 = vld [vmem:[#allocation12_spill] sm:$0xff]  ;;  %1855 = vperm.xlu0 %6784, %v6847_v18   ;;  %v9304_v10 = vpop.permute.xlu0 %1615  ;;  %v15125_v37 = vld [vmem:[#allocation21_spill] sm:$0xff] }
 0x254   : > { %15105 = vst [vmem:[#allocation293_spill] sm:$0xff] %v9236_v32  ;;  %v1878_v32 = vmul.f32 %v8676_v55, %v15111_v60  ;;  %15115 = vst [vmem:[#allocation12_spill] sm:$0xff] %v9269_v25  ;;  %v1877_v16 = vmul.f32 %v8679_v44, %v15112_v34  ;;  %4313 = vmatpush2.bf16.msra.mxu0 %v6829_v29  ;;  %v9279_v18 = vmul.f32 %v8045_v41, %v15117_v19  ;;  %v9287_v13 = vpop.permute.xlu1 %1611 }
 0x255   : > { %15107 = vst [vmem:[#allocation6_spill] sm:$0xff] %v9240_v36  ;;  %15108 = vst [vmem:[#allocation294_spill] sm:$0xff] %v9244_v33  ;;  %v1879_v36 = vmul.f32 %v8679_v44, %v15111_v60  ;;  %v1876_v33 = vmul.f32 %v8676_v55, %v15112_v34  ;;  %v9275_v60 = vmul.f32 %v8048_v53, %v15114_v22  ;;  %v15121_v34 = vld [vmem:[#allocation10_spill] sm:$0xff]  ;;  %4314 = vmatprep.subr.bf16.mxu0 %v6830_v51 }
 0x256   : > { %15110 = vst [vmem:[#allocation9_spill] sm:$0xff] %v9248_v30  ;;  %v9265_v30 = vmul.f32 %v8048_v53, %v15109_v31  ;;  %15118 = vst [vmem:[#allocation11_spill] sm:$0xff] %v9279_v18  ;;  %v9283_v31 = vmul.f32 %v8048_v53, %v15117_v19  ;;  %v9294_v22 = vmul.f32 %v8045_v41, %v15121_v34  ;;  %v6832_v41 = vld [vmem:[%s14317_s3 + $0x90] ss:$8 sps:$4 sm:$0xff]   ;;  %6688 = vmatpush2.bf16.msra.mxu1 %v6829_v29 }
 0x257   : > { %15116 = vst [vmem:[#allocation8_spill] sm:$0xff] %v9275_v60  ;;  %v9298_v18 = vmul.f32 %v8048_v53, %v15121_v34  ;;  %v15127_v53 = vld [vmem:[#allocation144_spill] sm:$0xff]  ;;  %6787 = vset.pattern.permute.xlu0 %v7069_v17  ;;  %v9320_v8 = vadd.f32 %v1877_v16, %v15131_v6  ;;  %v1885_v17 = vmul.f32 %v8679_v44, %v15133_v11 }
 0x258   : > { %15113 = vst [vmem:[#allocation13_spill] sm:$0xff] %v9265_v30  ;;  %15119 = vst [vmem:[#allocation295_spill] sm:$0xff] %v9283_v31  ;;  %v15120_v30 = vld [vmem:[#allocation15_spill] sm:$0xff]  ;;  %v15124_v31 = vld [vmem:[#allocation14_spill] sm:$0xff]  ;;  %v9313_v34 = vadd.f32 %v1879_v36, %v15127_v53  ;;  %v9334_v16 = vpop.permute.xlu1 %1619  ;;  %4315 = vmatpush2.bf16.msra.mxu0 %v6832_v41  ;;  %6673 = vmatprep.subr.bf16.mxu1 %v6830_v51 }
 0x259   : > { %v1880_v25 = vmul.f32 %v8676_v55, %v15120_v30  ;;  %15122 = vst [vmem:[#allocation15_spill] sm:$0xff] %v9294_v22  ;;  %15123 = vst [vmem:[#allocation10_spill] sm:$0xff] %v9298_v18  ;;  %v1881_v19 = vmul.f32 %v8679_v44, %v15120_v30  ;;  %v1882_v60 = vmul.f32 %v8676_v55, %v15124_v31  ;;  %v15129_v18 = vld [vmem:[#allocation16_spill] sm:$0xff]  ;;  %v15134_v36 = vld [vmem:[#allocation71_spill] sm:$0xff] }
 0x25a   : > { %v9310_v22 = vadd.f32 %v1878_v32, %v15125_v37  ;;  %15128 = vst [vmem:[#allocation21_spill] sm:$0xff] %v9313_v34  ;;  %v9316_v15 = vadd.f32 %v1876_v33, %v15129_v18  ;;  %v6848_v30 = vld [vmem:[%s7150_s16] sm:$0xff]  ;;  %15132 = vst [vmem:[#allocation16_spill] sm:$0xff] %v9320_v8  ;;  %v1883_v4 = vmul.f32 %v8679_v44, %v15124_v31  ;;  %v6849_v32 = vld [vmem:[%s7150_s16 + $0x8] sm:$0xff]  ;;  %6689 = vmatpush2.bf16.msra.mxu1 %v6832_v41 }
 0x25b   : > { %2389 = vperm.xlu1 %6786, %v6848_v30   ;;  %2393 = vperm.xlu0 %6787, %v6849_v32   ;;  %v9328_v37 = vadd.f32 %v1880_v25, %v15134_v36  ;;  %v15136_v33 = vld [vmem:[#allocation18_spill] sm:$0xff]  ;;  %v6833_v18 = vld [vmem:[%s14317_s3 + $0x84] ss:$8 sps:$4 sm:$0xff]   ;;  %v15141_v32 = vld [vmem:[#allocation23_spill] sm:$0xff]  ;;  %v9373_v5 = vadd.f32 %v1885_v17, %v15148_v3 }
 0x25c   : > { %15126 = vst [vmem:[#allocation14_spill] sm:$0xff] %v9310_v22  ;;  %15130 = vst [vmem:[#allocation144_spill] sm:$0xff] %v9316_v15  ;;  %v1886_v6 = vmul.f32 %v8676_v55, %v15136_v33  ;;  %v15137_v31 = vld [vmem:[#allocation70_spill] sm:$0xff]  ;;  %v15139_v25 = vld [vmem:[#allocation20_spill] sm:$0xff]  ;;  %v1887_v11 = vmul.f32 %v8679_v44, %v15136_v33  ;;  %v1888_v36 = vmul.f32 %v8676_v55, %v15141_v32  ;;  %4316 = vmatprep.subr.bf16.mxu0 %v6833_v18 }
 0x25d   : > { %15135 = vst [vmem:[#allocation17_spill] sm:$0xff] %v9328_v37  ;;  %v9340_v53 = vadd.f32 %v1881_v19, %v15137_v31  ;;  %v9343_v30 = vadd.f32 %v1882_v60, %v15139_v25  ;;  %v9349_v37 = vpop.permute.xlu0 %1623  ;;  %v6835_v34 = vld [vmem:[%s14317_s3 + $0x80] ss:$8 sps:$4 sm:$0xff]   ;;  %v1889_v29 = vmul.f32 %v8679_v44, %v15141_v32  ;;  %v15142_v19 = vld [vmem:[#allocation22_spill] sm:$0xff]  ;;  %15149 = vst [vmem:[#allocation20_spill] sm:$0xff] %v9373_v5  ;;  %6674 = vmatprep.subr.bf16.mxu1 %v6833_v18 }
 0x25e   : > { %v1890_v60 = vmul.f32 %v8676_v55, %v15142_v19  ;;  %v1891_v31 = vmul.f32 %v8679_v44, %v15142_v19  ;;  %v6850_v33 = vld [vmem:[%s7150_s16 + $0x10] sm:$0xff]  ;;  %v15143_v25 = vld [vmem:[#allocation143_spill] sm:$0xff]  ;;  %4317 = vmatpush2.bf16.msra.mxu0 %v6835_v34  ;;  %6690 = vmatpush2.bf16.msra.mxu1 %v6835_v34 }
 0x25f   : > { %15138 = vst [vmem:[#allocation19_spill] sm:$0xff] %v9340_v53  ;;  %15140 = vst [vmem:[#allocation71_spill] sm:$0xff] %v9343_v30  ;;  %2397 = vperm.xlu1 %6786, %v6850_v33   ;;  %v9362_v30 = vadd.f32 %v1883_v4, %v15143_v25  ;;  %v15145_v53 = vld [vmem:[#allocation25_spill] sm:$0xff]  ;;  %v15147_v8 = vld [vmem:[#allocation27_spill] sm:$0xff] }
 0x260   : > { %v9365_v22 = vadd.f32 %v1884_v63, %v15145_v53  ;;  %v1892_v51 = vmul.f32 %v8676_v55, %v15147_v8  ;;  %v1893_v32 = vmul.f32 %v8679_v44, %v15147_v8  ;;  %v6851_v15 = vld [vmem:[%s7150_s16 + $0x20] sm:$0xff]  ;;  %v15152_v4 = vld [vmem:[#allocation26_spill] sm:$0xff]  ;;  %v9380_v63 = vpop.permute.xlu1 %1627 }
 0x261   : > { %15144 = vst [vmem:[#allocation18_spill] sm:$0xff] %v9362_v30  ;;  %2405 = vperm.xlu0 %6787, %v6851_v15   ;;  %v15150_v19 = vld [vmem:[#allocation75_spill] sm:$0xff]  ;;  %v1894_v25 = vmul.f32 %v8676_v55, %v15152_v4  ;;  %v15153_v53 = vld [vmem:[#allocation24_spill] sm:$0xff]  ;;  %v1895_v8 = vmul.f32 %v8679_v44, %v15152_v4  ;;  %v15168_v18 = vld [vmem:[#allocation30_spill] sm:$0xff] }
 0x262   : > { %15146 = vst [vmem:[#allocation70_spill] sm:$0xff] %v9365_v22  ;;  %v9376_v33 = vadd.f32 %v1886_v6, %v15150_v19  ;;  %v9383_v22 = vadd.f32 %v1887_v11, %v15153_v53  ;;  %v15155_v3 = vld [vmem:[#allocation31_spill] sm:$0xff]  ;;  %v9391_v6 = vpop.permute.xlu0 %1631  ;;  %v15156_v19 = vld [vmem:[#allocation29_spill] sm:$0xff]  ;;  %v15160_v11 = vld [vmem:[#allocation74_spill] sm:$0xff]  ;;  %v9407_v56 = vadd.f32 %v1892_v51, %v15164_v0 }
 0x263   : > { %v1896_v15 = vmul.f32 %v8676_v55, %v15155_v3  ;;  %v1897_v17 = vmul.f32 %v8679_v44, %v15155_v3  ;;  %v15158_v41 = vld [vmem:[#allocation147_spill] sm:$0xff]  ;;  %v9400_v53 = vadd.f32 %v1890_v60, %v15160_v11  ;;  %v15166_v3 = vld [vmem:[#allocation149_spill] sm:$0xff]  ;;  %v15169_v60 = vld [vmem:[#allocation32_spill] sm:$0xff] }
 0x264   : > { %15151 = vst [vmem:[#allocation23_spill] sm:$0xff] %v9376_v33  ;;  %15154 = vst [vmem:[#allocation22_spill] sm:$0xff] %v9383_v22  ;;  %v9394_v33 = vadd.f32 %v1888_v36, %v15156_v19  ;;  %v9397_v30 = vadd.f32 %v1889_v29, %v15158_v41  ;;  %v15162_v22 = vld [vmem:[#allocation28_spill] sm:$0xff]  ;;  %v6852_v5 = vld [vmem:[%s7150_s16 + $0x18] sm:$0xff]  ;;  %v9410_v61 = vadd.f32 %v1893_v32, %v15166_v3  ;;  %v9426_v41 = vpop.permute.xlu1 %1635 }
 0x265   : > { %15161 = vst [vmem:[#allocation27_spill] sm:$0xff] %v9400_v53  ;;  %v9403_v4 = vadd.f32 %v1891_v31, %v15162_v22  ;;  %2401 = vperm.xlu1 %6786, %v6852_v5   ;;  %15165 = vst [vmem:[#allocation75_spill] sm:$0xff] %v9407_v56  ;;  %v1898_v36 = vmul.f32 %v8676_v55, %v15168_v18  ;;  %v1899_v29 = vmul.f32 %v8679_v44, %v15168_v18  ;;  %v6853_v19 = vld [vmem:[%s7150_s16 + $0x30] sm:$0xff]  ;;  %v15171_v31 = vld [vmem:[#allocation35_spill] sm:$0xff] }
 0x266   : > { %15157 = vst [vmem:[#allocation143_spill] sm:$0xff] %v9394_v33  ;;  %15159 = vst [vmem:[#allocation25_spill] sm:$0xff] %v9397_v30  ;;  %2413 = vperm.xlu0 %6787, %v6853_v19   ;;  %v9418_v22 = vadd.f32 %v1894_v25, %v15169_v60  ;;  %v1900_v5 = vmul.f32 %v8676_v55, %v15171_v31  ;;  %v1901_v0 = vmul.f32 %v8679_v44, %v15171_v31  ;;  %v15172_v51 = vld [vmem:[#allocation34_spill] sm:$0xff]  ;;  %v15173_v11 = vld [vmem:[#allocation148_spill] sm:$0xff]  ;;  %v9439_v31 = vpop.permute.xlu0 %1639 }
 0x267   : > { %15163 = vst [vmem:[#allocation146_spill] sm:$0xff] %v9403_v4  ;;  %15167 = vst [vmem:[#allocation26_spill] sm:$0xff] %v9410_v61  ;;  %v1902_v32 = vmul.f32 %v8676_v55, %v15172_v51  ;;  %v9429_v3 = vadd.f32 %v1895_v8, %v15173_v11  ;;  %v15175_v18 = vld [vmem:[#allocation37_spill] sm:$0xff]  ;;  %v15177_v25 = vld [vmem:[#allocation152_spill] sm:$0xff] }
 0x268   : > { %15170 = vst [vmem:[#allocation24_spill] sm:$0xff] %v9418_v22  ;;  %v9432_v19 = vadd.f32 %v1896_v15, %v15175_v18  ;;  %v9435_v60 = vadd.f32 %v1897_v17, %v15177_v25  ;;  %v1903_v22 = vmul.f32 %v8679_v44, %v15172_v51  ;;  %v15179_v56 = vld [vmem:[#allocation39_spill] sm:$0xff]  ;;  %v15180_v33 = vld [vmem:[#allocation38_spill] sm:$0xff]  ;;  %v6854_v11 = vld [vmem:[%s7150_s16 + $0x28] sm:$0xff] }
 0x269   : > { %15174 = vst [vmem:[#allocation31_spill] sm:$0xff] %v9429_v3  ;;  %v1904_v61 = vmul.f32 %v8676_v55, %v15179_v56  ;;  %v1905_v34 = vmul.f32 %v8679_v44, %v15179_v56  ;;  %v1906_v8 = vmul.f32 %v8676_v55, %v15180_v33  ;;  %v1907_v15 = vmul.f32 %v8679_v44, %v15180_v33  ;;  %v15181_v17 = vld [vmem:[#allocation36_spill] sm:$0xff]  ;;  %v15183_v51 = vld [vmem:[#allocation151_spill] sm:$0xff]  ;;  %v15186_v53 = vld [vmem:[#allocation41_spill] sm:$0xff] }
 0x26a   : > { %15176 = vst [vmem:[#allocation29_spill] sm:$0xff] %v9432_v19  ;;  %15178 = vst [vmem:[#allocation147_spill] sm:$0xff] %v9435_v60  ;;  %2409 = vperm.xlu1 %6786, %v6854_v11   ;;  %v9451_v18 = vadd.f32 %v1898_v36, %v15181_v17  ;;  %v9454_v25 = vadd.f32 %v1899_v29, %v15183_v51  ;;  %v15185_v60 = vld [vmem:[#allocation43_spill] sm:$0xff]  ;;  %v9462_v4 = vadd.f32 %v1900_v5, %v15186_v53  ;;  %v15188_v33 = vld [vmem:[#allocation154_spill] sm:$0xff] }
 0x26b   : > { %v1908_v19 = vmul.f32 %v8676_v55, %v15185_v60  ;;  %v1909_v56 = vmul.f32 %v8679_v44, %v15185_v60  ;;  %v6855_v3 = vld [vmem:[%s7150_s16 + $0x40] sm:$0xff]  ;;  %v9465_v11 = vadd.f32 %v1901_v0, %v15188_v33  ;;  %v15192_v29 = vld [vmem:[#allocation42_spill] sm:$0xff]  ;;  %v15198_v33 = vld [vmem:[#allocation45_spill] sm:$0xff] }
 0x26c   : > { %15182 = vst [vmem:[#allocation74_spill] sm:$0xff] %v9451_v18  ;;  %15184 = vst [vmem:[#allocation28_spill] sm:$0xff] %v9454_v25  ;;  %2421 = vperm.xlu0 %6787, %v6855_v3   ;;  %v15190_v36 = vld [vmem:[#allocation79_spill] sm:$0xff]  ;;  %v1910_v51 = vmul.f32 %v8676_v55, %v15192_v29  ;;  %v9472_v18 = vpop.permute.xlu1 %1643  ;;  %v15194_v25 = vld [vmem:[#allocation40_spill] sm:$0xff]  ;;  %v1911_v3 = vmul.f32 %v8679_v44, %v15192_v29 }
 0x26d   : > { %15187 = vst [vmem:[#allocation33_spill] sm:$0xff] %v9462_v4  ;;  %15189 = vst [vmem:[#allocation149_spill] sm:$0xff] %v9465_v11  ;;  %v9468_v17 = vadd.f32 %v1902_v32, %v15190_v36  ;;  %v9475_v60 = vadd.f32 %v1903_v22, %v15194_v25  ;;  %v15196_v53 = vld [vmem:[#allocation47_spill] sm:$0xff]  ;;  %v9483_v32 = vpop.permute.xlu0 %1647  ;;  %v9486_v36 = vadd.f32 %v1904_v61, %v15198_v33  ;;  %v15202_v4 = vld [vmem:[#allocation78_spill] sm:$0xff] }
 0x26e   : > { %15193 = vst [vmem:[#allocation32_spill] sm:$0xff] %v9472_v18  ;;  %v1912_v5 = vmul.f32 %v8676_v55, %v15196_v53  ;;  %v1913_v0 = vmul.f32 %v8679_v44, %v15196_v53  ;;  %15197 = vst [vmem:[#allocation34_spill] sm:$0xff] %v9483_v32  ;;  %v9492_v22 = vadd.f32 %v1906_v8, %v15202_v4  ;;  %v15204_v25 = vld [vmem:[#allocation44_spill] sm:$0xff]  ;;  %v6856_v29 = vld [vmem:[%s7150_s16 + $0x38] sm:$0xff] }
 0x26f   : > { %15191 = vst [vmem:[#allocation30_spill] sm:$0xff] %v9468_v17  ;;  %15195 = vst [vmem:[#allocation35_spill] sm:$0xff] %v9475_v60  ;;  %v15200_v17 = vld [vmem:[#allocation155_spill] sm:$0xff]  ;;  %v9495_v60 = vadd.f32 %v1907_v15, %v15204_v25  ;;  %2417 = vperm.xlu1 %6786, %v6856_v29   ;;  %v15206_v30 = vld [vmem:[#allocation49_spill] sm:$0xff] }
 0x270   : > { %15199 = vst [vmem:[#allocation148_spill] sm:$0xff] %v9486_v36  ;;  %v9489_v11 = vadd.f32 %v1905_v34, %v15200_v17  ;;  %15203 = vst [vmem:[#allocation152_spill] sm:$0xff] %v9492_v22  ;;  %v9499_v59 = vadd.f32 %v1908_v19, %v15206_v30  ;;  %v15208_v53 = vld [vmem:[#allocation157_spill] sm:$0xff]  ;;  %v15210_v32 = vld [vmem:[#allocation46_spill] sm:$0xff]  ;;  %v9518_v25 = vpop.permute.xlu1 %1651 }
 0x271   : > { %15205 = vst [vmem:[#allocation39_spill] sm:$0xff] %v9495_v60  ;;  %v9502_v18 = vadd.f32 %v1909_v56, %v15208_v53  ;;  %v1914_v61 = vmul.f32 %v8676_v55, %v15210_v32  ;;  %v1915_v34 = vmul.f32 %v8679_v44, %v15210_v32  ;;  %v6857_v17 = vld [vmem:[%s7150_s16 + $0x50] sm:$0xff]  ;;  %v15211_v4 = vld [vmem:[#allocation48_spill] sm:$0xff]  ;;  %v15213_v15 = vld [vmem:[#allocation51_spill] sm:$0xff]  ;;  %v9531_v22 = vpop.permute.xlu0 %1655 }
 0x272   : > { %15201 = vst [vmem:[#allocation37_spill] sm:$0xff] %v9489_v11  ;;  %15207 = vst [vmem:[#allocation38_spill] sm:$0xff] %v9499_v59  ;;  %2429 = vperm.xlu0 %6787, %v6857_v17   ;;  %v9510_v8 = vadd.f32 %v1910_v51, %v15211_v4  ;;  %v1916_v33 = vmul.f32 %v8676_v55, %v15213_v15  ;;  %v1917_v30 = vmul.f32 %v8679_v44, %v15213_v15  ;;  %v15214_v19 = vld [vmem:[#allocation50_spill] sm:$0xff]  ;;  %v15216_v29 = vld [vmem:[#allocation156_spill] sm:$0xff] }
 0x273   : > { %15209 = vst [vmem:[#allocation36_spill] sm:$0xff] %v9502_v18  ;;  %v1918_v56 = vmul.f32 %v8676_v55, %v15214_v19  ;;  %15215 = vst [vmem:[#allocation43_spill] sm:$0xff] %v9518_v25  ;;  %v9521_v32 = vadd.f32 %v1911_v3, %v15216_v29  ;;  %v15218_v53 = vld [vmem:[#allocation53_spill] sm:$0xff]  ;;  %v15220_v51 = vld [vmem:[#allocation160_spill] sm:$0xff] }
 0x274   : > { %15212 = vst [vmem:[#allocation151_spill] sm:$0xff] %v9510_v8  ;;  %v9524_v17 = vadd.f32 %v1912_v5, %v15218_v53  ;;  %v9527_v4 = vadd.f32 %v1913_v0, %v15220_v51  ;;  %v1919_v8 = vmul.f32 %v8679_v44, %v15214_v19  ;;  %15222 = vst [vmem:[#allocation42_spill] sm:$0xff] %v9531_v22  ;;  %v15223_v15 = vld [vmem:[#allocation54_spill] sm:$0xff]  ;;  %v15224_v59 = vld [vmem:[#allocation140_spill] sm:$0xff] }
 0x275   : > { %15217 = vst [vmem:[#allocation41_spill] sm:$0xff] %v9521_v32  ;;  %v1920_v60 = vmul.f32 %v8676_v55, %v15223_v15  ;;  %v1921_v18 = vmul.f32 %v8679_v44, %v15223_v15  ;;  %v1922_v3 = vmul.f32 %v8676_v55, %v15224_v59  ;;  %v1923_v5 = vmul.f32 %v8679_v44, %v15224_v59  ;;  %v6858_v29 = vld [vmem:[%s7150_s16 + $0x48] sm:$0xff]  ;;  %v15227_v19 = vld [vmem:[#allocation159_spill] sm:$0xff]  ;;  %v15229_v32 = vld [vmem:[#allocation58_spill] sm:$0xff] }
 0x276   : > { %15219 = vst [vmem:[#allocation154_spill] sm:$0xff] %v9524_v17  ;;  %15221 = vst [vmem:[#allocation79_spill] sm:$0xff] %v9527_v4  ;;  %2425 = vperm.xlu1 %6786, %v6858_v29   ;;  %v15225_v0 = vld [vmem:[#allocation52_spill] sm:$0xff]  ;;  %v9546_v51 = vadd.f32 %v1915_v34, %v15227_v19  ;;  %v1924_v4 = vmul.f32 %v8676_v55, %v15229_v32  ;;  %v1925_v15 = vmul.f32 %v8679_v44, %v15229_v32  ;;  %v15230_v11 = vld [vmem:[#allocation57_spill] sm:$0xff] }
 0x277   : > { %v9543_v53 = vadd.f32 %v1914_v61, %v15225_v0  ;;  %v6859_v17 = vld [vmem:[%s7150_s16 + $0x60] sm:$0xff]  ;;  %v9554_v36 = vadd.f32 %v1916_v33, %v15230_v11  ;;  %v15232_v59 = vld [vmem:[#allocation162_spill] sm:$0xff]  ;;  %v15236_v34 = vld [vmem:[#allocation141_spill] sm:$0xff] }
 0x278   : > { %15228 = vst [vmem:[#allocation47_spill] sm:$0xff] %v9546_v51  ;;  %2437 = vperm.xlu0 %6787, %v6859_v17   ;;  %v9557_v29 = vadd.f32 %v1917_v30, %v15232_v59  ;;  %v15234_v61 = vld [vmem:[#allocation83_spill] sm:$0xff]  ;;  %v1926_v19 = vmul.f32 %v8676_v55, %v15236_v34  ;;  %v9564_v51 = vpop.permute.xlu1 %1659  ;;  %v1927_v17 = vmul.f32 %v8679_v44, %v15236_v34  ;;  %v15242_v59 = vld [vmem:[#allocation61_spill] sm:$0xff] }
 0x279   : > { %15226 = vst [vmem:[#allocation40_spill] sm:$0xff] %v9543_v53  ;;  %15231 = vst [vmem:[#allocation45_spill] sm:$0xff] %v9554_v36  ;;  %v9560_v0 = vadd.f32 %v1918_v56, %v15234_v61  ;;  %v15238_v53 = vld [vmem:[#allocation56_spill] sm:$0xff]  ;;  %v15240_v11 = vld [vmem:[#allocation63_spill] sm:$0xff]  ;;  %v9575_v56 = vpop.permute.xlu0 %1663  ;;  %v9578_v61 = vadd.f32 %v1920_v60, %v15242_v59 }
 0x27a   : > { %15233 = vst [vmem:[#allocation155_spill] sm:$0xff] %v9557_v29  ;;  %15237 = vst [vmem:[#allocation44_spill] sm:$0xff] %v9564_v51  ;;  %v9567_v32 = vadd.f32 %v1919_v8, %v15238_v53  ;;  %v1928_v33 = vmul.f32 %v8676_v55, %v15240_v11  ;;  %v1929_v30 = vmul.f32 %v8679_v44, %v15240_v11  ;;  %v15246_v36 = vld [vmem:[#allocation82_spill] sm:$0xff]  ;;  %v15248_v53 = vld [vmem:[#allocation60_spill] sm:$0xff] }
 0x27b   : > { %15235 = vst [vmem:[#allocation78_spill] sm:$0xff] %v9560_v0  ;;  %15241 = vst [vmem:[#allocation157_spill] sm:$0xff] %v9575_v56  ;;  %v15244_v0 = vld [vmem:[#allocation163_spill] sm:$0xff]  ;;  %v9584_v8 = vadd.f32 %v1922_v3, %v15246_v36  ;;  %v15250_v51 = vld [vmem:[#allocation65_spill] sm:$0xff] }
 0x27c   : > { %15239 = vst [vmem:[#allocation49_spill] sm:$0xff] %v9567_v32  ;;  %15243 = vst [vmem:[#allocation46_spill] sm:$0xff] %v9578_v61  ;;  %v9581_v29 = vadd.f32 %v1921_v18, %v15244_v0  ;;  %v9587_v32 = vadd.f32 %v1923_v5, %v15248_v53  ;;  %v6860_v34 = vld [vmem:[%s7150_s16 + $0x58] sm:$0xff]  ;;  %v9591_v22 = vadd.f32 %v1924_v4, %v15250_v51  ;;  %v15252_v11 = vld [vmem:[#allocation165_spill] sm:$0xff]  ;;  %v9610_v53 = vpop.permute.xlu1 %1667 }
 0x27d   : > { %15247 = vst [vmem:[#allocation51_spill] sm:$0xff] %v9584_v8  ;;  %2433 = vperm.xlu1 %6786, %v6860_v34   ;;  %v9594_v25 = vadd.f32 %v1925_v15, %v15252_v11  ;;  %v15254_v56 = vld [vmem:[#allocation62_spill] sm:$0xff]  ;;  %v15255_v36 = vld [vmem:[#allocation64_spill] sm:$0xff]  ;;  %v15257_v5 = vld [vmem:[#allocation67_spill] sm:$0xff] }
 0x27e   : > { %15245 = vst [vmem:[#allocation48_spill] sm:$0xff] %v9581_v29  ;;  %15249 = vst [vmem:[#allocation50_spill] sm:$0xff] %v9587_v32  ;;  %v1930_v60 = vmul.f32 %v8676_v55, %v15254_v56  ;;  %v1931_v18 = vmul.f32 %v8679_v44, %v15254_v56  ;;  %v6861_v0 = vld [vmem:[%s7150_s16 + $0x70] sm:$0xff]  ;;  %v9602_v3 = vadd.f32 %v1926_v19, %v15255_v36  ;;  %v15260_v34 = vld [vmem:[#allocation164_spill] sm:$0xff]  ;;  %v9623_v32 = vpop.permute.xlu0 %1671 }
 0x27f   : > { %15251 = vst [vmem:[#allocation156_spill] sm:$0xff] %v9591_v22  ;;  %15253 = vst [vmem:[#allocation53_spill] sm:$0xff] %v9594_v25  ;;  %2445 = vperm.xlu0 %6787, %v6861_v0   ;;  %v1932_v59 = vmul.f32 %v8676_v55, %v15257_v5  ;;  %v1933_v4 = vmul.f32 %v8679_v44, %v15257_v5  ;;  %v15258_v51 = vld [vmem:[#allocation66_spill] sm:$0xff]  ;;  %v9613_v56 = vadd.f32 %v1927_v17, %v15260_v34  ;;  %v15262_v11 = vld [vmem:[#allocation69_spill] sm:$0xff] }
 0x280   : > { %15256 = vst [vmem:[#allocation160_spill] sm:$0xff] %v9602_v3  ;;  %v1934_v15 = vmul.f32 %v8676_v55, %v15258_v51  ;;  %15259 = vst [vmem:[#allocation54_spill] sm:$0xff] %v9610_v53  ;;  %v9616_v0 = vadd.f32 %v1928_v33, %v15262_v11  ;;  %v15264_v19 = vld [vmem:[#allocation168_spill] sm:$0xff]  ;;  %v1935_v3 = vmul.f32 %v8679_v44, %v15258_v51  ;;  %v15267_v5 = vld [vmem:[#allocation142_spill] sm:$0xff] }
 0x281   : > { %15261 = vst [vmem:[#allocation140_spill] sm:$0xff] %v9613_v56  ;;  %v9619_v36 = vadd.f32 %v1929_v30, %v15264_v19  ;;  %15266 = vst [vmem:[#allocation58_spill] sm:$0xff] %v9623_v32  ;;  %v1936_v8 = vmul.f32 %v8676_v55, %v15267_v5  ;;  %v1937_v25 = vmul.f32 %v8679_v44, %v15267_v5  ;;  %v15268_v22 = vld [vmem:[#allocation145_spill] sm:$0xff]  ;;  %v15269_v30 = vld [vmem:[#allocation68_spill] sm:$0xff] }
 0x282   : > { %15263 = vst [vmem:[#allocation52_spill] sm:$0xff] %v9616_v0  ;;  %v1938_v17 = vmul.f32 %v8676_v55, %v15268_v22  ;;  %v1939_v33 = vmul.f32 %v8679_v44, %v15268_v22  ;;  %v6862_v34 = vld [vmem:[%s7150_s16 + $0x68] sm:$0xff]  ;;  %v9635_v11 = vadd.f32 %v1930_v60, %v15269_v30  ;;  %v15271_v51 = vld [vmem:[#allocation167_spill] sm:$0xff]  ;;  %v15273_v56 = vld [vmem:[#allocation150_spill] sm:$0xff] }
 0x283   : > { %15265 = vst [vmem:[#allocation159_spill] sm:$0xff] %v9619_v36  ;;  %2441 = vperm.xlu1 %6786, %v6862_v34   ;;  %v9638_v19 = vadd.f32 %v1931_v18, %v15271_v51  ;;  %v1940_v36 = vmul.f32 %v8676_v55, %v15273_v56  ;;  %v1941_v5 = vmul.f32 %v8679_v44, %v15273_v56  ;;  %v6863_v0 = vld [vmem:[%s7150_s16 + $0x80] sm:$0xff]  ;;  %v15274_v29 = vld [vmem:[#allocation73_spill] sm:$0xff]  ;;  %v15276_v22 = vld [vmem:[#allocation170_spill] sm:$0xff] }
 0x284   : > { %15270 = vst [vmem:[#allocation57_spill] sm:$0xff] %v9635_v11  ;;  %2453 = vperm.xlu0 %6787, %v6863_v0   ;;  %v9646_v61 = vadd.f32 %v1932_v59, %v15274_v29  ;;  %v9649_v34 = vadd.f32 %v1933_v4, %v15276_v22  ;;  %v15278_v60 = vld [vmem:[#allocation87_spill] sm:$0xff]  ;;  %v15280_v18 = vld [vmem:[#allocation153_spill] sm:$0xff]  ;;  %v15282_v11 = vld [vmem:[#allocation72_spill] sm:$0xff] }
 0x285   : > { %15272 = vst [vmem:[#allocation162_spill] sm:$0xff] %v9638_v19  ;;  %v9652_v30 = vadd.f32 %v1934_v15, %v15278_v60  ;;  %v1942_v51 = vmul.f32 %v8676_v55, %v15280_v18  ;;  %v9656_v19 = vpop.permute.xlu1 %1675  ;;  %v9659_v56 = vadd.f32 %v1935_v3, %v15282_v11  ;;  %v1943_v0 = vmul.f32 %v8679_v44, %v15280_v18  ;;  %v15284_v29 = vld [vmem:[#allocation158_spill] sm:$0xff]  ;;  %v9667_v15 = vpop.permute.xlu0 %1679  ;;  %v15286_v22 = vld [vmem:[#allocation77_spill] sm:$0xff]  ;;  %v15292_v11 = vld [vmem:[#allocation76_spill] sm:$0xff] }
 0x286   : > { %15275 = vst [vmem:[#allocation83_spill] sm:$0xff] %v9646_v61  ;;  %15277 = vst [vmem:[#allocation141_spill] sm:$0xff] %v9649_v34  ;;  %v1944_v59 = vmul.f32 %v8676_v55, %v15284_v29  ;;  %v1945_v4 = vmul.f32 %v8679_v44, %v15284_v29  ;;  %v9670_v60 = vadd.f32 %v1936_v8, %v15286_v22  ;;  %v15290_v61 = vld [vmem:[#allocation86_spill] sm:$0xff]  ;;  %v15296_v29 = vld [vmem:[#allocation173_spill] sm:$0xff] }
 0x287   : > { %15279 = vst [vmem:[#allocation56_spill] sm:$0xff] %v9652_v30  ;;  %15281 = vst [vmem:[#allocation63_spill] sm:$0xff] %v9656_v19  ;;  %v15288_v30 = vld [vmem:[#allocation171_spill] sm:$0xff]  ;;  %v9676_v3 = vadd.f32 %v1938_v17, %v15290_v61  ;;  %v15294_v19 = vld [vmem:[#allocation81_spill] sm:$0xff]  ;;  %v9686_v53 = vadd.f32 %v1941_v5, %v15296_v29 }
 0x288   : > { %15283 = vst [vmem:[#allocation61_spill] sm:$0xff] %v9659_v56  ;;  %15285 = vst [vmem:[#allocation163_spill] sm:$0xff] %v9667_v15  ;;  %v9673_v34 = vadd.f32 %v1937_v25, %v15288_v30  ;;  %v9679_v56 = vadd.f32 %v1939_v33, %v15292_v11  ;;  %v6864_v18 = vld [vmem:[%s7150_s16 + $0x78] sm:$0xff]  ;;  %v9683_v32 = vadd.f32 %v1940_v36, %v15294_v19  ;;  %v15298_v15 = vld [vmem:[#allocation161_spill] sm:$0xff] }
 0x289   : > { %15287 = vst [vmem:[#allocation82_spill] sm:$0xff] %v9670_v60  ;;  %15291 = vst [vmem:[#allocation65_spill] sm:$0xff] %v9676_v3  ;;  %2449 = vperm.xlu1 %6786, %v6864_v18   ;;  %v1946_v8 = vmul.f32 %v8676_v55, %v15298_v15  ;;  %v1947_v25 = vmul.f32 %v8679_v44, %v15298_v15  ;;  %v6865_v30 = vld [vmem:[%s7150_s16 + $0x90] sm:$0xff]  ;;  %v15299_v61 = vld [vmem:[#allocation80_spill] sm:$0xff]  ;;  %v9702_v11 = vpop.permute.xlu1 %1683 }
 0x28a   : > { %15289 = vst [vmem:[#allocation60_spill] sm:$0xff] %v9673_v34  ;;  %15293 = vst [vmem:[#allocation165_spill] sm:$0xff] %v9679_v56  ;;  %2461 = vperm.xlu0 %6787, %v6865_v30   ;;  %v9694_v17 = vadd.f32 %v1942_v51, %v15299_v61  ;;  %v15301_v33 = vld [vmem:[#allocation166_spill] sm:$0xff]  ;;  %v15302_v19 = vld [vmem:[#allocation169_spill] sm:$0xff]  ;;  %v9715_v56 = vpop.permute.xlu0 %1687 }
 0x28b   : > { %15295 = vst [vmem:[#allocation62_spill] sm:$0xff] %v9683_v32  ;;  %15297 = vst [vmem:[#allocation64_spill] sm:$0xff] %v9686_v53  ;;  %v1948_v22 = vmul.f32 %v8676_v55, %v15301_v33  ;;  %v1949_v36 = vmul.f32 %v8679_v44, %v15301_v33  ;;  %v1950_v5 = vmul.f32 %v8676_v55, %v15302_v19  ;;  %v15304_v18 = vld [vmem:[#allocation172_spill] sm:$0xff]  ;;  %v15306_v29 = vld [vmem:[#allocation85_spill] sm:$0xff] }
 0x28c   : > { %15300 = vst [vmem:[#allocation67_spill] sm:$0xff] %v9694_v17  ;;  %15303 = vst [vmem:[#allocation66_spill] sm:$0xff] %v9702_v11  ;;  %v9705_v15 = vadd.f32 %v1943_v0, %v15304_v18  ;;  %v9708_v30 = vadd.f32 %v1944_v59, %v15306_v29  ;;  %v15308_v51 = vld [vmem:[#allocation176_spill] sm:$0xff]  ;;  %v1951_v17 = vmul.f32 %v8679_v44, %v15302_v19  ;;  %v15311_v33 = vld [vmem:[#allocation174_spill] sm:$0xff] }
 0x28d   : > { %v9711_v61 = vadd.f32 %v1945_v4, %v15308_v51  ;;  %15310 = vst [vmem:[#allocation142_spill] sm:$0xff] %v9715_v56  ;;  %v1952_v3 = vmul.f32 %v8676_v55, %v15311_v33  ;;  %v1953_v53 = vmul.f32 %v8679_v44, %v15311_v33  ;;  %v15312_v32 = vld [vmem:[#allocation177_spill] sm:$0xff]  ;;  %v15313_v4 = vld [vmem:[#allocation84_spill] sm:$0xff]  ;;  %v15315_v19 = vld [vmem:[#allocation175_spill] sm:$0xff] }
 0x28e   : > { %15305 = vst [vmem:[#allocation164_spill] sm:$0xff] %v9705_v15  ;;  %15307 = vst [vmem:[#allocation69_spill] sm:$0xff] %v9708_v30  ;;  %v1954_v0 = vmul.f32 %v8676_v55, %v15312_v32  ;;  %v1955_v59 = vmul.f32 %v8679_v44, %v15312_v32  ;;  %v6866_v18 = vld [vmem:[%s7150_s16 + $0x88] sm:$0xff]  ;;  %v9727_v29 = vadd.f32 %v1946_v8, %v15313_v4  ;;  %v6867_v30 = vld [vmem:[%s7150_s16 + $0xa0] sm:$0xff] }
 0x28f   : > { %15309 = vst [vmem:[#allocation168_spill] sm:$0xff] %v9711_v61  ;;  %2457 = vperm.xlu1 %6786, %v6866_v18   ;;  %v9730_v51 = vadd.f32 %v1947_v25, %v15315_v19  ;;  %v15317_v15 = vld [vmem:[#allocation181_spill] sm:$0xff]  ;;  %2469 = vperm.xlu0 %6787, %v6867_v30   ;;  %v15320_v32 = vld [vmem:[#allocation90_spill] sm:$0xff]  ;;  %v15322_v8 = vld [vmem:[#allocation91_spill] sm:$0xff] }
 0x290   : > { %15314 = vst [vmem:[#allocation145_spill] sm:$0xff] %v9727_v29  ;;  %v1956_v61 = vmul.f32 %v8676_v55, %v15317_v15  ;;  %v1957_v33 = vmul.f32 %v8679_v44, %v15317_v15  ;;  %v15318_v34 = vld [vmem:[#allocation89_spill] sm:$0xff]  ;;  %v9741_v18 = vadd.f32 %v1949_v36, %v15320_v32  ;;  %v9744_v4 = vadd.f32 %v1950_v5, %v15322_v8  ;;  %v15324_v25 = vld [vmem:[#allocation184_spill] sm:$0xff]  ;;  %v9759_v5 = vpop.permute.xlu0 %1695 }
 0x291   : > { %15316 = vst [vmem:[#allocation68_spill] sm:$0xff] %v9730_v51  ;;  %v9738_v60 = vadd.f32 %v1948_v22, %v15318_v34  ;;  %v1958_v19 = vmul.f32 %v8676_v55, %v15324_v25  ;;  %v9748_v51 = vpop.permute.xlu1 %1691  ;;  %v15326_v29 = vld [vmem:[#allocation88_spill] sm:$0xff]  ;;  %v1959_v30 = vmul.f32 %v8679_v44, %v15324_v25  ;;  %15329 = vst [vmem:[#allocation153_spill] sm:$0xff] %v9759_v5  ;;  %v15330_v32 = vld [vmem:[#allocation93_spill] sm:$0xff] }
 0x292   : > { %15321 = vst [vmem:[#allocation150_spill] sm:$0xff] %v9741_v18  ;;  %15323 = vst [vmem:[#allocation73_spill] sm:$0xff] %v9744_v4  ;;  %v9751_v15 = vadd.f32 %v1951_v17, %v15326_v29  ;;  %v15328_v34 = vld [vmem:[#allocation188_spill] sm:$0xff]  ;;  %v9762_v8 = vadd.f32 %v1952_v3, %v15330_v32  ;;  %v15331_v4 = vld [vmem:[#allocation179_spill] sm:$0xff] }
 0x293   : > { %15319 = vst [vmem:[#allocation167_spill] sm:$0xff] %v9738_v60  ;;  %15325 = vst [vmem:[#allocation170_spill] sm:$0xff] %v9748_v51  ;;  %v1960_v22 = vmul.f32 %v8676_v55, %v15328_v34  ;;  %v1961_v36 = vmul.f32 %v8679_v44, %v15328_v34  ;;  %v9765_v18 = vadd.f32 %v1953_v53, %v15331_v4  ;;  %v15332_v60 = vld [vmem:[#allocation92_spill] sm:$0xff]  ;;  %v15334_v29 = vld [vmem:[#allocation178_spill] sm:$0xff] }
 0x294   : > { %15327 = vst [vmem:[#allocation87_spill] sm:$0xff] %v9751_v15  ;;  %v9768_v17 = vadd.f32 %v1954_v0, %v15332_v60  ;;  %v9771_v15 = vadd.f32 %v1955_v59, %v15334_v29  ;;  %v6868_v25 = vld [vmem:[%s7150_s16 + $0x98] sm:$0xff]  ;;  %v15336_v51 = vld [vmem:[#allocation97_spill] sm:$0xff]  ;;  %v15341_v60 = vld [vmem:[#allocation96_spill] sm:$0xff] }
 0x295   : > { %2465 = vperm.xlu1 %6786, %v6868_v25   ;;  %v9775_v56 = vadd.f32 %v1956_v61, %v15336_v51  ;;  %v15338_v34 = vld [vmem:[#allocation182_spill] sm:$0xff]  ;;  %v15340_v5 = vld [vmem:[#allocation191_spill] sm:$0xff]  ;;  %v9786_v0 = vadd.f32 %v1958_v19, %v15341_v60  ;;  %v9794_v29 = vpop.permute.xlu1 %1699  ;;  %v15345_v25 = vld [vmem:[#allocation180_spill] sm:$0xff] }
 0x296   : > { %15333 = vst [vmem:[#allocation72_spill] sm:$0xff] %v9768_v17  ;;  %15335 = vst [vmem:[#allocation158_spill] sm:$0xff] %v9771_v15  ;;  %v9778_v11 = vadd.f32 %v1957_v33, %v15338_v34  ;;  %v1962_v3 = vmul.f32 %v8676_v55, %v15340_v5  ;;  %v1963_v53 = vmul.f32 %v8679_v44, %v15340_v5  ;;  %v6869_v4 = vld [vmem:[%s7150_s16 + $0xb0] sm:$0xff]  ;;  %v15343_v59 = vld [vmem:[#allocation195_spill] sm:$0xff]  ;;  %v9807_v15 = vpop.permute.xlu0 %1703 }
 0x297   : > { %15337 = vst [vmem:[#allocation77_spill] sm:$0xff] %v9775_v56  ;;  %2477 = vperm.xlu0 %6787, %v6869_v4   ;;  %15342 = vst [vmem:[#allocation86_spill] sm:$0xff] %v9786_v0  ;;  %v1964_v32 = vmul.f32 %v8676_v55, %v15343_v59  ;;  %v1965_v61 = vmul.f32 %v8679_v44, %v15343_v59  ;;  %v15344_v51 = vld [vmem:[#allocation198_spill] sm:$0xff]  ;;  %v9797_v5 = vadd.f32 %v1959_v30, %v15345_v25  ;;  %v15347_v34 = vld [vmem:[#allocation95_spill] sm:$0xff] }
 0x298   : > { %15339 = vst [vmem:[#allocation171_spill] sm:$0xff] %v9778_v11  ;;  %v1966_v33 = vmul.f32 %v8676_v55, %v15344_v51  ;;  %v9800_v4 = vadd.f32 %v1960_v22, %v15347_v34  ;;  %v15349_v19 = vld [vmem:[#allocation101_spill] sm:$0xff]  ;;  %v1967_v0 = vmul.f32 %v8679_v44, %v15344_v51  ;;  %v1968_v59 = vmul.f32 %v8676_v55, %v8615_v39  ;;  %v15353_v51 = vld [vmem:[#allocation183_spill] sm:$0xff] }
 0x299   : > { %15346 = vst [vmem:[#allocation76_spill] sm:$0xff] %v9797_v5  ;;  %v9803_v60 = vadd.f32 %v1961_v36, %v15349_v19  ;;  %v1969_v17 = vmul.f32 %v8679_v44, %v8615_v39  ;;  %v1970_v30 = vmul.f32 %v8676_v55, %v8636_v43  ;;  %v1971_v22 = vmul.f32 %v8679_v44, %v8636_v43  ;;  %v6870_v25 = vld [vmem:[%s7150_s16 + $0xa8] sm:$0xff] }
 0x29a   : > { %15348 = vst [vmem:[#allocation81_spill] sm:$0xff] %v9800_v4  ;;  %2473 = vperm.xlu1 %6786, %v6870_v25   ;;  %v15351_v36 = vld [vmem:[#allocation100_spill] sm:$0xff]  ;;  %v9822_v19 = vadd.f32 %v1963_v53, %v15353_v51  ;;  %v1972_v5 = vmul.f32 %v8676_v55, %v8681_v47  ;;  %v1973_v39 = vmul.f32 %v8679_v44, %v8681_v47  ;;  %v15355_v4 = vld [vmem:[#allocation105_spill] sm:$0xff]  ;;  %v9840_v51 = vpop.permute.xlu1 %1707 }
 0x29b   : > { %15350 = vst [vmem:[#allocation173_spill] sm:$0xff] %v9803_v60  ;;  %v9819_v34 = vadd.f32 %v1962_v3, %v15351_v36  ;;  %v6871_v60 = vld [vmem:[%s7150_s16 + $0xc0] sm:$0xff]  ;;  %v9830_v11 = vadd.f32 %v1964_v32, %v15355_v4  ;;  %v15357_v43 = vld [vmem:[#allocation185_spill] sm:$0xff]  ;;  %v1974_v53 = vmul.f32 %v8676_v55, %v8702_v42  ;;  %v1976_v32 = vmul.f32 %v8676_v55, %v8749_v54 }
 0x29c   : > { %15354 = vst [vmem:[#allocation80_spill] sm:$0xff] %v9822_v19  ;;  %2485 = vperm.xlu0 %6787, %v6871_v60   ;;  %v9833_v25 = vadd.f32 %v1965_v61, %v15357_v43  ;;  %v15359_v3 = vld [vmem:[#allocation104_spill] sm:$0xff]  ;;  %v15361_v19 = vld [vmem:[#allocation94_spill] sm:$0xff]  ;;  %v1975_v60 = vmul.f32 %v8679_v44, %v8702_v42  ;;  %v1977_v61 = vmul.f32 %v8679_v44, %v8749_v54  ;;  %v15363_v4 = vld [vmem:[#allocation109_spill] sm:$0xff] }
 0x29d   : > { %15352 = vst [vmem:[#allocation161_spill] sm:$0xff] %v9819_v34  ;;  %15356 = vst [vmem:[#allocation166_spill] sm:$0xff] %v9830_v11  ;;  %v9836_v36 = vadd.f32 %v1966_v33, %v15359_v3  ;;  %v9843_v47 = vadd.f32 %v1967_v0, %v15361_v19  ;;  %v9851_v33 = vpop.permute.xlu0 %1711  ;;  %v9854_v43 = vadd.f32 %v1968_v59, %v15363_v4  ;;  %v15365_v3 = vld [vmem:[#allocation187_spill] sm:$0xff]  ;;  %v15367_v34 = vld [vmem:[#allocation108_spill] sm:$0xff] }
 0x29e   : > { %15358 = vst [vmem:[#allocation169_spill] sm:$0xff] %v9833_v25  ;;  %v9860_v0 = vadd.f32 %v1970_v30, %v15367_v34  ;;  %v15369_v19 = vld [vmem:[#allocation186_spill] sm:$0xff]  ;;  %v15371_v25 = vld [vmem:[#allocation113_spill] sm:$0xff]  ;;  %v1978_v59 = vmul.f32 %v8676_v55, %v8770_v49  ;;  %v15375_v30 = vld [vmem:[#allocation112_spill] sm:$0xff]  ;;  %v1980_v34 = vmul.f32 %v8676_v55, %v8817_v7 }
 0x29f   : > { %15360 = vst [vmem:[#allocation172_spill] sm:$0xff] %v9836_v36  ;;  %15362 = vst [vmem:[#allocation85_spill] sm:$0xff] %v9843_v47  ;;  %v9857_v36 = vadd.f32 %v1969_v17, %v15365_v3  ;;  %v9863_v47 = vadd.f32 %v1971_v22, %v15369_v19  ;;  %v6872_v42 = vld [vmem:[%s7150_s16 + $0xb8] sm:$0xff]  ;;  %v9867_v11 = vadd.f32 %v1972_v5, %v15371_v25  ;;  %v6873_v4 = vld [vmem:[%s7150_s16 + $0xd0] sm:$0xff]  ;;  %v9886_v25 = vpop.permute.xlu1 %1715 }
 0x2a0   : > { %15364 = vst [vmem:[#allocation176_spill] sm:$0xff] %v9854_v43  ;;  %15368 = vst [vmem:[#allocation177_spill] sm:$0xff] %v9860_v0  ;;  %2481 = vperm.xlu1 %6786, %v6872_v42   ;;  %v15373_v54 = vld [vmem:[#allocation190_spill] sm:$0xff]  ;;  %v1979_v17 = vmul.f32 %v8679_v44, %v8770_v49  ;;  %2493 = vperm.xlu0 %6787, %v6873_v4   ;;  %v9878_v22 = vadd.f32 %v1974_v53, %v15375_v30  ;;  %v15377_v3 = vld [vmem:[#allocation189_spill] sm:$0xff] }
 0x2a1   : > { %15366 = vst [vmem:[#allocation174_spill] sm:$0xff] %v9857_v36  ;;  %15370 = vst [vmem:[#allocation84_spill] sm:$0xff] %v9863_v47  ;;  %v9870_v56 = vadd.f32 %v1973_v39, %v15373_v54  ;;  %v1981_v5 = vmul.f32 %v8679_v44, %v8817_v7  ;;  %v1982_v39 = vmul.f32 %v8676_v55, %v8838_v40  ;;  %v15379_v19 = vld [vmem:[#allocation117_spill] sm:$0xff]  ;;  %v15381_v53 = vld [vmem:[#allocation98_spill] sm:$0xff]  ;;  %v9899_v30 = vpop.permute.xlu0 %1719 }
 0x2a2   : > { %15372 = vst [vmem:[#allocation175_spill] sm:$0xff] %v9867_v11  ;;  %15376 = vst [vmem:[#allocation89_spill] sm:$0xff] %v9878_v22  ;;  %v9889_v49 = vadd.f32 %v1975_v60, %v15377_v3  ;;  %v9892_v42 = vadd.f32 %v1976_v32, %v15379_v19  ;;  %v9895_v54 = vadd.f32 %v1977_v61, %v15381_v53  ;;  %v6874_v3 = vld [vmem:[%s7150_s16 + $0xc8] sm:$0xff]  ;;  %v15383_v61 = vld [vmem:[#allocation99_spill] sm:$0xff] }
 0x2a3   : > { %15374 = vst [vmem:[#allocation181_spill] sm:$0xff] %v9870_v56  ;;  %v1983_v4 = vmul.f32 %v8679_v44, %v8838_v40  ;;  %v1984_v7 = vmul.f32 %v8676_v55, %v8885_v12  ;;  %v1985_v22 = vmul.f32 %v8679_v44, %v8885_v12  ;;  %v1986_v60 = vmul.f32 %v8676_v55, %v8906_v9  ;;  %v15385_v40 = vld [vmem:[#allocation116_spill] sm:$0xff]  ;;  %v15461_v0 = vld [vmem:[#allocation43_spill] sm:$0xff]  ;;  %v15467_v36 = vld [vmem:[#allocation214_spill] sm:$0xff] }
 0x2a4   : > { %15378 = vst [vmem:[#allocation90_spill] sm:$0xff] %v9889_v49  ;;  %15380 = vst [vmem:[#allocation91_spill] sm:$0xff] %v9892_v42  ;;  %v1987_v32 = vmul.f32 %v8679_v44, %v8906_v9  ;;  %2489 = vperm.xlu1 %6786, %v6874_v3   ;;  %v9911_v19 = vadd.f32 %v1978_v59, %v15383_v61  ;;  %v9914_v53 = vadd.f32 %v1979_v17, %v15385_v40  ;;  %v6875_v42 = vld [vmem:[%s7150_s16 + $0xe0] sm:$0xff]  ;;  %v15387_v49 = vld [vmem:[#allocation121_spill] sm:$0xff]  ;;  %v9932_v40 = vpop.permute.xlu1 %1723 }
 0x2a5   : > { %15382 = vst [vmem:[#allocation184_spill] sm:$0xff] %v9895_v54  ;;  %v1988_v54 = vmul.f32 %v8676_v55, %v8953_v21  ;;  %v1989_v12 = vmul.f32 %v8679_v44, %v8953_v21  ;;  %2501 = vperm.xlu0 %6787, %v6875_v42   ;;  %v9922_v56 = vadd.f32 %v1980_v34, %v15387_v49  ;;  %v15389_v9 = vld [vmem:[#allocation193_spill] sm:$0xff]  ;;  %v15391_v59 = vld [vmem:[#allocation120_spill] sm:$0xff]  ;;  %v15395_v49 = vld [vmem:[#allocation123_spill] sm:$0xff] }
 0x2a6   : > { %15384 = vst [vmem:[#allocation88_spill] sm:$0xff] %v9911_v19  ;;  %15386 = vst [vmem:[#allocation188_spill] sm:$0xff] %v9914_v53  ;;  %v9925_v3 = vadd.f32 %v1981_v5, %v15389_v9  ;;  %v9928_v61 = vadd.f32 %v1982_v39, %v15391_v59  ;;  %v1990_v17 = vmul.f32 %v8676_v55, %v8974_v2  ;;  %v15393_v53 = vld [vmem:[#allocation192_spill] sm:$0xff]  ;;  %v9943_v39 = vpop.permute.xlu0 %1727  ;;  %v15397_v59 = vld [vmem:[#allocation197_spill] sm:$0xff] }
 0x2a7   : > { %15388 = vst [vmem:[#allocation93_spill] sm:$0xff] %v9922_v56  ;;  %v9935_v21 = vadd.f32 %v1983_v4, %v15393_v53  ;;  %v1991_v42 = vmul.f32 %v8679_v44, %v8974_v2  ;;  %v1992_v34 = vmul.f32 %v8676_v55, %v9021_v26  ;;  %v1993_v5 = vmul.f32 %v8679_v44, %v9021_v26  ;;  %v15401_v53 = vld [vmem:[#allocation196_spill] sm:$0xff]  ;;  %v6876_v2 = vld [vmem:[%s7150_s16 + $0xd8] sm:$0xff]  ;;  %v15404_v26 = vld [vmem:[#allocation125_spill] sm:$0xff] }
 0x2a8   : > { %15390 = vst [vmem:[#allocation179_spill] sm:$0xff] %v9925_v3  ;;  %15392 = vst [vmem:[#allocation92_spill] sm:$0xff] %v9928_v61  ;;  %v9946_v9 = vadd.f32 %v1984_v7, %v15395_v49  ;;  %v9949_v61 = vadd.f32 %v1985_v22, %v15397_v59  ;;  %v15399_v3 = vld [vmem:[#allocation122_spill] sm:$0xff]  ;;  %2497 = vperm.xlu1 %6786, %v6876_v2   ;;  %v9959_v56 = vadd.f32 %v1988_v54, %v8589_v48  ;;  %v9974_v48 = vpop.permute.xlu1 %1731  ;;  %v15408_v54 = vld [vmem:[#allocation55_spill] sm:$0xff] }
 0x2a9   : > { %15394 = vst [vmem:[#allocation178_spill] sm:$0xff] %v9935_v21  ;;  %v9952_v4 = vadd.f32 %v1986_v60, %v15399_v3  ;;  %v9955_v21 = vadd.f32 %v1987_v32, %v15401_v53  ;;  %v9962_v19 = vadd.f32 %v1989_v12, %v15404_v26  ;;  %v1994_v7 = vmul.f32 %v8676_v55, %v9042_v23  ;;  %v6877_v49 = vld [vmem:[%s7150_s16 + $0xf0] sm:$0xff]  ;;  %v15406_v60 = vld [vmem:[#allocation103_spill] sm:$0xff]  ;;  %v15409_v53 = vld [vmem:[#allocation124_spill] sm:$0xff] }
 0x2aa   : > { %15396 = vst [vmem:[#allocation97_spill] sm:$0xff] %v9946_v9  ;;  %15398 = vst [vmem:[#allocation182_spill] sm:$0xff] %v9949_v61  ;;  %v1995_v22 = vmul.f32 %v8679_v44, %v9042_v23  ;;  %2509 = vperm.xlu0 %6787, %v6877_v49   ;;  %v9970_v32 = vadd.f32 %v1990_v17, %v15406_v60  ;;  %v1996_v3 = vmul.f32 %v8676_v55, %v9089_v35  ;;  %v15411_v23 = vld [vmem:[#allocation127_spill] sm:$0xff]  ;;  %v9989_v60 = vpop.permute.xlu0 %1735  ;;  %v15443_v9 = vld [vmem:[#allocation32_spill] sm:$0xff] }
 0x2ab   : > { %15400 = vst [vmem:[#allocation191_spill] sm:$0xff] %v9952_v4  ;;  %15402 = vst [vmem:[#allocation96_spill] sm:$0xff] %v9955_v21  ;;  %v2902_v12 = vsub.s32 2, %v15408_v54  ;;  %v2906_v59 = vsub.s32 6, %v15408_v54  ;;  %v9979_v2 = vadd.f32 %v1991_v42, %v15409_v53  ;;  %v9982_v26 = vadd.f32 %v1992_v34, %v15411_v23  ;;  %v15413_v49 = vld [vmem:[#allocation199_spill] sm:$0xff]  ;;  %v6878_v53 = vld [vmem:[%s7150_s16 + $0xe8] sm:$0xff] }
 0x2ac   : > { %15403 = vst [vmem:[#allocation195_spill] sm:$0xff] %v9959_v56  ;;  %15405 = vst [vmem:[#allocation198_spill] sm:$0xff] %v9962_v19  ;;  %v9985_v19 = vadd.f32 %v1993_v5, %v15413_v49  ;;  %v1997_v17 = vmul.f32 %v8679_v44, %v9089_v35  ;;  %v1999_v54 = vmul.f32 %v8679_v44, %v9110_v20  ;;  %2505 = vperm.xlu1 %6786, %v6878_v53   ;;  %v15415_v5 = vld [vmem:[#allocation102_spill] sm:$0xff]  ;;  %v15424_v56 = vld [vmem:[#allocation200_spill] sm:$0xff] }
 0x2ad   : > { %15407 = vst [vmem:[#allocation180_spill] sm:$0xff] %v9970_v32  ;;  %15410 = vst [vmem:[#allocation95_spill] sm:$0xff] %v9979_v2  ;;  %v1998_v32 = vmul.f32 %v8676_v55, %v9110_v20  ;;  %v2000_v42 = vmul.f32 %v8676_v55, %v9157_v27  ;;  %v2001_v34 = vmul.f32 %v8679_v44, %v9157_v27  ;;  %v15417_v35 = vld [vmem:[#allocation126_spill] sm:$0xff] }
 0x2ae   : > { %15412 = vst [vmem:[#allocation101_spill] sm:$0xff] %v9982_v26  ;;  %15414 = vst [vmem:[#allocation100_spill] sm:$0xff] %v9985_v19  ;;  %v10001_v23 = vadd.f32 %v1994_v7, %v15415_v5  ;;  %v10004_v49 = vadd.f32 %v1995_v22, %v15417_v35  ;;  %v2002_v19 = vmul.f32 %v8676_v55, %v9178_v24  ;;  %v6879_v26 = vld [vmem:[%s7150_s16 + $0x100] sm:$0xff]  ;;  %v10016_v7 = vpop.permute.xlu1 %1739  ;;  %v15420_v35 = vld [vmem:[#allocation201_spill] sm:$0xff] }
 0x2af   : > { %v2003_v20 = vmul.f32 %v8679_v44, %v9178_v24  ;;  %2517 = vperm.xlu0 %6787, %v6879_v26   ;;  %v10012_v2 = vadd.f32 %v1996_v3, %v8630_v52  ;;  %v2004_v27 = vmul.f32 %v8676_v55, %v9229_v28  ;;  %v6880_v22 = vld [vmem:[%s14315_s1] sm:$0x77]  ;;  %v2005_v24 = vmul.f32 %v8679_v44, %v9229_v28  ;;  %v10030_v26 = vpop.permute.xlu0 %1743  ;;  %v6881_v28 = vld [vmem:[%s7150_s16 + $0xf8] sm:$0xff] }
 0x2b0   : > { %15416 = vst [vmem:[#allocation183_spill] sm:$0xff] %v10001_v23  ;;  %15418 = vst [vmem:[#allocation105_spill] sm:$0xff] %v10004_v49  ;;  %v2903_v53 = vrot.slane %v6880_v22, %v2902_v12  ;;  %v2907_v5 = vrot.slane %v6880_v22, %v2906_v59  ;;  %v10022_v49 = vadd.f32 %v1997_v17, %v15420_v35  ;;  %2513 = vperm.xlu1 %6786, %v6881_v28   ;;  %v15428_v35 = vld [vmem:[#allocation107_spill] sm:$0xff] }
 0x2b1   : > { %15419 = vst [vmem:[#allocation185_spill] sm:$0xff] %v10012_v2  ;;  %v2006_v52 = vmul.f32 %v8676_v55, %v9250_v14  ;;  %v2007_v3 = vmul.f32 %v8679_v44, %v9250_v14  ;;  %v15422_v2 = vld [vmem:[#allocation128_spill] sm:$0xff]  ;;  %v10036_v59 = vadd.f32 %v1999_v54, %v15424_v56  ;;  %v10039_v17 = vadd.f32 %v2000_v42, %v8652_v57  ;;  %v6885_v21 = vld [vmem:[%s7150_s16 + $0x118] sm:$0xff] }
 0x2b2   : > { %15421 = vst [vmem:[#allocation104_spill] sm:$0xff] %v10022_v49  ;;  %v10033_v23 = vadd.f32 %v1998_v32, %v15422_v2  ;;  %v10042_v22 = vadd.f32 %v2001_v34, %v8657_v50  ;;  %v3430_v14 = vld [vmem:[%s14316_s2] sm:$0x3]  ;;  %v10049_v49 = vadd.f32 %v2002_v19, %v15428_v35  ;;  %v15430_v32 = vld [vmem:[#allocation202_spill] sm:$0xff]  ;;  %v2008_v56 = vmul.f32 %v8676_v55, %v9287_v13  ;;  %v10064_v19 = vpop.permute.xlu1 %1747 }
 0x2b3   : > { %15425 = vst [vmem:[#allocation109_spill] sm:$0xff] %v10036_v59  ;;  %15426 = vst [vmem:[#allocation187_spill] sm:$0xff] %v10039_v17  ;;  %v10052_v2 = vadd.f32 %v2003_v20, %v15430_v32  ;;  %v2009_v57 = vmul.f32 %v8679_v44, %v9287_v13  ;;  %v6882_v50 = vld [vmem:[%s7150_s16 + $0x110] sm:$0xff]  ;;  %v10060_v54 = vadd.f32 %v2004_v27, %v8669_v1  ;;  %v15433_v32 = vld [vmem:[#allocation203_spill] sm:$0xff]  ;;  %v10079_v1 = vpop.permute.xlu0 %1751 }
 0x2b4   : > { %15423 = vst [vmem:[#allocation94_spill] sm:$0xff] %v10033_v23  ;;  %15427 = vst [vmem:[#allocation108_spill] sm:$0xff] %v10042_v22  ;;  %2525 = vperm.xlu0 %6787, %v6882_v50   ;;  %v2010_v42 = vmul.f32 %v8676_v55, %v9304_v10  ;;  %v10066_v34 = vrot.slane %v2903_v53, %v2902_v12  ;;  %v10068_v20 = vrot.slane %v2907_v5, %v2902_v12  ;;  %v15432_v13 = vld [vmem:[#allocation106_spill] sm:$0xff]  ;;  %v15434_v27 = vld [vmem:[#allocation59_spill] sm:$0xff] }
 0x2b5   : > { %15429 = vst [vmem:[#allocation186_spill] sm:$0xff] %v10049_v49  ;;  %15431 = vst [vmem:[#allocation113_spill] sm:$0xff] %v10052_v2  ;;  %v10071_v28 = vadd.f32 %v2005_v24, %v8673_v38  ;;  %v10074_v35 = vadd.f32 %v2006_v52, %v15432_v13  ;;  %v10077_v50 = vadd.f32 %v2007_v3, %v15433_v32  ;;  %v6883_v5 = vld [vmem:[%s7150_s16 + $0x108] sm:$0xff]  ;;  %v15435_v24 = vld [vmem:[#allocation194_spill] sm:$0xff] }
 0x2b6   : > { %v10082_v2 = vrot.slane %v3430_v14, %v15434_v27  ;;  %v2011_v53 = vmul.f32 %v8679_v44, %v9304_v10  ;;  %v2012_v12 = vmul.f32 %v8676_v55, %v9334_v16  ;;  %v2013_v38 = vmul.f32 %v8679_v44, %v9334_v16  ;;  %2521 = vperm.xlu1 %6786, %v6883_v5   ;;  %v15436_v13 = vld [vmem:[#allocation206_spill] sm:$0xff]  ;;  %v6884_v22 = vld [vmem:[%s7150_s16 + $0x120] sm:$0xff] }
 0x2b7   : > { %v10092_v52 = vrot.slane %v3430_v14, %v15435_v24  ;;  %v10095_v3 = vadd.f32 %v2008_v56, %v8696_v46  ;;  %v10098_v32 = vadd.f32 %v2009_v57, %v15436_v13  ;;  %v2014_v10 = vmul.f32 %v8676_v55, %v9349_v37  ;;  %v15437_v16 = vld [vmem:[#allocation204_spill] sm:$0xff]  ;;  %v10114_v57 = vpop.permute.xlu1 %1755  ;;  %v15451_v24 = vld [vmem:[#allocation207_spill] sm:$0xff] }
 0x2b8   : > { %v2015_v49 = vmul.f32 %v8679_v44, %v9349_v37  ;;  %2533 = vperm.xlu0 %6787, %v6884_v22   ;;  %v10106_v5 = vadd.f32 %v2010_v42, %v15437_v16  ;;  %v2016_v14 = vmul.f32 %v8676_v55, %v9380_v63  ;;  %v2017_v46 = vmul.f32 %v8679_v44, %v9380_v63  ;;  %v10124_v16 = vpop.permute.xlu0 %1759  ;;  %v15438_v63 = vld [vmem:[#allocation205_spill] sm:$0xff]  ;;  %v15453_v27 = vld [vmem:[#allocation212_spill] sm:$0xff] }
 0x2b9   : > { %v2018_v56 = vmul.f32 %v8676_v55, %v9391_v6  ;;  %v2019_v37 = vmul.f32 %v8679_v44, %v9391_v6  ;;  %v2020_v22 = vmul.f32 %v8676_v55, %v9426_v41  ;;  %v2021_v42 = vmul.f32 %v8679_v44, %v9426_v41  ;;  %v15440_v41 = vld [vmem:[#allocation111_spill] sm:$0xff] }
 0x2ba   : > { %v2022_v13 = vmul.f32 %v8676_v55, %v9439_v31  ;;  %v10127_v17 = vadd.f32 %v2011_v53, %v15438_v63  ;;  %v10130_v59 = vadd.f32 %v2012_v12, %v8718_v62  ;;  %v10133_v23 = vadd.f32 %v2013_v38, %v8723_v45  ;;  %2529 = vperm.xlu1 %6786, %v6885_v21   ;;  %v6886_v12 = vld [vmem:[%s7150_s16 + $0x130] sm:$0xff]  ;;  %v15444_v45 = vld [vmem:[#allocation208_spill] sm:$0xff] }
 0x2bb   : > { %v2023_v6 = vmul.f32 %v8679_v44, %v9439_v31  ;;  %v10139_v4 = vadd.f32 %v2014_v10, %v15440_v41  ;;  %v10142_v61 = vadd.f32 %v2015_v49, %v8714_v58  ;;  %v2024_v53 = vmul.f32 %v8676_v55, %v15443_v9  ;;  %v15446_v31 = vld [vmem:[#allocation209_spill] sm:$0xff]  ;;  %v15448_v10 = vld [vmem:[#allocation110_spill] sm:$0xff]  ;;  %v10160_v41 = vpop.permute.xlu1 %1763 }
 0x2bc   : > { %15439 = vst [vmem:[#allocation190_spill] sm:$0xff] %v10130_v59  ;;  %v2025_v62 = vmul.f32 %v8679_v44, %v15443_v9  ;;  %2541 = vperm.xlu0 %6787, %v6886_v12   ;;  %v10150_v38 = vadd.f32 %v2016_v14, %v15444_v45  ;;  %v10153_v21 = vadd.f32 %v2017_v46, %v15446_v31  ;;  %v15450_v58 = vld [vmem:[#allocation34_spill] sm:$0xff]  ;;  %v15455_v14 = vld [vmem:[#allocation213_spill] sm:$0xff] }
 0x2bd   : > { %15441 = vst [vmem:[#allocation112_spill] sm:$0xff] %v10139_v4  ;;  %15442 = vst [vmem:[#allocation189_spill] sm:$0xff] %v10142_v61  ;;  %v10156_v63 = vadd.f32 %v2018_v56, %v15448_v10  ;;  %v2026_v49 = vmul.f32 %v8676_v55, %v15450_v58  ;;  %v10163_v9 = vadd.f32 %v2019_v37, %v15451_v24  ;;  %v15457_v46 = vld [vmem:[#allocation210_spill] sm:$0xff]  ;;  %v10174_v56 = vpop.permute.xlu0 %1767  ;;  %v15459_v10 = vld [vmem:[#allocation211_spill] sm:$0xff] }
 0x2be   : > { %15445 = vst [vmem:[#allocation117_spill] sm:$0xff] %v10150_v38  ;;  %15447 = vst [vmem:[#allocation98_spill] sm:$0xff] %v10153_v21  ;;  %v10166_v12 = vadd.f32 %v2020_v22, %v15453_v27  ;;  %v10169_v45 = vadd.f32 %v2021_v42, %v15455_v14  ;;  %v10172_v31 = vadd.f32 %v2022_v13, %v15457_v46  ;;  %v6887_v37 = vld [vmem:[%s7150_s16 + $0x128] sm:$0xff]  ;;  %v15462_v22 = vld [vmem:[#allocation115_spill] sm:$0xff] }
 0x2bf   : > { %15449 = vst [vmem:[#allocation99_spill] sm:$0xff] %v10156_v63  ;;  %15452 = vst [vmem:[#allocation116_spill] sm:$0xff] %v10163_v9  ;;  %v10177_v11 = vadd.f32 %v2023_v6, %v15459_v10  ;;  %v2027_v47 = vmul.f32 %v8679_v44, %v15450_v58  ;;  %v2028_v24 = vmul.f32 %v8676_v55, %v15461_v0  ;;  %2537 = vperm.xlu1 %6786, %v6887_v37   ;;  %v15464_v13 = vld [vmem:[#allocation216_spill] sm:$0xff]  ;;  %v15466_v46 = vld [vmem:[#allocation42_spill] sm:$0xff] }
 0x2c0   : > { %15454 = vst [vmem:[#allocation121_spill] sm:$0xff] %v10166_v12  ;;  %15456 = vst [vmem:[#allocation193_spill] sm:$0xff] %v10169_v45  ;;  %v2029_v27 = vmul.f32 %v8679_v44, %v15461_v0  ;;  %v10187_v42 = vadd.f32 %v2024_v53, %v15462_v22  ;;  %v10190_v14 = vadd.f32 %v2025_v62, %v15464_v13  ;;  %v6888_v10 = vld [vmem:[%s7150_s16 + $0x140] sm:$0xff]  ;;  %v15470_v62 = vld [vmem:[#allocation157_spill] sm:$0xff]  ;;  %v10206_v13 = vpop.permute.xlu1 %1771 }
 0x2c1   : > { %15458 = vst [vmem:[#allocation120_spill] sm:$0xff] %v10172_v31  ;;  %15460 = vst [vmem:[#allocation192_spill] sm:$0xff] %v10177_v11  ;;  %v2030_v6 = vmul.f32 %v8676_v55, %v15466_v46  ;;  %v2031_v58 = vmul.f32 %v8679_v44, %v15466_v46  ;;  %2549 = vperm.xlu0 %6787, %v6888_v10   ;;  %v10198_v43 = vadd.f32 %v2026_v49, %v15467_v36  ;;  %v15469_v0 = vld [vmem:[#allocation44_spill] sm:$0xff]  ;;  %v15471_v31 = vld [vmem:[#allocation54_spill] sm:$0xff]  ;;  %v10216_v11 = vpop.permute.xlu0 %1775 }
 0x2c2   : > { %15463 = vst [vmem:[#allocation123_spill] sm:$0xff] %v10187_v42  ;;  %15465 = vst [vmem:[#allocation197_spill] sm:$0xff] %v10190_v14  ;;  %v2032_v37 = vmul.f32 %v8676_v55, %v15469_v0  ;;  %v2033_v53 = vmul.f32 %v8679_v44, %v15469_v0  ;;  %v2034_v22 = vmul.f32 %v8676_v55, %v15470_v62  ;;  %v15472_v49 = vld [vmem:[#allocation58_spill] sm:$0xff]  ;;  %v15473_v0 = vld [vmem:[#allocation215_spill] sm:$0xff] }
 0x2c3   : > { %15468 = vst [vmem:[#allocation122_spill] sm:$0xff] %v10198_v43  ;;  %v2035_v46 = vmul.f32 %v8679_v44, %v15470_v62  ;;  %v2036_v10 = vmul.f32 %v8676_v55, %v15471_v31  ;;  %v2037_v36 = vmul.f32 %v8679_v44, %v15471_v31  ;;  %v2038_v43 = vmul.f32 %v8676_v55, %v15472_v49  ;;  %v15475_v42 = vld [vmem:[#allocation218_spill] sm:$0xff]  ;;  %v15477_v45 = vld [vmem:[#allocation219_spill] sm:$0xff]  ;;  %v15479_v31 = vld [vmem:[#allocation217_spill] sm:$0xff] }
 0x2c4   : > { %v10219_v14 = vadd.f32 %v2027_v47, %v15473_v0  ;;  %v10222_v63 = vadd.f32 %v2028_v24, %v15475_v42  ;;  %v10225_v9 = vadd.f32 %v2029_v27, %v15477_v45  ;;  %v2039_v62 = vmul.f32 %v8679_v44, %v15472_v49  ;;  %v6889_v12 = vld [vmem:[%s7150_s16 + $0x138] sm:$0xff]  ;;  %v6890_v42 = vld [vmem:[%s7150_s16 + $0x150] sm:$0xff] }
 0x2c5   : > { %2545 = vperm.xlu1 %6786, %v6889_v12   ;;  %v10231_v21 = vadd.f32 %v2030_v6, %v15479_v31  ;;  %v15481_v38 = vld [vmem:[#allocation114_spill] sm:$0xff]  ;;  %v15483_v4 = vld [vmem:[#allocation63_spill] sm:$0xff]  ;;  %2557 = vperm.xlu0 %6787, %v6890_v42   ;;  %v15488_v6 = vld [vmem:[#allocation220_spill] sm:$0xff]  ;;  %v10252_v31 = vpop.permute.xlu1 %1779 }
 0x2c6   : > { %15474 = vst [vmem:[#allocation196_spill] sm:$0xff] %v10219_v14  ;;  %15476 = vst [vmem:[#allocation125_spill] sm:$0xff] %v10222_v63  ;;  %v10234_v61 = vadd.f32 %v2031_v58, %v15481_v38  ;;  %v2040_v47 = vmul.f32 %v8676_v55, %v15483_v4  ;;  %v2041_v24 = vmul.f32 %v8679_v44, %v15483_v4  ;;  %v15484_v45 = vld [vmem:[#allocation222_spill] sm:$0xff]  ;;  %v15486_v49 = vld [vmem:[#allocation223_spill] sm:$0xff] }
 0x2c7   : > { %15478 = vst [vmem:[#allocation103_spill] sm:$0xff] %v10225_v9  ;;  %15480 = vst [vmem:[#allocation55_spill] sm:$0xff] %v10231_v21  ;;  %v10242_v27 = vadd.f32 %v2032_v37, %v15484_v45  ;;  %v10245_v12 = vadd.f32 %v2033_v53, %v15486_v49  ;;  %v10248_v0 = vadd.f32 %v2034_v22, %v15488_v6  ;;  %v15490_v38 = vld [vmem:[#allocation163_spill] sm:$0xff]  ;;  %v15493_v21 = vld [vmem:[#allocation226_spill] sm:$0xff]  ;;  %v10266_v22 = vpop.permute.xlu0 %1783 }
 0x2c8   : > { %15482 = vst [vmem:[#allocation124_spill] sm:$0xff] %v10234_v61  ;;  %v2042_v58 = vmul.f32 %v8676_v55, %v15490_v38  ;;  %v15491_v61 = vld [vmem:[#allocation221_spill] sm:$0xff]  ;;  %v10258_v42 = vadd.f32 %v2036_v10, %v15493_v21  ;;  %v15495_v37 = vld [vmem:[#allocation227_spill] sm:$0xff]  ;;  %v15497_v53 = vld [vmem:[#allocation224_spill] sm:$0xff] }
 0x2c9   : > { %15485 = vst [vmem:[#allocation127_spill] sm:$0xff] %v10242_v27  ;;  %15487 = vst [vmem:[#allocation199_spill] sm:$0xff] %v10245_v12  ;;  %v10255_v4 = vadd.f32 %v2035_v46, %v15491_v61  ;;  %v10261_v45 = vadd.f32 %v2037_v36, %v15495_v37  ;;  %v10264_v49 = vadd.f32 %v2038_v43, %v15497_v53  ;;  %v15499_v6 = vld [vmem:[#allocation225_spill] sm:$0xff]  ;;  %v15501_v27 = vld [vmem:[#allocation66_spill] sm:$0xff] }
 0x2ca   : > { %15489 = vst [vmem:[#allocation102_spill] sm:$0xff] %v10248_v0  ;;  %15494 = vst [vmem:[#allocation201_spill] sm:$0xff] %v10258_v42  ;;  %v10269_v0 = vadd.f32 %v2039_v62, %v15499_v6  ;;  %v2043_v12 = vmul.f32 %v8679_v44, %v15490_v38  ;;  %v2044_v61 = vmul.f32 %v8676_v55, %v15501_v27  ;;  %v6891_v46 = vld [vmem:[%s7150_s16 + $0x148] sm:$0xff]  ;;  %v15504_v43 = vld [vmem:[#allocation118_spill] sm:$0xff] }
 0x2cb   : > { %15492 = vst [vmem:[#allocation126_spill] sm:$0xff] %v10255_v4  ;;  %15496 = vst [vmem:[#allocation128_spill] sm:$0xff] %v10261_v45  ;;  %v2045_v21 = vmul.f32 %v8679_v44, %v15501_v27  ;;  %2553 = vperm.xlu1 %6786, %v6891_v46   ;;  %v15502_v10 = vld [vmem:[#allocation229_spill] sm:$0xff]  ;;  %v10282_v37 = vadd.f32 %v2041_v24, %v15504_v43  ;;  %v15506_v53 = vld [vmem:[#allocation142_spill] sm:$0xff]  ;;  %v10298_v43 = vpop.permute.xlu1 %1787 }
 0x2cc   : > { %15498 = vst [vmem:[#allocation200_spill] sm:$0xff] %v10264_v49  ;;  %15500 = vst [vmem:[#allocation107_spill] sm:$0xff] %v10269_v0  ;;  %v10279_v36 = vadd.f32 %v2040_v47, %v15502_v10  ;;  %v2046_v62 = vmul.f32 %v8676_v55, %v15506_v53  ;;  %v2047_v38 = vmul.f32 %v8679_v44, %v15506_v53  ;;  %v6892_v6 = vld [vmem:[%s7150_s16 + $0x160] sm:$0xff]  ;;  %v15509_v27 = vld [vmem:[#allocation170_spill] sm:$0xff] }
 0x2cd   : > { %15505 = vst [vmem:[#allocation106_spill] sm:$0xff] %v10282_v37  ;;  %2565 = vperm.xlu0 %6787, %v6892_v6   ;;  %v15507_v0 = vld [vmem:[#allocation119_spill] sm:$0xff]  ;;  %v2048_v46 = vmul.f32 %v8676_v55, %v15509_v27  ;;  %v2049_v47 = vmul.f32 %v8679_v44, %v15509_v27  ;;  %v15510_v24 = vld [vmem:[#allocation153_spill] sm:$0xff]  ;;  %v2052_v6 = vmul.f32 %v8676_v55, %v9794_v29  ;;  %v15511_v27 = vld [vmem:[#allocation228_spill] sm:$0xff] }
 0x2ce   : > { %15503 = vst [vmem:[#allocation202_spill] sm:$0xff] %v10279_v36  ;;  %v10290_v49 = vadd.f32 %v2042_v58, %v15507_v0  ;;  %v2050_v10 = vmul.f32 %v8676_v55, %v15510_v24  ;;  %v2051_v53 = vmul.f32 %v8679_v44, %v15510_v24  ;;  %v2053_v0 = vmul.f32 %v8679_v44, %v9794_v29  ;;  %v15513_v36 = vld [vmem:[#allocation232_spill] sm:$0xff]  ;;  %v15514_v45 = vld [vmem:[#allocation233_spill] sm:$0xff]  ;;  %v6893_v14 = vld [vmem:[%s7150_s16 + $0x158] sm:$0xff] }
 0x2cf   : > { %v2054_v58 = vmul.f32 %v8676_v55, %v9807_v15  ;;  %v10311_v37 = vadd.f32 %v2043_v12, %v15511_v27  ;;  %v10314_v4 = vadd.f32 %v2044_v61, %v15513_v36  ;;  %v10317_v42 = vadd.f32 %v2045_v21, %v15514_v45  ;;  %2561 = vperm.xlu1 %6786, %v6893_v14   ;;  %v15515_v29 = vld [vmem:[#allocation230_spill] sm:$0xff]  ;;  %v15517_v63 = vld [vmem:[#allocation231_spill] sm:$0xff]  ;;  %v15519_v45 = vld [vmem:[#allocation236_spill] sm:$0xff] }
 0x2d0   : > { %15508 = vst [vmem:[#allocation203_spill] sm:$0xff] %v10290_v49  ;;  %v10308_v49 = vpop.permute.xlu0 %1791  ;;  %v2055_v24 = vmul.f32 %v8679_v44, %v9807_v15  ;;  %v10323_v9 = vadd.f32 %v2046_v62, %v15515_v29  ;;  %v10326_v59 = vadd.f32 %v2047_v38, %v15517_v63  ;;  %v2056_v12 = vmul.f32 %v8676_v55, %v9840_v51  ;;  %v6894_v36 = vld [vmem:[%s7150_s16 + $0x200] sm:$0xff]  ;;  %v15521_v15 = vld [vmem:[#allocation237_spill] sm:$0xff]  ;;  %v15523_v62 = vld [vmem:[#allocation234_spill] sm:$0xff]  ;;  %v10344_v38 = vpop.permute.xlu1 %1795 }
 0x2d1   : > { %15512 = vst [vmem:[#allocation206_spill] sm:$0xff] %v10311_v37  ;;  %v2057_v61 = vmul.f32 %v8679_v44, %v9840_v51  ;;  %2645 = vperm.xlu0 %6787, %v6894_v36   ;;  %v10334_v21 = vadd.f32 %v2048_v46, %v15519_v45  ;;  %v10337_v14 = vadd.f32 %v2049_v47, %v15521_v15  ;;  %v15525_v29 = vld [vmem:[#allocation235_spill] sm:$0xff]  ;;  %v15529_v46 = vld [vmem:[#allocation241_spill] sm:$0xff]  ;;  %v15531_v47 = vld [vmem:[#allocation238_spill] sm:$0xff] }
 0x2d2   : > { %15516 = vst [vmem:[#allocation204_spill] sm:$0xff] %v10323_v9  ;;  %15518 = vst [vmem:[#allocation205_spill] sm:$0xff] %v10326_v59  ;;  %v10340_v27 = vadd.f32 %v2050_v10, %v15523_v62  ;;  %v2058_v63 = vmul.f32 %v8676_v55, %v9851_v33  ;;  %v10347_v51 = vadd.f32 %v2051_v53, %v15525_v29  ;;  %v15527_v59 = vld [vmem:[#allocation240_spill] sm:$0xff]  ;;  %v15533_v62 = vld [vmem:[#allocation239_spill] sm:$0xff] }
 0x2d3   : > { %15520 = vst [vmem:[#allocation111_spill] sm:$0xff] %v10334_v21  ;;  %15522 = vst [vmem:[#allocation32_spill] sm:$0xff] %v10337_v14  ;;  %v10350_v36 = vadd.f32 %v2052_v6, %v15527_v59  ;;  %v10353_v45 = vadd.f32 %v2053_v0, %v15529_v46  ;;  %v10356_v15 = vadd.f32 %v2054_v58, %v15531_v47  ;;  %v6895_v6 = vld [vmem:[%s7150_s16 + $0x168] sm:$0xff]  ;;  %v6896_v47 = vld [vmem:[%s7150_s16 + $0x210] sm:$0xff] }
 0x2d4   : > { %15524 = vst [vmem:[#allocation208_spill] sm:$0xff] %v10340_v27  ;;  %15526 = vst [vmem:[#allocation209_spill] sm:$0xff] %v10347_v51  ;;  %v10358_v10 = vpop.permute.xlu0 %1799  ;;  %v10361_v27 = vadd.f32 %v2055_v24, %v15533_v62  ;;  %v2059_v9 = vmul.f32 %v8679_v44, %v9851_v33  ;;  %v2060_v53 = vmul.f32 %v8676_v55, %v9886_v25  ;;  %2569 = vperm.xlu1 %6786, %v6895_v6   ;;  %v15535_v0 = vld [vmem:[#allocation244_spill] sm:$0xff]  ;;  %v15537_v58 = vld [vmem:[#allocation245_spill] sm:$0xff]  ;;  %v10390_v6 = vpop.permute.xlu1 %1803 }
 0x2d5   : > { %15528 = vst [vmem:[#allocation110_spill] sm:$0xff] %v10350_v36  ;;  %15530 = vst [vmem:[#allocation34_spill] sm:$0xff] %v10353_v45  ;;  %v2061_v59 = vmul.f32 %v8679_v44, %v9886_v25  ;;  %v10371_v29 = vadd.f32 %v2056_v12, %v15535_v0  ;;  %v10374_v46 = vadd.f32 %v2057_v61, %v15537_v58  ;;  %2653 = vperm.xlu0 %6787, %v6896_v47   ;;  %v15539_v62 = vld [vmem:[#allocation242_spill] sm:$0xff]  ;;  %v6897_v51 = vld [vmem:[%s7150_s16 + $0x208] sm:$0xff] }
 0x2d6   : > { %15532 = vst [vmem:[#allocation207_spill] sm:$0xff] %v10356_v15  ;;  %15534 = vst [vmem:[#allocation212_spill] sm:$0xff] %v10361_v27  ;;  %v2062_v24 = vmul.f32 %v8676_v55, %v9899_v30  ;;  %v2063_v33 = vmul.f32 %v8679_v44, %v9899_v30  ;;  %v10382_v27 = vadd.f32 %v2058_v63, %v15539_v62  ;;  %v15549_v36 = vld [vmem:[#allocation247_spill] sm:$0xff] }
 0x2d7   : > { %15536 = vst [vmem:[#allocation213_spill] sm:$0xff] %v10371_v29  ;;  %15538 = vst [vmem:[#allocation210_spill] sm:$0xff] %v10374_v46  ;;  %v2064_v25 = vmul.f32 %v8676_v55, %v9932_v40  ;;  %v2065_v12 = vmul.f32 %v8679_v44, %v9932_v40  ;;  %v2066_v61 = vmul.f32 %v8676_v55, %v9943_v39  ;;  %v15541_v40 = vld [vmem:[#allocation243_spill] sm:$0xff]  ;;  %v15545_v46 = vld [vmem:[#allocation249_spill] sm:$0xff] }
 0x2d8   : > { %15540 = vst [vmem:[#allocation211_spill] sm:$0xff] %v10382_v27  ;;  %v2067_v30 = vmul.f32 %v8679_v44, %v9943_v39  ;;  %v2068_v0 = vmul.f32 %v8676_v55, %v9974_v48  ;;  %v2069_v63 = vmul.f32 %v8679_v44, %v9974_v48  ;;  %v2070_v58 = vmul.f32 %v8676_v55, %v9989_v60  ;;  %v10400_v47 = vpop.permute.xlu0 %1807  ;;  %v15543_v27 = vld [vmem:[#allocation248_spill] sm:$0xff]  ;;  %v15547_v48 = vld [vmem:[#allocation246_spill] sm:$0xff]  ;;  %v15757_v21 = vld [vmem:[#allocation167_spill] sm:$0xff] }
 0x2d9   : > { %v10403_v62 = vadd.f32 %v2059_v9, %v15541_v40  ;;  %v10406_v15 = vadd.f32 %v2060_v53, %v15543_v27  ;;  %v10409_v29 = vadd.f32 %v2061_v59, %v15545_v46  ;;  %v2071_v39 = vmul.f32 %v8679_v44, %v9989_v60  ;;  %2649 = vperm.xlu1 %6786, %v6897_v51   ;;  %v6898_v53 = vld [vmem:[%s7150_s16 + $0x220] sm:$0xff]  ;;  %v15553_v60 = vld [vmem:[#allocation253_spill] sm:$0xff] }
 0x2da   : > { %v10415_v45 = vadd.f32 %v2062_v24, %v15547_v48  ;;  %v10418_v14 = vadd.f32 %v2063_v33, %v15549_v36  ;;  %v2072_v9 = vmul.f32 %v8676_v55, %v10016_v7  ;;  %v2073_v27 = vmul.f32 %v8679_v44, %v10016_v7  ;;  %2661 = vperm.xlu0 %6787, %v6898_v53   ;;  %v15551_v59 = vld [vmem:[#allocation252_spill] sm:$0xff]  ;;  %v15555_v24 = vld [vmem:[#allocation250_spill] sm:$0xff]  ;;  %v10436_v33 = vpop.permute.xlu1 %1811  ;;  %v15557_v48 = vld [vmem:[#allocation251_spill] sm:$0xff] }
 0x2db   : > { %15542 = vst [vmem:[#allocation43_spill] sm:$0xff] %v10403_v62  ;;  %15544 = vst [vmem:[#allocation115_spill] sm:$0xff] %v10406_v15  ;;  %v10426_v46 = vadd.f32 %v2064_v25, %v15551_v59  ;;  %v10429_v51 = vadd.f32 %v2065_v12, %v15553_v60  ;;  %v10432_v40 = vadd.f32 %v2066_v61, %v15555_v24  ;;  %v15561_v25 = vld [vmem:[#allocation257_spill] sm:$0xff]  ;;  %v15563_v12 = vld [vmem:[#allocation254_spill] sm:$0xff] }
 0x2dc   : > { %15546 = vst [vmem:[#allocation216_spill] sm:$0xff] %v10409_v29  ;;  %15548 = vst [vmem:[#allocation42_spill] sm:$0xff] %v10415_v45  ;;  %v2074_v36 = vmul.f32 %v8676_v55, %v10030_v26  ;;  %v10439_v7 = vadd.f32 %v2067_v30, %v15557_v48  ;;  %v10445_v59 = vadd.f32 %v2069_v63, %v15561_v25  ;;  %v10450_v61 = vpop.permute.xlu0 %1815  ;;  %v15565_v24 = vld [vmem:[#allocation255_spill] sm:$0xff]  ;;  %v15567_v63 = vld [vmem:[#allocation260_spill] sm:$0xff] }
 0x2dd   : > { %15550 = vst [vmem:[#allocation214_spill] sm:$0xff] %v10418_v14  ;;  %15552 = vst [vmem:[#allocation44_spill] sm:$0xff] %v10426_v46  ;;  %v15559_v14 = vld [vmem:[#allocation256_spill] sm:$0xff]  ;;  %v10448_v60 = vadd.f32 %v2070_v58, %v15563_v12  ;;  %v2075_v45 = vmul.f32 %v8679_v44, %v10030_v26  ;;  %v2076_v30 = vmul.f32 %v8676_v55, %v10064_v19  ;;  %v15569_v58 = vld [vmem:[#allocation261_spill] sm:$0xff] }
 0x2de   : > { %15554 = vst [vmem:[#allocation157_spill] sm:$0xff] %v10429_v51  ;;  %15556 = vst [vmem:[#allocation54_spill] sm:$0xff] %v10432_v40  ;;  %v10442_v53 = vadd.f32 %v2068_v0, %v15559_v14  ;;  %v10453_v40 = vadd.f32 %v2071_v39, %v15565_v24  ;;  %v2077_v14 = vmul.f32 %v8679_v44, %v10064_v19  ;;  %v6899_v0 = vld [vmem:[%s7150_s16 + $0x218] sm:$0xff]  ;;  %v6900_v12 = vld [vmem:[%s7150_s16 + $0x230] sm:$0xff] }
 0x2df   : > { %15558 = vst [vmem:[#allocation58_spill] sm:$0xff] %v10439_v7  ;;  %15562 = vst [vmem:[#allocation218_spill] sm:$0xff] %v10445_v59  ;;  %2657 = vperm.xlu1 %6786, %v6899_v0   ;;  %v10463_v48 = vadd.f32 %v2072_v9, %v15567_v63  ;;  %v10466_v25 = vadd.f32 %v2073_v27, %v15569_v58  ;;  %v2078_v39 = vmul.f32 %v8676_v55, %v10079_v1  ;;  %v15571_v24 = vld [vmem:[#allocation258_spill] sm:$0xff]  ;;  %v10482_v0 = vpop.permute.xlu1 %1819  ;;  %v6901_v7 = vld [vmem:[%s7150_s16 + $0x228] sm:$0xff] }
 0x2e0   : > { %15560 = vst [vmem:[#allocation215_spill] sm:$0xff] %v10442_v53  ;;  %15564 = vst [vmem:[#allocation219_spill] sm:$0xff] %v10448_v60  ;;  %v2079_v26 = vmul.f32 %v8679_v44, %v10079_v1  ;;  %2669 = vperm.xlu0 %6787, %v6900_v12   ;;  %v2080_v19 = vmul.f32 %v8676_v55, %v10114_v57  ;;  %v2081_v9 = vmul.f32 %v8679_v44, %v10114_v57  ;;  %v10492_v12 = vpop.permute.xlu0 %1823  ;;  %v15573_v57 = vld [vmem:[#allocation259_spill] sm:$0xff] }
 0x2e1   : > { %15566 = vst [vmem:[#allocation217_spill] sm:$0xff] %v10453_v40  ;;  %15568 = vst [vmem:[#allocation114_spill] sm:$0xff] %v10463_v48  ;;  %v10474_v40 = vadd.f32 %v2074_v36, %v15571_v24  ;;  %v2082_v27 = vmul.f32 %v8676_v55, %v10124_v16  ;;  %v2083_v1 = vmul.f32 %v8679_v44, %v10124_v16  ;;  %v15581_v53 = vld [vmem:[#allocation263_spill] sm:$0xff] }
 0x2e2   : > { %15570 = vst [vmem:[#allocation63_spill] sm:$0xff] %v10466_v25  ;;  %v2084_v63 = vmul.f32 %v8676_v55, %v10160_v41  ;;  %v2085_v36 = vmul.f32 %v8679_v44, %v10160_v41  ;;  %v2086_v58 = vmul.f32 %v8676_v55, %v10174_v56  ;;  %v10495_v24 = vadd.f32 %v2075_v45, %v15573_v57  ;;  %v15577_v25 = vld [vmem:[#allocation265_spill] sm:$0xff]  ;;  %v15579_v41 = vld [vmem:[#allocation262_spill] sm:$0xff]  ;;  %v6944_v29 = vld [vmem:[%s7150_s16 + $0x180] sm:$0xff] }
 0x2e3   : > { %15572 = vst [vmem:[#allocation222_spill] sm:$0xff] %v10474_v40  ;;  %v15575_v40 = vld [vmem:[#allocation264_spill] sm:$0xff]  ;;  %v10501_v48 = vadd.f32 %v2077_v14, %v15577_v25  ;;  %v2087_v16 = vmul.f32 %v8679_v44, %v10174_v56  ;;  %2665 = vperm.xlu1 %6786, %v6901_v7   ;;  %v10507_v59 = vadd.f32 %v2078_v39, %v15579_v41  ;;  %v15585_v56 = vld [vmem:[#allocation269_spill] sm:$0xff]  ;;  %v15587_v39 = vld [vmem:[#allocation266_spill] sm:$0xff] }
 0x2e4   : > { %15574 = vst [vmem:[#allocation223_spill] sm:$0xff] %v10495_v24  ;;  %v10498_v60 = vadd.f32 %v2076_v30, %v15575_v40  ;;  %v10510_v51 = vadd.f32 %v2079_v26, %v15581_v53  ;;  %v2088_v45 = vmul.f32 %v8676_v55, %v10206_v13  ;;  %v2089_v40 = vmul.f32 %v8679_v44, %v10206_v13  ;;  %v6902_v30 = vld [vmem:[%s7150_s16 + $0x240] sm:$0xff]  ;;  %v10528_v26 = vpop.permute.xlu1 %1827 }
 0x2e5   : > { %15578 = vst [vmem:[#allocation163_spill] sm:$0xff] %v10501_v48  ;;  %15580 = vst [vmem:[#allocation221_spill] sm:$0xff] %v10507_v59  ;;  %2677 = vperm.xlu0 %6787, %v6902_v30   ;;  %v15583_v14 = vld [vmem:[#allocation268_spill] sm:$0xff]  ;;  %v10521_v7 = vadd.f32 %v2081_v9, %v15585_v56  ;;  %v10524_v57 = vadd.f32 %v2082_v27, %v15587_v39  ;;  %v2090_v53 = vmul.f32 %v8676_v55, %v10216_v11  ;;  %v15589_v41 = vld [vmem:[#allocation267_spill] sm:$0xff]  ;;  %v10542_v27 = vpop.permute.xlu0 %1831 }
 0x2e6   : > { %15576 = vst [vmem:[#allocation220_spill] sm:$0xff] %v10498_v60  ;;  %15582 = vst [vmem:[#allocation226_spill] sm:$0xff] %v10510_v51  ;;  %v10518_v25 = vadd.f32 %v2080_v19, %v15583_v14  ;;  %v10531_v13 = vadd.f32 %v2083_v1, %v15589_v41  ;;  %v15591_v51 = vld [vmem:[#allocation272_spill] sm:$0xff]  ;;  %v15593_v19 = vld [vmem:[#allocation273_spill] sm:$0xff]  ;;  %v2091_v59 = vmul.f32 %v8679_v44, %v10216_v11 }
 0x2e7   : > { %15586 = vst [vmem:[#allocation224_spill] sm:$0xff] %v10521_v7  ;;  %15588 = vst [vmem:[#allocation225_spill] sm:$0xff] %v10524_v57  ;;  %v10534_v30 = vadd.f32 %v2084_v63, %v15591_v51  ;;  %v10537_v14 = vadd.f32 %v2085_v36, %v15593_v19  ;;  %v15595_v9 = vld [vmem:[#allocation270_spill] sm:$0xff]  ;;  %v15597_v39 = vld [vmem:[#allocation271_spill] sm:$0xff]  ;;  %v2092_v1 = vmul.f32 %v8676_v55, %v10252_v31 }
 0x2e8   : > { %15584 = vst [vmem:[#allocation227_spill] sm:$0xff] %v10518_v25  ;;  %15590 = vst [vmem:[#allocation66_spill] sm:$0xff] %v10531_v13  ;;  %v10540_v56 = vadd.f32 %v2086_v58, %v15595_v9  ;;  %v10545_v57 = vadd.f32 %v2087_v16, %v15597_v39  ;;  %v2093_v51 = vmul.f32 %v8679_v44, %v10252_v31  ;;  %v6903_v63 = vld [vmem:[%s7150_s16 + $0x238] sm:$0xff]  ;;  %v15599_v36 = vld [vmem:[#allocation276_spill] sm:$0xff] }
 0x2e9   : > { %15592 = vst [vmem:[#allocation229_spill] sm:$0xff] %v10534_v30  ;;  %15594 = vst [vmem:[#allocation118_spill] sm:$0xff] %v10537_v14  ;;  %2673 = vperm.xlu1 %6786, %v6903_v63   ;;  %v10555_v41 = vadd.f32 %v2088_v45, %v15599_v36  ;;  %v15601_v58 = vld [vmem:[#allocation277_spill] sm:$0xff]  ;;  %v2094_v16 = vmul.f32 %v8676_v55, %v10266_v22  ;;  %v2095_v11 = vmul.f32 %v8679_v44, %v10266_v22  ;;  %v15603_v39 = vld [vmem:[#allocation274_spill] sm:$0xff]  ;;  %v1836_v63 = vpop.permute.xlu1 %1835 }
 0x2ea   : > { %15596 = vst [vmem:[#allocation142_spill] sm:$0xff] %v10540_v56  ;;  %15598 = vst [vmem:[#allocation119_spill] sm:$0xff] %v10545_v57  ;;  %v10558_v19 = vadd.f32 %v2089_v40, %v15601_v58  ;;  %v6904_v9 = vld [vmem:[%s7150_s16 + $0x250] sm:$0xff]  ;;  %v10566_v57 = vadd.f32 %v2090_v53, %v15603_v39  ;;  %v2096_v31 = vmul.f32 %v8676_v55, %v10298_v43  ;;  %v6905_v13 = vld [vmem:[%s7150_s16 + $0x248] sm:$0xff] }
 0x2eb   : > { %15600 = vst [vmem:[#allocation170_spill] sm:$0xff] %v10555_v41  ;;  %2685 = vperm.xlu0 %6787, %v6904_v9   ;;  %v2097_v45 = vmul.f32 %v8679_v44, %v10298_v43  ;;  %v2098_v40 = vmul.f32 %v8676_v55, %v10308_v49  ;;  %v2099_v22 = vmul.f32 %v8679_v44, %v10308_v49  ;;  %v10582_v9 = vpop.permute.xlu0 %1839  ;;  %v15605_v43 = vld [vmem:[#allocation275_spill] sm:$0xff]  ;;  %v6936_v25 = vld [vmem:[%s7150_s16 + $0x350] sm:$0xff] }
 0x2ec   : > { %15602 = vst [vmem:[#allocation153_spill] sm:$0xff] %v10558_v19  ;;  %15604 = vst [vmem:[#allocation228_spill] sm:$0xff] %v10566_v57  ;;  %v2100_v36 = vmul.f32 %v8676_v55, %v10344_v38  ;;  %v2101_v53 = vmul.f32 %v8679_v44, %v10344_v38  ;;  %v2102_v58 = vmul.f32 %v8676_v55, %v10358_v10  ;;  %v15607_v57 = vld [vmem:[#allocation129_spill] sm:$0xff]  ;;  %v15609_v19 = vld [vmem:[#allocation280_spill] sm:$0xff] }
 0x2ed   : > { %v10585_v39 = vadd.f32 %v2091_v59, %v15605_v43  ;;  %v10588_v56 = vadd.f32 %v2092_v1, %v15607_v57  ;;  %v10591_v41 = vadd.f32 %v2093_v51, %v15609_v19  ;;  %v2103_v49 = vmul.f32 %v8679_v44, %v10358_v10  ;;  %2681 = vperm.xlu1 %6786, %v6905_v13   ;;  %v15611_v38 = vld [vmem:[#allocation278_spill] sm:$0xff]  ;;  %v15613_v30 = vld [vmem:[#allocation279_spill] sm:$0xff] }
 0x2ee   : > { %v10597_v14 = vadd.f32 %v2094_v16, %v15611_v38  ;;  %v10600_v7 = vadd.f32 %v2095_v11, %v15613_v30  ;;  %v2104_v59 = vmul.f32 %v8676_v55, %v10390_v6  ;;  %v2105_v57 = vmul.f32 %v8679_v44, %v10390_v6  ;;  %v6906_v1 = vld [vmem:[%s7150_s16 + $0x260] sm:$0xff]  ;;  %v15617_v10 = vld [vmem:[#allocation282_spill] sm:$0xff]  ;;  %v10618_v11 = vpop.permute.xlu1 %1843  ;;  %v15621_v38 = vld [vmem:[#allocation281_spill] sm:$0xff] }
 0x2ef   : > { %15606 = vst [vmem:[#allocation232_spill] sm:$0xff] %v10585_v39  ;;  %15608 = vst [vmem:[#allocation233_spill] sm:$0xff] %v10588_v56  ;;  %2693 = vperm.xlu0 %6787, %v6906_v1   ;;  %v15615_v51 = vld [vmem:[#allocation131_spill] sm:$0xff]  ;;  %v10611_v13 = vadd.f32 %v2097_v45, %v15617_v10  ;;  %v15619_v16 = vld [vmem:[#allocation130_spill] sm:$0xff]  ;;  %v2106_v30 = vmul.f32 %v8676_v55, %v10400_v47  ;;  %v10621_v6 = vadd.f32 %v2099_v22, %v15621_v38 }
 0x2f0   : > { %15610 = vst [vmem:[#allocation230_spill] sm:$0xff] %v10591_v41  ;;  %15612 = vst [vmem:[#allocation231_spill] sm:$0xff] %v10597_v14  ;;  %v10608_v19 = vadd.f32 %v2096_v31, %v15615_v51  ;;  %v10614_v43 = vadd.f32 %v2098_v40, %v15619_v16  ;;  %v15625_v31 = vld [vmem:[#allocation284_spill] sm:$0xff]  ;;  %v10632_v40 = vpop.permute.xlu0 %1847  ;;  %v15629_v16 = vld [vmem:[#allocation283_spill] sm:$0xff]  ;;  %v2108_v22 = vmul.f32 %v8676_v55, %v10436_v33 }
 0x2f1   : > { %15614 = vst [vmem:[#allocation236_spill] sm:$0xff] %v10600_v7  ;;  %15618 = vst [vmem:[#allocation234_spill] sm:$0xff] %v10611_v13  ;;  %v15623_v7 = vld [vmem:[#allocation133_spill] sm:$0xff]  ;;  %v10627_v51 = vadd.f32 %v2101_v53, %v15625_v31  ;;  %v15627_v45 = vld [vmem:[#allocation132_spill] sm:$0xff]  ;;  %v2107_v13 = vmul.f32 %v8679_v44, %v10400_v47  ;;  %v2111_v47 = vmul.f32 %v8679_v44, %v10450_v61 }
 0x2f2   : > { %15616 = vst [vmem:[#allocation237_spill] sm:$0xff] %v10608_v19  ;;  %15620 = vst [vmem:[#allocation235_spill] sm:$0xff] %v10614_v43  ;;  %v10624_v1 = vadd.f32 %v2100_v36, %v15623_v7  ;;  %v10630_v10 = vadd.f32 %v2102_v58, %v15627_v45  ;;  %v10635_v43 = vadd.f32 %v2103_v49, %v15629_v16  ;;  %v6907_v36 = vld [vmem:[%s7150_s16 + $0x258] sm:$0xff]  ;;  %v6908_v45 = vld [vmem:[%s7150_s16 + $0x270] sm:$0xff] }
 0x2f3   : > { %15622 = vst [vmem:[#allocation240_spill] sm:$0xff] %v10621_v6  ;;  %15626 = vst [vmem:[#allocation238_spill] sm:$0xff] %v10627_v51  ;;  %v2109_v7 = vmul.f32 %v8679_v44, %v10436_v33  ;;  %2689 = vperm.xlu1 %6786, %v6907_v36   ;;  %v15631_v53 = vld [vmem:[#allocation135_spill] sm:$0xff]  ;;  %v15633_v58 = vld [vmem:[#allocation286_spill] sm:$0xff]  ;;  %v2110_v49 = vmul.f32 %v8676_v55, %v10450_v61  ;;  %2701 = vperm.xlu0 %6787, %v6908_v45   ;;  %v10664_v36 = vpop.permute.xlu1 %1851 }
 0x2f4   : > { %15624 = vst [vmem:[#allocation241_spill] sm:$0xff] %v10624_v1  ;;  %15628 = vst [vmem:[#allocation239_spill] sm:$0xff] %v10630_v10  ;;  %v10645_v38 = vadd.f32 %v2104_v59, %v15631_v53  ;;  %v10648_v31 = vadd.f32 %v2105_v57, %v15633_v58  ;;  %v15635_v16 = vld [vmem:[#allocation134_spill] sm:$0xff]  ;;  %v2112_v33 = vmul.f32 %v8676_v55, %v10482_v0  ;;  %v10674_v45 = vpop.permute.xlu0 %1855  ;;  %v6909_v51 = vld [vmem:[%s7150_s16 + $0x268] sm:$0xff] }
 0x2f5   : > { %15630 = vst [vmem:[#allocation244_spill] sm:$0xff] %v10635_v43  ;;  %v10656_v43 = vadd.f32 %v2106_v30, %v15635_v16  ;;  %v2113_v59 = vmul.f32 %v8679_v44, %v10482_v0  ;;  %v2114_v57 = vmul.f32 %v8676_v55, %v10492_v12  ;;  %v2115_v61 = vmul.f32 %v8679_v44, %v10492_v12  ;;  %v15637_v0 = vld [vmem:[#allocation285_spill] sm:$0xff]  ;;  %v15645_v6 = vld [vmem:[#allocation287_spill] sm:$0xff] }
 0x2f6   : > { %15632 = vst [vmem:[#allocation245_spill] sm:$0xff] %v10645_v38  ;;  %15634 = vst [vmem:[#allocation242_spill] sm:$0xff] %v10648_v31  ;;  %v2116_v53 = vmul.f32 %v8676_v55, %v10528_v26  ;;  %v2117_v30 = vmul.f32 %v8679_v44, %v10528_v26  ;;  %v2118_v58 = vmul.f32 %v8676_v55, %v10542_v27  ;;  %v15641_v38 = vld [vmem:[#allocation288_spill] sm:$0xff] }
 0x2f7   : > { %15636 = vst [vmem:[#allocation243_spill] sm:$0xff] %v10656_v43  ;;  %v10677_v16 = vadd.f32 %v2107_v13, %v15637_v0  ;;  %v15639_v43 = vld [vmem:[#allocation137_spill] sm:$0xff]  ;;  %v10683_v10 = vadd.f32 %v2109_v7, %v15641_v38  ;;  %v2119_v12 = vmul.f32 %v8679_v44, %v10542_v27  ;;  %2697 = vperm.xlu1 %6786, %v6909_v51   ;;  %v15643_v26 = vld [vmem:[#allocation136_spill] sm:$0xff]  ;;  %v15649_v38 = vld [vmem:[#allocation290_spill] sm:$0xff] }
 0x2f8   : > { %v10680_v31 = vadd.f32 %v2108_v22, %v15639_v43  ;;  %v10689_v1 = vadd.f32 %v2110_v49, %v15643_v26  ;;  %v10692_v19 = vadd.f32 %v2111_v47, %v15645_v6  ;;  %v2120_v13 = vmul.f32 %v8676_v55, %v1836_v63  ;;  %v6910_v43 = vld [vmem:[%s7150_s16 + $0x280] sm:$0xff]  ;;  %v15651_v51 = vld [vmem:[#allocation138_spill] sm:$0xff]  ;;  %v15653_v49 = vld [vmem:[#allocation289_spill] sm:$0xff] }
 0x2f9   : > { %15638 = vst [vmem:[#allocation248_spill] sm:$0xff] %v10677_v16  ;;  %15642 = vst [vmem:[#allocation246_spill] sm:$0xff] %v10683_v10  ;;  %v2121_v0 = vmul.f32 %v8679_v44, %v1836_v63  ;;  %2709 = vperm.xlu0 %6787, %v6910_v43   ;;  %v15647_v22 = vld [vmem:[#allocation139_spill] sm:$0xff]  ;;  %v10701_v27 = vadd.f32 %v2113_v59, %v15649_v38  ;;  %v10704_v10 = vadd.f32 %v2114_v57, %v15651_v51  ;;  %v15655_v26 = vld [vmem:[#allocation4_spill] sm:$0xff]  ;;  %v2390_v59 = vpop.permute.xlu1 %2389 }
 0x2fa   : > { %15640 = vst [vmem:[#allocation249_spill] sm:$0xff] %v10680_v31  ;;  %15644 = vst [vmem:[#allocation247_spill] sm:$0xff] %v10689_v1  ;;  %v10698_v7 = vadd.f32 %v2112_v33, %v15647_v22  ;;  %v2122_v6 = vmul.f32 %v8676_v55, %v10582_v9  ;;  %v10709_v47 = vadd.f32 %v2115_v61, %v15653_v49  ;;  %v15657_v43 = vld [vmem:[#allocation292_spill] sm:$0xff]  ;;  %v15659_v33 = vld [vmem:[#allocation5_spill] sm:$0xff] }
 0x2fb   : > { %15646 = vst [vmem:[#allocation252_spill] sm:$0xff] %v10692_v19  ;;  %15650 = vst [vmem:[#allocation250_spill] sm:$0xff] %v10701_v27  ;;  %v10712_v63 = vadd.f32 %v2116_v53, %v15655_v26  ;;  %v10715_v19 = vadd.f32 %v2117_v30, %v15657_v43  ;;  %v10718_v22 = vadd.f32 %v2118_v58, %v15659_v33  ;;  %v15661_v38 = vld [vmem:[#allocation291_spill] sm:$0xff]  ;;  %v15663_v26 = vld [vmem:[#allocation6_spill] sm:$0xff] }
 0x2fc   : > { %15648 = vst [vmem:[#allocation253_spill] sm:$0xff] %v10698_v7  ;;  %15652 = vst [vmem:[#allocation251_spill] sm:$0xff] %v10704_v10  ;;  %v10721_v57 = vadd.f32 %v2119_v12, %v15661_v38  ;;  %v2123_v51 = vmul.f32 %v8679_v44, %v10582_v9  ;;  %v2918_v61 = vmul.f32 %v10066_v34, %v2390_v59  ;;  %v6911_v53 = vld [vmem:[%s7150_s16 + $0x278] sm:$0xff]  ;;  %v6912_v38 = vld [vmem:[%s7150_s16 + $0x290] sm:$0xff] }
 0x2fd   : > { %15654 = vst [vmem:[#allocation256_spill] sm:$0xff] %v10709_v47  ;;  %15656 = vst [vmem:[#allocation257_spill] sm:$0xff] %v10712_v63  ;;  %v2919_v49 = vmul.f32 %v10068_v20, %v2390_v59  ;;  %v2394_v47 = vpop.permute.xlu0 %2393  ;;  %2705 = vperm.xlu1 %6786, %v6911_v53   ;;  %v10729_v30 = vadd.f32 %v2120_v13, %v15663_v26  ;;  %v15665_v43 = vld [vmem:[#allocation294_spill] sm:$0xff]  ;;  %2717 = vperm.xlu0 %6787, %v6912_v38   ;;  %v15667_v9 = vld [vmem:[#allocation7_spill] sm:$0xff]  ;;  %v2398_v38 = vpop.permute.xlu1 %2397 }
 0x2fe   : > { %15658 = vst [vmem:[#allocation254_spill] sm:$0xff] %v10715_v19  ;;  %15660 = vst [vmem:[#allocation255_spill] sm:$0xff] %v10718_v22  ;;  %v10732_v58 = vadd.f32 %v2121_v0, %v15665_v43  ;;  %v2920_v33 = vmul.f32 %v10066_v34, %v2394_v47  ;;  %v2921_v12 = vmul.f32 %v10068_v20, %v2394_v47  ;;  %v15669_v53 = vld [vmem:[#allocation144_spill] sm:$0xff]  ;;  %v15671_v47 = vld [vmem:[#allocation14_spill] sm:$0xff] }
 0x2ff   : > { %15662 = vst [vmem:[#allocation260_spill] sm:$0xff] %v10721_v57  ;;  %15664 = vst [vmem:[#allocation261_spill] sm:$0xff] %v10729_v30  ;;  %v10738_v57 = vadd.f32 %v2122_v6, %v15667_v9  ;;  %v2124_v59 = vmul.f32 %v8676_v55, %v10618_v11  ;;  %v3174_v22 = vadd.f32 %v2918_v61, %v15669_v53  ;;  %v15670_v13 = vld [vmem:[#allocation16_spill] sm:$0xff]  ;;  %v15672_v30 = vld [vmem:[#allocation21_spill] sm:$0xff] }
 0x300   : > { %15666 = vst [vmem:[#allocation258_spill] sm:$0xff] %v10732_v58  ;;  %v3175_v26 = vadd.f32 %v2919_v49, %v15670_v13  ;;  %v2125_v0 = vmul.f32 %v8679_v44, %v10618_v11  ;;  %v2126_v43 = vmul.f32 %v8676_v55, %v10632_v40  ;;  %v3176_v58 = vadd.f32 %v2920_v33, %v15671_v47  ;;  %v6913_v61 = vld [vmem:[%s7150_s16 + $0x288] sm:$0xff]  ;;  %v6914_v47 = vld [vmem:[%s7150_s16 + $0x2a0] sm:$0xff]  ;;  %v6928_v16 = vld [vmem:[%s7150_s16 + $0x310] sm:$0xff] }
 0x301   : > { %15668 = vst [vmem:[#allocation259_spill] sm:$0xff] %v10738_v57  ;;  %v3177_v6 = vadd.f32 %v2921_v12, %v15672_v30  ;;  %v2922_v9 = vmul.f32 %v10066_v34, %v2398_v38  ;;  %v2923_v57 = vmul.f32 %v10068_v20, %v2398_v38  ;;  %v2406_v19 = vpop.permute.xlu0 %2405  ;;  %2713 = vperm.xlu1 %6786, %v6913_v61   ;;  %v15673_v11 = vld [vmem:[#allocation293_spill] sm:$0xff]  ;;  %v15675_v38 = vld [vmem:[#allocation19_spill] sm:$0xff]  ;;  %v15676_v10 = vld [vmem:[#allocation12_spill] sm:$0xff] }
 0x302   : > { %v3443_v49 = vadd.f32 %v10092_v52, %v3175_v26  ;;  %v3442_v53 = vadd.f32 %v10082_v2, %v3174_v22  ;;  %v10756_v13 = vadd.f32 %v2123_v51, %v15673_v11  ;;  %v2127_v33 = vmul.f32 %v8679_v44, %v10632_v40  ;;  %2725 = vperm.xlu0 %6787, %v6914_v47   ;;  %v15678_v11 = vld [vmem:[#allocation17_spill] sm:$0xff]  ;;  %v2402_v40 = vpop.permute.xlu1 %2401  ;;  %v15679_v7 = vld [vmem:[#allocation8_spill] sm:$0xff] }
 0x303   : > { %v3445_v30 = vadd.f32 %v10092_v52, %v3177_v6  ;;  %v3444_v12 = vadd.f32 %v10082_v2, %v3176_v58  ;;  %v3179_v63 = vadd.f32 %v2923_v57, %v15675_v38  ;;  %v2927_v61 = vmul.f32 %v10068_v20, %v2406_v19  ;;  %v15681_v1 = vld [vmem:[#allocation9_spill] sm:$0xff] }
 0x304   : > { %15674 = vst [vmem:[#allocation264_spill] sm:$0xff] %v10756_v13  ;;  %v3699_v26 = vmax.f32 %v3443_v49, 0.0  ;;  %v3698_v22 = vmax.f32 %v3442_v53, 0.0  ;;  %v10766_v51 = vadd.f32 %v2124_v59, %v15676_v10  ;;  %v3178_v13 = vadd.f32 %v2922_v9, %v15678_v11  ;;  %v6915_v53 = vld [vmem:[%s7150_s16 + $0x298] sm:$0xff]  ;;  %v15683_v10 = vld [vmem:[#allocation13_spill] sm:$0xff] }
 0x305   : > { %v3701_v27 = vmax.f32 %v3445_v30, 0.0  ;;  %v3700_v47 = vmax.f32 %v3444_v12, 0.0  ;;  %v10770_v6 = vadd.f32 %v2125_v0, %v15679_v7  ;;  %v10773_v58 = vadd.f32 %v2126_v43, %v15681_v1  ;;  %v2414_v49 = vpop.permute.xlu0 %2413  ;;  %2721 = vperm.xlu1 %6786, %v6915_v53   ;;  %v6916_v9 = vld [vmem:[%s7150_s16 + $0x2b0] sm:$0xff]  ;;  %v15685_v0 = vld [vmem:[#allocation20_spill] sm:$0xff]  ;;  %v15686_v11 = vld [vmem:[#allocation71_spill] sm:$0xff] }
 0x306   : > { %15677 = vst [vmem:[#allocation265_spill] sm:$0xff] %v10766_v51  ;;  %v2924_v57 = vmul.f32 %v10066_v34, %v2402_v40  ;;  %v2925_v38 = vmul.f32 %v10068_v20, %v2402_v40  ;;  %v10779_v59 = vadd.f32 %v2127_v33, %v15683_v10  ;;  %2733 = vperm.xlu0 %6787, %v6916_v9   ;;  %v15688_v10 = vld [vmem:[#allocation23_spill] sm:$0xff]  ;;  %v6925_v31 = vld [vmem:[%s7150_s16 + $0x2e8] sm:$0xff] }
 0x307   : > { %15680 = vst [vmem:[#allocation262_spill] sm:$0xff] %v10770_v6  ;;  %15682 = vst [vmem:[#allocation263_spill] sm:$0xff] %v10773_v58  ;;  %v3955_v30 = vpack.c.bf16 %v3701_v27, %v3699_v26  ;;  %v3954_v12 = vpack.c.bf16 %v3700_v47, %v3698_v22  ;;  %v3447_v7 = vadd.f32 %v10092_v52, %v3179_v63  ;;  %v15687_v58 = vld [vmem:[#allocation18_spill] sm:$0xff]  ;;  %v2410_v63 = vpop.permute.xlu1 %2409 }
 0x308   : > { %15684 = vst [vmem:[#allocation268_spill] sm:$0xff] %v10779_v59  ;;  %v2128_v1 = vmul.f32 %v8676_v55, %v10664_v36  ;;  %v3183_v43 = vadd.f32 %v2927_v61, %v15685_v0  ;;  %v3180_v40 = vadd.f32 %v2924_v57, %v15686_v11  ;;  %v3181_v6 = vadd.f32 %v2925_v38, %v15687_v58  ;;  %v6917_v58 = vld [vmem:[%s7150_s16 + $0x2a8] sm:$0xff] }
 0x309   : > { %v2129_v33 = vmul.f32 %v8679_v44, %v10664_v36  ;;  %v2130_v27 = vmul.f32 %v8676_v55, %v10674_v45  ;;  %v2926_v26 = vmul.f32 %v10066_v34, %v2406_v19  ;;  %4318 = vmatprep.mubr.bf16.mxu0 %v3955_v30  ;;  %v3446_v22 = vadd.f32 %v10082_v2, %v3178_v13  ;;  %v2422_v57 = vpop.permute.xlu0 %2421  ;;  %v6918_v19 = vld [vmem:[%s7150_s16 + $0x2c0] sm:$0xff]  ;;  %v15689_v30 = vld [vmem:[#allocation22_spill] sm:$0xff] }
 0x30a   : > { %v2928_v47 = vmul.f32 %v10066_v34, %v2410_v63  ;;  %v2929_v61 = vmul.f32 %v10068_v20, %v2410_v63  ;;  %4319 = vmatmul.mubr.bf16.vlgmr.msra.gmra.mxu0 %v3954_v12  ;;  %2729 = vperm.xlu1 %6786, %v6917_v58   ;;  %v3449_v38 = vadd.f32 %v10092_v52, %v3181_v6  ;;  %v3703_v53 = vmax.f32 %v3447_v7, 0.0  ;;  %v15690_v63 = vld [vmem:[#allocation15_spill] sm:$0xff] }
 0x30b   : > { %v2131_v36 = vmul.f32 %v8679_v44, %v10674_v45  ;;  %v2931_v55 = vmul.f32 %v10068_v20, %v2414_v49  ;;  %2741 = vperm.xlu0 %6787, %v6918_v19   ;;  %v3448_v13 = vadd.f32 %v10082_v2, %v3180_v40  ;;  %v3451_v11 = vadd.f32 %v10092_v52, %v3183_v43  ;;  %v15692_v44 = vld [vmem:[#allocation70_spill] sm:$0xff]  ;;  %v2418_v58 = vpop.permute.xlu1 %2417 }
 0x30c   : > { %v3184_v9 = vadd.f32 %v2928_v47, %v15688_v10  ;;  %v3185_v12 = vadd.f32 %v2929_v61, %v15689_v30  ;;  %v3705_v0 = vmax.f32 %v3449_v38, 0.0  ;;  %v10807_v6 = vadd.f32 %v2128_v1, %v15690_v63  ;;  %v6919_v47 = vld [vmem:[%s7150_s16 + $0x2b8] sm:$0xff]  ;;  %v15693_v10 = vld [vmem:[#allocation25_spill] sm:$0xff] }
 0x30d   : > { %v3182_v45 = vadd.f32 %v2926_v26, %v15692_v44  ;;  %v3702_v59 = vmax.f32 %v3446_v22, 0.0  ;;  %v3704_v51 = vmax.f32 %v3448_v13, 0.0  ;;  %v2932_v7 = vmul.f32 %v10066_v34, %v2418_v58  ;;  %v2430_v19 = vpop.permute.xlu0 %2429  ;;  %v6920_v26 = vld [vmem:[%s7150_s16 + $0x2d0] sm:$0xff] }
 0x30e   : > { %15691 = vst [vmem:[#allocation269_spill] sm:$0xff] %v10807_v6  ;;  %v2933_v40 = vmul.f32 %v10068_v20, %v2418_v58  ;;  %2737 = vperm.xlu1 %6786, %v6919_v47   ;;  %v3957_v61 = vpack.c.bf16 %v3705_v0, %v3703_v53  ;;  %v3453_v38 = vadd.f32 %v10092_v52, %v3185_v12  ;;  %v15694_v13 = vld [vmem:[#allocation146_spill] sm:$0xff]  ;;  %v3707_v44 = vmax.f32 %v3451_v11, 0.0 }
 0x30f   : > { %v2930_v43 = vmul.f32 %v10066_v34, %v2414_v49  ;;  %v3187_v1 = vadd.f32 %v2931_v55, %v15693_v10  ;;  %v2935_v30 = vmul.f32 %v10068_v20, %v2422_v57  ;;  %2749 = vperm.xlu0 %6787, %v6920_v26   ;;  %v3956_v22 = vpack.c.bf16 %v3704_v51, %v3702_v59  ;;  %v15695_v0 = vld [vmem:[#allocation10_spill] sm:$0xff]  ;;  %v15697_v49 = vld [vmem:[#allocation11_spill] sm:$0xff]  ;;  %v2426_v10 = vpop.permute.xlu1 %2425 }
 0x310   : > { %v3189_v63 = vadd.f32 %v2933_v40, %v15694_v13  ;;  %4328 = vmatprep.mubr.bf16.mxu0 %v3957_v61  ;;  %v3709_v58 = vmax.f32 %v3453_v38, 0.0  ;;  %v3452_v53 = vadd.f32 %v10082_v2, %v3184_v9  ;;  %v10821_v12 = vadd.f32 %v2129_v33, %v15695_v0  ;;  %v15699_v51 = vld [vmem:[#allocation27_spill] sm:$0xff]  ;;  %v6921_v61 = vld [vmem:[%s7150_s16 + $0x2c8] sm:$0xff] }
 0x311   : > { %v10824_v47 = vadd.f32 %v2130_v27, %v15697_v49  ;;  %v2934_v55 = vmul.f32 %v10066_v34, %v2422_v57  ;;  %v3450_v26 = vadd.f32 %v10082_v2, %v3182_v45  ;;  %v3188_v59 = vadd.f32 %v2932_v7, %v15699_v51  ;;  %v2438_v11 = vpop.permute.xlu0 %2437  ;;  %v15700_v38 = vld [vmem:[#allocation143_spill] sm:$0xff]  ;;  %v15703_v49 = vld [vmem:[#allocation26_spill] sm:$0xff] }
 0x312   : > { %15696 = vst [vmem:[#allocation266_spill] sm:$0xff] %v10821_v12  ;;  %v2937_v40 = vmul.f32 %v10068_v20, %v2426_v10  ;;  %4329 = vmatmul.mubr.bf16.gmra.mxu0 %v3956_v22  ;;  %2745 = vperm.xlu1 %6786, %v6921_v61   ;;  %v3959_v9 = vpack.c.bf16 %v3709_v58, %v3707_v44  ;;  %v6922_v27 = vld [vmem:[%s7150_s16 + $0x2e0] sm:$0xff]  ;;  %v3708_v44 = vmax.f32 %v3452_v53, 0.0 }
 0x313   : > { %15698 = vst [vmem:[#allocation267_spill] sm:$0xff] %v10824_v47  ;;  %v3186_v33 = vadd.f32 %v2930_v43, %v15700_v38  ;;  %v2936_v13 = vmul.f32 %v10066_v34, %v2426_v10  ;;  %2757 = vperm.xlu0 %6787, %v6922_v27   ;;  %v3455_v57 = vadd.f32 %v10092_v52, %v3187_v1  ;;  %v15701_v0 = vld [vmem:[#allocation295_spill] sm:$0xff]  ;;  %v2434_v10 = vpop.permute.xlu1 %2433  ;;  %v3706_v61 = vmax.f32 %v3450_v26, 0.0 }
 0x314   : > { %v3457_v45 = vadd.f32 %v10092_v52, %v3189_v63  ;;  %v10837_v7 = vadd.f32 %v2131_v36, %v15701_v0  ;;  %v3191_v22 = vadd.f32 %v2935_v30, %v15703_v49  ;;  %v15704_v51 = vld [vmem:[#allocation31_spill] sm:$0xff]  ;;  %4338 = vmatprep.mubr.bf16.mxu0 %v3959_v9  ;;  %v2938_v43 = vmul.f32 %v10066_v34, %v2430_v19  ;;  %v15706_v9 = vld [vmem:[#allocation24_spill] sm:$0xff] }
 0x315   : > { %v3193_v47 = vadd.f32 %v2937_v40, %v15704_v51  ;;  %v2939_v58 = vmul.f32 %v10068_v20, %v2430_v19  ;;  %v15705_v1 = vld [vmem:[#allocation75_spill] sm:$0xff]  ;;  %v2941_v63 = vmul.f32 %v10068_v20, %v2434_v10  ;;  %v2446_v36 = vpop.permute.xlu0 %2445  ;;  %v3456_v30 = vadd.f32 %v10082_v2, %v3188_v59  ;;  %v6924_v51 = vld [vmem:[%s7150_s16 + $0x2f0] sm:$0xff] }
 0x316   : > { %15702 = vst [vmem:[#allocation272_spill] sm:$0xff] %v10837_v7  ;;  %v3713_v38 = vmax.f32 %v3457_v45, 0.0  ;;  %v3190_v27 = vadd.f32 %v2934_v55, %v15705_v1  ;;  %v6923_v0 = vld [vmem:[%s7150_s16 + $0x2d8] sm:$0xff]  ;;  %v3192_v53 = vadd.f32 %v2936_v13, %v15706_v9  ;;  %v2942_v49 = vmul.f32 %v10066_v34, %v2438_v11  ;;  %v15707_v59 = vld [vmem:[#allocation29_spill] sm:$0xff]  ;;  %v15709_v9 = vld [vmem:[#allocation28_spill] sm:$0xff] }
 0x317   : > { %2753 = vperm.xlu1 %6786, %v6923_v0   ;;  %v3461_v40 = vadd.f32 %v10092_v52, %v3193_v47  ;;  %2765 = vperm.xlu0 %6787, %v6924_v51   ;;  %v3711_v19 = vmax.f32 %v3455_v57, 0.0  ;;  %v3454_v26 = vadd.f32 %v10082_v2, %v3186_v33  ;;  %v2943_v55 = vmul.f32 %v10068_v20, %v2438_v11  ;;  %v15708_v7 = vld [vmem:[#allocation147_spill] sm:$0xff]  ;;  %v2442_v6 = vpop.permute.xlu1 %2441 }
 0x318   : > { %v2940_v45 = vmul.f32 %v10066_v34, %v2434_v10  ;;  %v3958_v1 = vpack.c.bf16 %v3708_v44, %v3706_v61  ;;  %v3459_v0 = vadd.f32 %v10092_v52, %v3191_v22  ;;  %v3194_v47 = vadd.f32 %v2938_v43, %v15707_v59  ;;  %v15710_v22 = vld [vmem:[#allocation33_spill] sm:$0xff]  ;;  %v6926_v59 = vld [vmem:[%s7150_s16 + $0x300] sm:$0xff] }
 0x319   : > { %v3195_v13 = vadd.f32 %v2939_v58, %v15708_v7  ;;  %v3197_v12 = vadd.f32 %v2941_v63, %v15709_v9  ;;  %v3961_v51 = vpack.c.bf16 %v3713_v38, %v3711_v19  ;;  %v2946_v57 = vmul.f32 %v10066_v34, %v2446_v36  ;;  %v2454_v11 = vpop.permute.xlu0 %2453  ;;  %v15711_v38 = vld [vmem:[#allocation149_spill] sm:$0xff] }
 0x31a   : > { %v2947_v33 = vmul.f32 %v10068_v20, %v2446_v36  ;;  %4339 = vmatmul.mubr.bf16.gmra.mxu0 %v3958_v1  ;;  %v3712_v44 = vmax.f32 %v3456_v30, 0.0  ;;  %v3717_v10 = vmax.f32 %v3461_v40, 0.0  ;;  %v3198_v61 = vadd.f32 %v2942_v49, %v15710_v22  ;;  %v15712_v36 = vld [vmem:[#allocation74_spill] sm:$0xff] }
 0x31b   : > { %2761 = vperm.xlu1 %6786, %v6925_v31   ;;  %v2945_v43 = vmul.f32 %v10068_v20, %v2442_v6  ;;  %2773 = vperm.xlu0 %6787, %v6926_v59   ;;  %v3710_v7 = vmax.f32 %v3454_v26, 0.0  ;;  %v3460_v58 = vadd.f32 %v10082_v2, %v3192_v53  ;;  %v3199_v63 = vadd.f32 %v2943_v55, %v15711_v38  ;;  %v2450_v9 = vpop.permute.xlu1 %2449  ;;  %v15713_v26 = vld [vmem:[#allocation148_spill] sm:$0xff]  ;;  %v15714_v53 = vld [vmem:[#allocation37_spill] sm:$0xff] }
 0x31c   : > { %4348 = vmatprep.mubr.bf16.mxu0 %v3961_v51  ;;  %v3196_v19 = vadd.f32 %v2940_v45, %v15712_v36  ;;  %v3715_v1 = vmax.f32 %v3459_v0, 0.0  ;;  %v3458_v31 = vadd.f32 %v10082_v2, %v3190_v27  ;;  %v2944_v30 = vmul.f32 %v10066_v34, %v2442_v6  ;;  %v6927_v45 = vld [vmem:[%s7150_s16 + $0x2f8] sm:$0xff] }
 0x31d   : > { %v2950_v40 = vmul.f32 %v10066_v34, %v2454_v11  ;;  %v2951_v49 = vmul.f32 %v10068_v20, %v2454_v11  ;;  %v3465_v51 = vadd.f32 %v10092_v52, %v3197_v12  ;;  %v10873_v22 = vadd.f32 %v2946_v57, %v15713_v26  ;;  %v2462_v59 = vpop.permute.xlu0 %2461  ;;  %v15715_v27 = vld [vmem:[#allocation35_spill] sm:$0xff] }
 0x31e   : > { %v3203_v55 = vadd.f32 %v2947_v33, %v15714_v53  ;;  %v3960_v0 = vpack.c.bf16 %v3712_v44, %v3710_v7  ;;  %v3963_v38 = vpack.c.bf16 %v3717_v10, %v3715_v1  ;;  %v3201_v36 = vadd.f32 %v2945_v43, %v15715_v27  ;;  %v15716_v44 = vld [vmem:[#allocation30_spill] sm:$0xff]  ;;  %v15718_v1 = vld [vmem:[#allocation36_spill] sm:$0xff] }
 0x31f   : > { %2769 = vperm.xlu1 %6786, %v6927_v45   ;;  %v2949_v6 = vmul.f32 %v10068_v20, %v2450_v9  ;;  %2781 = vperm.xlu0 %6787, %v6928_v16   ;;  %v3716_v11 = vmax.f32 %v3460_v58, 0.0  ;;  %v3463_v12 = vadd.f32 %v10092_v52, %v3195_v13  ;;  %v2948_v57 = vmul.f32 %v10066_v34, %v2450_v9  ;;  %v15717_v7 = vld [vmem:[#allocation38_spill] sm:$0xff]  ;;  %v2458_v16 = vpop.permute.xlu1 %2457  ;;  %v6929_v27 = vld [vmem:[%s7150_s16 + $0x308] sm:$0xff] }
 0x320   : > { %v3714_v26 = vmax.f32 %v3458_v31, 0.0  ;;  %v3462_v33 = vadd.f32 %v10082_v2, %v3194_v47  ;;  %v3464_v53 = vadd.f32 %v10082_v2, %v3196_v19  ;;  %v3200_v10 = vadd.f32 %v2944_v30, %v15716_v44  ;;  %v15719_v19 = vld [vmem:[#allocation39_spill] sm:$0xff] }
 0x321   : > { %v10886_v43 = vadd.f32 %v2950_v40, %v15717_v7  ;;  %v10889_v45 = vadd.f32 %v2951_v49, %v15718_v1  ;;  %v3721_v58 = vmax.f32 %v3465_v51, 0.0  ;;  %v2954_v13 = vmul.f32 %v10066_v34, %v2462_v59  ;;  %v2470_v31 = vpop.permute.xlu0 %2469  ;;  %v6930_v44 = vld [vmem:[%s7150_s16 + $0x320] sm:$0xff] }
 0x322   : > { %v2955_v9 = vmul.f32 %v10068_v20, %v2462_v59  ;;  %4349 = vmatmul.mubr.bf16.gmra.mxu0 %v3960_v0  ;;  %v3467_v47 = vadd.f32 %v10092_v52, %v3199_v63  ;;  %v3205_v30 = vadd.f32 %v2949_v6, %v15719_v19  ;;  %v3962_v40 = vpack.c.bf16 %v3716_v11, %v3714_v26  ;;  %v15720_v7 = vld [vmem:[#allocation152_spill] sm:$0xff]  ;;  %v6931_v26 = vld [vmem:[%s7150_s16 + $0x318] sm:$0xff] }
 0x323   : > { %2777 = vperm.xlu1 %6786, %v6929_v27   ;;  %2789 = vperm.xlu0 %6787, %v6930_v44   ;;  %v3719_v49 = vmax.f32 %v3463_v12, 0.0  ;;  %v3469_v51 = vadd.f32 %v10092_v52, %v3201_v36  ;;  %v3204_v1 = vadd.f32 %v2948_v57, %v15720_v7  ;;  %v2952_v59 = vmul.f32 %v10066_v34, %v2458_v16  ;;  %v2466_v6 = vpop.permute.xlu1 %2465  ;;  %v15721_v44 = vld [vmem:[#allocation154_spill] sm:$0xff]  ;;  %v15722_v12 = vld [vmem:[#allocation79_spill] sm:$0xff] }
 0x324   : > { %4358 = vmatprep.mubr.bf16.mxu0 %v3963_v38  ;;  %v3718_v0 = vmax.f32 %v3462_v33, 0.0  ;;  %v3720_v14 = vmax.f32 %v3464_v53, 0.0  ;;  %v2953_v27 = vmul.f32 %v10068_v20, %v2458_v16  ;;  %v2958_v63 = vmul.f32 %v10066_v34, %v2470_v31  ;;  %v6932_v16 = vld [vmem:[%s7150_s16 + $0x330] sm:$0xff] }
 0x325   : > { %v3965_v19 = vpack.c.bf16 %v3721_v58, %v3719_v49  ;;  %v3466_v38 = vadd.f32 %v10082_v2, %v3198_v61  ;;  %v10904_v11 = vadd.f32 %v2954_v13, %v15721_v44  ;;  %v10907_v36 = vadd.f32 %v2955_v9, %v15722_v12  ;;  %v2478_v57 = vpop.permute.xlu0 %2477  ;;  %v15723_v13 = vld [vmem:[#allocation151_spill] sm:$0xff]  ;;  %v15724_v12 = vld [vmem:[#allocation41_spill] sm:$0xff] }
 0x326   : > { %v3723_v7 = vmax.f32 %v3467_v47, 0.0  ;;  %v3468_v33 = vadd.f32 %v10082_v2, %v3200_v10  ;;  %v2959_v53 = vmul.f32 %v10068_v20, %v2470_v31  ;;  %v3725_v39 = vmax.f32 %v3469_v51, 0.0 }
 0x327   : > { %2785 = vperm.xlu1 %6786, %v6931_v26   ;;  %2797 = vperm.xlu0 %6787, %v6932_v16   ;;  %v3471_v61 = vadd.f32 %v10092_v52, %v3203_v55  ;;  %v3473_v58 = vadd.f32 %v10092_v52, %v3205_v30  ;;  %v3208_v49 = vadd.f32 %v2952_v59, %v15723_v13  ;;  %v15725_v26 = vld [vmem:[#allocation45_spill] sm:$0xff]  ;;  %v2474_v16 = vpop.permute.xlu1 %2473  ;;  %v3722_v51 = vmax.f32 %v3466_v38, 0.0 }
 0x328   : > { %v2956_v9 = vmul.f32 %v10066_v34, %v2466_v6  ;;  %v2957_v44 = vmul.f32 %v10068_v20, %v2466_v6  ;;  %v3964_v47 = vpack.c.bf16 %v3720_v14, %v3718_v0  ;;  %v3209_v10 = vadd.f32 %v2953_v27, %v15724_v12  ;;  %v6933_v13 = vld [vmem:[%s7150_s16 + $0x328] sm:$0xff]  ;;  %v15726_v0 = vld [vmem:[#allocation155_spill] sm:$0xff] }
 0x329   : > { %v10920_v31 = vadd.f32 %v2958_v63, %v15725_v26  ;;  %v3472_v41 = vadd.f32 %v10082_v2, %v3204_v1  ;;  %v2962_v55 = vmul.f32 %v10066_v34, %v2478_v57  ;;  %v2963_v30 = vmul.f32 %v10068_v20, %v2478_v57  ;;  %v2486_v59 = vpop.permute.xlu0 %2485  ;;  %v6934_v63 = vld [vmem:[%s7150_s16 + $0x340] sm:$0xff] }
 0x32a   : > { %4359 = vmatmul.mubr.bf16.gmra.mxu0 %v3962_v40  ;;  %v3724_v6 = vmax.f32 %v3468_v33, 0.0  ;;  %v3470_v14 = vadd.f32 %v10082_v2, %v10873_v22  ;;  %v10929_v27 = vadd.f32 %v2959_v53, %v15726_v0  ;;  %v3967_v1 = vpack.c.bf16 %v3725_v39, %v3723_v7  ;;  %v15727_v26 = vld [vmem:[#allocation40_spill] sm:$0xff]  ;;  %v15728_v40 = vld [vmem:[#allocation47_spill] sm:$0xff]  ;;  %v15729_v39 = vld [vmem:[#allocation46_spill] sm:$0xff] }
 0x32b   : > { %2793 = vperm.xlu1 %6786, %v6933_v13   ;;  %2805 = vperm.xlu0 %6787, %v6934_v63   ;;  %v3727_v38 = vmax.f32 %v3471_v61, 0.0  ;;  %v3729_v12 = vmax.f32 %v3473_v58, 0.0  ;;  %v3212_v57 = vadd.f32 %v2956_v9, %v15727_v26  ;;  %v3213_v56 = vadd.f32 %v2957_v44, %v15728_v40  ;;  %v2482_v0 = vpop.permute.xlu1 %2481  ;;  %v15730_v61 = vld [vmem:[#allocation48_spill] sm:$0xff]  ;;  %v6935_v44 = vld [vmem:[%s7150_s16 + $0x338] sm:$0xff] }
 0x32c   : > { %4368 = vmatprep.mubr.bf16.mxu0 %v3965_v19  ;;  %v2960_v33 = vmul.f32 %v10066_v34, %v2474_v16  ;;  %v2961_v13 = vmul.f32 %v10068_v20, %v2474_v16  ;;  %v2966_v22 = vmul.f32 %v10066_v34, %v2486_v59  ;;  %v2967_v53 = vmul.f32 %v10068_v20, %v2486_v59 }
 0x32d   : > { %v3728_v63 = vmax.f32 %v3472_v41, 0.0  ;;  %v3477_v19 = vadd.f32 %v10092_v52, %v3209_v10  ;;  %v10940_v7 = vadd.f32 %v2962_v55, %v15729_v39  ;;  %v10943_v58 = vadd.f32 %v2963_v30, %v15730_v61  ;;  %v2494_v9 = vpop.permute.xlu0 %2493  ;;  %v15731_v55 = vld [vmem:[#allocation78_spill] sm:$0xff]  ;;  %v15732_v39 = vld [vmem:[#allocation49_spill] sm:$0xff] }
 0x32e   : > { %v10946_v26 = vpack.c.bf16 %v3724_v6, %v3722_v51  ;;  %v3726_v16 = vmax.f32 %v3470_v14, 0.0  ;;  %v2964_v40 = vmul.f32 %v10066_v34, %v2482_v0  ;;  %v10950_v59 = vpack.c.bf16 %v3729_v12, %v3727_v38  ;;  %v15733_v14 = vld [vmem:[#allocation156_spill] sm:$0xff]  ;;  %v15734_v38 = vld [vmem:[#allocation53_spill] sm:$0xff] }
 0x32f   : > { %2801 = vperm.xlu1 %6786, %v6935_v44   ;;  %2813 = vperm.xlu0 %6787, %v6936_v25   ;;  %v3475_v41 = vadd.f32 %v10092_v52, %v10889_v45  ;;  %v3474_v10 = vadd.f32 %v10082_v2, %v10886_v43  ;;  %v3216_v30 = vadd.f32 %v2960_v33, %v15731_v55  ;;  %v2490_v44 = vpop.permute.xlu1 %2489  ;;  %v3733_v24 = vmax.f32 %v3477_v19, 0.0  ;;  %v6937_v55 = vld [vmem:[%s7150_s16 + $0x348] sm:$0xff] }
 0x330   : > { %v3217_v61 = vadd.f32 %v2961_v13, %v15732_v39  ;;  %v2965_v51 = vmul.f32 %v10068_v20, %v2482_v0  ;;  %v3476_v6 = vadd.f32 %v10082_v2, %v3208_v49  ;;  %v10961_v25 = vadd.f32 %v2966_v22, %v15733_v14  ;;  %v15735_v22 = vld [vmem:[#allocation51_spill] sm:$0xff]  ;;  %v15736_v39 = vld [vmem:[#allocation50_spill] sm:$0xff] }
 0x331   : > { %v10964_v12 = vadd.f32 %v2967_v53, %v15734_v38  ;;  %v10966_v45 = vpack.c.bf16 %v3728_v63, %v3726_v16  ;;  %v2970_v43 = vmul.f32 %v10066_v34, %v2494_v9  ;;  %v2971_v33 = vmul.f32 %v10068_v20, %v2494_v9  ;;  %v2502_v13 = vpop.permute.xlu0 %2501  ;;  %v6938_v53 = vld [vmem:[%s7150_s16 + $0x360] sm:$0xff] }
 0x332   : > { %4369 = vmatmul.mubr.bf16.gmra.mxu0 %v3964_v47  ;;  %v3479_v49 = vadd.f32 %v10092_v52, %v10907_v36  ;;  %v10974_v0 = vadd.f32 %v2964_v40, %v15735_v22  ;;  %v3731_v63 = vmax.f32 %v3475_v41, 0.0  ;;  %v3730_v19 = vmax.f32 %v3474_v10, 0.0  ;;  %v15737_v41 = vld [vmem:[#allocation52_spill] sm:$0xff] }
 0x333   : > { %2809 = vperm.xlu1 %6786, %v6937_v55   ;;  %2821 = vperm.xlu0 %6787, %v6938_v53   ;;  %v3481_v16 = vadd.f32 %v10092_v52, %v3213_v56  ;;  %v3221_v9 = vadd.f32 %v2965_v51, %v15736_v39  ;;  %v2968_v47 = vmul.f32 %v10066_v34, %v2490_v44  ;;  %v3732_v38 = vmax.f32 %v3476_v6, 0.0  ;;  %v2498_v55 = vpop.permute.xlu1 %2497  ;;  %v15738_v56 = vld [vmem:[#allocation159_spill] sm:$0xff] }
 0x334   : > { %4378 = vmatprep.mubr.bf16.mxu0 %v3967_v1  ;;  %v2969_v14 = vmul.f32 %v10068_v20, %v2490_v44  ;;  %v2974_v36 = vmul.f32 %v10066_v34, %v2502_v13  ;;  %v2975_v40 = vmul.f32 %v10068_v20, %v2502_v13  ;;  %v10983_v22 = vpack.c.bf16 %v3733_v24, %v3731_v63  ;;  %v6939_v39 = vld [vmem:[%s7150_s16 + $0x358] sm:$0xff]  ;;  %v6940_v13 = vld [vmem:[%s7150_s16 + $0x170] sm:$0xff] }
 0x335   : > { %v3480_v1 = vadd.f32 %v10082_v2, %v3212_v57  ;;  %v10987_v10 = vadd.f32 %v2970_v43, %v15737_v41  ;;  %v10990_v51 = vadd.f32 %v2971_v33, %v15738_v56  ;;  %v2510_v53 = vpop.permute.xlu0 %2509  ;;  %v3735_v44 = vmax.f32 %v3479_v49, 0.0  ;;  %v15739_v33 = vld [vmem:[#allocation160_spill] sm:$0xff] }
 0x336   : > { %v3485_v6 = vadd.f32 %v10092_v52, %v3217_v61  ;;  %v2972_v48 = vmul.f32 %v10066_v34, %v2498_v55  ;;  %v3737_v24 = vmax.f32 %v3481_v16, 0.0  ;;  %v3478_v57 = vadd.f32 %v10082_v2, %v10904_v11  ;;  %v15740_v41 = vld [vmem:[#allocation140_spill] sm:$0xff]  ;;  %v15742_v16 = vld [vmem:[#allocation141_spill] sm:$0xff] }
 0x337   : > { %2817 = vperm.xlu1 %6786, %v6939_v39   ;;  %2573 = vperm.xlu0 %6787, %v6940_v13   ;;  %v3483_v43 = vadd.f32 %v10092_v52, %v10929_v27  ;;  %v11001_v63 = vadd.f32 %v2968_v47, %v15739_v33  ;;  %v3225_v56 = vadd.f32 %v2969_v14, %v15740_v41  ;;  %v15741_v39 = vld [vmem:[#allocation83_spill] sm:$0xff]  ;;  %v2506_v11 = vpop.permute.xlu1 %2505  ;;  %v3736_v46 = vmax.f32 %v3480_v1, 0.0  ;;  %v6942_v41 = vld [vmem:[%s7150_s16 + $0x370] sm:$0xff] }
 0x338   : > { %v2973_v49 = vmul.f32 %v10068_v20, %v2498_v55  ;;  %v11005_v61 = vpack.c.bf16 %v3732_v38, %v3730_v19  ;;  %v11008_v13 = vadd.f32 %v2974_v36, %v15741_v39  ;;  %v11011_v60 = vadd.f32 %v2975_v40, %v15742_v16  ;;  %v6941_v55 = vld [vmem:[%s7150_s16 + $0x368] sm:$0xff] }
 0x339   : > { %v3484_v27 = vadd.f32 %v10082_v2, %v3216_v30  ;;  %v2978_v47 = vmul.f32 %v10066_v34, %v2510_v53  ;;  %v2979_v33 = vmul.f32 %v10068_v20, %v2510_v53  ;;  %v2518_v14 = vpop.permute.xlu0 %2517  ;;  %v3741_v19 = vmax.f32 %v3485_v6, 0.0  ;;  %v15743_v36 = vld [vmem:[#allocation57_spill] sm:$0xff] }
 0x33a   : > { %4379 = vmatmul.mubr.bf16.gmra.mxu0 %v10946_v26  ;;  %v3482_v38 = vadd.f32 %v10082_v2, %v10920_v31  ;;  %v11021_v40 = vadd.f32 %v2972_v48, %v15743_v36  ;;  %v11025_v30 = vpack.c.bf16 %v3737_v24, %v3735_v44  ;;  %v3734_v1 = vmax.f32 %v3478_v57, 0.0  ;;  %v15744_v26 = vld [vmem:[#allocation162_spill] sm:$0xff] }
 0x33b   : > { %2825 = vperm.xlu1 %6786, %v6941_v55   ;;  %2829 = vperm.xlu0 %6787, %v6942_v41   ;;  %v3739_v53 = vmax.f32 %v3483_v43, 0.0  ;;  %v11028_v39 = vadd.f32 %v2973_v49, %v15744_v26  ;;  %v2976_v6 = vmul.f32 %v10066_v34, %v2506_v11  ;;  %v2977_v31 = vmul.f32 %v10068_v20, %v2506_v11  ;;  %v2514_v55 = vpop.permute.xlu1 %2513  ;;  %v15745_v24 = vld [vmem:[#allocation82_spill] sm:$0xff]  ;;  %v15746_v43 = vld [vmem:[#allocation60_spill] sm:$0xff] }
 0x33c   : > { %4388 = vmatprep.mubr.bf16.mxu0 %v10950_v59  ;;  %v2982_v48 = vmul.f32 %v10066_v34, %v2518_v14  ;;  %v2983_v16 = vmul.f32 %v10068_v20, %v2518_v14  ;;  %v11034_v36 = vpack.c.bf16 %v3736_v46, %v3734_v1  ;;  %v3740_v59 = vmax.f32 %v3484_v27, 0.0  ;;  %v6943_v26 = vld [vmem:[%s7150_s16 + $0x178] sm:$0xff] }
 0x33d   : > { %v3489_v44 = vadd.f32 %v10092_v52, %v3221_v9  ;;  %v11038_v57 = vadd.f32 %v2978_v47, %v15745_v24  ;;  %v11041_v49 = vadd.f32 %v2979_v33, %v15746_v43  ;;  %v2526_v41 = vpop.permute.xlu0 %2525  ;;  %v11044_v11 = vpack.c.bf16 %v3741_v19, %v3739_v53  ;;  %v15747_v47 = vld [vmem:[#allocation56_spill] sm:$0xff]  ;;  %v15748_v19 = vld [vmem:[#allocation61_spill] sm:$0xff] }
 0x33e   : > { %v3738_v62 = vmax.f32 %v3482_v38, 0.0  ;;  %v2980_v14 = vmul.f32 %v10066_v34, %v2514_v55  ;;  %v3487_v46 = vadd.f32 %v10092_v52, %v10943_v58  ;;  %v3486_v9 = vadd.f32 %v10082_v2, %v10940_v7  ;;  %v15749_v38 = vld [vmem:[#allocation62_spill] sm:$0xff]  ;;  %v15750_v24 = vld [vmem:[#allocation64_spill] sm:$0xff] }
 0x33f   : > { %2577 = vperm.xlu1 %6786, %v6943_v26   ;;  %2581 = vperm.xlu0 %6787, %v6944_v29   ;;  %v3488_v27 = vadd.f32 %v10082_v2, %v10974_v0  ;;  %v11055_v33 = vadd.f32 %v2976_v6, %v15747_v47  ;;  %v11058_v1 = vadd.f32 %v2977_v31, %v15748_v19  ;;  %v2522_v43 = vpop.permute.xlu1 %2521  ;;  %v3745_v0 = vmax.f32 %v3489_v44, 0.0  ;;  %v6945_v47 = vld [vmem:[%s7150_s16 + $0x378] sm:$0xff] }
 0x340   : > { %v11061_v53 = vadd.f32 %v2982_v48, %v15749_v38  ;;  %v2981_v29 = vmul.f32 %v10068_v20, %v2514_v55  ;;  %v11065_v58 = vadd.f32 %v2983_v16, %v15750_v24  ;;  %v2986_v7 = vmul.f32 %v10066_v34, %v2526_v41  ;;  %v15751_v16 = vld [vmem:[#allocation65_spill] sm:$0xff]  ;;  %v6946_v38 = vld [vmem:[%s7150_s16 + $0x380] sm:$0xff] }
 0x341   : > { %v11068_v26 = vpack.c.bf16 %v3740_v59, %v3738_v62  ;;  %v2987_v6 = vmul.f32 %v10068_v20, %v2526_v41  ;;  %v2534_v31 = vpop.permute.xlu0 %2533  ;;  %v3491_v48 = vadd.f32 %v10092_v52, %v10964_v12  ;;  %v3493_v55 = vadd.f32 %v10092_v52, %v3225_v56 }
 0x342   : > { %4389 = vmatmul.mubr.bf16.gmra.mxu0 %v10966_v45  ;;  %v11077_v19 = vadd.f32 %v2980_v14, %v15751_v16  ;;  %v3743_v62 = vmax.f32 %v3487_v46, 0.0  ;;  %v3742_v59 = vmax.f32 %v3486_v9, 0.0  ;;  %v3744_v44 = vmax.f32 %v3488_v27, 0.0  ;;  %v15752_v45 = vld [vmem:[#allocation165_spill] sm:$0xff]  ;;  %v15754_v27 = vld [vmem:[#allocation168_spill] sm:$0xff] }
 0x343   : > { %2833 = vperm.xlu1 %6786, %v6945_v47   ;;  %2837 = vperm.xlu0 %6787, %v6946_v38   ;;  %v11082_v41 = vadd.f32 %v2981_v29, %v15752_v45  ;;  %v2984_v24 = vmul.f32 %v10066_v34, %v2522_v43  ;;  %v2985_v12 = vmul.f32 %v10068_v20, %v2522_v43  ;;  %v15753_v14 = vld [vmem:[#allocation69_spill] sm:$0xff]  ;;  %v2530_v46 = vpop.permute.xlu1 %2529  ;;  %v3747_v43 = vmax.f32 %v3491_v48, 0.0  ;;  %v15756_v48 = vld [vmem:[#allocation164_spill] sm:$0xff] }
 0x344   : > { %4398 = vmatprep.mubr.bf16.mxu0 %v10983_v22  ;;  %v3492_v56 = vadd.f32 %v10082_v2, %v11001_v63  ;;  %v11089_v47 = vadd.f32 %v2986_v7, %v15753_v14  ;;  %v2990_v16 = vmul.f32 %v10066_v34, %v2534_v31  ;;  %v2991_v22 = vmul.f32 %v10068_v20, %v2534_v31  ;;  %v6947_v45 = vld [vmem:[%s7150_s16 + $0x188] sm:$0xff]  ;;  %v6948_v14 = vld [vmem:[%s7150_s16 + $0x190] sm:$0xff] }
 0x345   : > { %v11093_v9 = vpack.c.bf16 %v3745_v0, %v3743_v62  ;;  %v11096_v29 = vadd.f32 %v2987_v6, %v15754_v27  ;;  %v2542_v38 = vpop.permute.xlu0 %2541  ;;  %v3749_v15 = vmax.f32 %v3493_v55, 0.0  ;;  %v3490_v63 = vadd.f32 %v10082_v2, %v10961_v25  ;;  %v15755_v62 = vld [vmem:[#allocation67_spill] sm:$0xff] }
 0x346   : > { %v2988_v7 = vmul.f32 %v10066_v34, %v2530_v46  ;;  %v11103_v31 = vpack.c.bf16 %v3744_v44, %v3742_v59  ;;  %v3495_v0 = vadd.f32 %v10092_v52, %v10990_v51  ;;  %v3497_v6 = vadd.f32 %v10092_v52, %v11028_v39  ;;  %v15758_v59 = vld [vmem:[#allocation150_spill] sm:$0xff] }
 0x347   : > { %2585 = vperm.xlu1 %6786, %v6947_v45   ;;  %2589 = vperm.xlu0 %6787, %v6948_v14   ;;  %v11110_v27 = vadd.f32 %v2984_v24, %v15755_v62  ;;  %v11113_v55 = vadd.f32 %v2985_v12, %v15756_v48  ;;  %v2989_v25 = vmul.f32 %v10068_v20, %v2530_v46  ;;  %v3748_v45 = vmax.f32 %v3492_v56, 0.0  ;;  %v2538_v37 = vpop.permute.xlu1 %2537  ;;  %v6949_v12 = vld [vmem:[%s7150_s16 + $0x388] sm:$0xff]  ;;  %v6950_v48 = vld [vmem:[%s7150_s16 + $0x390] sm:$0xff] }
 0x348   : > { %v11117_v14 = vadd.f32 %v2990_v16, %v15757_v21  ;;  %v11120_v44 = vadd.f32 %v2991_v22, %v15758_v59  ;;  %v2994_v51 = vmul.f32 %v10066_v34, %v2542_v38  ;;  %v2995_v39 = vmul.f32 %v10068_v20, %v2542_v38  ;;  %v15759_v22 = vld [vmem:[#allocation145_spill] sm:$0xff] }
 0x349   : > { %v2550_v24 = vpop.permute.xlu0 %2549  ;;  %v11126_v62 = vpack.c.bf16 %v3749_v15, %v3747_v43  ;;  %v3746_v56 = vmax.f32 %v3490_v63, 0.0  ;;  %v3494_v21 = vadd.f32 %v10082_v2, %v10987_v10  ;;  %v3496_v16 = vadd.f32 %v10082_v2, %v11021_v40  ;;  %v15760_v43 = vld [vmem:[#allocation68_spill] sm:$0xff] }
 0x34a   : > { %4399 = vmatmul.mubr.bf16.gmra.mxu0 %v11005_v61  ;;  %v11133_v46 = vadd.f32 %v2988_v7, %v15759_v22  ;;  %v2992_v38 = vmul.f32 %v10066_v34, %v2538_v37  ;;  %v3751_v61 = vmax.f32 %v3495_v0, 0.0  ;;  %v3753_v15 = vmax.f32 %v3497_v6, 0.0  ;;  %v6951_v22 = vld [vmem:[%s7150_s16 + $0x198] sm:$0xff] }
 0x34b   : > { %2841 = vperm.xlu1 %6786, %v6949_v12   ;;  %2845 = vperm.xlu0 %6787, %v6950_v48   ;;  %v11139_v63 = vadd.f32 %v2989_v25, %v15760_v43  ;;  %v2993_v10 = vmul.f32 %v10068_v20, %v2538_v37  ;;  %v11142_v59 = vpack.c.bf16 %v3748_v45, %v3746_v56  ;;  %v2546_v6 = vpop.permute.xlu1 %2545  ;;  %v3750_v37 = vmax.f32 %v3494_v21, 0.0 }
 0x34c   : > { %4408 = vmatprep.mubr.bf16.mxu0 %v11025_v30  ;;  %v3501_v40 = vadd.f32 %v10092_v52, %v11058_v1  ;;  %v11147_v7 = vadd.f32 %v2994_v51, %v9762_v8  ;;  %v11150_v12 = vadd.f32 %v2995_v39, %v9765_v18  ;;  %v2998_v30 = vmul.f32 %v10066_v34, %v2550_v24  ;;  %v15762_v1 = vld [vmem:[#allocation73_spill] sm:$0xff]  ;;  %v6952_v39 = vld [vmem:[%s7150_s16 + $0x1a0] sm:$0xff] }
 0x34d   : > { %v2999_v0 = vmul.f32 %v10068_v20, %v2550_v24  ;;  %v2558_v25 = vpop.permute.xlu0 %2557  ;;  %v3752_v45 = vmax.f32 %v3496_v16, 0.0  ;;  %v3499_v56 = vadd.f32 %v10092_v52, %v11011_v60  ;;  %v3500_v8 = vadd.f32 %v10082_v2, %v11055_v33  ;;  %v15763_v16 = vld [vmem:[#allocation87_spill] sm:$0xff] }
 0x34e   : > { %15761 = vst [vmem:[#allocation273_spill] sm:$0xff] %v11147_v7  ;;  %v11160_v51 = vadd.f32 %v2992_v38, %v15762_v1  ;;  %v2996_v18 = vmul.f32 %v10066_v34, %v2546_v6  ;;  %v11164_v24 = vpack.c.bf16 %v3753_v15, %v3751_v61  ;;  %v3498_v21 = vadd.f32 %v10082_v2, %v11008_v13  ;;  %v15764_v38 = vld [vmem:[#allocation77_spill] sm:$0xff]  ;;  %v15766_v1 = vld [vmem:[#allocation171_spill] sm:$0xff] }
 0x34f   : > { %2593 = vperm.xlu1 %6786, %v6951_v22   ;;  %2597 = vperm.xlu0 %6787, %v6952_v39   ;;  %v11169_v48 = vadd.f32 %v2993_v10, %v15763_v16  ;;  %v2997_v60 = vmul.f32 %v10068_v20, %v2546_v6  ;;  %v3002_v33 = vmul.f32 %v10066_v34, %v2558_v25  ;;  %v3757_v43 = vmax.f32 %v3501_v40, 0.0  ;;  %v2554_v15 = vpop.permute.xlu1 %2553  ;;  %v6953_v6 = vld [vmem:[%s7150_s16 + $0x398] sm:$0xff] }
 0x350   : > { %v11174_v22 = vadd.f32 %v2998_v30, %v15764_v38  ;;  %v11177_v7 = vadd.f32 %v2999_v0, %v15766_v1  ;;  %v3003_v61 = vmul.f32 %v10068_v20, %v2558_v25  ;;  %v3503_v13 = vadd.f32 %v10092_v52, %v11041_v49  ;;  %v15767_v0 = vld [vmem:[#allocation72_spill] sm:$0xff] }
 0x351   : > { %v2566_v10 = vpop.permute.xlu0 %2565  ;;  %v11184_v39 = vpack.c.bf16 %v3752_v45, %v3750_v37  ;;  %v3755_v40 = vmax.f32 %v3499_v56, 0.0  ;;  %v3756_v30 = vmax.f32 %v3500_v8, 0.0  ;;  %v3505_v16 = vadd.f32 %v10092_v52, %v11082_v41  ;;  %v6954_v1 = vld [vmem:[%s7150_s16 + $0x3a0] sm:$0xff]  ;;  %v15768_v37 = vld [vmem:[#allocation158_spill] sm:$0xff]  ;;  %v15769_v56 = vld [vmem:[#allocation81_spill] sm:$0xff] }
 0x352   : > { %15765 = vst [vmem:[#allocation270_spill] sm:$0xff] %v11174_v22  ;;  %4409 = vmatmul.mubr.bf16.gmra.mxu0 %v11034_v36  ;;  %v11189_v38 = vadd.f32 %v2996_v18, %v15767_v0  ;;  %v3000_v25 = vmul.f32 %v10066_v34, %v2554_v15  ;;  %v3001_v49 = vmul.f32 %v10068_v20, %v2554_v15  ;;  %v3754_v36 = vmax.f32 %v3498_v21, 0.0 }
 0x353   : > { %2849 = vperm.xlu1 %6786, %v6953_v6   ;;  %2853 = vperm.xlu0 %6787, %v6954_v1   ;;  %v11196_v45 = vadd.f32 %v2997_v60, %v15768_v37  ;;  %v11199_v8 = vadd.f32 %v3002_v33, %v15769_v56  ;;  %v3006_v41 = vmul.f32 %v10066_v34, %v2566_v10  ;;  %v15770_v6 = vld [vmem:[#allocation173_spill] sm:$0xff]  ;;  %v2562_v1 = vpop.permute.xlu1 %2561  ;;  %v3759_v22 = vmax.f32 %v3503_v13, 0.0 }
 0x354   : > { %4418 = vmatprep.mubr.bf16.mxu0 %v11044_v11  ;;  %v11202_v18 = vpack.c.bf16 %v3757_v43, %v3755_v40  ;;  %v11205_v0 = vadd.f32 %v3003_v61, %v15770_v6  ;;  %v3007_v15 = vmul.f32 %v10068_v20, %v2566_v10  ;;  %v3504_v11 = vadd.f32 %v10082_v2, %v11077_v19  ;;  %v6955_v60 = vld [vmem:[%s7150_s16 + $0x1a8] sm:$0xff]  ;;  %v15771_v40 = vld [vmem:[#allocation86_spill] sm:$0xff] }
 0x355   : > { %v2646_v21 = vpop.permute.xlu0 %2645  ;;  %v11211_v33 = vpack.c.bf16 %v3756_v30, %v3754_v36  ;;  %v3761_v37 = vmax.f32 %v3505_v16, 0.0  ;;  %v3502_v43 = vadd.f32 %v10082_v2, %v11038_v57  ;;  %v3509_v61 = vadd.f32 %v10092_v52, %v11113_v55  ;;  %v15772_v10 = vld [vmem:[#allocation76_spill] sm:$0xff]  ;;  %v6956_v30 = vld [vmem:[%s7150_s16 + $0x1b0] sm:$0xff] }
 0x356   : > { %v11218_v56 = vadd.f32 %v3000_v25, %v15771_v40  ;;  %v11221_v13 = vadd.f32 %v3001_v49, %v15772_v10  ;;  %v3046_v19 = vmul.f32 %v10066_v34, %v2646_v21  ;;  %v3047_v6 = vmul.f32 %v10068_v20, %v2646_v21  ;;  %v15773_v16 = vld [vmem:[#allocation166_spill] sm:$0xff] }
 0x357   : > { %2601 = vperm.xlu1 %6786, %v6955_v60   ;;  %2605 = vperm.xlu0 %6787, %v6956_v30   ;;  %v11227_v36 = vadd.f32 %v3006_v41, %v15773_v16  ;;  %v3004_v57 = vmul.f32 %v10066_v34, %v2562_v1  ;;  %v3005_v55 = vmul.f32 %v10068_v20, %v2562_v1  ;;  %v15775_v60 = vld [vmem:[#allocation169_spill] sm:$0xff]  ;;  %v2570_v40 = vpop.permute.xlu1 %2569  ;;  %v3760_v10 = vmax.f32 %v3504_v11, 0.0 }
 0x358   : > { %v3507_v25 = vadd.f32 %v10092_v52, %v11065_v58  ;;  %v11234_v49 = vadd.f32 %v3007_v15, %v15775_v60  ;;  %v3506_v21 = vadd.f32 %v10082_v2, %v11061_v53  ;;  %v3508_v41 = vadd.f32 %v10082_v2, %v11110_v27  ;;  %v6957_v16 = vld [vmem:[%s7150_s16 + $0x3a8] sm:$0xff] }
 0x359   : > { %15774 = vst [vmem:[#allocation271_spill] sm:$0xff] %v11227_v36  ;;  %v3302_v30 = vadd.f32 %v3046_v19, %v10060_v54  ;;  %v2654_v1 = vpop.permute.xlu0 %2653  ;;  %v3303_v58 = vadd.f32 %v3047_v6, %v10071_v28  ;;  %v11244_v15 = vpack.c.bf16 %v3761_v37, %v3759_v22  ;;  %v3765_v60 = vmax.f32 %v3509_v61, 0.0  ;;  %v15778_v19 = vld [vmem:[#allocation80_spill] sm:$0xff] }
 0x35a   : > { %15776 = vst [vmem:[#allocation276_spill] sm:$0xff] %v11234_v49  ;;  %4419 = vmatmul.mubr.bf16.gmra.mxu0 %v11068_v26  ;;  %v3008_v11 = vmul.f32 %v10066_v34, %v2570_v40  ;;  %v3050_v36 = vmul.f32 %v10066_v34, %v2654_v1  ;;  %v3051_v53 = vmul.f32 %v10068_v20, %v2654_v1  ;;  %v6958_v49 = vld [vmem:[%s7150_s16 + $0x3b0] sm:$0xff]  ;;  %v3758_v54 = vmax.f32 %v3502_v43, 0.0 }
 0x35b   : > { %2857 = vperm.xlu1 %6786, %v6957_v16   ;;  %2861 = vperm.xlu0 %6787, %v6958_v49   ;;  %v15777_v26 = vld [vmem:[#allocation161_spill] sm:$0xff]  ;;  %v11255_v28 = vadd.f32 %v3005_v55, %v15778_v19  ;;  %v3009_v22 = vmul.f32 %v10068_v20, %v2570_v40  ;;  %v3763_v37 = vmax.f32 %v3507_v25, 0.0  ;;  %v2650_v6 = vpop.permute.xlu1 %2649  ;;  %v3762_v16 = vmax.f32 %v3506_v21, 0.0  ;;  %v15779_v25 = vld [vmem:[#allocation172_spill] sm:$0xff] }
 0x35c   : > { %4428 = vmatprep.mubr.bf16.mxu0 %v11093_v9  ;;  %v11252_v27 = vadd.f32 %v3004_v57, %v15777_v26  ;;  %v3307_v61 = vadd.f32 %v3051_v53, %v10098_v32  ;;  %v11259_v1 = vpack.c.bf16 %v3760_v10, %v3758_v54  ;;  %v3764_v49 = vmax.f32 %v3508_v41, 0.0  ;;  %v6959_v26 = vld [vmem:[%s7150_s16 + $0x1b8] sm:$0xff]  ;;  %v6960_v21 = vld [vmem:[%s7150_s16 + $0x1c0] sm:$0xff]  ;;  %v15780_v53 = vld [vmem:[#allocation85_spill] sm:$0xff] }
 0x35d   : > { %v3048_v9 = vmul.f32 %v10066_v34, %v2650_v6  ;;  %v3049_v43 = vmul.f32 %v10068_v20, %v2650_v6  ;;  %v2662_v57 = vpop.permute.xlu0 %2661  ;;  %v3571_v55 = vadd.f32 %v10092_v52, %v3303_v58  ;;  %v11265_v19 = vpack.c.bf16 %v3765_v60, %v3763_v37 }
 0x35e   : > { %v11268_v40 = vadd.f32 %v3008_v11, %v15779_v25  ;;  %v3306_v32 = vadd.f32 %v3050_v36, %v10095_v3  ;;  %v3055_v10 = vmul.f32 %v10068_v20, %v2662_v57  ;;  %v3570_v41 = vadd.f32 %v10082_v2, %v3302_v30 }
 0x35f   : > { %2609 = vperm.xlu1 %6786, %v6959_v26   ;;  %2613 = vperm.xlu0 %6787, %v6960_v21   ;;  %v11275_v54 = vadd.f32 %v3009_v22, %v15780_v53  ;;  %v3304_v6 = vadd.f32 %v3048_v9, %v10074_v35  ;;  %v3305_v58 = vadd.f32 %v3049_v43, %v10077_v50  ;;  %v2658_v36 = vpop.permute.xlu1 %2657  ;;  %v3827_v43 = vmax.f32 %v3571_v55, 0.0  ;;  %v15781_v21 = vld [vmem:[#allocation190_spill] sm:$0xff] }
 0x360   : > { %v11281_v60 = vadd.f32 %v10092_v52, %v11096_v29  ;;  %v3054_v3 = vmul.f32 %v10066_v34, %v2662_v57  ;;  %v3575_v11 = vadd.f32 %v10092_v52, %v3307_v61  ;;  %v11285_v37 = vpack.c.bf16 %v3764_v49, %v3762_v16  ;;  %v6961_v29 = vld [vmem:[%s7150_s16 + $0x3b8] sm:$0xff]  ;;  %v6962_v16 = vld [vmem:[%s7150_s16 + $0x3c0] sm:$0xff] }
 0x361   : > { %v11289_v30 = vadd.f32 %v10092_v52, %v11139_v63  ;;  %v3052_v35 = vmul.f32 %v10066_v34, %v2658_v36  ;;  %v3053_v50 = vmul.f32 %v10068_v20, %v2658_v36  ;;  %v2670_v22 = vpop.permute.xlu0 %2669  ;;  %v3573_v9 = vadd.f32 %v10092_v52, %v3305_v58 }
 0x362   : > { %4429 = vmatmul.mubr.bf16.gmra.mxu0 %v11103_v31  ;;  %v3311_v61 = vadd.f32 %v3055_v10, %v10133_v23  ;;  %v3572_v63 = vadd.f32 %v10082_v2, %v3304_v6  ;;  %v3826_v49 = vmax.f32 %v3570_v41, 0.0  ;;  %v3574_v57 = vadd.f32 %v10082_v2, %v3306_v32 }
 0x363   : > { %2865 = vperm.xlu1 %6786, %v6961_v29   ;;  %2869 = vperm.xlu0 %6787, %v6962_v16   ;;  %v3308_v31 = vadd.f32 %v3052_v35, %v10106_v5  ;;  %v3309_v26 = vadd.f32 %v3053_v50, %v10127_v17  ;;  %v3829_v25 = vmax.f32 %v3573_v9, 0.0  ;;  %v3310_v23 = vadd.f32 %v3054_v3, %v15781_v21  ;;  %v2666_v53 = vpop.permute.xlu1 %2665  ;;  %v6963_v5 = vld [vmem:[%s7150_s16 + $0x1c8] sm:$0xff]  ;;  %v6964_v50 = vld [vmem:[%s7150_s16 + $0x1d0] sm:$0xff] }
 0x364   : > { %4438 = vmatprep.mubr.bf16.mxu0 %v11126_v62  ;;  %v3058_v10 = vmul.f32 %v10066_v34, %v2670_v22  ;;  %v3059_v62 = vmul.f32 %v10068_v20, %v2670_v22  ;;  %v3828_v58 = vmax.f32 %v3572_v63, 0.0  ;;  %v3056_v41 = vmul.f32 %v10066_v34, %v2666_v53  ;;  %v15782_v9 = vld [vmem:[#allocation112_spill] sm:$0xff]  ;;  %v15783_v63 = vld [vmem:[#allocation189_spill] sm:$0xff] }
 0x365   : > { %v3057_v32 = vmul.f32 %v10068_v20, %v2666_v53  ;;  %v2678_v6 = vpop.permute.xlu0 %2677  ;;  %v4019_v17 = vpack.c.bf16 %v3829_v25, %v3827_v43  ;;  %v3577_v36 = vadd.f32 %v10092_v52, %v3309_v26  ;;  %v3576_v29 = vadd.f32 %v10082_v2, %v3308_v31  ;;  %v15784_v43 = vld [vmem:[#allocation117_spill] sm:$0xff] }
 0x366   : > { %v3062_v35 = vmul.f32 %v10066_v34, %v2678_v6  ;;  %v4018_v3 = vpack.c.bf16 %v3828_v58, %v3826_v49  ;;  %v3579_v22 = vadd.f32 %v10092_v52, %v3311_v61  ;;  %v3312_v16 = vadd.f32 %v3056_v41, %v15782_v9 }
 0x367   : > { %2617 = vperm.xlu1 %6786, %v6963_v5   ;;  %2621 = vperm.xlu0 %6787, %v6964_v50   ;;  %v3313_v21 = vadd.f32 %v3057_v32, %v15783_v63  ;;  %v3831_v53 = vmax.f32 %v3575_v11, 0.0  ;;  %v3833_v5 = vmax.f32 %v3577_v36, 0.0  ;;  %v3314_v25 = vadd.f32 %v3058_v10, %v15784_v43  ;;  %v2674_v55 = vpop.permute.xlu1 %2673  ;;  %v6965_v11 = vld [vmem:[%s7150_s16 + $0x3c8] sm:$0xff] }
 0x368   : > { %4638 = vmatprep.mubr.bf16.mxu1 %v4019_v17  ;;  %v3063_v26 = vmul.f32 %v10068_v20, %v2678_v6  ;;  %v3832_v49 = vmax.f32 %v3576_v29, 0.0  ;;  %v11320_v31 = vadd.f32 %v10082_v2, %v3310_v23  ;;  %v3060_v61 = vmul.f32 %v10066_v34, %v2674_v55  ;;  %v15785_v17 = vld [vmem:[#allocation98_spill] sm:$0xff]  ;;  %v15786_v36 = vld [vmem:[#allocation121_spill] sm:$0xff]  ;;  %v15787_v29 = vld [vmem:[#allocation116_spill] sm:$0xff] }
 0x369   : > { %4639 = vmatmul.mubr.bf16.vlgmr.msra.gmra.mxu1 %v4018_v3  ;;  %v3061_v58 = vmul.f32 %v10068_v20, %v2674_v55  ;;  %v2686_v41 = vpop.permute.xlu0 %2685  ;;  %v4021_v32 = vpack.c.bf16 %v3833_v5, %v3831_v53  ;;  %v3830_v10 = vmax.f32 %v3574_v57, 0.0  ;;  %v3315_v6 = vadd.f32 %v3059_v62, %v15785_v17  ;;  %v6966_v23 = vld [vmem:[%s7150_s16 + $0x3d0] sm:$0xff]  ;;  %v15789_v53 = vld [vmem:[#allocation99_spill] sm:$0xff] }
 0x36a   : > { %4439 = vmatmul.mubr.bf16.gmra.mxu0 %v11142_v59  ;;  %v11328_v50 = vadd.f32 %v3062_v35, %v15786_v36  ;;  %v3066_v3 = vmul.f32 %v10066_v34, %v2686_v41  ;;  %v3835_v55 = vmax.f32 %v3579_v22, 0.0  ;;  %v3067_v9 = vmul.f32 %v10068_v20, %v2686_v41  ;;  %v15788_v35 = vld [vmem:[#allocation193_spill] sm:$0xff]  ;;  %v15790_v17 = vld [vmem:[#allocation123_spill] sm:$0xff] }
 0x36b   : > { %2873 = vperm.xlu1 %6786, %v6965_v11   ;;  %2877 = vperm.xlu0 %6787, %v6966_v23   ;;  %v3317_v59 = vadd.f32 %v3061_v58, %v15787_v29  ;;  %v3581_v57 = vadd.f32 %v10092_v52, %v3313_v21  ;;  %v3580_v62 = vadd.f32 %v10082_v2, %v3312_v16  ;;  %v2682_v43 = vpop.permute.xlu1 %2681  ;;  %v6967_v36 = vld [vmem:[%s7150_s16 + $0x1d8] sm:$0xff]  ;;  %v15792_v23 = vld [vmem:[#allocation192_spill] sm:$0xff] }
 0x36c   : > { %4448 = vmatprep.mubr.bf16.mxu0 %v11164_v24  ;;  %4648 = vmatprep.mubr.bf16.mxu1 %v4021_v32  ;;  %v3319_v63 = vadd.f32 %v3063_v26, %v15788_v35  ;;  %v3316_v5 = vadd.f32 %v3060_v61, %v15789_v53  ;;  %v4020_v11 = vpack.c.bf16 %v3832_v49, %v3830_v10  ;;  %v3834_v24 = vmax.f32 %v11320_v31, 0.0  ;;  %v6968_v26 = vld [vmem:[%s7150_s16 + $0x1e0] sm:$0xff]  ;;  %v15791_v10 = vld [vmem:[#allocation197_spill] sm:$0xff] }
 0x36d   : > { %v11341_v22 = vadd.f32 %v3066_v3, %v15790_v17  ;;  %v3064_v58 = vmul.f32 %v10066_v34, %v2682_v43  ;;  %v3065_v41 = vmul.f32 %v10068_v20, %v2682_v43  ;;  %v2694_v32 = vpop.permute.xlu0 %2693  ;;  %v3837_v21 = vmax.f32 %v3581_v57, 0.0  ;;  %v15793_v43 = vld [vmem:[#allocation120_spill] sm:$0xff] }
 0x36e   : > { %v3070_v16 = vmul.f32 %v10066_v34, %v2694_v32  ;;  %v3836_v61 = vmax.f32 %v3580_v62, 0.0  ;;  %v3583_v49 = vadd.f32 %v10092_v52, %v3315_v6  ;;  %v3585_v31 = vadd.f32 %v10092_v52, %v3317_v59 }
 0x36f   : > { %2625 = vperm.xlu1 %6786, %v6967_v36   ;;  %2629 = vperm.xlu0 %6787, %v6968_v26   ;;  %v3323_v3 = vadd.f32 %v3067_v9, %v15791_v10  ;;  %v3321_v29 = vadd.f32 %v3065_v41, %v15792_v23  ;;  %v3071_v35 = vmul.f32 %v10068_v20, %v2694_v32  ;;  %v2690_v17 = vpop.permute.xlu1 %2689  ;;  %v6969_v41 = vld [vmem:[%s7150_s16 + $0x3d8] sm:$0xff]  ;;  %v15794_v32 = vld [vmem:[#allocation125_spill] sm:$0xff] }
 0x370   : > { %v3582_v53 = vadd.f32 %v10082_v2, %v3314_v25  ;;  %v3320_v57 = vadd.f32 %v3064_v58, %v15793_v43  ;;  %v4023_v36 = vpack.c.bf16 %v3837_v21, %v3835_v55  ;;  %v3841_v62 = vmax.f32 %v3585_v31, 0.0 }
 0x371   : > { %4649 = vmatmul.mubr.bf16.gmra.mxu1 %v4020_v11  ;;  %v3584_v6 = vadd.f32 %v10082_v2, %v3316_v5  ;;  %v3068_v26 = vmul.f32 %v10066_v34, %v2690_v17  ;;  %v3069_v59 = vmul.f32 %v10068_v20, %v2690_v17  ;;  %v2702_v9 = vpop.permute.xlu0 %2701  ;;  %v3587_v25 = vadd.f32 %v10092_v52, %v3319_v63  ;;  %v6970_v11 = vld [vmem:[%s7150_s16 + $0x3e0] sm:$0xff] }
 0x372   : > { %4449 = vmatmul.mubr.bf16.gmra.mxu0 %v11184_v39  ;;  %v3769_v58 = vmax.f32 %v11289_v30, 0.0  ;;  %v11363_v10 = vadd.f32 %v3070_v16, %v15794_v32  ;;  %v3074_v55 = vmul.f32 %v10066_v34, %v2702_v9  ;;  %v4022_v5 = vpack.c.bf16 %v3836_v61, %v3834_v24  ;;  %v15795_v39 = vld [vmem:[#allocation103_spill] sm:$0xff]  ;;  %4658 = vmatprep.mubr.bf16.mxu1 %v4023_v36  ;;  %v15796_v16 = vld [vmem:[#allocation122_spill] sm:$0xff]  ;;  %v15797_v17 = vld [vmem:[#allocation196_spill] sm:$0xff] }
 0x373   : > { %2881 = vperm.xlu1 %6786, %v6969_v41   ;;  %2885 = vperm.xlu0 %6787, %v6970_v11   ;;  %v3839_v21 = vmax.f32 %v3583_v49, 0.0  ;;  %v11369_v31 = vadd.f32 %v3071_v35, %v15795_v39  ;;  %v3075_v23 = vmul.f32 %v10068_v20, %v2702_v9  ;;  %v3840_v63 = vmax.f32 %v3584_v6, 0.0  ;;  %v2698_v32 = vpop.permute.xlu1 %2697  ;;  %v6971_v35 = vld [vmem:[%s7150_s16 + $0x1e8] sm:$0xff]  ;;  %v15798_v6 = vld [vmem:[#allocation127_spill] sm:$0xff] }
 0x374   : > { %4458 = vmatprep.mubr.bf16.mxu0 %v11202_v18  ;;  %v3589_v30 = vadd.f32 %v10092_v52, %v3321_v29  ;;  %v3324_v43 = vadd.f32 %v3068_v26, %v15796_v16  ;;  %v3325_v41 = vadd.f32 %v3069_v59, %v15797_v17  ;;  %v3838_v18 = vmax.f32 %v3582_v53, 0.0  ;;  %v6972_v26 = vld [vmem:[%s7150_s16 + $0x1f0] sm:$0xff] }
 0x375   : > { %v4025_v11 = vpack.c.bf16 %v3841_v62, %v3839_v21  ;;  %v3072_v24 = vmul.f32 %v10066_v34, %v2698_v32  ;;  %v3073_v61 = vmul.f32 %v10068_v20, %v2698_v32  ;;  %v2710_v49 = vpop.permute.xlu0 %2709  ;;  %v3843_v9 = vmax.f32 %v3587_v25, 0.0  ;;  %v15799_v62 = vld [vmem:[#allocation199_spill] sm:$0xff] }
 0x376   : > { %v3588_v36 = vadd.f32 %v10082_v2, %v3320_v57  ;;  %v11380_v39 = vadd.f32 %v3074_v55, %v15798_v6  ;;  %v3078_v29 = vmul.f32 %v10066_v34, %v2710_v49  ;;  %v3845_v59 = vmax.f32 %v3589_v30, 0.0  ;;  %v15801_v55 = vld [vmem:[#allocation55_spill] sm:$0xff] }
 0x377   : > { %2633 = vperm.xlu1 %6786, %v6971_v35   ;;  %2637 = vperm.xlu0 %6787, %v6972_v26   ;;  %v3586_v53 = vadd.f32 %v10082_v2, %v11328_v50  ;;  %v11387_v21 = vadd.f32 %v3075_v23, %v15799_v62  ;;  %v3079_v16 = vmul.f32 %v10068_v20, %v2710_v49  ;;  %v15800_v57 = vmax.f32 %v11281_v60, 0.0  ;;  %v15802_v23 = vld [vmem:[#allocation124_spill] sm:$0xff] }
 0x378   : > { %v4024_v25 = vpack.c.bf16 %v3840_v63, %v3838_v18  ;;  %v11395_v32 = vadd.f32 %v3072_v24, %v15801_v55  ;;  %v2706_v35 = vpop.permute.xlu1 %2705  ;;  %v3844_v30 = vmax.f32 %v3588_v36, 0.0  ;;  %v3591_v50 = vadd.f32 %v10092_v52, %v3323_v3  ;;  %v15803_v18 = vld [vmem:[#allocation201_spill] sm:$0xff] }
 0x379   : > { %v11392_v17 = vpack.c.bf16 %v3769_v58, %v15800_v57  ;;  %4659 = vmatmul.mubr.bf16.gmra.mxu1 %v4022_v5  ;;  %v3593_v6 = vadd.f32 %v10092_v52, %v3325_v41  ;;  %v3329_v26 = vadd.f32 %v3073_v61, %v15802_v23  ;;  %v3076_v49 = vmul.f32 %v10066_v34, %v2706_v35  ;;  %v2718_v60 = vpop.permute.xlu0 %2717  ;;  %v6973_v58 = vld [vmem:[%s7150_s16 + $0x3e8] sm:$0xff]  ;;  %v6974_v36 = vld [vmem:[%s7150_s16 + $0x3f0] sm:$0xff] }
 0x37a   : > { %v3077_v63 = vmul.f32 %v10068_v20, %v2706_v35  ;;  %4459 = vmatmul.mubr.bf16.gmra.mxu0 %v11211_v33  ;;  %v11405_v24 = vadd.f32 %v3078_v29, %v15803_v18  ;;  %v3082_v5 = vmul.f32 %v10066_v34, %v2718_v60  ;;  %v4027_v3 = vpack.c.bf16 %v3845_v59, %v3843_v9  ;;  %v15804_v57 = vld [vmem:[#allocation128_spill] sm:$0xff]  ;;  %v15805_v35 = vld [vmem:[#allocation102_spill] sm:$0xff] }
 0x37b   : > { %2889 = vperm.xlu1 %6786, %v6973_v58   ;;  %2893 = vperm.xlu0 %6787, %v6974_v36   ;;  %v3842_v41 = vmax.f32 %v3586_v53, 0.0  ;;  %v3083_v61 = vmul.f32 %v10068_v20, %v2718_v60  ;;  %v3849_v62 = vmax.f32 %v3593_v6, 0.0  ;;  %v3510_v33 = vadd.f32 %v10082_v2, %v11089_v47  ;;  %v15806_v53 = vld [vmem:[#allocation126_spill] sm:$0xff] }
 0x37c   : > { %4468 = vmatprep.mubr.bf16.mxu0 %v11244_v15  ;;  %4668 = vmatprep.mubr.bf16.mxu1 %v4025_v11  ;;  %v3512_v29 = vadd.f32 %v10082_v2, %v11133_v46  ;;  %v11416_v55 = vadd.f32 %v3079_v16, %v15804_v57  ;;  %v11419_v23 = vadd.f32 %v3076_v49, %v15805_v35  ;;  %v2714_v15 = vpop.permute.xlu1 %2713  ;;  %v3847_v59 = vmax.f32 %v3591_v50, 0.0  ;;  %v6975_v60 = vld [vmem:[%s7150_s16 + $0x1f8] sm:$0xff] }
 0x37d   : > { %v4026_v9 = vpack.c.bf16 %v3844_v30, %v3842_v41  ;;  %v11422_v58 = vadd.f32 %v3077_v63, %v15806_v53  ;;  %v3080_v11 = vmul.f32 %v10066_v34, %v2714_v15  ;;  %v3081_v6 = vmul.f32 %v10068_v20, %v2714_v15  ;;  %v2726_v47 = vpop.permute.xlu0 %2725  ;;  %v15807_v18 = vld [vmem:[#allocation202_spill] sm:$0xff]  ;;  %v15809_v15 = vld [vmem:[#allocation200_spill] sm:$0xff] }
 0x37e   : > { %v3768_v46 = vmax.f32 %v3512_v29, 0.0  ;;  %v11428_v16 = vadd.f32 %v3082_v5, %v15807_v18  ;;  %v3086_v49 = vmul.f32 %v10066_v34, %v2726_v47  ;;  %v3590_v30 = vadd.f32 %v10082_v2, %v11341_v22  ;;  %v15808_v63 = vld [vmem:[#allocation106_spill] sm:$0xff] }
 0x37f   : > { %2641 = vperm.xlu1 %6786, %v6975_v60   ;;  %v3592_v50 = vadd.f32 %v10082_v2, %v3324_v43  ;;  %v11435_v36 = vadd.f32 %v3083_v61, %v15808_v63  ;;  %v3087_v41 = vmul.f32 %v10068_v20, %v2726_v47  ;;  %v4029_v57 = vpack.c.bf16 %v3849_v62, %v3847_v59  ;;  %v15810_v43 = vld [vmem:[#allocation107_spill] sm:$0xff] }
 0x380   : > { %v3766_v35 = vmax.f32 %v3510_v33, 0.0  ;;  %v11439_v29 = vadd.f32 %v3080_v11, %v15809_v15  ;;  %v2722_v5 = vpop.permute.xlu1 %2721  ;;  %v3515_v60 = vadd.f32 %v10092_v52, %v11120_v44  ;;  %v3517_v22 = vadd.f32 %v10092_v52, %v11169_v48  ;;  %v6976_v33 = vld [vmem:[%s7150_s16 + $0x3f8] sm:$0xff] }
 0x381   : > { %4669 = vmatmul.mubr.bf16.gmra.mxu1 %v4024_v25  ;;  %v3848_v53 = vmax.f32 %v3592_v50, 0.0  ;;  %v11446_v18 = vadd.f32 %v3081_v6, %v15810_v43  ;;  %v11449_v61 = vadd.f32 %v3086_v49, %v10314_v4  ;;  %v2734_v62 = vpop.permute.xlu0 %2733  ;;  %v3084_v25 = vmul.f32 %v10066_v34, %v2722_v5  ;;  %v15814_v43 = vld [vmem:[#allocation32_spill] sm:$0xff] }
 0x382   : > { %4469 = vmatmul.mubr.bf16.gmra.mxu0 %v11259_v1  ;;  %v11453_v59 = vpack.c.bf16 %v3768_v46, %v3766_v35  ;;  %v3085_v44 = vmul.f32 %v10068_v20, %v2722_v5  ;;  %4678 = vmatprep.mubr.bf16.mxu1 %v4027_v3  ;;  %v3846_v48 = vmax.f32 %v3590_v30, 0.0  ;;  %v3595_v11 = vadd.f32 %v10092_v52, %v11369_v31  ;;  %v15811_v5 = vld [vmem:[#allocation203_spill] sm:$0xff] }
 0x383   : > { %2897 = vperm.xlu1 %6786, %v6976_v33   ;;  %4478 = vmatprep.mubr.bf16.mxu0 %v11265_v19  ;;  %v3090_v4 = vmul.f32 %v10066_v34, %v2734_v62  ;;  %v3091_v1 = vmul.f32 %v10068_v20, %v2734_v62  ;;  %v3773_v6 = vmax.f32 %v3517_v22, 0.0  ;;  %v3597_v47 = vadd.f32 %v10092_v52, %v3329_v26 }
 0x384   : > { %v11464_v46 = vadd.f32 %v3087_v41, %v10317_v42  ;;  %v4028_v50 = vpack.c.bf16 %v3848_v53, %v3846_v48  ;;  %v3771_v63 = vmax.f32 %v3515_v60, 0.0  ;;  %v3514_v19 = vadd.f32 %v10082_v2, %v11117_v14  ;;  %v15812_v42 = vld [vmem:[#allocation206_spill] sm:$0xff]  ;;  %v15813_v14 = vld [vmem:[#allocation111_spill] sm:$0xff] }
 0x385   : > { %v2730_v49 = vpop.permute.xlu1 %2729  ;;  %v3853_v35 = vmax.f32 %v3597_v47, 0.0  ;;  %v3516_v15 = vadd.f32 %v10082_v2, %v11160_v51  ;;  %v11473_v26 = vadd.f32 %v3084_v25, %v15811_v5  ;;  %v11476_v41 = vadd.f32 %v3085_v44, %v15812_v42  ;;  %v15815_v47 = vld [vmem:[#allocation204_spill] sm:$0xff]  ;;  %v15816_v5 = vld [vmem:[#allocation205_spill] sm:$0xff] }
 0x386   : > { %v3088_v3 = vmul.f32 %v10066_v34, %v2730_v49  ;;  %v3089_v31 = vmul.f32 %v10068_v20, %v2730_v49  ;;  %v2742_v30 = vpop.permute.xlu0 %2741  ;;  %v11481_v22 = vadd.f32 %v3090_v4, %v15813_v14  ;;  %v11484_v62 = vadd.f32 %v3091_v1, %v15814_v43 }
 0x387   : > { %v3094_v53 = vmul.f32 %v10066_v34, %v2742_v30  ;;  %v3095_v60 = vmul.f32 %v10068_v20, %v2742_v30  ;;  %v3991_v33 = vpack.c.bf16 %v3773_v6, %v3771_v63  ;;  %v3851_v48 = vmax.f32 %v3595_v11, 0.0 }
 0x388   : > { %v11487_v51 = vadd.f32 %v3088_v3, %v15815_v47  ;;  %v3772_v49 = vmax.f32 %v3516_v15, 0.0  ;;  %v3594_v44 = vadd.f32 %v10082_v2, %v11363_v10  ;;  %v3596_v30 = vadd.f32 %v10082_v2, %v11395_v32  ;;  %v15817_v3 = vld [vmem:[#allocation110_spill] sm:$0xff] }
 0x389   : > { %v2738_v25 = vpop.permute.xlu1 %2737  ;;  %4679 = vmatmul.mubr.bf16.gmra.mxu1 %v4026_v9  ;;  %v11494_v4 = vadd.f32 %v3089_v31, %v15816_v5  ;;  %v4031_v6 = vpack.c.bf16 %v3853_v35, %v3851_v48  ;;  %v3770_v63 = vmax.f32 %v3514_v19, 0.0  ;;  %v11499_v9 = vadd.f32 %v3094_v53, %v15817_v3  ;;  %v15819_v15 = vld [vmem:[#allocation34_spill] sm:$0xff]  ;;  %v15820_v19 = vld [vmem:[#allocation208_spill] sm:$0xff] }
 0x38a   : > { %v3092_v1 = vmul.f32 %v10066_v34, %v2738_v25  ;;  %4479 = vmatmul.mubr.bf16.gmra.mxu0 %v11285_v37  ;;  %v2750_v11 = vpop.permute.xlu0 %2749  ;;  %4688 = vmatprep.mubr.bf16.mxu1 %v4029_v57  ;;  %v11502_v42 = vadd.f32 %v3095_v60, %v15819_v15  ;;  %v3093_v10 = vmul.f32 %v10068_v20, %v2738_v25  ;;  %v3852_v14 = vmax.f32 %v3596_v30, 0.0  ;;  %v15824_v3 = vld [vmem:[#allocation210_spill] sm:$0xff] }
 0x38b   : > { %15818 = vst [vmem:[#allocation277_spill] sm:$0xff] %v11499_v9  ;;  %v3098_v32 = vmul.f32 %v10066_v34, %v2750_v11  ;;  %4488 = vmatprep.mubr.bf16.mxu0 %v11392_v17  ;;  %v3099_v31 = vmul.f32 %v10068_v20, %v2750_v11  ;;  %v3519_v37 = vadd.f32 %v10092_v52, %v11150_v12  ;;  %v3850_v43 = vmax.f32 %v3594_v44, 0.0  ;;  %v15822_v44 = vld [vmem:[#allocation273_spill] sm:$0xff] }
 0x38c   : > { %v3521_v57 = vadd.f32 %v10092_v52, %v11196_v45  ;;  %v11513_v35 = vadd.f32 %v3092_v1, %v15820_v19  ;;  %v11515_v60 = vpack.c.bf16 %v3772_v49, %v3770_v63  ;;  %v3599_v48 = vadd.f32 %v10092_v52, %v11387_v21  ;;  %v15821_v45 = vld [vmem:[#allocation209_spill] sm:$0xff] }
 0x38d   : > { %v2746_v53 = vpop.permute.xlu1 %2745  ;;  %v3601_v12 = vadd.f32 %v10092_v52, %v11422_v58  ;;  %v11524_v5 = vadd.f32 %v3093_v10, %v15821_v45  ;;  %v3518_v11 = vadd.f32 %v10082_v2, %v15822_v44  ;;  %v15823_v21 = vld [vmem:[#allocation213_spill] sm:$0xff]  ;;  %v11534_v15 = vadd.f32 %v3099_v31, %v15824_v3  ;;  %v15826_v10 = vld [vmem:[#allocation212_spill] sm:$0xff] }
 0x38e   : > { %v3096_v17 = vmul.f32 %v10066_v34, %v2746_v53  ;;  %v3097_v47 = vmul.f32 %v10068_v20, %v2746_v53  ;;  %v2758_v25 = vpop.permute.xlu0 %2757  ;;  %v3777_v30 = vmax.f32 %v3521_v57, 0.0  ;;  %v11531_v63 = vadd.f32 %v3098_v32, %v15823_v21  ;;  %v15825_v53 = vld [vmem:[#allocation207_spill] sm:$0xff] }
 0x38f   : > { %v3102_v1 = vmul.f32 %v10066_v34, %v2758_v25  ;;  %v3103_v49 = vmul.f32 %v10068_v20, %v2758_v25  ;;  %v4030_v57 = vpack.c.bf16 %v3852_v14, %v3850_v43  ;;  %v3775_v19 = vmax.f32 %v3519_v37, 0.0  ;;  %v15827_v43 = vld [vmem:[#allocation115_spill] sm:$0xff] }
 0x390   : > { %v11537_v58 = vadd.f32 %v3096_v17, %v15825_v53  ;;  %v11540_v45 = vadd.f32 %v3097_v47, %v15826_v10  ;;  %v3857_v25 = vmax.f32 %v3601_v12, 0.0  ;;  %v3520_v44 = vadd.f32 %v10082_v2, %v11189_v38  ;;  %v15829_v47 = vld [vmem:[#allocation216_spill] sm:$0xff] }
 0x391   : > { %4689 = vmatmul.mubr.bf16.gmra.mxu1 %v4028_v50  ;;  %v3993_v14 = vpack.c.bf16 %v3777_v30, %v3775_v19  ;;  %v3855_v37 = vmax.f32 %v3599_v48, 0.0  ;;  %v11548_v17 = vadd.f32 %v3102_v1, %v15827_v43  ;;  %v11551_v3 = vadd.f32 %v3103_v49, %v15829_v47  ;;  %v15831_v48 = vld [vmem:[#allocation211_spill] sm:$0xff] }
 0x392   : > { %v2754_v9 = vpop.permute.xlu1 %2753  ;;  %4489 = vmatmul.mubr.bf16.gmra.mxu0 %v11453_v59  ;;  %v2766_v31 = vpop.permute.xlu0 %2765  ;;  %4698 = vmatprep.mubr.bf16.mxu1 %v4031_v6  ;;  %v3774_v50 = vmax.f32 %v3518_v11, 0.0  ;;  %v3598_v38 = vadd.f32 %v10082_v2, %v11380_v39  ;;  %v3776_v59 = vmax.f32 %v3520_v44, 0.0  ;;  %v3600_v6 = vadd.f32 %v10082_v2, %v11419_v23  ;;  %v15832_v1 = vld [vmem:[#allocation43_spill] sm:$0xff] }
 0x393   : > { %v3100_v32 = vmul.f32 %v10066_v34, %v2754_v9  ;;  %v3101_v21 = vmul.f32 %v10068_v20, %v2754_v9  ;;  %15828 = vst [vmem:[#allocation274_spill] sm:$0xff] %v11548_v17  ;;  %15830 = vst [vmem:[#allocation275_spill] sm:$0xff] %v11551_v3  ;;  %4498 = vmatprep.mubr.bf16.mxu0 %v3991_v33  ;;  %v3106_v12 = vmul.f32 %v10066_v34, %v2766_v31 }
 0x394   : > { %v3107_v9 = vmul.f32 %v10068_v20, %v2766_v31  ;;  %v4033_v33 = vpack.c.bf16 %v3857_v25, %v3855_v37  ;;  %v3523_v11 = vadd.f32 %v10092_v52, %v11177_v7  ;;  %v3856_v44 = vmax.f32 %v3600_v6, 0.0  ;;  %v15833_v37 = vld [vmem:[#allocation44_spill] sm:$0xff]  ;;  %v15834_v7 = vld [vmem:[#allocation157_spill] sm:$0xff]  ;;  %v15835_v6 = vld [vmem:[#allocation42_spill] sm:$0xff] }
 0x395   : > { %v11560_v30 = vadd.f32 %v3100_v32, %v15831_v48  ;;  %v11563_v19 = vadd.f32 %v3101_v21, %v15832_v1  ;;  %v3525_v23 = vadd.f32 %v10092_v52, %v11221_v13  ;;  %v3854_v21 = vmax.f32 %v3598_v38, 0.0  ;;  %v15836_v13 = vld [vmem:[#allocation214_spill] sm:$0xff] }
 0x396   : > { %v2762_v49 = vpop.permute.xlu1 %2761  ;;  %v2774_v10 = vpop.permute.xlu0 %2773  ;;  %v3603_v25 = vadd.f32 %v10092_v52, %v11416_v55  ;;  %v11576_v43 = vadd.f32 %v3106_v12, %v15833_v37  ;;  %v11579_v47 = vadd.f32 %v3107_v9, %v15834_v7  ;;  %v3992_v48 = vpack.c.bf16 %v3776_v59, %v3774_v50 }
 0x397   : > { %v3104_v39 = vmul.f32 %v10066_v34, %v2762_v49  ;;  %v3105_v53 = vmul.f32 %v10068_v20, %v2762_v49  ;;  %v3110_v32 = vmul.f32 %v10066_v34, %v2774_v10  ;;  %v3111_v31 = vmul.f32 %v10068_v20, %v2774_v10  ;;  %v15837_v10 = vld [vmem:[#allocation215_spill] sm:$0xff] }
 0x398   : > { %v3781_v1 = vmax.f32 %v3525_v23, 0.0  ;;  %v4032_v38 = vpack.c.bf16 %v3856_v44, %v3854_v21  ;;  %v3605_v55 = vadd.f32 %v10092_v52, %v11446_v18  ;;  %v3859_v44 = vmax.f32 %v3603_v25, 0.0  ;;  %v15840_v18 = vld [vmem:[#allocation270_spill] sm:$0xff] }
 0x399   : > { %v11582_v49 = vadd.f32 %v3104_v39, %v15835_v6  ;;  %v11585_v17 = vadd.f32 %v3105_v53, %v15836_v13  ;;  %4699 = vmatmul.mubr.bf16.gmra.mxu1 %v4030_v57  ;;  %v11590_v12 = vadd.f32 %v3110_v32, %v15837_v10  ;;  %v3779_v39 = vmax.f32 %v3523_v11, 0.0  ;;  %v15839_v53 = vld [vmem:[#allocation218_spill] sm:$0xff] }
 0x39a   : > { %v2770_v3 = vpop.permute.xlu1 %2769  ;;  %4499 = vmatmul.mubr.bf16.gmra.mxu0 %v11515_v60  ;;  %v2782_v59 = vpop.permute.xlu0 %2781  ;;  %4708 = vmatprep.mubr.bf16.mxu1 %v4033_v33  ;;  %v11596_v23 = vadd.f32 %v3111_v31, %v15839_v53  ;;  %v3522_v32 = vadd.f32 %v10082_v2, %v15840_v18  ;;  %v3861_v7 = vmax.f32 %v3605_v55, 0.0  ;;  %v3524_v60 = vadd.f32 %v10082_v2, %v11218_v56  ;;  %v15842_v11 = vld [vmem:[#allocation58_spill] sm:$0xff] }
 0x39b   : > { %15838 = vst [vmem:[#allocation129_spill] sm:$0xff] %v11590_v12  ;;  %v3108_v9 = vmul.f32 %v10066_v34, %v2770_v3  ;;  %v3109_v50 = vmul.f32 %v10068_v20, %v2770_v3  ;;  %v3114_v57 = vmul.f32 %v10066_v34, %v2782_v59  ;;  %4508 = vmatprep.mubr.bf16.mxu0 %v3993_v14  ;;  %v15841_v3 = vld [vmem:[#allocation54_spill] sm:$0xff] }
 0x39c   : > { %v3115_v21 = vmul.f32 %v10068_v20, %v2782_v59  ;;  %v3995_v37 = vpack.c.bf16 %v3781_v1, %v3779_v39  ;;  %v15843_v6 = vld [vmem:[#allocation114_spill] sm:$0xff]  ;;  %v3602_v25 = vadd.f32 %v10082_v2, %v11405_v24  ;;  %v3780_v59 = vmax.f32 %v3524_v60, 0.0  ;;  %v15846_v24 = vld [vmem:[#allocation219_spill] sm:$0xff]  ;;  %v15847_v60 = vld [vmem:[#allocation217_spill] sm:$0xff] }
 0x39d   : > { %v11605_v33 = vadd.f32 %v3108_v9, %v15841_v3  ;;  %v11608_v31 = vadd.f32 %v3109_v50, %v15842_v11  ;;  %v11611_v13 = vadd.f32 %v3114_v57, %v15843_v6  ;;  %v3604_v56 = vadd.f32 %v10082_v2, %v11439_v29  ;;  %v15845_v57 = vld [vmem:[#allocation63_spill] sm:$0xff]  ;;  %v15848_v29 = vld [vmem:[#allocation220_spill] sm:$0xff] }
 0x39e   : > { %v2778_v14 = vpop.permute.xlu1 %2777  ;;  %v2790_v55 = vpop.permute.xlu0 %2789  ;;  %v3778_v39 = vmax.f32 %v3522_v32, 0.0  ;;  %v3527_v53 = vadd.f32 %v10092_v52, %v11205_v0  ;;  %v11624_v18 = vadd.f32 %v3115_v21, %v15845_v57  ;;  %v4035_v11 = vpack.c.bf16 %v3861_v7, %v3859_v44 }
 0x39f   : > { %15844 = vst [vmem:[#allocation280_spill] sm:$0xff] %v11611_v13  ;;  %v3112_v10 = vmul.f32 %v10066_v34, %v2778_v14  ;;  %v3113_v1 = vmul.f32 %v10068_v20, %v2778_v14  ;;  %v3118_v9 = vmul.f32 %v10066_v34, %v2790_v55  ;;  %v3119_v50 = vmul.f32 %v10068_v20, %v2790_v55  ;;  %v15849_v55 = vld [vmem:[#allocation163_spill] sm:$0xff] }
 0x3a0   : > { %v3860_v6 = vmax.f32 %v3604_v56, 0.0  ;;  %v3994_v32 = vpack.c.bf16 %v3780_v59, %v3778_v39  ;;  %v3529_v0 = vadd.f32 %v10092_v52, %v11255_v28  ;;  %v3607_v28 = vadd.f32 %v10092_v52, %v11435_v36 }
 0x3a1   : > { %v11627_v3 = vadd.f32 %v3112_v10, %v15846_v24  ;;  %v11630_v14 = vadd.f32 %v3113_v1, %v15847_v60  ;;  %v11633_v13 = vadd.f32 %v3118_v9, %v15848_v29  ;;  %4709 = vmatmul.mubr.bf16.gmra.mxu1 %v4032_v38  ;;  %v11638_v21 = vadd.f32 %v3119_v50, %v15849_v55 }
 0x3a2   : > { %v2786_v12 = vpop.permute.xlu1 %2785  ;;  %4509 = vmatmul.mubr.bf16.gmra.mxu0 %v3992_v48  ;;  %v2798_v7 = vpop.permute.xlu0 %2797  ;;  %4718 = vmatprep.mubr.bf16.mxu1 %v4035_v11  ;;  %v3858_v1 = vmax.f32 %v3602_v25, 0.0  ;;  %v3783_v38 = vmax.f32 %v3527_v53, 0.0  ;;  %v3785_v50 = vmax.f32 %v3529_v0, 0.0  ;;  %v3609_v39 = vadd.f32 %v10092_v52, %v11476_v41  ;;  %v15851_v25 = vld [vmem:[#allocation223_spill] sm:$0xff]  ;;  %v15854_v0 = vld [vmem:[#allocation224_spill] sm:$0xff] }
 0x3a3   : > { %v3116_v10 = vmul.f32 %v10066_v34, %v2786_v12  ;;  %v3117_v44 = vmul.f32 %v10068_v20, %v2786_v12  ;;  %v3122_v56 = vmul.f32 %v10066_v34, %v2798_v7  ;;  %v3123_v9 = vmul.f32 %v10068_v20, %v2798_v7  ;;  %4518 = vmatprep.mubr.bf16.mxu0 %v3995_v37  ;;  %v15850_v12 = vld [vmem:[#allocation222_spill] sm:$0xff]  ;;  %v15852_v11 = vld [vmem:[#allocation227_spill] sm:$0xff] }
 0x3a4   : > { %v4034_v59 = vpack.c.bf16 %v3860_v6, %v3858_v1  ;;  %v3526_v48 = vadd.f32 %v10082_v2, %v11199_v8  ;;  %v3863_v60 = vmax.f32 %v3607_v28, 0.0  ;;  %v3865_v41 = vmax.f32 %v3609_v39, 0.0  ;;  %v15856_v39 = vld [vmem:[#allocation226_spill] sm:$0xff] }
 0x3a5   : > { %v11651_v57 = vadd.f32 %v3116_v10, %v15850_v12  ;;  %v11654_v24 = vadd.f32 %v3117_v44, %v15851_v25  ;;  %v11657_v37 = vadd.f32 %v3122_v56, %v15852_v11  ;;  %v3528_v8 = vadd.f32 %v10082_v2, %v11252_v27  ;;  %v15855_v25 = vld [vmem:[#allocation221_spill] sm:$0xff] }
 0x3a6   : > { %v2794_v53 = vpop.permute.xlu1 %2793  ;;  %v2806_v29 = vpop.permute.xlu0 %2805  ;;  %v11664_v55 = vadd.f32 %v3123_v9, %v15854_v0  ;;  %v3606_v7 = vadd.f32 %v10082_v2, %v11428_v16  ;;  %v3997_v1 = vpack.c.bf16 %v3785_v50, %v3783_v38  ;;  %v4037_v56 = vpack.c.bf16 %v3865_v41, %v3863_v60  ;;  %v15857_v27 = vld [vmem:[#allocation229_spill] sm:$0xff]  ;;  %v15859_v41 = vld [vmem:[#allocation276_spill] sm:$0xff] }
 0x3a7   : > { %15853 = vst [vmem:[#allocation278_spill] sm:$0xff] %v11657_v37  ;;  %v3120_v36 = vmul.f32 %v10066_v34, %v2794_v53  ;;  %v3121_v6 = vmul.f32 %v10068_v20, %v2794_v53  ;;  %v3126_v10 = vmul.f32 %v10066_v34, %v2806_v29  ;;  %v3127_v44 = vmul.f32 %v10068_v20, %v2806_v29  ;;  %v15858_v37 = vld [vmem:[#allocation118_spill] sm:$0xff] }
 0x3a8   : > { %v3782_v28 = vmax.f32 %v3526_v48, 0.0  ;;  %v3784_v12 = vmax.f32 %v3528_v8, 0.0  ;;  %v3608_v29 = vadd.f32 %v10082_v2, %v11473_v26  ;;  %v3862_v60 = vmax.f32 %v3606_v7, 0.0  ;;  %v15860_v8 = vld [vmem:[#allocation225_spill] sm:$0xff]  ;;  %v15861_v7 = vld [vmem:[#allocation66_spill] sm:$0xff] }
 0x3a9   : > { %v11671_v11 = vadd.f32 %v3120_v36, %v15855_v25  ;;  %v11674_v53 = vadd.f32 %v3121_v6, %v15856_v39  ;;  %v11677_v9 = vadd.f32 %v3126_v10, %v15857_v27  ;;  %4719 = vmatmul.mubr.bf16.gmra.mxu1 %v4034_v59  ;;  %v11682_v16 = vadd.f32 %v3127_v44, %v15858_v37  ;;  %v15862_v25 = vld [vmem:[#allocation170_spill] sm:$0xff] }
 0x3aa   : > { %v2802_v0 = vpop.permute.xlu1 %2801  ;;  %4519 = vmatmul.mubr.bf16.gmra.mxu0 %v3994_v32  ;;  %v2814_v48 = vpop.permute.xlu0 %2813  ;;  %4728 = vmatprep.mubr.bf16.mxu1 %v4037_v56  ;;  %v3864_v59 = vmax.f32 %v3608_v29, 0.0  ;;  %v3531_v26 = vadd.f32 %v10092_v52, %v15859_v41  ;;  %v3996_v10 = vpack.c.bf16 %v3784_v12, %v3782_v28  ;;  %v3533_v44 = vadd.f32 %v10092_v52, %v11275_v54 }
 0x3ab   : > { %v3124_v38 = vmul.f32 %v10066_v34, %v2802_v0  ;;  %v3125_v50 = vmul.f32 %v10068_v20, %v2802_v0  ;;  %v3130_v36 = vmul.f32 %v10066_v34, %v2814_v48  ;;  %v3131_v6 = vmul.f32 %v10068_v20, %v2814_v48  ;;  %4528 = vmatprep.mubr.bf16.mxu0 %v3997_v1  ;;  %v15864_v1 = vld [vmem:[#allocation153_spill] sm:$0xff] }
 0x3ac   : > { %v3611_v32 = vadd.f32 %v10092_v52, %v11464_v46  ;;  %v4036_v29 = vpack.c.bf16 %v3864_v59, %v3862_v60  ;;  %v3789_v54 = vmax.f32 %v3533_v44, 0.0  ;;  %v3613_v46 = vadd.f32 %v10092_v52, %v11494_v4  ;;  %v15870_v44 = vld [vmem:[#allocation233_spill] sm:$0xff]  ;;  %v15872_v4 = vld [vmem:[#allocation230_spill] sm:$0xff] }
 0x3ad   : > { %v11691_v37 = vadd.f32 %v3124_v38, %v15860_v8  ;;  %v11698_v56 = vadd.f32 %v3125_v50, %v15861_v7  ;;  %v11701_v39 = vadd.f32 %v3130_v36, %v15862_v25  ;;  %v11704_v27 = vadd.f32 %v3131_v6, %v15864_v1  ;;  %v15866_v8 = vld [vmem:[#allocation142_spill] sm:$0xff]  ;;  %v15868_v7 = vld [vmem:[#allocation119_spill] sm:$0xff] }
 0x3ae   : > { %v2810_v0 = vpop.permute.xlu1 %2809  ;;  %v2822_v12 = vpop.permute.xlu0 %2821  ;;  %v3787_v36 = vmax.f32 %v3531_v26, 0.0  ;;  %v3867_v41 = vmax.f32 %v3611_v32, 0.0  ;;  %v3869_v59 = vmax.f32 %v3613_v46, 0.0  ;;  %v15869_v25 = vld [vmem:[#allocation271_spill] sm:$0xff]  ;;  %v3532_v32 = vadd.f32 %v10082_v2, %v11268_v40  ;;  %v15874_v40 = vld [vmem:[#allocation228_spill] sm:$0xff] }
 0x3af   : > { %15863 = vst [vmem:[#allocation279_spill] sm:$0xff] %v11701_v39  ;;  %15865 = vst [vmem:[#allocation131_spill] sm:$0xff] %v11704_v27  ;;  %v3128_v38 = vmul.f32 %v10066_v34, %v2810_v0  ;;  %v3129_v28 = vmul.f32 %v10068_v20, %v2810_v0  ;;  %v3134_v50 = vmul.f32 %v10066_v34, %v2822_v12 }
 0x3b0   : > { %v3135_v48 = vmul.f32 %v10068_v20, %v2822_v12  ;;  %v3530_v1 = vadd.f32 %v10082_v2, %v15869_v25  ;;  %v3999_v26 = vpack.c.bf16 %v3789_v54, %v3787_v36  ;;  %v4039_v46 = vpack.c.bf16 %v3869_v59, %v3867_v41  ;;  %v15878_v41 = vld [vmem:[#allocation176_spill] sm:$0xff]  ;;  %v15879_v25 = vld [vmem:[#allocation174_spill] sm:$0xff] }
 0x3b1   : > { %v11713_v6 = vadd.f32 %v3128_v38, %v15866_v8  ;;  %v11716_v60 = vadd.f32 %v3129_v28, %v15868_v7  ;;  %v11721_v0 = vadd.f32 %v3134_v50, %v15870_v44  ;;  %4729 = vmatmul.mubr.bf16.gmra.mxu1 %v4036_v29  ;;  %v3610_v50 = vadd.f32 %v10082_v2, %v11449_v61  ;;  %v15876_v7 = vld [vmem:[#allocation232_spill] sm:$0xff] }
 0x3b2   : > { %v11724_v39 = vadd.f32 %v3135_v48, %v15872_v4  ;;  %v2818_v27 = vpop.permute.xlu1 %2817  ;;  %4529 = vmatmul.mubr.bf16.gmra.mxu0 %v3996_v10  ;;  %v2574_v12 = vpop.permute.xlu0 %2573  ;;  %v3788_v29 = vmax.f32 %v3532_v32, 0.0  ;;  %v3612_v54 = vadd.f32 %v10082_v2, %v11487_v51  ;;  %4738 = vmatprep.mubr.bf16.mxu1 %v4039_v46  ;;  %v3786_v10 = vmax.f32 %v3530_v1, 0.0 }
 0x3b3   : > { %15867 = vst [vmem:[#allocation282_spill] sm:$0xff] %v11713_v6  ;;  %15871 = vst [vmem:[#allocation130_spill] sm:$0xff] %v11721_v0  ;;  %v3132_v38 = vmul.f32 %v10066_v34, %v2818_v27  ;;  %v3133_v28 = vmul.f32 %v10068_v20, %v2818_v27  ;;  %v3010_v8 = vmul.f32 %v10066_v34, %v2574_v12  ;;  %4538 = vmatprep.mubr.bf16.mxu0 %v3999_v26 }
 0x3b4   : > { %15873 = vst [vmem:[#allocation281_spill] sm:$0xff] %v11724_v39  ;;  %v3011_v48 = vmul.f32 %v10068_v20, %v2574_v12  ;;  %v3615_v61 = vadd.f32 %v10092_v52, %v11484_v62  ;;  %v3866_v26 = vmax.f32 %v3610_v50, 0.0  ;;  %v3868_v32 = vmax.f32 %v3612_v54, 0.0 }
 0x3b5   : > { %v11737_v36 = vadd.f32 %v3132_v38, %v15874_v40  ;;  %v11740_v27 = vadd.f32 %v3133_v28, %v15876_v7  ;;  %v3266_v59 = vadd.f32 %v3010_v8, %v15878_v41  ;;  %v3998_v40 = vpack.c.bf16 %v3788_v29, %v3786_v10  ;;  %v15882_v29 = vld [vmem:[#allocation236_spill] sm:$0xff] }
 0x3b6   : > { %v3267_v44 = vadd.f32 %v3011_v48, %v15879_v25  ;;  %v2826_v4 = vpop.permute.xlu1 %2825  ;;  %v2830_v12 = vpop.permute.xlu0 %2829  ;;  %v3617_v28 = vadd.f32 %v10092_v52, %v11524_v5  ;;  %v4038_v46 = vpack.c.bf16 %v3868_v32, %v3866_v26  ;;  %v3614_v8 = vadd.f32 %v10082_v2, %v11481_v22  ;;  %v15880_v48 = vld [vmem:[#allocation231_spill] sm:$0xff]  ;;  %v15884_v5 = vld [vmem:[#allocation237_spill] sm:$0xff] }
 0x3b7   : > { %15875 = vst [vmem:[#allocation133_spill] sm:$0xff] %v11737_v36  ;;  %15877 = vst [vmem:[#allocation284_spill] sm:$0xff] %v11740_v27  ;;  %v3136_v51 = vmul.f32 %v10066_v34, %v2826_v4  ;;  %v3137_v38 = vmul.f32 %v10068_v20, %v2826_v4  ;;  %v3138_v1 = vmul.f32 %v10066_v34, %v2830_v12  ;;  %v3871_v54 = vmax.f32 %v3615_v61, 0.0  ;;  %v15886_v4 = vld [vmem:[#allocation234_spill] sm:$0xff] }
 0x3b8   : > { %v3139_v62 = vmul.f32 %v10068_v20, %v2830_v12  ;;  %v3873_v7 = vmax.f32 %v3617_v28, 0.0  ;;  %v3616_v41 = vadd.f32 %v10082_v2, %v11513_v35  ;;  %v3619_v22 = vadd.f32 %v10092_v52, %v11502_v42 }
 0x3b9   : > { %v11755_v50 = vadd.f32 %v3136_v51, %v15880_v48  ;;  %v11760_v10 = vadd.f32 %v3137_v38, %v15882_v29  ;;  %v11763_v25 = vadd.f32 %v3138_v1, %v15884_v5  ;;  %4739 = vmatmul.mubr.bf16.gmra.mxu1 %v4038_v46  ;;  %v3870_v48 = vmax.f32 %v3614_v8, 0.0  ;;  %v15888_v46 = vld [vmem:[#allocation177_spill] sm:$0xff]  ;;  %v15889_v5 = vld [vmem:[#allocation84_spill] sm:$0xff] }
 0x3ba   : > { %v11766_v12 = vadd.f32 %v3139_v62, %v15886_v4  ;;  %v2578_v26 = vpop.permute.xlu1 %2577  ;;  %4539 = vmatmul.mubr.bf16.gmra.mxu0 %v3998_v40  ;;  %v2582_v35 = vpop.permute.xlu0 %2581  ;;  %v4041_v51 = vpack.c.bf16 %v3873_v7, %v3871_v54  ;;  %v3872_v38 = vmax.f32 %v3616_v41, 0.0  ;;  %v3621_v62 = vadd.f32 %v10092_v52, %v11540_v45  ;;  %v15890_v40 = vld [vmem:[#allocation175_spill] sm:$0xff]  ;;  %v15891_v8 = vld [vmem:[#allocation181_spill] sm:$0xff] }
 0x3bb   : > { %15881 = vst [vmem:[#allocation132_spill] sm:$0xff] %v11755_v50  ;;  %15883 = vst [vmem:[#allocation283_spill] sm:$0xff] %v11760_v10  ;;  %v3012_v61 = vmul.f32 %v10066_v34, %v2578_v26  ;;  %v3013_v32 = vmul.f32 %v10068_v20, %v2578_v26  ;;  %v3014_v28 = vmul.f32 %v10066_v34, %v2582_v35  ;;  %v3875_v4 = vmax.f32 %v3619_v22, 0.0 }
 0x3bc   : > { %15885 = vst [vmem:[#allocation135_spill] sm:$0xff] %v11763_v25  ;;  %15887 = vst [vmem:[#allocation286_spill] sm:$0xff] %v11766_v12  ;;  %v3015_v1 = vmul.f32 %v10068_v20, %v2582_v35  ;;  %4748 = vmatprep.mubr.bf16.mxu1 %v4041_v51  ;;  %v3535_v26 = vadd.f32 %v10092_v52, %v3267_v44  ;;  %v4040_v7 = vpack.c.bf16 %v3872_v38, %v3870_v48  ;;  %v15892_v38 = vld [vmem:[#allocation235_spill] sm:$0xff]  ;;  %v15894_v48 = vld [vmem:[#allocation240_spill] sm:$0xff] }
 0x3bd   : > { %v3268_v29 = vadd.f32 %v3012_v61, %v15888_v46  ;;  %v3269_v42 = vadd.f32 %v3013_v32, %v15889_v5  ;;  %v11780_v25 = vadd.f32 %v3014_v28, %v15890_v40  ;;  %v3877_v41 = vmax.f32 %v3621_v62, 0.0 }
 0x3be   : > { %v2834_v54 = vpop.permute.xlu1 %2833  ;;  %v3534_v35 = vadd.f32 %v10082_v2, %v3266_v59  ;;  %v3271_v12 = vadd.f32 %v3015_v1, %v15891_v8  ;;  %v2838_v46 = vpop.permute.xlu0 %2837  ;;  %v3791_v51 = vmax.f32 %v3535_v26, 0.0  ;;  %v4114_v59 = vld [vmem:[%s14318_s4] sm:$0x3]  ;;  %v15898_v8 = vld [vmem:[#allocation238_spill] sm:$0xff] }
 0x3bf   : > { %v3140_v45 = vmul.f32 %v10066_v34, %v2834_v54  ;;  %v3141_v61 = vmul.f32 %v10068_v20, %v2834_v54  ;;  %v3537_v32 = vadd.f32 %v10092_v52, %v3269_v42  ;;  %v3142_v22 = vmul.f32 %v10066_v34, %v2838_v46  ;;  %v15896_v42 = vld [vmem:[#allocation241_spill] sm:$0xff] }
 0x3c0   : > { %v3143_v44 = vmul.f32 %v10068_v20, %v2838_v46  ;;  %v3536_v28 = vadd.f32 %v10082_v2, %v3268_v29  ;;  %v4043_v5 = vpack.c.bf16 %v3877_v41, %v3875_v4  ;;  %v3790_v29 = vmax.f32 %v3534_v35, 0.0 }
 0x3c1   : > { %v11794_v1 = vadd.f32 %v3140_v45, %v15892_v38  ;;  %v11797_v62 = vadd.f32 %v3141_v61, %v15894_v48  ;;  %v3793_v40 = vmax.f32 %v3537_v32, 0.0  ;;  %v11800_v54 = vadd.f32 %v3142_v22, %v15896_v42  ;;  %4749 = vmatmul.mubr.bf16.gmra.mxu1 %v4040_v7  ;;  %v5215_v45 = vld [vmem:[%s14319_s5] sm:$0x3]  ;;  %v15902_v42 = vld [vmem:[#allocation89_spill] sm:$0xff] }
 0x3c2   : > { %v11803_v46 = vadd.f32 %v3143_v44, %v15898_v8  ;;  %v2586_v26 = vpop.permute.xlu1 %2585  ;;  %v3792_v50 = vmax.f32 %v3536_v28, 0.0  ;;  %v2590_v4 = vpop.permute.xlu0 %2589  ;;  %4758 = vmatprep.mubr.bf16.mxu1 %v4043_v5  ;;  %v15900_v32 = vld [vmem:[#allocation59_spill] sm:$0xff]  ;;  %v15901_v28 = vld [vmem:[#allocation277_spill] sm:$0xff]  ;;  %v3623_v5 = vadd.f32 %v10092_v52, %v11534_v15 }
 0x3c3   : > { %15893 = vst [vmem:[#allocation134_spill] sm:$0xff] %v11794_v1  ;;  %15895 = vst [vmem:[#allocation285_spill] sm:$0xff] %v11797_v62  ;;  %v3016_v38 = vmul.f32 %v10066_v34, %v2586_v26  ;;  %v3017_v61 = vmul.f32 %v10068_v20, %v2586_v26  ;;  %v4001_v41 = vpack.c.bf16 %v3793_v40, %v3791_v51  ;;  %v15903_v40 = vld [vmem:[#allocation90_spill] sm:$0xff] }
 0x3c4   : > { %15897 = vst [vmem:[#allocation137_spill] sm:$0xff] %v11800_v54  ;;  %15899 = vst [vmem:[#allocation288_spill] sm:$0xff] %v11803_v46  ;;  %v11811_v22 = vrot.slane %v4114_v59, %v15900_v32  ;;  %v3018_v44 = vmul.f32 %v10066_v34, %v2590_v4  ;;  %v3019_v7 = vmul.f32 %v10068_v20, %v2590_v4  ;;  %v15904_v46 = vld [vmem:[#allocation91_spill] sm:$0xff]  ;;  %v15910_v62 = vld [vmem:[#allocation194_spill] sm:$0xff] }
 0x3c5   : > { %v4000_v35 = vpack.c.bf16 %v3792_v50, %v3790_v29  ;;  %v3618_v48 = vadd.f32 %v10082_v2, %v15901_v28  ;;  %v3272_v8 = vadd.f32 %v3016_v38, %v15902_v42  ;;  %4548 = vmatprep.mubr.bf16.mxu0 %v4001_v41  ;;  %v11819_v54 = vrot.slane %v5215_v45, %v15900_v32  ;;  %v15905_v50 = vld [vmem:[#allocation184_spill] sm:$0xff] }
 0x3c6   : > { %v3620_v51 = vadd.f32 %v10082_v2, %v11537_v58  ;;  %v3273_v26 = vadd.f32 %v3017_v61, %v15903_v40  ;;  %v11827_v4 = vadd.f32 %v3018_v44, %v15904_v46  ;;  %v11830_v29 = vadd.f32 %v3019_v7, %v15905_v50  ;;  %v2842_v28 = vpop.permute.xlu1 %2841  ;;  %v2846_v32 = vpop.permute.xlu0 %2845  ;;  %v15906_v7 = vld [vmem:[#allocation239_spill] sm:$0xff] }
 0x3c7   : > { %4549 = vmatmul.mubr.bf16.gmra.mxu0 %v4000_v35  ;;  %v3625_v38 = vadd.f32 %v10092_v52, %v11563_v19  ;;  %v3144_v41 = vmul.f32 %v10066_v34, %v2842_v28  ;;  %v3145_v58 = vmul.f32 %v10068_v20, %v2842_v28  ;;  %v3874_v42 = vmax.f32 %v3618_v48, 0.0  ;;  %v15908_v35 = vld [vmem:[#allocation244_spill] sm:$0xff]  ;;  %v15911_v28 = vld [vmem:[#allocation245_spill] sm:$0xff] }
 0x3c8   : > { %v3876_v15 = vmax.f32 %v3620_v51, 0.0  ;;  %v3146_v61 = vmul.f32 %v10066_v34, %v2846_v32  ;;  %v3147_v46 = vmul.f32 %v10068_v20, %v2846_v32  ;;  %v3879_v44 = vmax.f32 %v3623_v5, 0.0 }
 0x3c9   : > { %v3881_v40 = vmax.f32 %v3625_v38, 0.0  ;;  %v11839_v50 = vadd.f32 %v3144_v41, %v15906_v7  ;;  %v11842_v1 = vadd.f32 %v3145_v58, %v15908_v35  ;;  %v11845_v0 = vrot.slane %v4114_v59, %v15910_v62  ;;  %v15913_v38 = vld [vmem:[#allocation242_spill] sm:$0xff] }
 0x3ca   : > { %v4042_v19 = vpack.c.bf16 %v3876_v15, %v3874_v42  ;;  %v11848_v10 = vadd.f32 %v3146_v61, %v15911_v28  ;;  %v2594_v48 = vpop.permute.xlu1 %2593  ;;  %v11851_v39 = vrot.slane %v5215_v45, %v15910_v62  ;;  %v3539_v5 = vadd.f32 %v10092_v52, %v3271_v12  ;;  %v4320_v42 = vpop.f32.mrf.mxu0  ;;  %v15915_v45 = vld [vmem:[#allocation88_spill] sm:$0xff] }
 0x3cb   : > { %15907 = vst [vmem:[#allocation136_spill] sm:$0xff] %v11839_v50  ;;  %15909 = vst [vmem:[#allocation287_spill] sm:$0xff] %v11842_v1  ;;  %v4045_v51 = vpack.c.bf16 %v3881_v40, %v3879_v44  ;;  %v11855_v41 = vadd.f32 %v3147_v46, %v15913_v38  ;;  %v3020_v58 = vmul.f32 %v10066_v34, %v2594_v48  ;;  %v2598_v59 = vpop.permute.xlu0 %2597  ;;  %v15916_v28 = vld [vmem:[#allocation188_spill] sm:$0xff]  ;;  %v15917_v38 = vld [vmem:[#allocation93_spill] sm:$0xff] }
 0x3cc   : > { %15912 = vst [vmem:[#allocation139_spill] sm:$0xff] %v11848_v10  ;;  %v3021_v32 = vmul.f32 %v10068_v20, %v2594_v48  ;;  %4759 = vmatmul.mubr.bf16.gmra.mxu1 %v4042_v19  ;;  %v3541_v15 = vadd.f32 %v10092_v52, %v3273_v26  ;;  %v4321_v61 = vadd.f32 %v4320_v42, %v11811_v22  ;;  %v4322_v40 = vpop.f32.mrf.mxu0  ;;  %v3795_v7 = vmax.f32 %v3539_v5, 0.0  ;;  %v15918_v10 = vld [vmem:[#allocation179_spill] sm:$0xff]  ;;  %v15925_v1 = vld [vmem:[#allocation246_spill] sm:$0xff] }
 0x3cd   : > { %15914 = vst [vmem:[#allocation290_spill] sm:$0xff] %v11855_v41  ;;  %v3022_v44 = vmul.f32 %v10066_v34, %v2598_v59  ;;  %v3023_v62 = vmul.f32 %v10068_v20, %v2598_v59  ;;  %4768 = vmatprep.mubr.bf16.mxu1 %v4045_v51  ;;  %v3538_v12 = vadd.f32 %v10082_v2, %v11780_v25 }
 0x3ce   : > { %v11866_v46 = vadd.f32 %v3020_v58, %v15915_v45  ;;  %v3797_v35 = vmax.f32 %v3541_v15, 0.0  ;;  %v3540_v19 = vadd.f32 %v10082_v2, %v3272_v8  ;;  %v11870_v26 = vadd.f32 %v3021_v32, %v15916_v28  ;;  %v2850_v59 = vpop.permute.xlu1 %2849  ;;  %v4324_v15 = vpop.f32.mrf.mxu0 }
 0x3cf   : > { %v4959_v48 = vmax.f32 %v4321_v61, 0.0  ;;  %v11873_v42 = vadd.f32 %v3022_v44, %v15917_v38  ;;  %v4323_v51 = vadd.f32 %v4322_v40, %v11845_v0  ;;  %v11877_v25 = vadd.f32 %v3023_v62, %v15918_v10  ;;  %v2854_v8 = vpop.permute.xlu0 %2853  ;;  %v15919_v40 = vld [vmem:[#allocation243_spill] sm:$0xff] }
 0x3d0   : > { %v4003_v58 = vpack.c.bf16 %v3797_v35, %v3795_v7  ;;  %v3148_v45 = vmul.f32 %v10066_v34, %v2850_v59  ;;  %v3149_v5 = vmul.f32 %v10068_v20, %v2850_v59  ;;  %v4325_v32 = vadd.f32 %v4324_v15, %v11811_v22  ;;  %v4326_v7 = vpop.f32.mrf.mxu0  ;;  %v15921_v35 = vld [vmem:[#allocation248_spill] sm:$0xff] }
 0x3d1   : > { %v4960_v41 = vmax.f32 %v4323_v51, 0.0  ;;  %v3794_v61 = vmax.f32 %v3538_v12, 0.0  ;;  %v3796_v28 = vmax.f32 %v3540_v19, 0.0  ;;  %v5227_v44 = vmul.f32 %v11819_v54, %v4959_v48  ;;  %v15923_v48 = vld [vmem:[#allocation249_spill] sm:$0xff] }
 0x3d2   : > { %4558 = vmatprep.mubr.bf16.mxu0 %v4003_v58  ;;  %v11884_v38 = vadd.f32 %v3148_v45, %v15919_v40  ;;  %v3150_v10 = vmul.f32 %v10066_v34, %v2854_v8  ;;  %v3151_v62 = vmul.f32 %v10068_v20, %v2854_v8  ;;  %v11889_v59 = vadd.f32 %v3149_v5, %v15921_v35  ;;  %v2602_v12 = vpop.permute.xlu1 %2601 }
 0x3d3   : > { %v4961_v50 = vmax.f32 %v4325_v32, 0.0  ;;  %v4002_v51 = vpack.c.bf16 %v3796_v28, %v3794_v61  ;;  %v4327_v15 = vadd.f32 %v4326_v7, %v11845_v0  ;;  %v5228_v19 = vmul.f32 %v11851_v39, %v4960_v41  ;;  %v2606_v8 = vpop.permute.xlu0 %2605 }
 0x3d4   : > { %15920 = vst [vmem:[#allocation138_spill] sm:$0xff] %v11884_v38  ;;  %15922 = vst [vmem:[#allocation289_spill] sm:$0xff] %v11889_v59  ;;  %v11894_v58 = vadd.f32 %v3150_v10, %v15923_v48  ;;  %v3024_v45 = vmul.f32 %v10066_v34, %v2602_v12  ;;  %v3025_v40 = vmul.f32 %v10068_v20, %v2602_v12  ;;  %v4330_v38 = vpop.f32.mrf.mxu0  ;;  %v15927_v10 = vld [vmem:[#allocation92_spill] sm:$0xff] }
 0x3d5   : > { %4559 = vmatmul.mubr.bf16.gmra.mxu0 %v4002_v51  ;;  %v11899_v5 = vadd.f32 %v3151_v62, %v15925_v1  ;;  %v4962_v32 = vmax.f32 %v4327_v15, 0.0  ;;  %v4331_v61 = vadd.f32 %v4330_v38, %v11811_v22  ;;  %v3622_v28 = vadd.f32 %v10082_v2, %v11531_v63  ;;  %v15928_v62 = vld [vmem:[#allocation178_spill] sm:$0xff] }
 0x3d6   : > { %15924 = vst [vmem:[#allocation4_spill] sm:$0xff] %v11894_v58  ;;  %v5229_v41 = vmul.f32 %v11819_v54, %v4961_v50  ;;  %v11906_v7 = vadd.f32 %v3024_v45, %v15927_v10  ;;  %v3624_v35 = vadd.f32 %v10082_v2, %v11560_v30  ;;  %v3026_v12 = vmul.f32 %v10066_v34, %v2606_v8  ;;  %v4332_v51 = vpop.f32.mrf.mxu0  ;;  %v2858_v58 = vpop.permute.xlu1 %2857 }
 0x3d7   : > { %15926 = vst [vmem:[#allocation292_spill] sm:$0xff] %v11899_v5  ;;  %v5230_v1 = vmul.f32 %v11851_v39, %v4962_v32  ;;  %v11913_v15 = vadd.f32 %v3025_v40, %v15928_v62  ;;  %v4963_v38 = vmax.f32 %v4331_v61, 0.0  ;;  %v3878_v48 = vmax.f32 %v3622_v28, 0.0  ;;  %v15929_v5 = vld [vmem:[#allocation275_spill] sm:$0xff]  ;;  %v15930_v32 = vld [vmem:[#allocation97_spill] sm:$0xff] }
 0x3d8   : > { %v3880_v63 = vmax.f32 %v3624_v35, 0.0  ;;  %v3027_v50 = vmul.f32 %v10068_v20, %v2606_v8  ;;  %v3627_v45 = vadd.f32 %v10092_v52, %v15929_v5  ;;  %v3629_v30 = vadd.f32 %v10092_v52, %v11585_v17  ;;  %v4334_v10 = vpop.f32.mrf.mxu0  ;;  %v2862_v5 = vpop.permute.xlu0 %2861 }
 0x3d9   : > { %v11921_v59 = vmul.f32 %v11819_v54, %v4963_v38  ;;  %v11924_v36 = vadd.f32 %v3026_v12, %v15930_v32  ;;  %v4333_v40 = vadd.f32 %v4332_v51, %v11845_v0  ;;  %v5483_v61 = vadd.f32 %v5228_v19, %v5227_v44  ;;  %v15931_v51 = vld [vmem:[#allocation182_spill] sm:$0xff] }
 0x3da   : > { %v4044_v28 = vpack.c.bf16 %v3880_v63, %v3878_v48  ;;  %v3883_v35 = vmax.f32 %v3627_v45, 0.0  ;;  %v3885_v62 = vmax.f32 %v3629_v30, 0.0  ;;  %v3543_v8 = vadd.f32 %v10092_v52, %v11830_v29  ;;  %v4336_v27 = vpop.f32.mrf.mxu0 }
 0x3db   : > { %v4964_v6 = vmax.f32 %v4333_v40, 0.0  ;;  %5484 = vadd.xlane.f32.xlu0 %v5483_v61  ;;  %v3545_v17 = vadd.f32 %v10092_v52, %v11870_v26  ;;  %v3152_v38 = vmul.f32 %v10066_v34, %v2858_v58  ;;  %v3153_v12 = vmul.f32 %v10068_v20, %v2858_v58  ;;  %v15932_v26 = vld [vmem:[#allocation247_spill] sm:$0xff]  ;;  %v2610_v61 = vpop.permute.xlu1 %2609  ;;  %v15934_v58 = vld [vmem:[#allocation252_spill] sm:$0xff] }
 0x3dc   : > { %4769 = vmatmul.mubr.bf16.gmra.mxu1 %v4044_v28  ;;  %v11934_v44 = vadd.f32 %v3027_v50, %v15931_v51  ;;  %v4047_v19 = vpack.c.bf16 %v3885_v62, %v3883_v35  ;;  %v4335_v48 = vadd.f32 %v4334_v10, %v11811_v22  ;;  %v3542_v29 = vadd.f32 %v10082_v2, %v11827_v4  ;;  %v4340_v63 = vpop.f32.mrf.mxu0 }
 0x3dd   : > { %v5232_v45 = vmul.f32 %v11851_v39, %v4964_v6  ;;  %v3799_v30 = vmax.f32 %v3543_v8, 0.0  ;;  %v3801_v32 = vmax.f32 %v3545_v17, 0.0  ;;  %v11941_v40 = vadd.f32 %v3152_v38, %v15932_v26 }
 0x3de   : > { %4778 = vmatprep.mubr.bf16.mxu1 %v4047_v19  ;;  %v11944_v28 = vadd.f32 %v3153_v12, %v15934_v58  ;;  %v4965_v50 = vmax.f32 %v4335_v48, 0.0  ;;  %v3544_v10 = vadd.f32 %v10082_v2, %v11866_v46  ;;  %v3154_v35 = vmul.f32 %v10066_v34, %v2862_v5  ;;  %v4342_v4 = vpop.f32.mrf.mxu0  ;;  %v2614_v48 = vpop.permute.xlu0 %2613  ;;  %v15936_v46 = vld [vmem:[#allocation253_spill] sm:$0xff] }
 0x3df   : > { %15933 = vst [vmem:[#allocation5_spill] sm:$0xff] %v11941_v40  ;;  %v4005_v62 = vpack.c.bf16 %v3801_v32, %v3799_v30  ;;  %v3155_v6 = vmul.f32 %v10068_v20, %v2862_v5  ;;  %v4337_v8 = vadd.f32 %v4336_v27, %v11845_v0  ;;  %v5486_v17 = vadd.f32 %v5230_v1, %v5229_v41  ;;  %v15938_v1 = vld [vmem:[#allocation250_spill] sm:$0xff] }
 0x3e0   : > { %15935 = vst [vmem:[#allocation291_spill] sm:$0xff] %v11944_v28  ;;  %v11952_v38 = vmul.f32 %v11819_v54, %v4965_v50  ;;  %v3798_v51 = vmax.f32 %v3542_v29, 0.0  ;;  %v3800_v19 = vmax.f32 %v3544_v10, 0.0  ;;  %v3028_v12 = vmul.f32 %v10066_v34, %v2610_v61  ;;  %v4344_v26 = vpop.f32.mrf.mxu0  ;;  %v15940_v29 = vld [vmem:[#allocation274_spill] sm:$0xff] }
 0x3e1   : > { %4568 = vmatprep.mubr.bf16.mxu0 %v4005_v62  ;;  %v11956_v58 = vadd.f32 %v3154_v35, %v15936_v46  ;;  %v4966_v40 = vmax.f32 %v4337_v8, 0.0  ;;  %5487 = vadd.xlane.f32.xlu1 %v5486_v17  ;;  %v3029_v5 = vmul.f32 %v10068_v20, %v2610_v61  ;;  %v4341_v27 = vadd.f32 %v4340_v63, %v11811_v22  ;;  %v15941_v62 = vld [vmem:[#allocation191_spill] sm:$0xff] }
 0x3e2   : > { %v4004_v41 = vpack.c.bf16 %v3800_v19, %v3798_v51  ;;  %v11961_v30 = vadd.f32 %v3155_v6, %v15938_v1  ;;  %v3626_v32 = vadd.f32 %v10082_v2, %v15940_v29  ;;  %v3628_v50 = vadd.f32 %v10082_v2, %v11582_v49  ;;  %v4346_v10 = vpop.f32.mrf.mxu0  ;;  %v15942_v1 = vld [vmem:[#allocation96_spill] sm:$0xff]  ;;  %v15943_v29 = vld [vmem:[#allocation195_spill] sm:$0xff] }
 0x3e3   : > { %15937 = vst [vmem:[#allocation6_spill] sm:$0xff] %v11956_v58  ;;  %v5234_v35 = vmul.f32 %v11851_v39, %v4966_v40  ;;  %v11969_v8 = vadd.f32 %v3028_v12, %v15941_v62  ;;  %v4967_v17 = vmax.f32 %v4341_v27, 0.0  ;;  %v3030_v61 = vmul.f32 %v10066_v34, %v2614_v48  ;;  %v2866_v62 = vpop.permute.xlu1 %2865  ;;  %v15948_v58 = vld [vmem:[#allocation257_spill] sm:$0xff] }
 0x3e4   : > { %15939 = vst [vmem:[#allocation294_spill] sm:$0xff] %v11961_v30  ;;  %4569 = vmatmul.mubr.bf16.gmra.mxu0 %v4004_v41  ;;  %v3882_v63 = vmax.f32 %v3626_v32, 0.0  ;;  %v3884_v51 = vmax.f32 %v3628_v50, 0.0  ;;  %v3031_v6 = vmul.f32 %v10068_v20, %v2614_v48  ;;  %v3631_v19 = vadd.f32 %v10092_v52, %v11579_v47  ;;  %v4350_v46 = vpop.f32.mrf.mxu0  ;;  %v15949_v30 = vld [vmem:[#allocation254_spill] sm:$0xff] }
 0x3e5   : > { %v11976_v49 = vadd.f32 %v3029_v5, %v15942_v1  ;;  %v3286_v40 = vadd.f32 %v3030_v61, %v15943_v29  ;;  %v3633_v12 = vadd.f32 %v10092_v52, %v11608_v31  ;;  %v4343_v27 = vadd.f32 %v4342_v4, %v11845_v0  ;;  %v15944_v4 = vld [vmem:[#allocation198_spill] sm:$0xff] }
 0x3e6   : > { %v11983_v41 = vmul.f32 %v11819_v54, %v4967_v17  ;;  %v4046_v32 = vpack.c.bf16 %v3884_v51, %v3882_v63  ;;  %v3887_v48 = vmax.f32 %v3631_v19, 0.0  ;;  %v5489_v50 = vadd.f32 %v5232_v45, %v11921_v59  ;;  %v11986_v47 = vpop.f32.mrf.mxu0  ;;  %v2870_v45 = vpop.permute.xlu0 %2869 }
 0x3e7   : > { %v11989_v5 = vadd.f32 %v10082_v2, %v3286_v40  ;;  %v3889_v1 = vmax.f32 %v3633_v12, 0.0  ;;  %v4968_v61 = vmax.f32 %v4343_v27, 0.0  ;;  %v3547_v31 = vadd.f32 %v10092_v52, %v11877_v25 }
 0x3e8   : > { %4779 = vmatmul.mubr.bf16.gmra.mxu1 %v4046_v32  ;;  %v11994_v29 = vadd.f32 %v3031_v6, %v15944_v4  ;;  %5490 = vadd.xlane.f32.xlu0 %v5489_v50  ;;  %v3549_v17 = vadd.f32 %v10092_v52, %v11913_v15  ;;  %v3156_v59 = vmul.f32 %v10066_v34, %v2866_v62  ;;  %v11999_v63 = vpop.f32.mrf.mxu0  ;;  %v15945_v6 = vld [vmem:[#allocation251_spill] sm:$0xff] }
 0x3e9   : > { %v4049_v19 = vpack.c.bf16 %v3889_v1, %v3887_v48  ;;  %v5236_v40 = vmul.f32 %v11851_v39, %v4968_v61  ;;  %v3157_v25 = vmul.f32 %v10068_v20, %v2866_v62  ;;  %v3803_v12 = vmax.f32 %v3547_v31, 0.0  ;;  %v2618_v61 = vpop.permute.xlu1 %2617 }
 0x3ea   : > { %v3805_v27 = vmax.f32 %v3549_v17, 0.0  ;;  %v12005_v32 = vadd.f32 %v3156_v59, %v15945_v6  ;;  %v4345_v50 = vadd.f32 %v4344_v26, %v11811_v22  ;;  %v12008_v15 = vpop.f32.mrf.mxu0  ;;  %v3546_v4 = vadd.f32 %v10082_v2, %v11873_v42 }
 0x3eb   : > { %4788 = vmatprep.mubr.bf16.mxu1 %v4049_v19  ;;  %v3548_v48 = vadd.f32 %v10082_v2, %v11906_v7  ;;  %v3158_v1 = vmul.f32 %v10066_v34, %v2870_v45  ;;  %v3159_v62 = vmul.f32 %v10068_v20, %v2870_v45  ;;  %v4347_v59 = vadd.f32 %v4346_v10, %v11845_v0  ;;  %v15947_v19 = vld [vmem:[#allocation256_spill] sm:$0xff] }
 0x3ec   : > { %15946 = vst [vmem:[#allocation7_spill] sm:$0xff] %v12005_v32  ;;  %v4007_v31 = vpack.c.bf16 %v3805_v27, %v3803_v12  ;;  %v4969_v17 = vmax.f32 %v4345_v50, 0.0  ;;  %v5492_v26 = vadd.f32 %v5234_v35, %v11952_v38  ;;  %v12018_v6 = vpop.f32.mrf.mxu0  ;;  %v12021_v51 = vadd.f32 %v3157_v25, %v15947_v19  ;;  %v2622_v38 = vpop.permute.xlu0 %2621 }
 0x3ed   : > { %v3802_v42 = vmax.f32 %v3546_v4, 0.0  ;;  %v3804_v32 = vmax.f32 %v3548_v48, 0.0  ;;  %v3414_v7 = vadd.f32 %v3158_v1, %v15948_v58  ;;  %v12025_v28 = vadd.f32 %v3159_v62, %v15949_v30  ;;  %v15952_v48 = vld [vmem:[#allocation180_spill] sm:$0xff] }
 0x3ee   : > { %4578 = vmatprep.mubr.bf16.mxu0 %v4007_v31  ;;  %v4970_v45 = vmax.f32 %v4347_v59, 0.0  ;;  %5493 = vadd.xlane.f32.xlu0 %v5492_v26  ;;  %v3032_v12 = vmul.f32 %v10066_v34, %v2618_v61  ;;  %v3033_v10 = vmul.f32 %v10068_v20, %v2618_v61  ;;  %v12029_v35 = vpop.f32.mrf.mxu0  ;;  %v4351_v50 = vadd.f32 %v4350_v46, %v11811_v22  ;;  %v15953_v61 = vld [vmem:[#allocation95_spill] sm:$0xff] }
 0x3ef   : > { %15950 = vst [vmem:[#allocation144_spill] sm:$0xff] %v12025_v28  ;;  %v4006_v27 = vpack.c.bf16 %v3804_v32, %v3802_v42  ;;  %v12032_v25 = vadd.f32 %v10082_v2, %v3414_v7  ;;  %v3630_v58 = vadd.f32 %v10082_v2, %v11576_v43  ;;  %v12038_v30 = vmul.f32 %v11819_v54, %v4969_v17 }
 0x3f0   : > { %v12041_v4 = vmul.f32 %v11851_v39, %v4970_v45  ;;  %v3288_v1 = vadd.f32 %v3032_v12, %v15952_v48  ;;  %v3632_v62 = vadd.f32 %v10082_v2, %v11605_v33  ;;  %v12046_v32 = vpop.f32.mrf.mxu0  ;;  %v12049_v31 = vadd.f32 %v3033_v10, %v15953_v61  ;;  %v15954_v45 = vld [vmem:[#allocation101_spill] sm:$0xff] }
 0x3f1   : > { %15951 = vst [vmem:[#allocation16_spill] sm:$0xff] %v12032_v25  ;;  %4579 = vmatmul.mubr.bf16.gmra.mxu0 %v4006_v27  ;;  %v4971_v46 = vmax.f32 %v4351_v50, 0.0  ;;  %v3886_v59 = vmax.f32 %v3630_v58, 0.0  ;;  %v3034_v43 = vmul.f32 %v10066_v34, %v2622_v38  ;;  %v3035_v19 = vmul.f32 %v10068_v20, %v2622_v38  ;;  %v2874_v50 = vpop.permute.xlu1 %2873 }
 0x3f2   : > { %v12053_v17 = vadd.f32 %v10082_v2, %v3288_v1  ;;  %v3888_v26 = vmax.f32 %v3632_v62, 0.0  ;;  %v3635_v42 = vadd.f32 %v10092_v52, %v11596_v23  ;;  %v12058_v33 = vpop.f32.mrf.mxu0  ;;  %v3637_v10 = vadd.f32 %v10092_v52, %v11630_v14 }
 0x3f3   : > { %v3290_v12 = vadd.f32 %v3034_v43, %v15954_v45  ;;  %v4353_v27 = vadd.f32 %v11986_v47, %v11845_v0  ;;  %v12068_v38 = vmul.f32 %v11819_v54, %v4971_v46  ;;  %v5495_v14 = vadd.f32 %v5236_v40, %v11983_v41  ;;  %v15955_v45 = vld [vmem:[#allocation100_spill] sm:$0xff] }
 0x3f4   : > { %v4048_v48 = vpack.c.bf16 %v3888_v26, %v3886_v59  ;;  %v3891_v23 = vmax.f32 %v3635_v42, 0.0  ;;  %v12070_v1 = vpop.f32.mrf.mxu0  ;;  %v3893_v61 = vmax.f32 %v3637_v10, 0.0  ;;  %v12077_v47 = vadd.f32 %v3035_v19, %v15955_v45  ;;  %v2878_v26 = vpop.permute.xlu0 %2877 }
 0x3f5   : > { %v12073_v62 = vadd.f32 %v10082_v2, %v3290_v12  ;;  %v4972_v43 = vmax.f32 %v4353_v27, 0.0  ;;  %v3551_v7 = vadd.f32 %v10092_v52, %v11934_v44  ;;  %v3553_v46 = vadd.f32 %v10092_v52, %v11976_v49  ;;  %5496 = vadd.xlane.f32.xlu1 %v5495_v14  ;;  %v15956_v49 = vld [vmem:[#allocation255_spill] sm:$0xff] }
 0x3f6   : > { %4789 = vmatmul.mubr.bf16.gmra.mxu1 %v4048_v48  ;;  %v3160_v59 = vmul.f32 %v10066_v34, %v2874_v50  ;;  %v12084_v42 = vpop.f32.mrf.mxu0  ;;  %v4051_v10 = vpack.c.bf16 %v3893_v61, %v3891_v23  ;;  %v3161_v41 = vmul.f32 %v10068_v20, %v2874_v50  ;;  %v4355_v40 = vadd.f32 %v11999_v63, %v11811_v22 }
 0x3f7   : > { %v12091_v19 = vmul.f32 %v11851_v39, %v4972_v43  ;;  %v3807_v44 = vmax.f32 %v3551_v7, 0.0  ;;  %v3809_v27 = vmax.f32 %v3553_v46, 0.0  ;;  %v3550_v23 = vadd.f32 %v10082_v2, %v11924_v36  ;;  %v2626_v46 = vpop.permute.xlu1 %2625 }
 0x3f8   : > { %v3416_v48 = vadd.f32 %v3160_v59, %v15956_v49  ;;  %v12094_v45 = vpop.f32.mrf.mxu0  ;;  %4798 = vmatprep.mubr.bf16.mxu1 %v4051_v10  ;;  %v4973_v58 = vmax.f32 %v4355_v40, 0.0  ;;  %v3552_v50 = vadd.f32 %v10082_v2, %v11969_v8  ;;  %v3162_v61 = vmul.f32 %v10066_v34, %v2878_v26  ;;  %v15958_v10 = vld [vmem:[#allocation260_spill] sm:$0xff]  ;;  %v15959_v8 = vld [vmem:[#allocation261_spill] sm:$0xff] }
 0x3f9   : > { %v4009_v63 = vpack.c.bf16 %v3809_v27, %v3807_v44  ;;  %v3163_v7 = vmul.f32 %v10068_v20, %v2878_v26  ;;  %v4357_v14 = vadd.f32 %v12008_v15, %v11845_v0  ;;  %v12110_v40 = vadd.f32 %v3161_v41, %v15958_v10  ;;  %v15960_v41 = vld [vmem:[#allocation258_spill] sm:$0xff] }
 0x3fa   : > { %v12102_v43 = vadd.f32 %v10082_v2, %v3416_v48  ;;  %v12107_v59 = vpop.f32.mrf.mxu0  ;;  %v3806_v36 = vmax.f32 %v3550_v23, 0.0  ;;  %v3808_v49 = vmax.f32 %v3552_v50, 0.0  ;;  %v3418_v12 = vadd.f32 %v3162_v61, %v15959_v8  ;;  %v2630_v48 = vpop.permute.xlu0 %2629 }
 0x3fb   : > { %4588 = vmatprep.mubr.bf16.mxu0 %v4009_v63  ;;  %v12115_v27 = vmul.f32 %v11819_v54, %v4973_v58  ;;  %v4974_v26 = vmax.f32 %v4357_v14, 0.0  ;;  %v5498_v15 = vadd.f32 %v12041_v4, %v12038_v30  ;;  %v12122_v10 = vadd.f32 %v3163_v7, %v15960_v41  ;;  %v15963_v63 = vld [vmem:[#allocation129_spill] sm:$0xff] }
 0x3fc   : > { %15957 = vst [vmem:[#allocation14_spill] sm:$0xff] %v12102_v43  ;;  %v12119_v25 = vpop.f32.mrf.mxu0  ;;  %v4008_v28 = vpack.c.bf16 %v3808_v49, %v3806_v36  ;;  %v12125_v23 = vadd.f32 %v10082_v2, %v3418_v12  ;;  %v3036_v50 = vmul.f32 %v10066_v34, %v2626_v46  ;;  %v3037_v58 = vmul.f32 %v10068_v20, %v2626_v46  ;;  %v15964_v36 = vld [vmem:[#allocation183_spill] sm:$0xff] }
 0x3fd   : > { %15961 = vst [vmem:[#allocation21_spill] sm:$0xff] %v12122_v10  ;;  %5499 = vadd.xlane.f32.xlu0 %v5498_v15  ;;  %v4361_v61 = vadd.f32 %v12018_v6, %v11811_v22  ;;  %v3634_v30 = vadd.f32 %v10082_v2, %v15963_v63  ;;  %v3636_v4 = vadd.f32 %v10082_v2, %v11627_v3  ;;  %v2882_v63 = vpop.permute.xlu1 %2881 }
 0x3fe   : > { %15962 = vst [vmem:[#allocation293_spill] sm:$0xff] %v12125_v23  ;;  %v12135_v14 = vpop.f32.mrf.mxu0  ;;  %4589 = vmatmul.mubr.bf16.gmra.mxu0 %v4008_v28  ;;  %v5242_v7 = vmul.f32 %v11851_v39, %v4974_v26  ;;  %v3292_v49 = vadd.f32 %v3036_v50, %v15964_v36  ;;  %v3038_v46 = vmul.f32 %v10066_v34, %v2630_v48  ;;  %v15965_v28 = vld [vmem:[#allocation185_spill] sm:$0xff] }
 0x3ff   : > { %v4975_v8 = vmax.f32 %v4361_v61, 0.0  ;;  %v3890_v15 = vmax.f32 %v3634_v30, 0.0  ;;  %v3892_v6 = vmax.f32 %v3636_v4, 0.0  ;;  %v3039_v41 = vmul.f32 %v10068_v20, %v2630_v48  ;;  %v15966_v36 = vld [vmem:[#allocation105_spill] sm:$0xff] }
 0x400   : > { %v12142_v44 = vpop.f32.mrf.mxu0  ;;  %v12145_v3 = vadd.f32 %v10082_v2, %v3292_v49  ;;  %v3294_v10 = vadd.f32 %v3038_v46, %v15965_v28  ;;  %v3639_v26 = vadd.f32 %v10092_v52, %v11624_v18  ;;  %v3641_v50 = vadd.f32 %v10092_v52, %v11654_v24  ;;  %v15967_v28 = vld [vmem:[#allocation104_spill] sm:$0xff] }
 0x401   : > { %v12153_v61 = vadd.f32 %v3037_v58, %v15966_v36  ;;  %v12156_v30 = vmul.f32 %v11819_v54, %v4975_v8  ;;  %v4050_v48 = vpack.c.bf16 %v3892_v6, %v3890_v15  ;;  %v4363_v4 = vadd.f32 %v12029_v35, %v11845_v0  ;;  %v2886_v15 = vpop.permute.xlu0 %2885  ;;  %v15969_v46 = vld [vmem:[#allocation264_spill] sm:$0xff] }
 0x402   : > { %v12160_v49 = vpop.f32.mrf.mxu0  ;;  %v12164_v12 = vadd.f32 %v3039_v41, %v15967_v28  ;;  %v3895_v18 = vmax.f32 %v3639_v26, 0.0  ;;  %v3897_v23 = vmax.f32 %v3641_v50, 0.0  ;;  %v5501_v58 = vadd.f32 %v12091_v19, %v12068_v38  ;;  %v15968_v28 = vld [vmem:[#allocation259_spill] sm:$0xff] }
 0x403   : > { %4799 = vmatmul.mubr.bf16.gmra.mxu1 %v4050_v48  ;;  %v4976_v24 = vmax.f32 %v4363_v4, 0.0  ;;  %v3555_v8 = vadd.f32 %v10092_v52, %v11994_v29  ;;  %v3557_v35 = vadd.f32 %v10092_v52, %v12049_v31  ;;  %v12175_v36 = vadd.f32 %v10082_v2, %v3294_v10  ;;  %v2634_v31 = vpop.permute.xlu1 %2633 }
 0x404   : > { %v12172_v6 = vpop.f32.mrf.mxu0  ;;  %v4053_v41 = vpack.c.bf16 %v3897_v23, %v3895_v18  ;;  %v3164_v26 = vmul.f32 %v10066_v34, %v2882_v63  ;;  %v3165_v50 = vmul.f32 %v10068_v20, %v2882_v63  ;;  %5502 = vadd.xlane.f32.xlu1 %v5501_v58  ;;  %v4365_v29 = vadd.f32 %v12046_v32, %v11811_v22 }
 0x405   : > { %v5244_v48 = vmul.f32 %v11851_v39, %v4976_v24  ;;  %v3811_v38 = vmax.f32 %v3555_v8, 0.0  ;;  %v3813_v19 = vmax.f32 %v3557_v35, 0.0  ;;  %v15971_v18 = vmax.f32 %v11989_v5, 0.0 }
 0x406   : > { %v12182_v4 = vpop.f32.mrf.mxu0  ;;  %4808 = vmatprep.mubr.bf16.mxu1 %v4053_v41  ;;  %v3420_v10 = vadd.f32 %v3164_v26, %v15968_v28  ;;  %v12186_v23 = vadd.f32 %v3165_v50, %v15969_v46  ;;  %v15972_v63 = vmax.f32 %v12053_v17, 0.0  ;;  %v3166_v58 = vmul.f32 %v10066_v34, %v2886_v15  ;;  %v15974_v46 = vld [vmem:[#allocation265_spill] sm:$0xff]  ;;  %v2638_v28 = vpop.permute.xlu0 %2637 }
 0x407   : > { %v4011_v8 = vpack.c.bf16 %v3813_v19, %v3811_v38  ;;  %v4977_v35 = vmax.f32 %v4365_v29, 0.0  ;;  %v3167_v32 = vmul.f32 %v10068_v20, %v2886_v15  ;;  %v4367_v43 = vadd.f32 %v12058_v33, %v11845_v0  ;;  %v15975_v19 = vld [vmem:[#allocation262_spill] sm:$0xff] }
 0x408   : > { %15970 = vst [vmem:[#allocation19_spill] sm:$0xff] %v12186_v23  ;;  %v4010_v24 = vpack.c.bf16 %v15972_v63, %v15971_v18  ;;  %v12196_v41 = vpop.f32.mrf.mxu0  ;;  %v12199_v26 = vadd.f32 %v10082_v2, %v3420_v10  ;;  %v3422_v50 = vadd.f32 %v3166_v58, %v15974_v46  ;;  %v5504_v5 = vadd.f32 %v5242_v7, %v12115_v27  ;;  %v15978_v7 = vld [vmem:[#allocation94_spill] sm:$0xff]  ;;  %v15980_v46 = vld [vmem:[#allocation109_spill] sm:$0xff] }
 0x409   : > { %v3040_v17 = vmul.f32 %v10066_v34, %v2634_v31  ;;  %4598 = vmatprep.mubr.bf16.mxu0 %v4011_v8  ;;  %v12205_v38 = vmul.f32 %v11819_v54, %v4977_v35  ;;  %v12208_v15 = vadd.f32 %v3167_v32, %v15975_v19  ;;  %v4978_v29 = vmax.f32 %v4367_v43, 0.0  ;;  %v2890_v8 = vpop.permute.xlu1 %2889 }
 0x40a   : > { %15973 = vst [vmem:[#allocation12_spill] sm:$0xff] %v12199_v26  ;;  %v3041_v33 = vmul.f32 %v10068_v20, %v2634_v31  ;;  %v12211_v18 = vpop.f32.mrf.mxu0  ;;  %4599 = vmatmul.mubr.bf16.gmra.mxu0 %v4010_v24  ;;  %v12215_v27 = vadd.f32 %v10082_v2, %v3422_v50  ;;  %5505 = vadd.xlane.f32.xlu0 %v5504_v5  ;;  %v15979_v31 = vld [vmem:[#allocation280_spill] sm:$0xff] }
 0x40b   : > { %15976 = vst [vmem:[#allocation17_spill] sm:$0xff] %v12208_v15  ;;  %v3296_v63 = vadd.f32 %v3040_v17, %v15978_v7  ;;  %v4371_v58 = vadd.f32 %v12070_v1, %v11811_v22  ;;  %v5246_v43 = vmul.f32 %v11851_v39, %v4978_v29  ;;  %v3638_v35 = vadd.f32 %v10082_v2, %v15979_v31 }
 0x40c   : > { %15977 = vst [vmem:[#allocation8_spill] sm:$0xff] %v12215_v27  ;;  %v3640_v32 = vadd.f32 %v10082_v2, %v11651_v57  ;;  %v12226_v24 = vpop.f32.mrf.mxu0  ;;  %v12229_v50 = vadd.f32 %v3041_v33, %v15980_v46  ;;  %v3042_v1 = vmul.f32 %v10066_v34, %v2638_v28  ;;  %v3043_v29 = vmul.f32 %v10068_v20, %v2638_v28  ;;  %v15981_v46 = vld [vmem:[#allocation187_spill] sm:$0xff] }
 0x40d   : > { %v12232_v5 = vadd.f32 %v10082_v2, %v3296_v63  ;;  %v4979_v17 = vmax.f32 %v4371_v58, 0.0  ;;  %v3894_v19 = vmax.f32 %v3638_v35, 0.0  ;;  %v3643_v31 = vadd.f32 %v10092_v52, %v11638_v21 }
 0x40e   : > { %v3896_v7 = vmax.f32 %v3640_v32, 0.0  ;;  %v12238_v57 = vpop.f32.mrf.mxu0  ;;  %v3298_v63 = vadd.f32 %v3042_v1, %v15981_v46  ;;  %v3645_v58 = vadd.f32 %v10092_v52, %v11674_v53  ;;  %v4373_v21 = vadd.f32 %v12084_v42, %v11845_v0  ;;  %v15982_v53 = vld [vmem:[#allocation108_spill] sm:$0xff] }
 0x40f   : > { %v12246_v35 = vmul.f32 %v11819_v54, %v4979_v17  ;;  %v3899_v28 = vmax.f32 %v3643_v31, 0.0  ;;  %v5507_v33 = vadd.f32 %v5244_v48, %v12156_v30  ;;  %v3559_v1 = vadd.f32 %v10092_v52, %v12077_v47  ;;  %v2894_v31 = vpop.permute.xlu0 %2893 }
 0x410   : > { %v4052_v32 = vpack.c.bf16 %v3896_v7, %v3894_v19  ;;  %v12250_v15 = vpop.f32.mrf.mxu0  ;;  %v12253_v26 = vadd.f32 %v10082_v2, %v3298_v63  ;;  %v3901_v10 = vmax.f32 %v3645_v58, 0.0  ;;  %v12259_v17 = vadd.f32 %v3043_v29, %v15982_v53  ;;  %v2642_v53 = vpop.permute.xlu1 %2641 }
 0x411   : > { %v4980_v19 = vmax.f32 %v4373_v21, 0.0  ;;  %v3561_v7 = vadd.f32 %v10092_v52, %v12153_v61  ;;  %v3168_v42 = vmul.f32 %v10066_v34, %v2890_v8  ;;  %5508 = vadd.xlane.f32.xlu1 %v5507_v33  ;;  %v3169_v30 = vmul.f32 %v10068_v20, %v2890_v8  ;;  %v15983_v21 = vld [vmem:[#allocation263_spill] sm:$0xff] }
 0x412   : > { %4809 = vmatmul.mubr.bf16.gmra.mxu1 %v4052_v32  ;;  %v12264_v46 = vpop.f32.mrf.mxu0  ;;  %v4055_v58 = vpack.c.bf16 %v3901_v10, %v3899_v28  ;;  %v4375_v47 = vadd.f32 %v12094_v45, %v11811_v22  ;;  %v3815_v29 = vmax.f32 %v3559_v1, 0.0  ;;  %v15984_v63 = vmax.f32 %v12073_v62, 0.0 }
 0x413   : > { %v5248_v48 = vmul.f32 %v11851_v39, %v4980_v19  ;;  %v3817_v32 = vmax.f32 %v3561_v7, 0.0  ;;  %v3424_v61 = vadd.f32 %v3168_v42, %v15983_v21  ;;  %v15985_v10 = vmax.f32 %v12145_v3, 0.0 }
 0x414   : > { %v12272_v27 = vpop.f32.mrf.mxu0  ;;  %4818 = vmatprep.mubr.bf16.mxu1 %v4055_v58  ;;  %v4981_v23 = vmax.f32 %v4375_v47, 0.0  ;;  %v3170_v8 = vmul.f32 %v10066_v34, %v2894_v31  ;;  %v3171_v45 = vmul.f32 %v10068_v20, %v2894_v31  ;;  %v4377_v19 = vadd.f32 %v12107_v59, %v11845_v0  ;;  %v15986_v58 = vld [vmem:[#allocation268_spill] sm:$0xff] }
 0x415   : > { %v4012_v33 = vpack.c.bf16 %v15985_v10, %v15984_v63  ;;  %v4013_v28 = vpack.c.bf16 %v3817_v32, %v3815_v29  ;;  %v12281_v1 = vadd.f32 %v10082_v2, %v3424_v61  ;;  %v5510_v7 = vadd.f32 %v5246_v43, %v12205_v38  ;;  %v15987_v63 = vld [vmem:[#allocation269_spill] sm:$0xff]  ;;  %v15988_v29 = vld [vmem:[#allocation266_spill] sm:$0xff] }
 0x416   : > { %v12286_v42 = vpop.f32.mrf.mxu0  ;;  %v12289_v62 = vadd.f32 %v3169_v30, %v15986_v58  ;;  %v5249_v3 = vmul.f32 %v11819_v54, %v4981_v23  ;;  %v3426_v47 = vadd.f32 %v3170_v8, %v15987_v63  ;;  %v3044_v31 = vmul.f32 %v10066_v34, %v2642_v53  ;;  %v15989_v30 = vld [vmem:[#allocation186_spill] sm:$0xff] }
 0x417   : > { %4608 = vmatprep.mubr.bf16.mxu0 %v4013_v28  ;;  %v12295_v32 = vadd.f32 %v3171_v45, %v15988_v29  ;;  %v4982_v21 = vmax.f32 %v4377_v19, 0.0  ;;  %5511 = vadd.xlane.f32.xlu0 %v5510_v7  ;;  %v3045_v59 = vmul.f32 %v10068_v20, %v2642_v53  ;;  %v4381_v38 = vadd.f32 %v12119_v25, %v11811_v22  ;;  %v15990_v19 = vld [vmem:[#allocation113_spill] sm:$0xff] }
 0x418   : > { %v12300_v43 = vpop.f32.mrf.mxu0  ;;  %4609 = vmatmul.mubr.bf16.gmra.mxu0 %v4012_v33  ;;  %v12303_v23 = vadd.f32 %v10082_v2, %v3426_v47  ;;  %v3300_v61 = vadd.f32 %v3044_v31, %v15989_v30  ;;  %v3642_v10 = vadd.f32 %v10082_v2, %v11633_v13  ;;  %v3644_v8 = vadd.f32 %v10082_v2, %v11671_v11  ;;  %v2898_v47 = vpop.permute.xlu1 %2897 }
 0x419   : > { %v5250_v53 = vmul.f32 %v11851_v39, %v4982_v21  ;;  %v4983_v28 = vmax.f32 %v4381_v38, 0.0  ;;  %v3647_v25 = vadd.f32 %v10092_v52, %v11664_v55  ;;  %v12317_v7 = vadd.f32 %v3045_v59, %v15990_v19 }
 0x41a   : > { %v12314_v33 = vpop.f32.mrf.mxu0  ;;  %v12320_v58 = vadd.f32 %v10082_v2, %v3300_v61  ;;  %v3898_v13 = vmax.f32 %v3642_v10, 0.0  ;;  %v3900_v63 = vmax.f32 %v3644_v8, 0.0  ;;  %v3649_v29 = vadd.f32 %v10092_v52, %v11698_v56 }
 0x41b   : > { %v5251_v31 = vmul.f32 %v11819_v54, %v4983_v28  ;;  %v4383_v55 = vadd.f32 %v12135_v14, %v11845_v0  ;;  %v3903_v38 = vmax.f32 %v3647_v25, 0.0  ;;  %v5513_v30 = vadd.f32 %v5248_v48, %v12246_v35 }
 0x41c   : > { %v12328_v21 = vpop.f32.mrf.mxu0  ;;  %v4054_v59 = vpack.c.bf16 %v3900_v63, %v3898_v13  ;;  %v3563_v61 = vadd.f32 %v10092_v52, %v12164_v12  ;;  %v3905_v10 = vmax.f32 %v3649_v29, 0.0  ;;  %v3565_v28 = vadd.f32 %v10092_v52, %v12229_v50  ;;  %v15991_v63 = vld [vmem:[#allocation267_spill] sm:$0xff] }
 0x41d   : > { %v4984_v8 = vmax.f32 %v4383_v55, 0.0  ;;  %v3172_v19 = vmul.f32 %v10066_v34, %v2898_v47  ;;  %v3824_v14 = vmax.f32 %v12320_v58, 0.0  ;;  %5514 = vadd.xlane.f32.xlu1 %v5513_v30  ;;  %v3173_v25 = vmul.f32 %v10068_v20, %v2898_v47 }
 0x41e   : > { %v12336_v56 = vpop.f32.mrf.mxu0  ;;  %4819 = vmatmul.mubr.bf16.gmra.mxu1 %v4054_v59  ;;  %v3819_v13 = vmax.f32 %v3563_v61, 0.0  ;;  %v4385_v35 = vadd.f32 %v12142_v44, %v11811_v22  ;;  %v4057_v12 = vpack.c.bf16 %v3905_v10, %v3903_v38  ;;  %v3821_v48 = vmax.f32 %v3565_v28, 0.0  ;;  %v15994_v38 = vld [vmem:[#allocation272_spill] sm:$0xff]  ;;  %v15995_v61 = vld [vmem:[#allocation278_spill] sm:$0xff] }
 0x41f   : > { %v3428_v29 = vadd.f32 %v3172_v19, %v15991_v63  ;;  %v15992_v50 = vmax.f32 %v12175_v36, 0.0  ;;  %v15993_v34 = vmax.f32 %v12232_v5, 0.0  ;;  %v5252_v58 = vmul.f32 %v11851_v39, %v4984_v8 }
 0x420   : > { %v12347_v11 = vpop.f32.mrf.mxu0  ;;  %v4985_v59 = vmax.f32 %v4385_v35, 0.0  ;;  %v4387_v20 = vadd.f32 %v12160_v49, %v11845_v0  ;;  %v5516_v47 = vadd.f32 %v5250_v53, %v5249_v3  ;;  %4828 = vmatprep.mubr.bf16.mxu1 %v4057_v12  ;;  %v4015_v44 = vpack.c.bf16 %v3821_v48, %v3819_v13 }
 0x421   : > { %v4014_v55 = vpack.c.bf16 %v15993_v34, %v15992_v50  ;;  %v12353_v30 = vadd.f32 %v3173_v25, %v15994_v38  ;;  %v4391_v36 = vadd.f32 %v12172_v6, %v11811_v22  ;;  %v3646_v5 = vadd.f32 %v10082_v2, %v15995_v61 }
 0x422   : > { %v12359_v10 = vpop.f32.mrf.mxu0  ;;  %v12362_v8 = vadd.f32 %v10082_v2, %v3428_v29  ;;  %v4986_v28 = vmax.f32 %v4387_v20, 0.0  ;;  %5517 = vadd.xlane.f32.xlu0 %v5516_v47  ;;  %v3648_v49 = vadd.f32 %v10082_v2, %v11691_v37  ;;  %v3651_v3 = vadd.f32 %v10092_v52, %v11682_v16  ;;  %4618 = vmatprep.mubr.bf16.mxu0 %v4015_v44 }
 0x423   : > { %v5253_v53 = vmul.f32 %v11819_v54, %v4985_v59  ;;  %v4987_v6 = vmax.f32 %v4391_v36, 0.0  ;;  %v3902_v19 = vmax.f32 %v3646_v5, 0.0  ;;  %v3653_v13 = vadd.f32 %v10092_v52, %v11716_v60  ;;  %4619 = vmatmul.mubr.bf16.gmra.mxu0 %v4014_v55 }
 0x424   : > { %v12371_v25 = vpop.f32.mrf.mxu0  ;;  %v5254_v35 = vmul.f32 %v11851_v39, %v4986_v28  ;;  %v3904_v12 = vmax.f32 %v3648_v49, 0.0  ;;  %v3907_v48 = vmax.f32 %v3651_v3, 0.0  ;;  %v4393_v37 = vadd.f32 %v12182_v4, %v11845_v0 }
 0x425   : > { %v5255_v16 = vmul.f32 %v11819_v54, %v4987_v6  ;;  %v3909_v63 = vmax.f32 %v3653_v13, 0.0  ;;  %v5519_v29 = vadd.f32 %v5252_v58, %v5251_v31  ;;  %v3567_v50 = vadd.f32 %v10092_v52, %v12259_v17  ;;  %v15998_v6 = vld [vmem:[#allocation131_spill] sm:$0xff] }
 0x426   : > { %v12379_v34 = vpop.f32.mrf.mxu0  ;;  %v4056_v60 = vpack.c.bf16 %v3904_v12, %v3902_v19  ;;  %v4988_v59 = vmax.f32 %v4393_v37, 0.0  ;;  %v3569_v55 = vadd.f32 %v10092_v52, %v12317_v7  ;;  %v4395_v20 = vadd.f32 %v12196_v41, %v11811_v22  ;;  %v15999_v19 = vld [vmem:[#allocation284_spill] sm:$0xff] }
 0x427   : > { %v4059_v47 = vpack.c.bf16 %v3909_v63, %v3907_v48  ;;  %5520 = vadd.xlane.f32.xlu1 %v5519_v29  ;;  %v3823_v4 = vmax.f32 %v3567_v50, 0.0  ;;  %v15996_v44 = vmax.f32 %v12253_v26, 0.0  ;;  %v4397_v31 = vadd.f32 %v12211_v18, %v11845_v0 }
 0x428   : > { %v12389_v17 = vpop.f32.mrf.mxu0  ;;  %4829 = vmatmul.mubr.bf16.gmra.mxu1 %v4056_v60  ;;  %v5256_v58 = vmul.f32 %v11851_v39, %v4988_v59  ;;  %v3825_v36 = vmax.f32 %v3569_v55, 0.0  ;;  %v4989_v61 = vmax.f32 %v4395_v20, 0.0  ;;  %v5522_v7 = vadd.f32 %v5254_v35, %v5253_v53 }
 0x429   : > { %v4016_v38 = vpack.c.bf16 %v3824_v14, %v15996_v44  ;;  %4838 = vmatprep.mubr.bf16.mxu1 %v4059_v47  ;;  %v4990_v5 = vmax.f32 %v4397_v31, 0.0  ;;  %v4401_v41 = vadd.f32 %v12226_v24, %v11811_v22  ;;  %v3650_v26 = vadd.f32 %v10082_v2, %v11677_v9  ;;  %v15997_v14 = vld [vmem:[#allocation282_spill] sm:$0xff]  ;;  %v12405_v35 = vpop.f32.mrf.mxu1 }
 0x42a   : > { %v3652_v28 = vadd.f32 %v10082_v2, %v15997_v14  ;;  %v12398_v18 = vpop.f32.mrf.mxu0  ;;  %v4017_v49 = vpack.c.bf16 %v3825_v36, %v3823_v4  ;;  %v5257_v3 = vmul.f32 %v11819_v54, %v4989_v61  ;;  %5523 = vadd.xlane.f32.xlu0 %v5522_v7  ;;  %v3655_v53 = vadd.f32 %v10092_v52, %v15998_v6  ;;  %v16000_v7 = vld [vmem:[#allocation279_spill] sm:$0xff] }
 0x42b   : > { %v3657_v13 = vadd.f32 %v10092_v52, %v15999_v19  ;;  %v5258_v24 = vmul.f32 %v11851_v39, %v4990_v5  ;;  %v4991_v9 = vmax.f32 %v4401_v41, 0.0  ;;  %v3906_v12 = vmax.f32 %v3650_v26, 0.0  ;;  %v12412_v59 = vpop.f32.mrf.mxu1 }
 0x42c   : > { %v3908_v48 = vmax.f32 %v3652_v28, 0.0  ;;  %v12408_v37 = vpop.f32.mrf.mxu0  ;;  %4628 = vmatprep.mubr.bf16.mxu0 %v4017_v49  ;;  %v3911_v63 = vmax.f32 %v3655_v53, 0.0  ;;  %v4403_v50 = vadd.f32 %v12238_v57, %v11845_v0  ;;  %v5525_v60 = vadd.f32 %v5256_v58, %v5255_v16  ;;  %v16002_v28 = vld [vmem:[#allocation281_spill] sm:$0xff]  ;;  %v16003_v49 = vld [vmem:[#allocation283_spill] sm:$0xff] }
 0x42d   : > { %v3913_v29 = vmax.f32 %v3657_v13, 0.0  ;;  %4629 = vmatmul.mubr.bf16.gmra.mxu0 %v4016_v38  ;;  %v5259_v55 = vmul.f32 %v11819_v54, %v4991_v9  ;;  %v4405_v47 = vadd.f32 %v12250_v15, %v11811_v22  ;;  %v4407_v4 = vadd.f32 %v12264_v46, %v11845_v0  ;;  %v12423_v16 = vpop.f32.mrf.mxu1  ;;  %v16001_v15 = vld [vmem:[#allocation133_spill] sm:$0xff] }
 0x42e   : > { %v4058_v20 = vpack.c.bf16 %v3908_v48, %v3906_v12  ;;  %v12419_v44 = vpop.f32.mrf.mxu0  ;;  %v4992_v36 = vmax.f32 %v4403_v50, 0.0  ;;  %5526 = vadd.xlane.f32.xlu1 %v5525_v60  ;;  %v5528_v61 = vadd.f32 %v5258_v24, %v5257_v3  ;;  %v4411_v57 = vadd.f32 %v12272_v27, %v11811_v22 }
 0x42f   : > { %v4061_v31 = vpack.c.bf16 %v3913_v29, %v3911_v63  ;;  %v4993_v38 = vmax.f32 %v4405_v47, 0.0  ;;  %v4994_v58 = vmax.f32 %v4407_v4, 0.0  ;;  %v3654_v5 = vadd.f32 %v10082_v2, %v16000_v7  ;;  %v12436_v6 = vpop.f32.mrf.mxu1 }
 0x430   : > { %v3656_v41 = vadd.f32 %v10082_v2, %v16001_v15  ;;  %v12429_v46 = vpop.f32.mrf.mxu0  ;;  %4839 = vmatmul.mubr.bf16.gmra.mxu1 %v4058_v20  ;;  %v5260_v26 = vmul.f32 %v11851_v39, %v4992_v36  ;;  %5529 = vadd.xlane.f32.xlu0 %v5528_v61  ;;  %v4995_v14 = vmax.f32 %v4411_v57, 0.0  ;;  %v3659_v27 = vadd.f32 %v10092_v52, %v16002_v28  ;;  %v16007_v28 = vld [vmem:[#allocation285_spill] sm:$0xff] }
 0x431   : > { %v3661_v3 = vadd.f32 %v10092_v52, %v16003_v49  ;;  %4848 = vmatprep.mubr.bf16.mxu1 %v4061_v31  ;;  %v5261_v53 = vmul.f32 %v11819_v54, %v4993_v38  ;;  %v5262_v19 = vmul.f32 %v11851_v39, %v4994_v58  ;;  %v3910_v13 = vmax.f32 %v3654_v5, 0.0  ;;  %v12445_v50 = vpop.f32.mrf.mxu1 }
 0x432   : > { %v3912_v24 = vmax.f32 %v3656_v41, 0.0  ;;  %v12440_v9 = vpop.f32.mrf.mxu0  ;;  %v5263_v12 = vmul.f32 %v11819_v54, %v4995_v14  ;;  %v3915_v48 = vmax.f32 %v3659_v27, 0.0  ;;  %v4413_v29 = vadd.f32 %v12286_v42, %v11845_v0  ;;  %v16006_v14 = vld [vmem:[#allocation286_spill] sm:$0xff] }
 0x433   : > { %v3917_v63 = vmax.f32 %v3661_v3, 0.0  ;;  %v5531_v20 = vadd.f32 %v5260_v26, %v5259_v55  ;;  %v4415_v47 = vadd.f32 %v12300_v43, %v11811_v22  ;;  %v4417_v4 = vadd.f32 %v12314_v33, %v11845_v0  ;;  %v12455_v58 = vpop.f32.mrf.mxu1  ;;  %v16004_v55 = vld [vmem:[#allocation130_spill] sm:$0xff]  ;;  %v16005_v43 = vld [vmem:[#allocation132_spill] sm:$0xff] }
 0x434   : > { %v4060_v60 = vpack.c.bf16 %v3912_v24, %v3910_v13  ;;  %v12451_v31 = vpop.f32.mrf.mxu0  ;;  %v4996_v61 = vmax.f32 %v4413_v29, 0.0  ;;  %v5534_v57 = vadd.f32 %v5262_v19, %v5261_v53  ;;  %v4421_v38 = vadd.f32 %v12328_v21, %v11811_v22 }
 0x435   : > { %v4063_v36 = vpack.c.bf16 %v3917_v63, %v3915_v48  ;;  %5532 = vadd.xlane.f32.xlu1 %v5531_v20  ;;  %v4997_v42 = vmax.f32 %v4415_v47, 0.0  ;;  %v4998_v7 = vmax.f32 %v4417_v4, 0.0  ;;  %v3658_v5 = vadd.f32 %v10082_v2, %v16004_v55  ;;  %v12468_v49 = vpop.f32.mrf.mxu1 }
 0x436   : > { %v3660_v15 = vadd.f32 %v10082_v2, %v16005_v43  ;;  %v12461_v33 = vpop.f32.mrf.mxu0  ;;  %v5264_v41 = vmul.f32 %v11851_v39, %v4996_v61  ;;  %5535 = vadd.xlane.f32.xlu0 %v5534_v57  ;;  %v4999_v26 = vmax.f32 %v4421_v38, 0.0  ;;  %v3663_v21 = vadd.f32 %v10092_v52, %v16006_v14 }
 0x437   : > { %v3665_v27 = vadd.f32 %v10092_v52, %v16007_v28  ;;  %v5265_v3 = vmul.f32 %v11819_v54, %v4997_v42  ;;  %v5266_v53 = vmul.f32 %v11851_v39, %v4998_v7  ;;  %v3914_v19 = vmax.f32 %v3658_v5, 0.0  ;;  %v12477_v47 = vpop.f32.mrf.mxu1  ;;  %v16011_v28 = vld [vmem:[#allocation287_spill] sm:$0xff] }
 0x438   : > { %v3916_v13 = vmax.f32 %v3660_v15, 0.0  ;;  %v12472_v24 = vpop.f32.mrf.mxu0  ;;  %4849 = vmatmul.mubr.bf16.gmra.mxu1 %v4060_v60  ;;  %v5267_v48 = vmul.f32 %v11819_v54, %v4999_v26  ;;  %v3919_v63 = vmax.f32 %v3663_v21, 0.0  ;;  %v4423_v20 = vadd.f32 %v12336_v56, %v11845_v0  ;;  %v16010_v21 = vld [vmem:[#allocation288_spill] sm:$0xff] }
 0x439   : > { %v3921_v29 = vmax.f32 %v3665_v27, 0.0  ;;  %4858 = vmatprep.mubr.bf16.mxu1 %v4063_v36  ;;  %v5537_v61 = vadd.f32 %v5264_v41, %v5263_v12  ;;  %v4425_v57 = vadd.f32 %v12347_v11, %v11811_v22  ;;  %v4427_v38 = vadd.f32 %v12359_v10, %v11845_v0  ;;  %v12487_v56 = vpop.f32.mrf.mxu1  ;;  %v16008_v12 = vld [vmem:[#allocation135_spill] sm:$0xff]  ;;  %v16009_v11 = vld [vmem:[#allocation134_spill] sm:$0xff] }
 0x43a   : > { %v4062_v4 = vpack.c.bf16 %v3916_v13, %v3914_v19  ;;  %v12483_v42 = vpop.f32.mrf.mxu0  ;;  %v5000_v7 = vmax.f32 %v4423_v20, 0.0  ;;  %v5540_v55 = vadd.f32 %v5266_v53, %v5265_v3  ;;  %v4431_v5 = vadd.f32 %v12371_v25, %v11811_v22 }
 0x43b   : > { %v4065_v60 = vpack.c.bf16 %v3921_v29, %v3919_v63  ;;  %5538 = vadd.xlane.f32.xlu1 %v5537_v61  ;;  %v5001_v36 = vmax.f32 %v4425_v57, 0.0  ;;  %v5002_v43 = vmax.f32 %v4427_v38, 0.0  ;;  %v3662_v15 = vadd.f32 %v10082_v2, %v16008_v12  ;;  %v12500_v3 = vpop.f32.mrf.mxu1 }
 0x43c   : > { %v3664_v41 = vadd.f32 %v10082_v2, %v16009_v11  ;;  %v12493_v10 = vpop.f32.mrf.mxu0  ;;  %v5268_v26 = vmul.f32 %v11851_v39, %v5000_v7  ;;  %5541 = vadd.xlane.f32.xlu0 %v5540_v55  ;;  %v5003_v14 = vmax.f32 %v4431_v5, 0.0  ;;  %v3667_v25 = vadd.f32 %v10092_v52, %v16010_v21  ;;  %v16012_v21 = vld [vmem:[#allocation137_spill] sm:$0xff] }
 0x43d   : > { %v3669_v27 = vadd.f32 %v10092_v52, %v16011_v28  ;;  %v5269_v53 = vmul.f32 %v11819_v54, %v5001_v36  ;;  %v5270_v19 = vmul.f32 %v11851_v39, %v5002_v43  ;;  %v3918_v13 = vmax.f32 %v3662_v15, 0.0  ;;  %v12509_v7 = vpop.f32.mrf.mxu1 }
 0x43e   : > { %v3920_v63 = vmax.f32 %v3664_v41, 0.0  ;;  %v12504_v29 = vpop.f32.mrf.mxu0  ;;  %v5271_v20 = vmul.f32 %v11819_v54, %v5003_v14  ;;  %v3923_v61 = vmax.f32 %v3667_v25, 0.0  ;;  %v4433_v38 = vadd.f32 %v12379_v34, %v11845_v0 }
 0x43f   : > { %v3925_v57 = vmax.f32 %v3669_v27, 0.0  ;;  %v5543_v5 = vadd.f32 %v5268_v26, %v5267_v48  ;;  %v4435_v36 = vadd.f32 %v12389_v17, %v11811_v22  ;;  %v4437_v43 = vadd.f32 %v12398_v18, %v11845_v0  ;;  %v12519_v34 = vpop.f32.mrf.mxu1  ;;  %v16013_v27 = vld [vmem:[#allocation136_spill] sm:$0xff] }
 0x440   : > { %v4064_v55 = vpack.c.bf16 %v3920_v63, %v3918_v13  ;;  %v12515_v12 = vpop.f32.mrf.mxu0  ;;  %4859 = vmatmul.mubr.bf16.gmra.mxu1 %v4062_v4  ;;  %v5004_v11 = vmax.f32 %v4433_v38, 0.0  ;;  %v5546_v41 = vadd.f32 %v5270_v19, %v5269_v53  ;;  %v4441_v14 = vadd.f32 %v12408_v37, %v11811_v22  ;;  %v16014_v53 = vld [vmem:[#allocation290_spill] sm:$0xff] }
 0x441   : > { %v4067_v15 = vpack.c.bf16 %v3925_v57, %v3923_v61  ;;  %4868 = vmatprep.mubr.bf16.mxu1 %v4065_v60  ;;  %5544 = vadd.xlane.f32.xlu1 %v5543_v5  ;;  %v5005_v48 = vmax.f32 %v4435_v36, 0.0  ;;  %v5006_v26 = vmax.f32 %v4437_v43, 0.0  ;;  %v4641_v17 = vadd.f32 %v12405_v35, %v11811_v22  ;;  %v12532_v19 = vpop.f32.mrf.mxu1  ;;  %v16015_v36 = vld [vmem:[#allocation289_spill] sm:$0xff] }
 0x442   : > { %v3666_v18 = vadd.f32 %v10082_v2, %v16012_v21  ;;  %v12525_v25 = vpop.f32.mrf.mxu0  ;;  %v5272_v4 = vmul.f32 %v11851_v39, %v5004_v11  ;;  %5547 = vadd.xlane.f32.xlu0 %v5546_v41  ;;  %v5007_v28 = vmax.f32 %v4441_v14, 0.0  ;;  %v3668_v37 = vadd.f32 %v10082_v2, %v16013_v27 }
 0x443   : > { %v3671_v60 = vadd.f32 %v10092_v52, %v16014_v53  ;;  %v5273_v13 = vmul.f32 %v11819_v54, %v5005_v48  ;;  %v5274_v35 = vmul.f32 %v11851_v39, %v5006_v26  ;;  %v5087_v63 = vmax.f32 %v4641_v17, 0.0  ;;  %v12541_v41 = vpop.f32.mrf.mxu1 }
 0x444   : > { %v3922_v61 = vmax.f32 %v3666_v18, 0.0  ;;  %v12536_v57 = vpop.f32.mrf.mxu0  ;;  %v5275_v38 = vmul.f32 %v11819_v54, %v5007_v28  ;;  %v3924_v5 = vmax.f32 %v3668_v37, 0.0  ;;  %v3673_v43 = vadd.f32 %v10092_v52, %v16015_v36 }
 0x445   : > { %v3927_v11 = vmax.f32 %v3671_v60, 0.0  ;;  %v12544_v14 = vmul.f32 %v11819_v54, %v5087_v63  ;;  %v4443_v48 = vadd.f32 %v12419_v44, %v11845_v0  ;;  %v4643_v26 = vadd.f32 %v12412_v59, %v11845_v0  ;;  %v12556_v53 = vpop.f32.mrf.mxu1 }
 0x446   : > { %v5549_v17 = vadd.f32 %v5272_v4, %v5271_v20  ;;  %v12550_v21 = vpop.f32.mrf.mxu0  ;;  %v4066_v18 = vpack.c.bf16 %v3924_v5, %v3922_v61  ;;  %v3929_v28 = vmax.f32 %v3673_v43, 0.0  ;;  %v4445_v27 = vadd.f32 %v12429_v46, %v11811_v22 }
 0x447   : > { %16016 = vst [vmem:[#allocation9_spill] sm:$0xff] %v12544_v14  ;;  %v4645_v37 = vadd.f32 %v12423_v16, %v11811_v22  ;;  %v5008_v60 = vmax.f32 %v4443_v48, 0.0  ;;  %v5088_v63 = vmax.f32 %v4643_v26, 0.0  ;;  %v4447_v44 = vadd.f32 %v12440_v9, %v11845_v0  ;;  %v12564_v36 = vpop.f32.mrf.mxu1 }
 0x448   : > { %5550 = vadd.xlane.f32.xlu1 %v5549_v17  ;;  %v4647_v59 = vadd.f32 %v12436_v6, %v11845_v0  ;;  %v12562_v20 = vpop.f32.mrf.mxu0  ;;  %4869 = vmatmul.mubr.bf16.gmra.mxu1 %v4064_v55  ;;  %v4069_v4 = vpack.c.bf16 %v3929_v28, %v3927_v11  ;;  %v5009_v61 = vmax.f32 %v4445_v27, 0.0  ;;  %v5552_v5 = vadd.f32 %v5274_v35, %v5273_v13  ;;  %v16020_v28 = vld [vmem:[#allocation139_spill] sm:$0xff] }
 0x449   : > { %v5089_v46 = vmax.f32 %v4645_v37, 0.0  ;;  %4878 = vmatprep.mubr.bf16.mxu1 %v4067_v15  ;;  %v5276_v16 = vmul.f32 %v11851_v39, %v5008_v60  ;;  %v12568_v43 = vmul.f32 %v11851_v39, %v5088_v63  ;;  %v5010_v48 = vmax.f32 %v4447_v44, 0.0  ;;  %v12580_v35 = vpop.f32.mrf.mxu1  ;;  %v16021_v37 = vld [vmem:[#allocation138_spill] sm:$0xff] }
 0x44a   : > { %v5090_v9 = vmax.f32 %v4647_v59, 0.0  ;;  %v12570_v26 = vpop.f32.mrf.mxu0  ;;  %v5277_v6 = vmul.f32 %v11819_v54, %v5009_v61  ;;  %5553 = vadd.xlane.f32.xlu0 %v5552_v5  ;;  %v4451_v13 = vadd.f32 %v12451_v31, %v11811_v22  ;;  %v4651_v15 = vadd.f32 %v12445_v50, %v11811_v22  ;;  %v16022_v59 = vld [vmem:[#allocation292_spill] sm:$0xff]  ;;  %v16023_v61 = vld [vmem:[#allocation291_spill] sm:$0xff] }
 0x44b   : > { %16017 = vst [vmem:[#allocation13_spill] sm:$0xff] %v12568_v43  ;;  %v12574_v55 = vmul.f32 %v11819_v54, %v5089_v46  ;;  %v5278_v11 = vmul.f32 %v11851_v39, %v5010_v48  ;;  %v3670_v27 = vadd.f32 %v10082_v2, %v16020_v28  ;;  %v3672_v60 = vadd.f32 %v10082_v2, %v16021_v37  ;;  %v12596_v5 = vpop.f32.mrf.mxu1 }
 0x44c   : > { %v12584_v17 = vmul.f32 %v11851_v39, %v5090_v9  ;;  %v12590_v63 = vpop.f32.mrf.mxu0  ;;  %v5011_v44 = vmax.f32 %v4451_v13, 0.0  ;;  %v5091_v31 = vmax.f32 %v4651_v15, 0.0  ;;  %v3675_v50 = vadd.f32 %v10092_v52, %v16022_v59 }
 0x44d   : > { %16018 = vst [vmem:[#allocation20_spill] sm:$0xff] %v12574_v55  ;;  %v3677_v46 = vadd.f32 %v10092_v52, %v16023_v61  ;;  %v3926_v48 = vmax.f32 %v3670_v27, 0.0  ;;  %v3928_v9 = vmax.f32 %v3672_v60, 0.0  ;;  %v4453_v28 = vadd.f32 %v12461_v33, %v11845_v0  ;;  %v12608_v61 = vpop.f32.mrf.mxu1 }
 0x44e   : > { %16019 = vst [vmem:[#allocation71_spill] sm:$0xff] %v12584_v17  ;;  %v4653_v37 = vadd.f32 %v12455_v58, %v11845_v0  ;;  %v12602_v45 = vpop.f32.mrf.mxu0  ;;  %v5279_v13 = vmul.f32 %v11819_v54, %v5011_v44  ;;  %v12606_v15 = vmul.f32 %v11819_v54, %v5091_v31  ;;  %v3931_v59 = vmax.f32 %v3675_v50, 0.0 }
 0x44f   : > { %v3933_v17 = vmax.f32 %v3677_v46, 0.0  ;;  %v4068_v55 = vpack.c.bf16 %v3928_v9, %v3926_v48  ;;  %v5012_v27 = vmax.f32 %v4453_v28, 0.0  ;;  %v5555_v43 = vadd.f32 %v5276_v16, %v5275_v38  ;;  %v12618_v50 = vpop.f32.mrf.mxu1  ;;  %v16029_v46 = vld [vmem:[#allocation294_spill] sm:$0xff] }
 0x450   : > { %v5092_v60 = vmax.f32 %v4653_v37, 0.0  ;;  %v12610_v14 = vpop.f32.mrf.mxu0  ;;  %4879 = vmatmul.mubr.bf16.gmra.mxu1 %v4066_v18  ;;  %v4455_v58 = vadd.f32 %v12472_v24, %v11811_v22  ;;  %v4655_v44 = vadd.f32 %v12468_v49, %v11811_v22  ;;  %v4457_v31 = vadd.f32 %v12483_v42, %v11845_v0 }
 0x451   : > { %v4071_v33 = vpack.c.bf16 %v3933_v17, %v3931_v59  ;;  %4888 = vmatprep.mubr.bf16.mxu1 %v4069_v4  ;;  %v5280_v38 = vmul.f32 %v11851_v39, %v5012_v27  ;;  %5556 = vadd.xlane.f32.xlu1 %v5555_v43  ;;  %v4657_v24 = vadd.f32 %v12477_v47, %v11845_v0  ;;  %v12629_v9 = vpop.f32.mrf.mxu1  ;;  %v16025_v59 = vld [vmem:[#allocation4_spill] sm:$0xff] }
 0x452   : > { %v12623_v16 = vmul.f32 %v11851_v39, %v5092_v60  ;;  %v12627_v18 = vpop.f32.mrf.mxu0  ;;  %v5013_v49 = vmax.f32 %v4455_v58, 0.0  ;;  %v5093_v17 = vmax.f32 %v4655_v44, 0.0  ;;  %v5014_v48 = vmax.f32 %v4457_v31, 0.0 }
 0x453   : > { %v5558_v42 = vadd.f32 %v5278_v11, %v5277_v6  ;;  %v5094_v28 = vmax.f32 %v4657_v24, 0.0  ;;  %v4461_v4 = vadd.f32 %v12493_v10, %v11811_v22  ;;  %v4661_v37 = vadd.f32 %v12487_v56, %v11811_v22  ;;  %v16027_v11 = vld [vmem:[#allocation5_spill] sm:$0xff]  ;;  %v12646_v10 = vpop.f32.mrf.mxu1 }
 0x454   : > { %16024 = vst [vmem:[#allocation18_spill] sm:$0xff] %v12623_v16  ;;  %v3674_v43 = vadd.f32 %v10082_v2, %v16025_v59  ;;  %v12637_v27 = vpop.f32.mrf.mxu0  ;;  %v5281_v47 = vmul.f32 %v11819_v54, %v5013_v49  ;;  %v12641_v60 = vmul.f32 %v11819_v54, %v5093_v17  ;;  %v5282_v6 = vmul.f32 %v11851_v39, %v5014_v48 }
 0x455   : > { %5559 = vadd.xlane.f32.xlu0 %v5558_v42  ;;  %v3676_v58 = vadd.f32 %v10082_v2, %v16027_v11  ;;  %v12649_v56 = vmul.f32 %v11851_v39, %v5094_v28  ;;  %v5015_v44 = vmax.f32 %v4461_v4, 0.0  ;;  %v5095_v31 = vmax.f32 %v4661_v37, 0.0  ;;  %v12659_v11 = vpop.f32.mrf.mxu1 }
 0x456   : > { %16026 = vst [vmem:[#allocation23_spill] sm:$0xff] %v12641_v60  ;;  %v3930_v24 = vmax.f32 %v3674_v43, 0.0  ;;  %v12651_v59 = vpop.f32.mrf.mxu0  ;;  %v3679_v17 = vadd.f32 %v10092_v52, %v16029_v46  ;;  %v3681_v48 = vadd.f32 %v10092_v52, %v12021_v51  ;;  %v4463_v42 = vadd.f32 %v12504_v29, %v11845_v0 }
 0x457   : > { %16028 = vst [vmem:[#allocation22_spill] sm:$0xff] %v12649_v56  ;;  %v3932_v49 = vmax.f32 %v3676_v58, 0.0  ;;  %v5283_v28 = vmul.f32 %v11819_v54, %v5015_v44  ;;  %v12663_v4 = vmul.f32 %v11819_v54, %v5095_v31  ;;  %v4663_v37 = vadd.f32 %v12500_v3, %v11845_v0  ;;  %v12669_v16 = vpop.f32.mrf.mxu1 }
 0x458   : > { %v5561_v43 = vadd.f32 %v5280_v38, %v5279_v13  ;;  %v12667_v58 = vpop.f32.mrf.mxu0  ;;  %4889 = vmatmul.mubr.bf16.gmra.mxu1 %v4068_v55  ;;  %v3935_v56 = vmax.f32 %v3679_v17, 0.0  ;;  %v3937_v51 = vmax.f32 %v3681_v48, 0.0  ;;  %v5016_v60 = vmax.f32 %v4463_v42, 0.0 }
 0x459   : > { %v4070_v46 = vpack.c.bf16 %v3932_v49, %v3930_v24  ;;  %4898 = vmatprep.mubr.bf16.mxu1 %v4071_v33  ;;  %v5096_v29 = vmax.f32 %v4663_v37, 0.0  ;;  %v4465_v44 = vadd.f32 %v12515_v12, %v11811_v22  ;;  %v4665_v31 = vadd.f32 %v12509_v7, %v11811_v22  ;;  %v12682_v49 = vpop.f32.mrf.mxu1 }
 0x45a   : > { %5562 = vadd.xlane.f32.xlu1 %v5561_v43  ;;  %v4467_v3 = vadd.f32 %v12525_v25, %v11845_v0  ;;  %v12677_v13 = vpop.f32.mrf.mxu0  ;;  %v4073_v55 = vpack.c.bf16 %v3937_v51, %v3935_v56  ;;  %v5284_v38 = vmul.f32 %v11851_v39, %v5016_v60  ;;  %v4667_v24 = vadd.f32 %v12519_v34, %v11845_v0  ;;  %v16031_v34 = vld [vmem:[#allocation6_spill] sm:$0xff] }
 0x45b   : > { %v5564_v33 = vadd.f32 %v5282_v6, %v5281_v47  ;;  %v12685_v17 = vmul.f32 %v11851_v39, %v5096_v29  ;;  %v5017_v12 = vmax.f32 %v4465_v44, 0.0  ;;  %v5097_v48 = vmax.f32 %v4665_v31, 0.0  ;;  %v12695_v6 = vpop.f32.mrf.mxu1  ;;  %v16033_v29 = vld [vmem:[#allocation7_spill] sm:$0xff] }
 0x45c   : > { %v5018_v7 = vmax.f32 %v4467_v3, 0.0  ;;  %v12687_v42 = vpop.f32.mrf.mxu0  ;;  %v5098_v25 = vmax.f32 %v4667_v24, 0.0  ;;  %v4471_v56 = vadd.f32 %v12536_v57, %v11811_v22  ;;  %v4671_v60 = vadd.f32 %v12532_v19, %v11811_v22 }
 0x45d   : > { %16030 = vst [vmem:[#allocation15_spill] sm:$0xff] %v12685_v17  ;;  %5565 = vadd.xlane.f32.xlu0 %v5564_v33  ;;  %v3678_v47 = vadd.f32 %v10082_v2, %v16031_v34  ;;  %v5285_v37 = vmul.f32 %v11819_v54, %v5017_v12  ;;  %v12699_v43 = vmul.f32 %v11819_v54, %v5097_v48  ;;  %v12709_v33 = vpop.f32.mrf.mxu1  ;;  %v16035_v12 = vld [vmem:[#allocation144_spill] sm:$0xff] }
 0x45e   : > { %v5286_v51 = vmul.f32 %v11851_v39, %v5018_v7  ;;  %v3680_v44 = vadd.f32 %v10082_v2, %v16033_v29  ;;  %v12704_v31 = vpop.f32.mrf.mxu0  ;;  %v12707_v57 = vmul.f32 %v11851_v39, %v5098_v25  ;;  %v5019_v19 = vmax.f32 %v4471_v56, 0.0 }
 0x45f   : > { %16032 = vst [vmem:[#allocation70_spill] sm:$0xff] %v12699_v43  ;;  %v5099_v3 = vmax.f32 %v4671_v60, 0.0  ;;  %v3934_v24 = vmax.f32 %v3678_v47, 0.0  ;;  %v3683_v48 = vadd.f32 %v10092_v52, %v16035_v12  ;;  %v3685_v7 = vadd.f32 %v10092_v52, %v12110_v40 }
 0x460   : > { %16034 = vst [vmem:[#allocation25_spill] sm:$0xff] %v12707_v57  ;;  %v3936_v34 = vmax.f32 %v3680_v44, 0.0  ;;  %v4473_v2 = vadd.f32 %v12550_v21, %v11845_v0  ;;  %v12717_v29 = vpop.f32.mrf.mxu0  ;;  %4899 = vmatmul.mubr.bf16.gmra.mxu1 %v4070_v46  ;;  %v5287_v25 = vmul.f32 %v11819_v54, %v5019_v19  ;;  %v4673_v60 = vadd.f32 %v12541_v41, %v11845_v0  ;;  %v12725_v44 = vpop.f32.mrf.mxu1 }
 0x461   : > { %v12721_v56 = vmul.f32 %v11819_v54, %v5099_v3  ;;  %v5567_v47 = vadd.f32 %v5284_v38, %v5283_v28  ;;  %4908 = vmatprep.mubr.bf16.mxu1 %v4073_v55  ;;  %v3939_v40 = vmax.f32 %v3683_v48, 0.0  ;;  %v3941_v57 = vmax.f32 %v3685_v7, 0.0 }
 0x462   : > { %v4072_v12 = vpack.c.bf16 %v3936_v34, %v3934_v24  ;;  %v5020_v43 = vmax.f32 %v4473_v2, 0.0  ;;  %v12727_v21 = vpop.f32.mrf.mxu0  ;;  %v5100_v17 = vmax.f32 %v4673_v60, 0.0  ;;  %v4475_v46 = vadd.f32 %v12562_v20, %v11811_v22  ;;  %v12735_v28 = vpop.f32.mrf.mxu1 }
 0x463   : > { %5568 = vadd.xlane.f32.xlu1 %v5567_v47  ;;  %v4675_v19 = vadd.f32 %v12556_v53, %v11811_v22  ;;  %v4477_v41 = vadd.f32 %v12570_v26, %v11845_v0  ;;  %v4075_v55 = vpack.c.bf16 %v3941_v57, %v3939_v40  ;;  %v4677_v3 = vadd.f32 %v12564_v36, %v11845_v0  ;;  %v16036_v36 = vld [vmem:[#allocation16_spill] sm:$0xff] }
 0x464   : > { %v5288_v38 = vmul.f32 %v11851_v39, %v5020_v43  ;;  %v5570_v24 = vadd.f32 %v5286_v51, %v5285_v37  ;;  %v12740_v34 = vpop.f32.mrf.mxu0  ;;  %v12743_v48 = vmul.f32 %v11851_v39, %v5100_v17  ;;  %v5021_v20 = vmax.f32 %v4475_v46, 0.0  ;;  %v12745_v2 = vpop.f32.mrf.mxu1  ;;  %v16038_v51 = vld [vmem:[#allocation14_spill] sm:$0xff] }
 0x465   : > { %v5101_v7 = vmax.f32 %v4675_v19, 0.0  ;;  %v5022_v53 = vmax.f32 %v4477_v41, 0.0  ;;  %v5102_v26 = vmax.f32 %v4677_v3, 0.0  ;;  %v4481_v57 = vadd.f32 %v12590_v63, %v11811_v22  ;;  %v16041_v41 = vld [vmem:[#allocation21_spill] sm:$0xff] }
 0x466   : > { %5571 = vadd.xlane.f32.xlu0 %v5570_v24  ;;  %v4681_v43 = vadd.f32 %v12580_v35, %v11811_v22  ;;  %v16037_v37 = vmax.f32 %v16036_v36, 0.0  ;;  %v16039_v60 = vmax.f32 %v16038_v51, 0.0  ;;  %v12755_v17 = vpop.f32.mrf.mxu0  ;;  %v5289_v40 = vmul.f32 %v11819_v54, %v5021_v20  ;;  %v12764_v3 = vpop.f32.mrf.mxu1 }
 0x467   : > { %v12759_v46 = vmul.f32 %v11819_v54, %v5101_v7  ;;  %v5290_v19 = vmul.f32 %v11851_v39, %v5022_v53  ;;  %v3687_v63 = vadd.f32 %v10092_v52, %v16041_v41  ;;  %v12767_v35 = vmul.f32 %v11851_v39, %v5102_v26 }
 0x468   : > { %v4074_v47 = vpack.c.bf16 %v16039_v60, %v16037_v37  ;;  %v5023_v24 = vmax.f32 %v4481_v57, 0.0  ;;  %v5103_v36 = vmax.f32 %v4681_v43, 0.0  ;;  %v16043_v37 = vld [vmem:[#allocation19_spill] sm:$0xff]  ;;  %v12771_v60 = vpop.f32.mrf.mxu0  ;;  %4909 = vmatmul.mubr.bf16.gmra.mxu1 %v4072_v12  ;;  %v4483_v7 = vadd.f32 %v12602_v45, %v11845_v0 }
 0x469   : > { %16040 = vst [vmem:[#allocation146_spill] sm:$0xff] %v12759_v46  ;;  %16042 = vst [vmem:[#allocation10_spill] sm:$0xff] %v12767_v35  ;;  %v3689_v51 = vadd.f32 %v10092_v52, %v16043_v37  ;;  %v3943_v20 = vmax.f32 %v3687_v63, 0.0  ;;  %v4683_v53 = vadd.f32 %v12596_v5, %v11845_v0  ;;  %v5573_v41 = vadd.f32 %v5288_v38, %v5287_v25  ;;  %v12777_v46 = vpop.f32.mrf.mxu1 }
 0x46a   : > { %4918 = vmatprep.mubr.bf16.mxu1 %v4075_v55  ;;  %v5291_v26 = vmul.f32 %v11819_v54, %v5023_v24  ;;  %v12781_v57 = vmul.f32 %v11819_v54, %v5103_v36  ;;  %v4485_v12 = vadd.f32 %v12610_v14, %v11811_v22  ;;  %v12785_v63 = vpop.f32.mrf.mxu0  ;;  %v5024_v37 = vmax.f32 %v4483_v7, 0.0 }
 0x46b   : > { %v3945_v43 = vmax.f32 %v3689_v51, 0.0  ;;  %v5104_v45 = vmax.f32 %v4683_v53, 0.0  ;;  %5574 = vadd.xlane.f32.xlu1 %v5573_v41  ;;  %v4685_v5 = vadd.f32 %v12608_v61, %v11811_v22  ;;  %v4487_v25 = vadd.f32 %v12627_v18, %v11845_v0  ;;  %v12791_v55 = vpop.f32.mrf.mxu1 }
 0x46c   : > { %16044 = vst [vmem:[#allocation11_spill] sm:$0xff] %v12781_v57  ;;  %v5025_v24 = vmax.f32 %v4485_v12, 0.0  ;;  %v4687_v36 = vadd.f32 %v12618_v50, %v11845_v0  ;;  %v5576_v51 = vadd.f32 %v5290_v19, %v5289_v40  ;;  %v12795_v14 = vpop.f32.mrf.mxu0  ;;  %v5292_v7 = vmul.f32 %v11851_v39, %v5024_v37  ;;  %v16047_v12 = vld [vmem:[#allocation293_spill] sm:$0xff] }
 0x46d   : > { %v4077_v38 = vpack.c.bf16 %v3945_v43, %v3943_v20  ;;  %v12799_v53 = vmul.f32 %v11851_v39, %v5104_v45  ;;  %v5105_v41 = vmax.f32 %v4685_v5, 0.0  ;;  %v5026_v61 = vmax.f32 %v4487_v25, 0.0  ;;  %v12801_v57 = vpop.f32.mrf.mxu1  ;;  %v16049_v45 = vld [vmem:[#allocation12_spill] sm:$0xff] }
 0x46e   : > { %v5293_v18 = vmul.f32 %v11819_v54, %v5025_v24  ;;  %v5106_v35 = vmax.f32 %v4687_v36, 0.0  ;;  %5577 = vadd.xlane.f32.xlu0 %v5576_v51  ;;  %v4491_v20 = vadd.f32 %v12637_v27, %v11811_v22  ;;  %v4691_v50 = vadd.f32 %v12629_v9, %v11811_v22  ;;  %v12808_v40 = vpop.f32.mrf.mxu0  ;;  %v16051_v24 = vld [vmem:[#allocation17_spill] sm:$0xff] }
 0x46f   : > { %16045 = vst [vmem:[#allocation27_spill] sm:$0xff] %v12799_v53  ;;  %v12811_v19 = vmul.f32 %v11819_v54, %v5105_v41  ;;  %v5294_v43 = vmul.f32 %v11851_v39, %v5026_v61  ;;  %v16048_v37 = vmax.f32 %v16047_v12, 0.0  ;;  %v16050_v5 = vmax.f32 %v16049_v45, 0.0  ;;  %v12820_v51 = vpop.f32.mrf.mxu1 }
 0x470   : > { %v3691_v36 = vadd.f32 %v10092_v52, %v16051_v24  ;;  %v12823_v27 = vmul.f32 %v11851_v39, %v5106_v35  ;;  %v5027_v9 = vmax.f32 %v4491_v20, 0.0  ;;  %v5107_v53 = vmax.f32 %v4691_v50, 0.0  ;;  %4919 = vmatmul.mubr.bf16.gmra.mxu1 %v4074_v47 }
 0x471   : > { %16046 = vst [vmem:[#allocation143_spill] sm:$0xff] %v12811_v19  ;;  %v4076_v25 = vpack.c.bf16 %v16050_v5, %v16048_v37  ;;  %v3693_v41 = vadd.f32 %v10092_v52, %v12289_v62  ;;  %v12827_v19 = vpop.f32.mrf.mxu0  ;;  %v4493_v12 = vadd.f32 %v12651_v59, %v11845_v0  ;;  %v4693_v37 = vadd.f32 %v12646_v10, %v11845_v0  ;;  %v12833_v5 = vpop.f32.mrf.mxu1 }
 0x472   : > { %v3947_v61 = vmax.f32 %v3691_v36, 0.0  ;;  %v5579_v45 = vadd.f32 %v5292_v7, %v5291_v26  ;;  %4928 = vmatprep.mubr.bf16.mxu1 %v4077_v38  ;;  %v5295_v35 = vmul.f32 %v11819_v54, %v5027_v9  ;;  %v12837_v20 = vmul.f32 %v11819_v54, %v5107_v53 }
 0x473   : > { %v3949_v62 = vmax.f32 %v3693_v41, 0.0  ;;  %v4495_v47 = vadd.f32 %v12667_v58, %v11811_v22  ;;  %v12841_v50 = vpop.f32.mrf.mxu0  ;;  %v5028_v59 = vmax.f32 %v4493_v12, 0.0  ;;  %v5108_v24 = vmax.f32 %v4693_v37, 0.0  ;;  %v12847_v38 = vpop.f32.mrf.mxu1 }
 0x474   : > { %5580 = vadd.xlane.f32.xlu1 %v5579_v45  ;;  %v4695_v10 = vadd.f32 %v12659_v11, %v11811_v22  ;;  %v4497_v26 = vadd.f32 %v12677_v13, %v11845_v0  ;;  %v4697_v36 = vadd.f32 %v12669_v16, %v11845_v0  ;;  %v5582_v58 = vadd.f32 %v5294_v43, %v5293_v18 }
 0x475   : > { %v4079_v7 = vpack.c.bf16 %v3949_v62, %v3947_v61  ;;  %v5029_v53 = vmax.f32 %v4495_v47, 0.0  ;;  %v12852_v9 = vpop.f32.mrf.mxu0  ;;  %v5296_v41 = vmul.f32 %v11851_v39, %v5028_v59  ;;  %v12856_v12 = vmul.f32 %v11851_v39, %v5108_v24  ;;  %v12858_v45 = vpop.f32.mrf.mxu1  ;;  %v16052_v59 = vld [vmem:[#allocation8_spill] sm:$0xff] }
 0x476   : > { %v5109_v11 = vmax.f32 %v4695_v10, 0.0  ;;  %v5030_v37 = vmax.f32 %v4497_v26, 0.0  ;;  %v5110_v61 = vmax.f32 %v4697_v36, 0.0  ;;  %5583 = vadd.xlane.f32.xlu0 %v5582_v58  ;;  %v4501_v16 = vadd.f32 %v12687_v42, %v11811_v22 }
 0x477   : > { %v5297_v13 = vmul.f32 %v11819_v54, %v5029_v53  ;;  %v4701_v18 = vadd.f32 %v12682_v49, %v11811_v22  ;;  %v12865_v43 = vpop.f32.mrf.mxu0  ;;  %v16053_v24 = vmax.f32 %v16052_v59, 0.0  ;;  %v16054_v10 = vmax.f32 %v12281_v1, 0.0  ;;  %v12879_v42 = vpop.f32.mrf.mxu1 }
 0x478   : > { %v12868_v62 = vmul.f32 %v11819_v54, %v5109_v11  ;;  %v5298_v47 = vmul.f32 %v11851_v39, %v5030_v37  ;;  %v3695_v53 = vadd.f32 %v10092_v52, %v12295_v32  ;;  %v12882_v49 = vmul.f32 %v11851_v39, %v5110_v61  ;;  %v12886_v37 = vld [vmem:[#allocation2] ss:$0 sm:$0xff]  ;;  %v5485_v59 = vpop.xlane.xlu0 %5484  ;;  %4929 = vmatmul.mubr.bf16.gmra.mxu1 %v4076_v25 }
 0x479   : > { %v4078_v26 = vpack.c.bf16 %v16054_v10, %v16053_v24  ;;  %v5031_v36 = vmax.f32 %v4501_v16, 0.0  ;;  %v5111_v58 = vmax.f32 %v4701_v18, 0.0  ;;  %v3697_v11 = vadd.f32 %v10092_v52, %v12353_v30  ;;  %v12888_v1 = vpop.f32.mrf.mxu0  ;;  %4938 = vmatprep.mubr.bf16.mxu1 %v4079_v7  ;;  %v5488_v7 = vpop.xlane.xlu1 %5487 }
 0x47a   : > { %16055 = vst [vmem:[#allocation295_spill] sm:$0xff] %v12882_v49  ;;  %v3951_v24 = vmax.f32 %v3695_v53, 0.0  ;;  %v4503_v32 = vadd.f32 %v12704_v31, %v11845_v0  ;;  %v4703_v10 = vadd.f32 %v12695_v6, %v11845_v0  ;;  %v5585_v61 = vadd.f32 %v5296_v41, %v5295_v35  ;;  %v12894_v49 = vpop.f32.mrf.mxu1 }
 0x47b   : > { %v5299_v16 = vmul.f32 %v11819_v54, %v5031_v36  ;;  %v12898_v52 = vmul.f32 %v11819_v54, %v5111_v58  ;;  %v3953_v30 = vmax.f32 %v3697_v11, 0.0  ;;  %v4505_v25 = vadd.f32 %v12717_v29, %v11811_v22  ;;  %v12902_v18 = vpop.f32.mrf.mxu0 }
 0x47c   : > { %v5032_v31 = vmax.f32 %v4503_v32, 0.0  ;;  %v5112_v53 = vmax.f32 %v4703_v10, 0.0  ;;  %5586 = vadd.xlane.f32.xlu1 %v5585_v61  ;;  %v4705_v6 = vadd.f32 %v12709_v33, %v11811_v22  ;;  %v5874_v35 = vadd.f32 %v12886_v37, %v5485_v59  ;;  %v12907_v41 = vpop.f32.mrf.mxu1 }
 0x47d   : > { %16056 = vst [vmem:[#allocation26_spill] sm:$0xff] %v12898_v52  ;;  %v4081_v36 = vpack.c.bf16 %v3953_v30, %v3951_v24  ;;  %v5033_v58 = vmax.f32 %v4505_v25, 0.0  ;;  %v4507_v11 = vadd.f32 %v12727_v21, %v11845_v0  ;;  %v4707_v29 = vadd.f32 %v12725_v44, %v11845_v0  ;;  %v12913_v52 = vpop.f32.mrf.mxu0  ;;  %v5491_v24 = vpop.xlane.xlu0 %5490 }
 0x47e   : > { %v5300_v32 = vmul.f32 %v11851_v39, %v5032_v31  ;;  %v12917_v10 = vmul.f32 %v11851_v39, %v5112_v53  ;;  %v5113_v33 = vmax.f32 %v4705_v6, 0.0  ;;  %6003 = vst.msk [vmem:[%s12920_s30] sm:$0xff] %vm6002_vm0, %v5874_v35  ;;  %v5588_v59 = vadd.f32 %v5298_v47, %v5297_v13  ;;  %v12924_v21 = vpop.f32.mrf.mxu1 }
 0x47f   : > { %v5301_v44 = vmul.f32 %v11819_v54, %v5033_v58  ;;  %v5034_v61 = vmax.f32 %v4507_v11, 0.0  ;;  %v5114_v30 = vmax.f32 %v4707_v29, 0.0  ;;  %v5875_v25 = vadd.f32 %v12886_v37, %v5488_v7  ;;  %v12928_v31 = vpop.f32.mrf.mxu0 }
 0x480   : > { %v12931_v53 = vmul.f32 %v11819_v54, %v5113_v33  ;;  %5589 = vadd.xlane.f32.xlu0 %v5588_v59  ;;  %v4511_v6 = vadd.f32 %v12740_v34, %v11811_v22  ;;  %v4711_v13 = vadd.f32 %v12735_v28, %v11811_v22  ;;  %v16057_v47 = vmax.f32 %v12303_v23, 0.0  ;;  %v12941_v11 = vpop.f32.mrf.mxu1  ;;  %4939 = vmatmul.mubr.bf16.gmra.mxu1 %v4078_v26 }
 0x481   : > { %v16058_v35 = vmax.f32 %v12362_v8, 0.0  ;;  %v5302_v7 = vmul.f32 %v11851_v39, %v5034_v61  ;;  %v12945_v29 = vmul.f32 %v11851_v39, %v5114_v30  ;;  %6004 = vst.msk [vmem:[%s12920_s30 + $0x8] sm:$0xff] %vm6002_vm0, %v5875_v25  ;;  %v4513_v34 = vadd.f32 %v12755_v17, %v11845_v0  ;;  %4948 = vmatprep.mubr.bf16.mxu1 %v4081_v36 }
 0x482   : > { %v4713_v28 = vadd.f32 %v12745_v2, %v11845_v0  ;;  %v5035_v23 = vmax.f32 %v4511_v6, 0.0  ;;  %v5115_v33 = vmax.f32 %v4711_v13, 0.0  ;;  %v5591_v8 = vadd.f32 %v5300_v32, %v5299_v16  ;;  %v12957_v61 = vpop.f32.mrf.mxu1  ;;  %v5494_v6 = vpop.xlane.xlu0 %5493 }
 0x483   : > { %v4080_v58 = vpack.c.bf16 %v16058_v35, %v16057_v47  ;;  %v4515_v59 = vadd.f32 %v12771_v60, %v11811_v22  ;;  %v12955_v47 = vpop.f32.mrf.mxu0  ;;  %v5036_v30 = vmax.f32 %v4513_v34, 0.0  ;;  %v4715_v17 = vadd.f32 %v12764_v3, %v11811_v22  ;;  %v5497_v34 = vpop.xlane.xlu1 %5496 }
 0x484   : > { %v5116_v25 = vmax.f32 %v4713_v28, 0.0  ;;  %v5876_v2 = vadd.f32 %v12886_v37, %v5491_v24  ;;  %v5303_v26 = vmul.f32 %v11819_v54, %v5035_v23  ;;  %v12964_v16 = vmul.f32 %v11819_v54, %v5115_v33  ;;  %5592 = vadd.xlane.f32.xlu1 %v5591_v8  ;;  %v12968_v13 = vpop.f32.mrf.mxu1 }
 0x485   : > { %v5037_v60 = vmax.f32 %v4515_v59, 0.0  ;;  %v4517_v32 = vadd.f32 %v12785_v63, %v11845_v0  ;;  %v5304_v36 = vmul.f32 %v11851_v39, %v5036_v30  ;;  %v5117_v3 = vmax.f32 %v4715_v17, 0.0  ;;  %v12981_v8 = vpop.f32.mrf.mxu0 }
 0x486   : > { %v12972_v35 = vmul.f32 %v11851_v39, %v5116_v25  ;;  %6005 = vst.msk [vmem:[%s12920_s30 + $0x10] sm:$0xff] %vm6002_vm0, %v5876_v2  ;;  %v4717_v24 = vadd.f32 %v12777_v46, %v11845_v0  ;;  %v5594_v33 = vadd.f32 %v5302_v7, %v5301_v44  ;;  %v4521_v63 = vadd.f32 %v12795_v14, %v11811_v22  ;;  %v12983_v59 = vpop.f32.mrf.mxu1 }
 0x487   : > { %v5305_v28 = vmul.f32 %v11819_v54, %v5037_v60  ;;  %v5038_v23 = vmax.f32 %v4517_v32, 0.0  ;;  %v12986_v30 = vmul.f32 %v11819_v54, %v5117_v3  ;;  %v4721_v46 = vadd.f32 %v12791_v55, %v11811_v22  ;;  %v12996_v60 = vpop.f32.mrf.mxu0 }
 0x488   : > { %v5118_v25 = vmax.f32 %v4717_v24, 0.0  ;;  %v5877_v17 = vadd.f32 %v12886_v37, %v5494_v6  ;;  %5595 = vadd.xlane.f32.xlu0 %v5594_v33  ;;  %v5039_v44 = vmax.f32 %v4521_v63, 0.0  ;;  %v4523_v14 = vadd.f32 %v12808_v40, %v11845_v0  ;;  %v13004_v24 = vpop.f32.mrf.mxu1  ;;  %4949 = vmatmul.mubr.bf16.gmra.mxu1 %v4080_v58 }
 0x489   : > { %v5306_v2 = vmul.f32 %v11851_v39, %v5038_v23  ;;  %v4723_v7 = vadd.f32 %v12801_v57, %v11845_v0  ;;  %v5119_v3 = vmax.f32 %v4721_v46, 0.0  ;;  %v5597_v55 = vadd.f32 %v5304_v36, %v5303_v26  ;;  %v13009_v63 = vpop.f32.mrf.mxu0 }
 0x48a   : > { %v12999_v32 = vmul.f32 %v11851_v39, %v5118_v25  ;;  %6006 = vst.msk [vmem:[%s12920_s30 + $0x18] sm:$0xff] %vm6002_vm0, %v5877_v17  ;;  %v5878_v6 = vadd.f32 %v12886_v37, %v5497_v34  ;;  %v5307_v40 = vmul.f32 %v11819_v54, %v5039_v44  ;;  %v5040_v23 = vmax.f32 %v4523_v14, 0.0  ;;  %v5500_v34 = vpop.xlane.xlu0 %5499  ;;  %v13022_v46 = vpop.f32.mrf.mxu1 }
 0x48b   : > { %v5120_v33 = vmax.f32 %v4723_v7, 0.0  ;;  %v4525_v57 = vadd.f32 %v12827_v19, %v11811_v22  ;;  %v13012_v25 = vmul.f32 %v11819_v54, %v5119_v3  ;;  %5598 = vadd.xlane.f32.xlu1 %v5597_v55  ;;  %v4725_v26 = vadd.f32 %v12820_v51, %v11811_v22 }
 0x48c   : > { %6007 = vst.msk [vmem:[%s12920_s30 + $0x20] sm:$0xff] %vm6002_vm0, %v5878_v6  ;;  %v4527_v58 = vadd.f32 %v12841_v50, %v11845_v0  ;;  %v4727_v36 = vadd.f32 %v12833_v5, %v11845_v0  ;;  %v5308_v19 = vmul.f32 %v11851_v39, %v5040_v23  ;;  %v5600_v14 = vadd.f32 %v5306_v2, %v5305_v28  ;;  %v13030_v55 = vpop.f32.mrf.mxu1  ;;  %v13038_v2 = vpop.f32.mrf.mxu0 }
 0x48d   : > { %v13026_v17 = vmul.f32 %v11851_v39, %v5120_v33  ;;  %v5041_v44 = vmax.f32 %v4525_v57, 0.0  ;;  %v5121_v7 = vmax.f32 %v4725_v26, 0.0  ;;  %v4531_v50 = vadd.f32 %v12852_v9, %v11811_v22 }
 0x48e   : > { %v5042_v3 = vmax.f32 %v4527_v58, 0.0  ;;  %v5122_v51 = vmax.f32 %v4727_v36, 0.0  ;;  %5601 = vadd.xlane.f32.xlu0 %v5600_v14  ;;  %v4731_v6 = vadd.f32 %v12847_v38, %v11811_v22  ;;  %v5879_v23 = vadd.f32 %v12886_v37, %v5500_v34  ;;  %v5503_v34 = vpop.xlane.xlu1 %5502 }
 0x48f   : > { %v5309_v5 = vmul.f32 %v11819_v54, %v5041_v44  ;;  %v4533_v28 = vadd.f32 %v12865_v43, %v11845_v0  ;;  %v13041_v33 = vmul.f32 %v11819_v54, %v5121_v7  ;;  %v5043_v26 = vmax.f32 %v4531_v50, 0.0 }
 0x490   : > { %v5310_v9 = vmul.f32 %v11851_v39, %v5042_v3  ;;  %v13045_v57 = vmul.f32 %v11851_v39, %v5122_v51  ;;  %v5123_v58 = vmax.f32 %v4731_v6, 0.0  ;;  %6008 = vst.msk [vmem:[%s12920_s30 + $0x28] sm:$0xff] %vm6002_vm0, %v5879_v23  ;;  %v4733_v36 = vadd.f32 %v12858_v45, %v11845_v0  ;;  %v13057_v51 = vpop.f32.mrf.mxu1 }
 0x491   : > { %v5044_v38 = vmax.f32 %v4533_v28, 0.0  ;;  %v5603_v43 = vadd.f32 %v5308_v19, %v5307_v40  ;;  %v5311_v44 = vmul.f32 %v11819_v54, %v5043_v26  ;;  %v5880_v14 = vadd.f32 %v12886_v37, %v5503_v34  ;;  %v13065_v19 = vpop.f32.mrf.mxu0 }
 0x492   : > { %v4535_v7 = vadd.f32 %v12888_v1, %v11811_v22  ;;  %v4735_v3 = vadd.f32 %v12879_v42, %v11811_v22  ;;  %v13060_v50 = vmul.f32 %v11819_v54, %v5123_v58  ;;  %v5124_v45 = vmax.f32 %v4733_v36, 0.0 }
 0x493   : > { %v5312_v6 = vmul.f32 %v11851_v39, %v5044_v38  ;;  %5604 = vadd.xlane.f32.xlu1 %v5603_v43  ;;  %v4537_v40 = vadd.f32 %v12902_v18, %v11845_v0  ;;  %6009 = vst.msk [vmem:[%s12920_s30 + $0x30] sm:$0xff] %vm6002_vm0, %v5880_v14  ;;  %v4737_v42 = vadd.f32 %v12894_v49, %v11845_v0  ;;  %v5506_v49 = vpop.xlane.xlu0 %5505 }
 0x494   : > { %v5045_v1 = vmax.f32 %v4535_v7, 0.0  ;;  %v5125_v23 = vmax.f32 %v4735_v3, 0.0  ;;  %v5606_v28 = vadd.f32 %v5310_v9, %v5309_v5  ;;  %v13072_v26 = vmul.f32 %v11851_v39, %v5124_v45  ;;  %v13084_v9 = vpop.f32.mrf.mxu1 }
 0x495   : > { %v5046_v58 = vmax.f32 %v4537_v40, 0.0  ;;  %v4541_v38 = vadd.f32 %v12913_v52, %v11811_v22  ;;  %v4741_v18 = vadd.f32 %v12907_v41, %v11811_v22  ;;  %v5126_v34 = vmax.f32 %v4737_v42, 0.0  ;;  %v13088_v3 = vpop.f32.mrf.mxu0 }
 0x496   : > { %v5313_v36 = vmul.f32 %v11819_v54, %v5045_v1  ;;  %v13080_v43 = vmul.f32 %v11819_v54, %v5125_v23  ;;  %5607 = vadd.xlane.f32.xlu0 %v5606_v28  ;;  %v4543_v5 = vadd.f32 %v12928_v31, %v11845_v0  ;;  %v5881_v41 = vadd.f32 %v12886_v37, %v5506_v49 }
 0x497   : > { %v5314_v14 = vmul.f32 %v11851_v39, %v5046_v58  ;;  %v5047_v52 = vmax.f32 %v4541_v38, 0.0  ;;  %v5127_v7 = vmax.f32 %v4741_v18, 0.0  ;;  %v13091_v45 = vmul.f32 %v11851_v39, %v5126_v34  ;;  %v13105_v38 = vpop.f32.mrf.mxu0 }
 0x498   : > { %v5048_v40 = vmax.f32 %v4543_v5, 0.0  ;;  %v4743_v1 = vadd.f32 %v12924_v21, %v11845_v0  ;;  %v5609_v23 = vadd.f32 %v5312_v6, %v5311_v44  ;;  %6010 = vst.msk [vmem:[%s12920_s30 + $0x38] sm:$0xff] %vm6002_vm0, %v5881_v41  ;;  %v4545_v28 = vadd.f32 %v12955_v47, %v11811_v22  ;;  %v4766_v6 = vpop.f32.mrf.mxu1 }
 0x499   : > { %v5315_v31 = vmul.f32 %v11819_v54, %v5047_v52  ;;  %v13097_v42 = vmul.f32 %v11819_v54, %v5127_v7  ;;  %v4745_v58 = vadd.f32 %v12941_v11, %v11811_v22  ;;  %v4547_v21 = vadd.f32 %v12981_v8, %v11845_v0 }
 0x49a   : > { %v5316_v18 = vmul.f32 %v11851_v39, %v5048_v40  ;;  %v5128_v34 = vmax.f32 %v4743_v1, 0.0  ;;  %5610 = vadd.xlane.f32.xlu1 %v5609_v23  ;;  %v4747_v44 = vadd.f32 %v12957_v61, %v11845_v0  ;;  %v5049_v49 = vmax.f32 %v4545_v28, 0.0 }
 0x49b   : > { %v5129_v5 = vmax.f32 %v4745_v58, 0.0  ;;  %v5612_v52 = vadd.f32 %v5314_v14, %v5313_v36  ;;  %v4751_v47 = vadd.f32 %v12968_v13, %v11811_v22  ;;  %v5050_v7 = vmax.f32 %v4547_v21, 0.0  ;;  %v4564_v36 = vpop.f32.mrf.mxu0  ;;  %v5509_v14 = vpop.xlane.xlu1 %5508 }
 0x49c   : > { %v13115_v11 = vmul.f32 %v11851_v39, %v5128_v34  ;;  %v5130_v41 = vmax.f32 %v4747_v44, 0.0  ;;  %v4753_v40 = vadd.f32 %v12983_v59, %v11845_v0  ;;  %v5317_v8 = vmul.f32 %v11819_v54, %v5049_v49  ;;  %v4770_v34 = vpop.f32.mrf.mxu1 }
 0x49d   : > { %v13121_v1 = vmul.f32 %v11819_v54, %v5129_v5  ;;  %5613 = vadd.xlane.f32.xlu0 %v5612_v52  ;;  %v5131_v61 = vmax.f32 %v4751_v47, 0.0  ;;  %v5615_v23 = vadd.f32 %v5316_v18, %v5315_v31  ;;  %v5318_v13 = vmul.f32 %v11851_v39, %v5050_v7 }
 0x49e   : > { %v13125_v28 = vmul.f32 %v11851_v39, %v5130_v41  ;;  %v5132_v58 = vmax.f32 %v4753_v40, 0.0  ;;  %v4551_v59 = vadd.f32 %v12996_v60, %v11811_v22  ;;  %v5882_v21 = vadd.f32 %v12886_v37, %v5509_v14  ;;  %v4772_v47 = vpop.f32.mrf.mxu1 }
 0x49f   : > { %v13131_v44 = vmul.f32 %v11819_v54, %v5131_v61  ;;  %5616 = vadd.xlane.f32.xlu1 %v5615_v23  ;;  %v4755_v31 = vadd.f32 %v13004_v24, %v11811_v22  ;;  %v4553_v18 = vadd.f32 %v13009_v63, %v11845_v0  ;;  %v4757_v60 = vadd.f32 %v13022_v46, %v11845_v0 }
 0x4a0   : > { %v13138_v49 = vmul.f32 %v11851_v39, %v5132_v58  ;;  %v5051_v5 = vmax.f32 %v4551_v59, 0.0  ;;  %v5618_v52 = vadd.f32 %v5318_v13, %v5317_v8  ;;  %6011 = vst.msk [vmem:[%s12920_s30 + $0x40] sm:$0xff] %vm6002_vm0, %v5882_v21  ;;  %v4555_v40 = vadd.f32 %v13038_v2, %v11811_v22  ;;  %v4566_v8 = vpop.f32.mrf.mxu0  ;;  %v5512_v14 = vpop.xlane.xlu0 %5511 }
 0x4a1   : > { %v5133_v7 = vmax.f32 %v4755_v31, 0.0  ;;  %v5052_v41 = vmax.f32 %v4553_v18, 0.0  ;;  %v4761_v24 = vadd.f32 %v13030_v55, %v11811_v22  ;;  %v5134_v61 = vmax.f32 %v4757_v60, 0.0  ;;  %v4774_v59 = vpop.f32.mrf.mxu1 }
 0x4a2   : > { %v5319_v63 = vmul.f32 %v11819_v54, %v5051_v5  ;;  %5619 = vadd.xlane.f32.xlu0 %v5618_v52  ;;  %v4557_v23 = vadd.f32 %v13065_v19, %v11845_v0  ;;  %v4763_v46 = vadd.f32 %v13057_v51, %v11845_v0  ;;  %v5053_v58 = vmax.f32 %v4555_v40, 0.0 }
 0x4a3   : > { %v13154_v13 = vmul.f32 %v11819_v54, %v5133_v7  ;;  %v5320_v2 = vmul.f32 %v11851_v39, %v5052_v41  ;;  %v5135_v55 = vmax.f32 %v4761_v24, 0.0  ;;  %v5883_v21 = vadd.f32 %v12886_v37, %v5512_v14 }
 0x4a4   : > { %v13159_v31 = vmul.f32 %v11851_v39, %v5134_v61  ;;  %v5054_v19 = vmax.f32 %v4557_v23, 0.0  ;;  %v5136_v18 = vmax.f32 %v4763_v46, 0.0  ;;  %v5321_v51 = vmul.f32 %v11819_v54, %v5053_v58  ;;  %v4570_v61 = vpop.f32.mrf.mxu0  ;;  %v4776_v58 = vpop.f32.mrf.mxu1 }
 0x4a5   : > { %v13163_v5 = vmul.f32 %v11819_v54, %v5135_v55  ;;  %v4561_v60 = vadd.f32 %v13088_v3, %v11811_v22  ;;  %v4765_v52 = vadd.f32 %v13084_v9, %v11811_v22  ;;  %6012 = vst.msk [vmem:[%s12920_s30 + $0x48] sm:$0xff] %vm6002_vm0, %v5883_v21  ;;  %v4563_v40 = vadd.f32 %v13105_v38, %v11845_v0 }
 0x4a6   : > { %v5322_v7 = vmul.f32 %v11851_v39, %v5054_v19  ;;  %v13173_v41 = vmul.f32 %v11851_v39, %v5136_v18  ;;  %v4767_v24 = vadd.f32 %v4766_v6, %v11845_v0  ;;  %v5621_v14 = vadd.f32 %v5320_v2, %v5319_v63  ;;  %v4572_v18 = vpop.f32.mrf.mxu0  ;;  %v5515_v63 = vpop.xlane.xlu1 %5514 }
 0x4a7   : > { %v5055_v23 = vmax.f32 %v4561_v60, 0.0  ;;  %v5137_v46 = vmax.f32 %v4765_v52, 0.0  ;;  %v4565_v3 = vadd.f32 %v4564_v36, %v11811_v22  ;;  %v5056_v9 = vmax.f32 %v4563_v40, 0.0 }
 0x4a8   : > { %16059 = vst [vmem:[#allocation31_spill] sm:$0xff] %v13173_v41  ;;  %v5138_v55 = vmax.f32 %v4767_v24, 0.0  ;;  %v4771_v21 = vadd.f32 %v4770_v34, %v11811_v22  ;;  %v4567_v19 = vadd.f32 %v4566_v8, %v11845_v0  ;;  %5622 = vadd.xlane.f32.xlu1 %v5621_v14  ;;  %v4773_v60 = vadd.f32 %v4772_v47, %v11845_v0  ;;  %v4574_v8 = vpop.f32.mrf.mxu0  ;;  %v4780_v14 = vpop.f32.mrf.mxu1 }
 0x4a9   : > { %v5323_v41 = vmul.f32 %v11819_v54, %v5055_v23  ;;  %v13183_v38 = vmul.f32 %v11819_v54, %v5137_v46  ;;  %v5057_v6 = vmax.f32 %v4565_v3, 0.0  ;;  %v5324_v36 = vmul.f32 %v11851_v39, %v5056_v9 }
 0x4aa   : > { %v13188_v2 = vmul.f32 %v11851_v39, %v5138_v55  ;;  %v5139_v34 = vmax.f32 %v4771_v21, 0.0  ;;  %v5058_v52 = vmax.f32 %v4567_v19, 0.0  ;;  %v5884_v40 = vadd.f32 %v12886_v37, %v5515_v63 }
 0x4ab   : > { %v5325_v24 = vmul.f32 %v11819_v54, %v5057_v6  ;;  %v5140_v23 = vmax.f32 %v4773_v60, 0.0  ;;  %v5624_v46 = vadd.f32 %v5322_v7, %v5321_v51  ;;  %v4571_v9 = vadd.f32 %v4570_v61, %v11811_v22  ;;  %v4782_v6 = vpop.f32.mrf.mxu1  ;;  %v5518_v60 = vpop.xlane.xlu0 %5517 }
 0x4ac   : > { %16060 = vst [vmem:[#allocation75_spill] sm:$0xff] %v13188_v2  ;;  %v13193_v3 = vmul.f32 %v11819_v54, %v5139_v34  ;;  %v5326_v47 = vmul.f32 %v11851_v39, %v5058_v52  ;;  %v4775_v55 = vadd.f32 %v4774_v59, %v11811_v22  ;;  %v4576_v2 = vpop.f32.mrf.mxu0  ;;  %6013 = vst.msk [vmem:[%s12920_s30 + $0x50] sm:$0xff] %vm6002_vm0, %v5884_v40 }
 0x4ad   : > { %v13201_v21 = vmul.f32 %v11851_v39, %v5140_v23  ;;  %5625 = vadd.xlane.f32.xlu0 %v5624_v46  ;;  %v4573_v19 = vadd.f32 %v4572_v18, %v11845_v0  ;;  %v4777_v51 = vadd.f32 %v4776_v58, %v11845_v0  ;;  %v5627_v7 = vadd.f32 %v5324_v36, %v5323_v41  ;;  %v4784_v18 = vpop.f32.mrf.mxu1 }
 0x4ae   : > { %v5059_v63 = vmax.f32 %v4571_v9, 0.0  ;;  %v5141_v34 = vmax.f32 %v4775_v55, 0.0  ;;  %v4575_v61 = vadd.f32 %v4574_v8, %v11811_v22  ;;  %v4781_v59 = vadd.f32 %v4780_v14, %v11811_v22 }
 0x4af   : > { %v5885_v52 = vadd.f32 %v12886_v37, %v5518_v60  ;;  %v5060_v40 = vmax.f32 %v4573_v19, 0.0  ;;  %v5142_v23 = vmax.f32 %v4777_v51, 0.0  ;;  %5628 = vadd.xlane.f32.xlu1 %v5627_v7  ;;  %v4577_v46 = vadd.f32 %v4576_v2, %v11845_v0  ;;  %v4786_v51 = vpop.f32.mrf.mxu1 }
 0x4b0   : > { %v5327_v58 = vmul.f32 %v11819_v54, %v5059_v63  ;;  %v13211_v41 = vmul.f32 %v11819_v54, %v5141_v34  ;;  %v5061_v36 = vmax.f32 %v4575_v61, 0.0  ;;  %v5143_v9 = vmax.f32 %v4781_v59, 0.0  ;;  %v5521_v34 = vpop.xlane.xlu1 %5520 }
 0x4b1   : > { %6014 = vst.msk [vmem:[%s12920_s30 + $0x58] sm:$0xff] %vm6002_vm0, %v5885_v52  ;;  %v5328_v8 = vmul.f32 %v11851_v39, %v5060_v40  ;;  %v13217_v14 = vmul.f32 %v11851_v39, %v5142_v23  ;;  %v5062_v55 = vmax.f32 %v4577_v46, 0.0  ;;  %v4783_v19 = vadd.f32 %v4782_v6, %v11845_v0  ;;  %v4580_v52 = vpop.f32.mrf.mxu0 }
 0x4b2   : > { %v5329_v2 = vmul.f32 %v11819_v54, %v5061_v36  ;;  %v13222_v7 = vmul.f32 %v11819_v54, %v5143_v9  ;;  %v5630_v60 = vadd.f32 %v5326_v47, %v5325_v24  ;;  %v4785_v63 = vadd.f32 %v4784_v18, %v11811_v22  ;;  %v16063_v9 = vld [vmem:[#allocation9_spill] sm:$0xff] }
 0x4b3   : > { %16061 = vst [vmem:[#allocation24_spill] sm:$0xff] %v13217_v14  ;;  %v5330_v61 = vmul.f32 %v11851_v39, %v5062_v55  ;;  %v5144_v59 = vmax.f32 %v4783_v19, 0.0  ;;  %v4787_v40 = vadd.f32 %v4786_v51, %v11845_v0  ;;  %v5633_v23 = vadd.f32 %v5328_v8, %v5327_v58  ;;  %v4582_v18 = vpop.f32.mrf.mxu0  ;;  %v16065_v14 = vld [vmem:[#allocation20_spill] sm:$0xff]  ;;  %v16066_v51 = vld [vmem:[#allocation71_spill] sm:$0xff]  ;;  %v5524_v8 = vpop.xlane.xlu0 %5523 }
 0x4b4   : > { %16062 = vst [vmem:[#allocation29_spill] sm:$0xff] %v13222_v7  ;;  %v5886_v6 = vadd.f32 %v12886_v37, %v5521_v34  ;;  %5631 = vadd.xlane.f32.xlu0 %v5630_v60  ;;  %v4581_v46 = vadd.f32 %v4580_v52, %v11811_v22  ;;  %v5145_v36 = vmax.f32 %v4785_v63, 0.0  ;;  %v16064_v7 = vld [vmem:[#allocation13_spill] sm:$0xff]  ;;  %v13238_v58 = vadd.f32 %v16066_v51, %v16065_v14  ;;  %v16067_v34 = vld [vmem:[#allocation18_spill] sm:$0xff]  ;;  %v16068_v52 = vld [vmem:[#allocation23_spill] sm:$0xff] }
 0x4b5   : > { %v13231_v24 = vadd.f32 %v16064_v7, %v16063_v9  ;;  %v13234_v47 = vmul.f32 %v11851_v39, %v5144_v59  ;;  %v5146_v55 = vmax.f32 %v4787_v40, 0.0  ;;  %5634 = vadd.xlane.f32.xlu1 %v5633_v23  ;;  %v5636_v19 = vadd.f32 %v5330_v61, %v5329_v2  ;;  %v4584_v14 = vpop.f32.mrf.mxu0  ;;  %v16069_v40 = vld [vmem:[#allocation22_spill] sm:$0xff] }
 0x4b6   : > { %6015 = vst.msk [vmem:[%s12920_s30 + $0x60] sm:$0xff] %vm6002_vm0, %v5886_v6  ;;  %v5063_v60 = vmax.f32 %v4581_v46, 0.0  ;;  %v13243_v63 = vmul.f32 %v11819_v54, %v5145_v36  ;;  %v4583_v7 = vadd.f32 %v4582_v18, %v11845_v0  ;;  %v13248_v59 = vadd.f32 %v16067_v34, %v12606_v15  ;;  %v16070_v6 = vld [vmem:[#allocation15_spill] sm:$0xff]  ;;  %v4790_v18 = vpop.f32.mrf.mxu1  ;;  %v16072_v51 = vld [vmem:[#allocation70_spill] sm:$0xff] }
 0x4b7   : > { %v5887_v2 = vadd.f32 %v12886_v37, %v5524_v8  ;;  %v13252_v61 = vmul.f32 %v11851_v39, %v5146_v55  ;;  %v13256_v23 = vadd.f32 %v16069_v40, %v16068_v52  ;;  %v13260_v46 = vadd.f32 %v16070_v6, %v12663_v4  ;;  %v16073_v8 = vld [vmem:[#allocation25_spill] sm:$0xff]  ;;  %v4586_v52 = vpop.f32.mrf.mxu0  ;;  %v16075_v40 = vld [vmem:[#allocation146_spill] sm:$0xff]  ;;  %v16079_v6 = vld [vmem:[#allocation27_spill] sm:$0xff] }
 0x4b8   : > { %v5331_v36 = vmul.f32 %v11819_v54, %v5063_v60  ;;  %v5064_v9 = vmax.f32 %v4583_v7, 0.0  ;;  %v4585_v15 = vadd.f32 %v4584_v14, %v11811_v22  ;;  %5637 = vadd.xlane.f32.xlu0 %v5636_v19  ;;  %v13266_v55 = vadd.f32 %v16073_v8, %v16072_v51  ;;  %v16076_v60 = vld [vmem:[#allocation10_spill] sm:$0xff]  ;;  %v16078_v14 = vld [vmem:[#allocation11_spill] sm:$0xff]  ;;  %v4792_v8 = vpop.f32.mrf.mxu1 }
 0x4b9   : > { %16071 = vst [vmem:[#allocation147_spill] sm:$0xff] %v13260_v46  ;;  %6016 = vst.msk [vmem:[%s12920_s30 + $0x68] sm:$0xff] %vm6002_vm0, %v5887_v2  ;;  %v4791_v34 = vadd.f32 %v4790_v18, %v11811_v22  ;;  %v13273_v4 = vadd.f32 %v12743_v48, %v12721_v56  ;;  %v13277_v7 = vadd.f32 %v16076_v60, %v16075_v40  ;;  %v5527_v46 = vpop.xlane.xlu1 %5526 }
 0x4ba   : > { %16074 = vst [vmem:[#allocation28_spill] sm:$0xff] %v13266_v55  ;;  %v13281_v19 = vadd.f32 %v16079_v6, %v16078_v14  ;;  %v5332_v51 = vmul.f32 %v11851_v39, %v5064_v9  ;;  %v5065_v2 = vmax.f32 %v4585_v15, 0.0  ;;  %v4587_v18 = vadd.f32 %v4586_v52, %v11845_v0  ;;  %v16081_v55 = vld [vmem:[#allocation143_spill] sm:$0xff]  ;;  %v5530_v6 = vpop.xlane.xlu0 %5529  ;;  %v4794_v52 = vpop.f32.mrf.mxu1 }
 0x4bb   : > { %16077 = vst [vmem:[#allocation33_spill] sm:$0xff] %v13277_v7  ;;  %v13287_v56 = vadd.f32 %v12823_v27, %v16081_v55  ;;  %v5888_v48 = vadd.f32 %v12886_v37, %v5527_v46  ;;  %v5147_v40 = vmax.f32 %v4791_v34, 0.0  ;;  %v4793_v60 = vadd.f32 %v4792_v8, %v11845_v0  ;;  %v16082_v7 = vld [vmem:[#allocation295_spill] sm:$0xff] }
 0x4bc   : > { %16080 = vst [vmem:[#allocation149_spill] sm:$0xff] %v13281_v19  ;;  %v13293_v14 = vadd.f32 %v12856_v12, %v12837_v20  ;;  %v5333_v9 = vmul.f32 %v11819_v54, %v5065_v2  ;;  %v5066_v15 = vmax.f32 %v4587_v18, 0.0  ;;  %v5639_v19 = vadd.f32 %v5332_v51, %v5331_v36  ;;  %v4796_v2 = vpop.f32.mrf.mxu1  ;;  %v16083_v18 = vld [vmem:[#allocation26_spill] sm:$0xff] }
 0x4bd   : > { %v13298_v27 = vadd.f32 %v16082_v7, %v12868_v62  ;;  %6017 = vst.msk [vmem:[%s12920_s30 + $0x70] sm:$0xff] %vm6002_vm0, %v5888_v48  ;;  %v5889_v46 = vadd.f32 %v12886_v37, %v5530_v6  ;;  %v5415_v55 = vmul.f32 %v11819_v54, %v5147_v40  ;;  %v5148_v34 = vmax.f32 %v4793_v60, 0.0  ;;  %v16084_v6 = vld [vmem:[#allocation31_spill] sm:$0xff] }
 0x4be   : > { %v4795_v20 = vadd.f32 %v4794_v52, %v11811_v22  ;;  %v5334_v12 = vmul.f32 %v11851_v39, %v5066_v15  ;;  %5640 = vadd.xlane.f32.xlu1 %v5639_v19  ;;  %v13308_v36 = vadd.f32 %v12917_v10, %v16083_v18  ;;  %v13312_v62 = vadd.f32 %v12945_v29, %v12931_v53  ;;  %v4590_v40 = vpop.f32.mrf.mxu0  ;;  %v16087_v52 = vld [vmem:[#allocation29_spill] sm:$0xff] }
 0x4bf   : > { %v13316_v7 = vadd.f32 %v12972_v35, %v12964_v16  ;;  %6018 = vst.msk [vmem:[%s12920_s30 + $0x78] sm:$0xff] %vm6002_vm0, %v5889_v46  ;;  %v5416_v51 = vmul.f32 %v11851_v39, %v5148_v34  ;;  %v4797_v48 = vadd.f32 %v4796_v2, %v11845_v0  ;;  %v13324_v19 = vadd.f32 %v12999_v32, %v12986_v30  ;;  %v5533_v35 = vpop.xlane.xlu1 %5532 }
 0x4c0   : > { %v5149_v8 = vmax.f32 %v4795_v20, 0.0  ;;  %v5642_v10 = vadd.f32 %v5334_v12, %v5333_v9  ;;  %v13328_v53 = vadd.f32 %v13026_v17, %v13012_v25  ;;  %v13332_v29 = vadd.f32 %v13045_v57, %v13041_v33  ;;  %v5536_v33 = vpop.xlane.xlu0 %5535 }
 0x4c1   : > { %v13336_v16 = vadd.f32 %v13072_v26, %v13060_v50  ;;  %v5150_v30 = vmax.f32 %v4797_v48, 0.0  ;;  %v13341_v32 = vadd.f32 %v13091_v45, %v13080_v43  ;;  %v13345_v25 = vadd.f32 %v13115_v11, %v13097_v42  ;;  %v4592_v45 = vpop.f32.mrf.mxu0 }
 0x4c2   : > { %v5417_v60 = vmul.f32 %v11819_v54, %v5149_v8  ;;  %v5890_v17 = vadd.f32 %v12886_v37, %v5533_v35  ;;  %v4591_v57 = vadd.f32 %v4590_v40, %v11811_v22  ;;  %5643 = vadd.xlane.f32.xlu0 %v5642_v10  ;;  %v13351_v50 = vadd.f32 %v13125_v28, %v13121_v1 }
 0x4c3   : > { %v13355_v26 = vadd.f32 %v13138_v49, %v13131_v44  ;;  %v5891_v43 = vadd.f32 %v12886_v37, %v5536_v33  ;;  %v5418_v42 = vmul.f32 %v11851_v39, %v5150_v30  ;;  %v13361_v11 = vadd.f32 %v13159_v31, %v13154_v13  ;;  %v16085_v44 = vld [vmem:[#allocation75_spill] sm:$0xff]  ;;  %v4594_v13 = vpop.f32.mrf.mxu0  ;;  %v16086_v31 = vld [vmem:[#allocation24_spill] sm:$0xff]  ;;  %v13395_v20 = vpop.f32.mrf.mxu1 }
 0x4c4   : > { %v13365_v9 = vadd.f32 %v16084_v6, %v13163_v5  ;;  %6019 = vst.msk [vmem:[%s12920_s30 + $0x80] sm:$0xff] %vm6002_vm0, %v5890_v17  ;;  %v5067_v1 = vmax.f32 %v4591_v57, 0.0  ;;  %v4593_v28 = vadd.f32 %v4592_v45, %v11845_v0  ;;  %v13372_v49 = vadd.f32 %v16085_v44, %v13183_v38 }
 0x4c5   : > { %v13376_v15 = vadd.f32 %v13201_v21, %v13193_v3  ;;  %6020 = vst.msk [vmem:[%s12920_s30 + $0x88] sm:$0xff] %vm6002_vm0, %v5891_v43  ;;  %v13382_v5 = vadd.f32 %v16086_v31, %v13211_v41  ;;  %v13386_v46 = vadd.f32 %v13234_v47, %v16087_v52  ;;  %v13390_v34 = vadd.f32 %v13252_v61, %v13243_v63  ;;  %v5539_v41 = vpop.xlane.xlu1 %5538  ;;  %v4596_v47 = vpop.f32.mrf.mxu0 }
 0x4c6   : > { %v13392_v38 = vadd.f32 %v5416_v51, %v5415_v55  ;;  %v5068_v3 = vmax.f32 %v4593_v28, 0.0  ;;  %v4595_v21 = vadd.f32 %v4594_v13, %v11811_v22  ;;  %v13397_v12 = vadd.f32 %v5418_v42, %v5417_v60  ;;  %v5542_v8 = vpop.xlane.xlu0 %5541  ;;  %v13403_v51 = vpop.f32.mrf.mxu1 }
 0x4c7   : > { %v5335_v2 = vmul.f32 %v11819_v54, %v5067_v1  ;;  %v5892_v18 = vadd.f32 %v12886_v37, %v5539_v41  ;;  %v4597_v55 = vadd.f32 %v4596_v47, %v11845_v0  ;;  %v5893_v48 = vadd.f32 %v12886_v37, %v5542_v8 }
 0x4c8   : > { %v5336_v63 = vmul.f32 %v11851_v39, %v5068_v3  ;;  %v5069_v61 = vmax.f32 %v4595_v21, 0.0  ;;  %v13412_v30 = vpop.f32.mrf.mxu1 }
 0x4c9   : > { %6021 = vst.msk [vmem:[%s12920_s30 + $0x90] sm:$0xff] %vm6002_vm0, %v5892_v18  ;;  %v5070_v10 = vmax.f32 %v4597_v55, 0.0  ;;  %6022 = vst.msk [vmem:[%s12920_s30 + $0x98] sm:$0xff] %vm6002_vm0, %v5893_v48 }
 0x4ca   : > { %v5645_v35 = vadd.f32 %v5336_v63, %v5335_v2  ;;  %v5337_v40 = vmul.f32 %v11819_v54, %v5069_v61  ;;  %v5545_v17 = vpop.xlane.xlu1 %5544  ;;  %v4600_v33 = vpop.f32.mrf.mxu0 }
 0x4cb   : > { %v5338_v60 = vmul.f32 %v11851_v39, %v5070_v10  ;;  %v5894_v57 = vadd.f32 %v12886_v37, %v5545_v17  ;;  %v4601_v43 = vadd.f32 %v4600_v33, %v11811_v22  ;;  %v5548_v45 = vpop.xlane.xlu0 %5547  ;;  %v13420_v13 = vpop.f32.mrf.mxu1 }
 0x4cc   : > { %5646 = vadd.xlane.f32.xlu1 %v5645_v35  ;;  %v4602_v6 = vpop.f32.mrf.mxu0  ;;  %v5895_v1 = vadd.f32 %v12886_v37, %v5548_v45 }
 0x4cd   : > { %v5648_v42 = vadd.f32 %v5338_v60, %v5337_v40  ;;  %6023 = vst.msk [vmem:[%s12920_s30 + $0xa0] sm:$0xff] %vm6002_vm0, %v5894_v57  ;;  %v5071_v28 = vmax.f32 %v4601_v43, 0.0  ;;  %v4603_v44 = vadd.f32 %v4602_v6, %v11845_v0 }
 0x4ce   : > { %v4604_v31 = vpop.f32.mrf.mxu0  ;;  %6024 = vst.msk [vmem:[%s12920_s30 + $0xa8] sm:$0xff] %vm6002_vm0, %v5895_v1 }
 0x4cf   : > { %5649 = vadd.xlane.f32.xlu0 %v5648_v42  ;;  %v5072_v52 = vmax.f32 %v4603_v44, 0.0  ;;  %v4605_v3 = vadd.f32 %v4604_v31, %v11811_v22  ;;  %v5339_v21 = vmul.f32 %v11819_v54, %v5071_v28 }
 0x4d0   : > { %v4606_v41 = vpop.f32.mrf.mxu0 }
 0x4d1   : > { %v5551_v2 = vpop.xlane.xlu1 %5550  ;;  %v5340_v47 = vmul.f32 %v11851_v39, %v5072_v52  ;;  %v5073_v18 = vmax.f32 %v4605_v3, 0.0  ;;  %v4607_v61 = vadd.f32 %v4606_v41, %v11845_v0 }
 0x4d2   : > { %v13427_v63 = vpop.f32.mrf.mxu1  ;;  %v5896_v8 = vadd.f32 %v12886_v37, %v5551_v2 }
 0x4d3   : > { %v5074_v55 = vmax.f32 %v4607_v61, 0.0  ;;  %v5651_v10 = vadd.f32 %v5340_v47, %v5339_v21  ;;  %v5554_v35 = vpop.xlane.xlu0 %5553  ;;  %v5341_v60 = vmul.f32 %v11819_v54, %v5073_v18 }
 0x4d4   : > { %v13431_v48 = vpop.f32.mrf.mxu1  ;;  %6025 = vst.msk [vmem:[%s12920_s30 + $0xb0] sm:$0xff] %vm6002_vm0, %v5896_v8  ;;  %v5897_v40 = vadd.f32 %v12886_v37, %v5554_v35 }
 0x4d5   : > { %v5342_v17 = vmul.f32 %v11851_v39, %v5074_v55  ;;  %5652 = vadd.xlane.f32.xlu1 %v5651_v10 }
 0x4d6   : > { %v13438_v33 = vpop.f32.mrf.mxu1  ;;  %6026 = vst.msk [vmem:[%s12920_s30 + $0xb8] sm:$0xff] %vm6002_vm0, %v5897_v40 }
 0x4d7   : > { %v5654_v57 = vadd.f32 %v5342_v17, %v5341_v60 }
 0x4d8   : > { %v4610_v43 = vpop.f32.mrf.mxu0  ;;  %v13443_v42 = vpop.f32.mrf.mxu1 }
 0x4d9   : > { %v4611_v45 = vadd.f32 %v4610_v43, %v11811_v22  ;;  %5655 = vadd.xlane.f32.xlu0 %v5654_v57 }
 0x4da   : > { %v4612_v6 = vpop.f32.mrf.mxu0  ;;  %v5557_v1 = vpop.xlane.xlu1 %5556 }
 0x4db   : > { %v4613_v28 = vadd.f32 %v4612_v6, %v11845_v0  ;;  %v5898_v44 = vadd.f32 %v12886_v37, %v5557_v1  ;;  %v5075_v31 = vmax.f32 %v4611_v45, 0.0 }
 0x4dc   : > { %v4614_v52 = vpop.f32.mrf.mxu0 }
 0x4dd   : > { %v5076_v3 = vmax.f32 %v4613_v28, 0.0  ;;  %v4615_v21 = vadd.f32 %v4614_v52, %v11811_v22  ;;  %6027 = vst.msk [vmem:[%s12920_s30 + $0xc0] sm:$0xff] %vm6002_vm0, %v5898_v44  ;;  %v5343_v55 = vmul.f32 %v11819_v54, %v5075_v31 }
 0x4de   : > { %v5560_v41 = vpop.xlane.xlu0 %5559  ;;  %v13450_v2 = vpop.f32.mrf.mxu1 }
 0x4df   : > { %v4616_v47 = vpop.f32.mrf.mxu0  ;;  %v5899_v18 = vadd.f32 %v12886_v37, %v5560_v41  ;;  %v5344_v61 = vmul.f32 %v11851_v39, %v5076_v3  ;;  %v5077_v10 = vmax.f32 %v4615_v21, 0.0 }
 0x4e0   : > { %v4617_v8 = vadd.f32 %v4616_v47, %v11845_v0  ;;  %v13456_v35 = vpop.f32.mrf.mxu1 }
 0x4e1   : > { %6028 = vst.msk [vmem:[%s12920_s30 + $0xc8] sm:$0xff] %vm6002_vm0, %v5899_v18  ;;  %v5657_v17 = vadd.f32 %v5344_v61, %v5343_v55  ;;  %v5345_v45 = vmul.f32 %v11819_v54, %v5077_v10 }
 0x4e2   : > { %v5078_v40 = vmax.f32 %v4617_v8, 0.0  ;;  %v13460_v60 = vpop.f32.mrf.mxu1 }
 0x4e3   : > { %v5563_v57 = vpop.xlane.xlu1 %5562  ;;  %v4620_v6 = vpop.f32.mrf.mxu0  ;;  %5658 = vadd.xlane.f32.xlu1 %v5657_v17 }
 0x4e4   : > { %v5346_v43 = vmul.f32 %v11851_v39, %v5078_v40  ;;  %v13464_v1 = vpop.f32.mrf.mxu1  ;;  %v5900_v28 = vadd.f32 %v12886_v37, %v5563_v57  ;;  %v4621_v44 = vadd.f32 %v4620_v6, %v11811_v22 }
 0x4e5   : > { %v4622_v52 = vpop.f32.mrf.mxu0 }
 0x4e6   : > { %v5566_v31 = vpop.xlane.xlu0 %5565  ;;  %v5660_v3 = vadd.f32 %v5346_v43, %v5345_v45  ;;  %6029 = vst.msk [vmem:[%s12920_s30 + $0xd0] sm:$0xff] %vm6002_vm0, %v5900_v28  ;;  %v4623_v41 = vadd.f32 %v4622_v52, %v11845_v0  ;;  %v5079_v47 = vmax.f32 %v4621_v44, 0.0  ;;  %v13484_v28 = vld [vmem:[#allocation2] ss:$0 sm:$0xff] }
 0x4e7   : > { %v5901_v21 = vadd.f32 %v12886_v37, %v5566_v31  ;;  %v4624_v18 = vpop.f32.mrf.mxu0 }
 0x4e8   : > { %v13472_v61 = vpop.f32.mrf.mxu1  ;;  %5661 = vadd.xlane.f32.xlu0 %v5660_v3  ;;  %v5080_v8 = vmax.f32 %v4623_v41, 0.0  ;;  %v4625_v55 = vadd.f32 %v4624_v18, %v11811_v22  ;;  %v5347_v45 = vmul.f32 %v11819_v54, %v5079_v47 }
 0x4e9   : > { %6030 = vst.msk [vmem:[%s12920_s30 + $0xd8] sm:$0xff] %vm6002_vm0, %v5901_v21  ;;  %v4626_v10 = vpop.f32.mrf.mxu0 }
 0x4ea   : > { %v13477_v40 = vpop.f32.mrf.mxu1  ;;  %v5348_v17 = vmul.f32 %v11851_v39, %v5080_v8  ;;  %v5081_v57 = vmax.f32 %v4625_v55, 0.0  ;;  %v4627_v37 = vadd.f32 %v4626_v10, %v11845_v0 }
 0x4ec   : > { %v5569_v43 = vpop.xlane.xlu1 %5568  ;;  %v13482_v6 = vpop.f32.mrf.mxu1  ;;  %v5082_v31 = vmax.f32 %v4627_v37, 0.0  ;;  %v5663_v41 = vadd.f32 %v5348_v17, %v5347_v45  ;;  %v5349_v8 = vmul.f32 %v11819_v54, %v5081_v57 }
 0x4ed   : > { %16088 = vst [vmem:[#allocation74_spill] sm:$0xff] %v13482_v6  ;;  %v5902_v44 = vadd.f32 %v13484_v28, %v5569_v43  ;;  %v4630_v52 = vpop.f32.mrf.mxu0 }
 0x4ee   : > { %v4631_v3 = vadd.f32 %v4630_v52, %v11811_v22  ;;  %v13488_v21 = vpop.f32.mrf.mxu1  ;;  %v5350_v47 = vmul.f32 %v11851_v39, %v5082_v31  ;;  %5664 = vadd.xlane.f32.xlu1 %v5663_v41 }
 0x4ef   : > { %16089 = vst [vmem:[#allocation148_spill] sm:$0xff] %v13488_v21  ;;  %6031 = vst.msk [vmem:[%s12920_s30 + $0xe0] sm:$0xff] %vm6002_vm0, %v5902_v44  ;;  %v5572_v18 = vpop.xlane.xlu0 %5571  ;;  %v4632_v55 = vpop.f32.mrf.mxu0 }
 0x4f0   : > { %v5083_v10 = vmax.f32 %v4631_v3, 0.0  ;;  %v4633_v6 = vadd.f32 %v4632_v55, %v11845_v0  ;;  %v13495_v37 = vpop.f32.mrf.mxu1  ;;  %v5903_v43 = vadd.f32 %v13484_v28, %v5572_v18  ;;  %v5666_v21 = vadd.f32 %v5350_v47, %v5349_v8 }
 0x4f1   : > { %16090 = vst [vmem:[#allocation37_spill] sm:$0xff] %v13495_v37  ;;  %v4634_v52 = vpop.f32.mrf.mxu0 }
 0x4f2   : > { %v5084_v17 = vmax.f32 %v4633_v6, 0.0  ;;  %v4635_v45 = vadd.f32 %v4634_v52, %v11811_v22  ;;  %v13499_v44 = vpop.f32.mrf.mxu1  ;;  %6032 = vst.msk [vmem:[%s12920_s30 + $0xe8] sm:$0xff] %vm6002_vm0, %v5903_v43  ;;  %v5351_v57 = vmul.f32 %v11819_v54, %v5083_v10  ;;  %5667 = vadd.xlane.f32.xlu0 %v5666_v21 }
 0x4f3   : > { %v4636_v31 = vpop.f32.mrf.mxu0 }
 0x4f4   : > { %v5575_v3 = vpop.xlane.xlu1 %5574  ;;  %v5352_v41 = vmul.f32 %v11851_v39, %v5084_v17  ;;  %v5085_v55 = vmax.f32 %v4635_v45, 0.0  ;;  %v4637_v18 = vadd.f32 %v4636_v31, %v11845_v0  ;;  %v13506_v8 = vpop.f32.mrf.mxu1 }
 0x4f5   : > { %v5904_v6 = vadd.f32 %v13484_v28, %v5575_v3 }
 0x4f6   : > { %v5086_v47 = vmax.f32 %v4637_v18, 0.0  ;;  %v13509_v52 = vpop.f32.mrf.mxu1  ;;  %v5669_v37 = vadd.f32 %v5352_v41, %v5351_v57  ;;  %v5353_v43 = vmul.f32 %v11819_v54, %v5085_v55 }
 0x4f7   : > { %6033 = vst.msk [vmem:[%s12920_s30 + $0xf0] sm:$0xff] %vm6002_vm0, %v5904_v6  ;;  %v5578_v10 = vpop.xlane.xlu0 %5577 }
 0x4f8   : > { %v5905_v21 = vadd.f32 %v13484_v28, %v5578_v10  ;;  %v5354_v17 = vmul.f32 %v11851_v39, %v5086_v47  ;;  %5670 = vadd.xlane.f32.xlu1 %v5669_v37  ;;  %v13516_v45 = vpop.f32.mrf.mxu1 }
 0x4fa   : > { %6034 = vst.msk [vmem:[%s12920_s30 + $0xf8] sm:$0xff] %vm6002_vm0, %v5905_v21  ;;  %v13520_v31 = vpop.f32.mrf.mxu1  ;;  %v5672_v3 = vadd.f32 %v5354_v17, %v5353_v43  ;;  %v16091_v21 = vld [vmem:[#allocation147_spill] sm:$0xff] }
 0x4fc   : > { %5673 = vadd.xlane.f32.xlu0 %v5672_v3  ;;  %5676 = vadd.xlane.f32.xlu1 %v13231_v24  ;;  %v13523_v41 = vpop.f32.mrf.mxu1  ;;  %v16092_v3 = vld [vmem:[#allocation28_spill] sm:$0xff] }
 0x4fd   : > { %v5581_v57 = vpop.xlane.xlu1 %5580 }
 0x4fe   : > { %v5906_v18 = vadd.f32 %v13484_v28, %v5581_v57  ;;  %v13526_v55 = vpop.f32.mrf.mxu1 }
 0x4ff   : > { %v5584_v37 = vpop.xlane.xlu0 %5583 }
 0x500   : > { %6035 = vst.msk [vmem:[%s12920_s30 + $0x100] sm:$0xff] %vm6002_vm0, %v5906_v18  ;;  %v5907_v6 = vadd.f32 %v13484_v28, %v5584_v37  ;;  %5679 = vadd.xlane.f32.xlu0 %v13238_v58  ;;  %5682 = vadd.xlane.f32.xlu1 %v13248_v59  ;;  %v13533_v47 = vpop.f32.mrf.mxu1 }
 0x502   : > { %6036 = vst.msk [vmem:[%s12920_s30 + $0x108] sm:$0xff] %vm6002_vm0, %v5907_v6  ;;  %v13537_v24 = vpop.f32.mrf.mxu1  ;;  %v16093_v6 = vld [vmem:[#allocation33_spill] sm:$0xff] }
 0x504   : > { %5685 = vadd.xlane.f32.xlu0 %v13256_v23  ;;  %5688 = vadd.xlane.f32.xlu1 %v16091_v21  ;;  %v13541_v43 = vpop.f32.mrf.mxu1 }
 0x505   : > { %v5587_v10 = vpop.xlane.xlu1 %5586 }
 0x506   : > { %v5908_v17 = vadd.f32 %v13484_v28, %v5587_v10  ;;  %v13544_v58 = vpop.f32.mrf.mxu1  ;;  %v16094_v10 = vld [vmem:[#allocation149_spill] sm:$0xff] }
 0x508   : > { %6037 = vst.msk [vmem:[%s12920_s30 + $0x110] sm:$0xff] %vm6002_vm0, %v5908_v17  ;;  %5691 = vadd.xlane.f32.xlu0 %v16092_v3  ;;  %5694 = vadd.xlane.f32.xlu1 %v13273_v4  ;;  %v13550_v57 = vpop.f32.mrf.mxu1 }
 0x509   : > { %v5590_v59 = vpop.xlane.xlu0 %5589 }
 0x50a   : > { %v5909_v23 = vadd.f32 %v13484_v28, %v5590_v59  ;;  %v13553_v18 = vpop.f32.mrf.mxu1 }
 0x50c   : > { %6038 = vst.msk [vmem:[%s12920_s30 + $0x118] sm:$0xff] %vm6002_vm0, %v5909_v23  ;;  %5697 = vadd.xlane.f32.xlu0 %v16093_v6  ;;  %5700 = vadd.xlane.f32.xlu1 %v16094_v10  ;;  %v13559_v21 = vpop.f32.mrf.mxu1 }
 0x50d   : > { %v5593_v37 = vpop.xlane.xlu1 %5592 }
 0x50e   : > { %v5910_v17 = vadd.f32 %v13484_v28, %v5593_v37  ;;  %v13562_v4 = vpop.f32.mrf.mxu1 }
 0x510   : > { %6039 = vst.msk [vmem:[%s12920_s30 + $0x120] sm:$0xff] %vm6002_vm0, %v5910_v17  ;;  %5703 = vadd.xlane.f32.xlu0 %v13287_v56  ;;  %5706 = vadd.xlane.f32.xlu1 %v13293_v14  ;;  %v13568_v3 = vpop.f32.mrf.mxu1 }
 0x511   : > { %v5596_v59 = vpop.xlane.xlu0 %5595 }
 0x512   : > { %v5911_v23 = vadd.f32 %v13484_v28, %v5596_v59  ;;  %v13571_v6 = vpop.f32.mrf.mxu1 }
 0x514   : > { %6040 = vst.msk [vmem:[%s12920_s30 + $0x128] sm:$0xff] %vm6002_vm0, %v5911_v23  ;;  %v5599_v10 = vpop.xlane.xlu1 %5598  ;;  %5709 = vadd.xlane.f32.xlu0 %v13298_v27  ;;  %5712 = vadd.xlane.f32.xlu1 %v13308_v36  ;;  %v13578_v56 = vpop.f32.mrf.mxu1 }
 0x515   : > { %v5912_v37 = vadd.f32 %v13484_v28, %v5599_v10 }
 0x516   : > { %v13582_v17 = vpop.f32.mrf.mxu1 }
 0x517   : > { %6041 = vst.msk [vmem:[%s12920_s30 + $0x130] sm:$0xff] %vm6002_vm0, %v5912_v37  ;;  %v5602_v14 = vpop.xlane.xlu0 %5601 }
 0x518   : > { %v5913_v59 = vadd.f32 %v13484_v28, %v5602_v14  ;;  %5715 = vadd.xlane.f32.xlu0 %v13312_v62  ;;  %5718 = vadd.xlane.f32.xlu1 %v13316_v7  ;;  %v13587_v23 = vpop.f32.mrf.mxu1 }
 0x51a   : > { %6042 = vst.msk [vmem:[%s12920_s30 + $0x138] sm:$0xff] %vm6002_vm0, %v5913_v59  ;;  %v13591_v36 = vpop.f32.mrf.mxu1 }
 0x51c   : > { %v5605_v27 = vpop.xlane.xlu1 %5604  ;;  %5721 = vadd.xlane.f32.xlu0 %v13324_v19  ;;  %5724 = vadd.xlane.f32.xlu1 %v13328_v53  ;;  %v13596_v37 = vpop.f32.mrf.mxu1 }
 0x51d   : > { %v5914_v10 = vadd.f32 %v13484_v28, %v5605_v27 }
 0x51e   : > { %v13601_v14 = vpop.f32.mrf.mxu1 }
 0x51f   : > { %6043 = vst.msk [vmem:[%s12920_s30 + $0x140] sm:$0xff] %vm6002_vm0, %v5914_v10  ;;  %v5608_v62 = vpop.xlane.xlu0 %5607 }
 0x520   : > { %v5915_v7 = vadd.f32 %v13484_v28, %v5608_v62  ;;  %5727 = vadd.xlane.f32.xlu0 %v13332_v29  ;;  %5730 = vadd.xlane.f32.xlu1 %v13336_v16  ;;  %v13607_v59 = vpop.f32.mrf.mxu1 }
 0x522   : > { %6044 = vst.msk [vmem:[%s12920_s30 + $0x148] sm:$0xff] %vm6002_vm0, %v5915_v7  ;;  %v13610_v27 = vpop.f32.mrf.mxu1 }
 0x523   : > { %v5611_v19 = vpop.xlane.xlu1 %5610 }
 0x524   : > { %v5916_v53 = vadd.f32 %v13484_v28, %v5611_v19  ;;  %5733 = vadd.xlane.f32.xlu0 %v13341_v32  ;;  %5736 = vadd.xlane.f32.xlu1 %v13345_v25  ;;  %v13616_v62 = vpop.f32.mrf.mxu1 }
 0x525   : > { %16095 = vst [vmem:[#allocation35_spill] sm:$0xff] %v13616_v62 }
 0x526   : > { %6045 = vst.msk [vmem:[%s12920_s30 + $0x150] sm:$0xff] %vm6002_vm0, %v5916_v53  ;;  %v5614_v10 = vpop.xlane.xlu0 %5613  ;;  %v13619_v7 = vpop.f32.mrf.mxu1 }
 0x527   : > { %v5917_v29 = vadd.f32 %v13484_v28, %v5614_v10 }
 0x528   : > { %v5617_v16 = vpop.xlane.xlu1 %5616  ;;  %5739 = vadd.xlane.f32.xlu0 %v13351_v50  ;;  %5742 = vadd.xlane.f32.xlu1 %v13355_v26  ;;  %v13626_v53 = vpop.f32.mrf.mxu1  ;;  %v4803_v50 = vadd.f32 %v13403_v51, %v11845_v0 }
 0x529   : > { %6046 = vst.msk [vmem:[%s12920_s30 + $0x158] sm:$0xff] %vm6002_vm0, %v5917_v29  ;;  %v5918_v19 = vadd.f32 %v13484_v28, %v5617_v16  ;;  %v4807_v29 = vadd.f32 %v13420_v13, %v11845_v0 }
 0x52a   : > { %v13631_v62 = vpop.f32.mrf.mxu1  ;;  %v5152_v51 = vmax.f32 %v4803_v50, 0.0  ;;  %v4817_v50 = vadd.f32 %v13443_v42, %v11845_v0 }
 0x52b   : > { %6047 = vst.msk [vmem:[%s12920_s30 + $0x160] sm:$0xff] %vm6002_vm0, %v5918_v19  ;;  %v5620_v32 = vpop.xlane.xlu0 %5619  ;;  %v4801_v19 = vadd.f32 %v13395_v20, %v11811_v22  ;;  %v5154_v13 = vmax.f32 %v4807_v29, 0.0  ;;  %v4823_v29 = vadd.f32 %v13456_v35, %v11845_v0 }
 0x52c   : > { %v5919_v25 = vadd.f32 %v13484_v28, %v5620_v32  ;;  %5745 = vadd.xlane.f32.xlu0 %v13361_v11  ;;  %5748 = vadd.xlane.f32.xlu1 %v13365_v9  ;;  %v13637_v10 = vpop.f32.mrf.mxu1  ;;  %v4805_v32 = vadd.f32 %v13412_v30, %v11811_v22 }
 0x52d   : > { %16096 = vst [vmem:[#allocation30_spill] sm:$0xff] %v13637_v10  ;;  %v5151_v30 = vmax.f32 %v4801_v19, 0.0  ;;  %v5420_v19 = vmul.f32 %v11851_v39, %v5152_v51  ;;  %v5158_v51 = vmax.f32 %v4817_v50, 0.0 }
 0x52e   : > { %6048 = vst.msk [vmem:[%s12920_s30 + $0x168] sm:$0xff] %vm6002_vm0, %v5919_v25  ;;  %v13641_v26 = vpop.f32.mrf.mxu1  ;;  %v4813_v25 = vadd.f32 %v13431_v48, %v11845_v0  ;;  %v4815_v48 = vadd.f32 %v13438_v33, %v11811_v22  ;;  %v4821_v33 = vadd.f32 %v13450_v2, %v11811_v22 }
 0x52f   : > { %16097 = vst [vmem:[#allocation38_spill] sm:$0xff] %v13641_v26  ;;  %v5153_v26 = vmax.f32 %v4805_v32, 0.0  ;;  %v5419_v42 = vmul.f32 %v11819_v54, %v5151_v30  ;;  %v4833_v30 = vadd.f32 %v13477_v40, %v11845_v0 }
 0x530   : > { %5751 = vadd.xlane.f32.xlu0 %v13372_v49  ;;  %5754 = vadd.xlane.f32.xlu1 %v13376_v15  ;;  %v13651_v11 = vpop.f32.mrf.mxu1  ;;  %v4811_v49 = vadd.f32 %v13427_v63, %v11811_v22  ;;  %v5156_v63 = vmax.f32 %v4813_v25, 0.0  ;;  %v5160_v25 = vmax.f32 %v4823_v29, 0.0 }
 0x531   : > { %v5623_v16 = vpop.xlane.xlu1 %5622  ;;  %v5421_v32 = vmul.f32 %v11819_v54, %v5153_v26 }
 0x532   : > { %v5920_v9 = vadd.f32 %v13484_v28, %v5623_v16  ;;  %v13658_v20 = vpop.f32.mrf.mxu1  ;;  %v5155_v35 = vmax.f32 %v4811_v49, 0.0  ;;  %v5424_v2 = vmul.f32 %v11851_v39, %v5156_v63  ;;  %v5159_v49 = vmax.f32 %v4821_v33, 0.0  ;;  %v16098_v33 = vld [vmem:[#allocation148_spill] sm:$0xff] }
 0x533   : > { %v5428_v63 = vmul.f32 %v11851_v39, %v5160_v25 }
 0x534   : > { %6049 = vst.msk [vmem:[%s12920_s30 + $0x170] sm:$0xff] %vm6002_vm0, %v5920_v9  ;;  %5757 = vadd.xlane.f32.xlu0 %v13382_v5  ;;  %5760 = vadd.xlane.f32.xlu1 %v13386_v46  ;;  %v5422_v46 = vmul.f32 %v11851_v39, %v5154_v13  ;;  %v5157_v9 = vmax.f32 %v4815_v48, 0.0  ;;  %v4827_v13 = vadd.f32 %v13464_v1, %v11845_v0 }
 0x535   : > { %v5423_v1 = vmul.f32 %v11819_v54, %v5155_v35  ;;  %v5427_v35 = vmul.f32 %v11819_v54, %v5159_v49 }
 0x536   : > { %v5626_v10 = vpop.xlane.xlu0 %5625  ;;  %v5774_v48 = vadd.f32 %v5422_v46, %v5421_v32  ;;  %v5164_v46 = vmax.f32 %v4833_v30, 0.0 }
 0x537   : > { %v5921_v15 = vadd.f32 %v13484_v28, %v5626_v10  ;;  %v13678_v10 = vpop.f32.mrf.mxu1  ;;  %v5777_v32 = vadd.f32 %v5424_v2, %v5423_v1  ;;  %v5783_v49 = vadd.f32 %v5428_v63, %v5427_v35 }
 0x538   : > { %v5629_v16 = vpop.xlane.xlu1 %5628  ;;  %5763 = vadd.xlane.f32.xlu0 %v13390_v34  ;;  %5766 = vadd.xlane.f32.xlu1 %v13392_v38  ;;  %v4825_v34 = vadd.f32 %v13460_v60, %v11811_v22  ;;  %v5426_v60 = vmul.f32 %v11851_v39, %v5158_v51  ;;  %v16099_v51 = vld [vmem:[#allocation74_spill] sm:$0xff] }
 0x539   : > { %6050 = vst.msk [vmem:[%s12920_s30 + $0x178] sm:$0xff] %vm6002_vm0, %v5921_v15  ;;  %v5922_v5 = vadd.f32 %v13484_v28, %v5629_v16  ;;  %v5771_v15 = vadd.f32 %v5420_v19, %v5419_v42  ;;  %v13693_v38 = vpop.f32.mrf.mxu1  ;;  %v4831_v16 = vadd.f32 %v13472_v61, %v11811_v22  ;;  %v5425_v19 = vmul.f32 %v11819_v54, %v5157_v9 }
 0x53a   : > { %v4837_v42 = vadd.f32 %v16098_v33, %v11845_v0  ;;  %v4843_v61 = vadd.f32 %v13499_v44, %v11845_v0  ;;  %v5161_v9 = vmax.f32 %v4825_v34, 0.0  ;;  %v4835_v25 = vadd.f32 %v16099_v51, %v11811_v22 }
 0x53b   : > { %6051 = vst.msk [vmem:[%s12920_s30 + $0x180] sm:$0xff] %vm6002_vm0, %v5922_v5  ;;  %v5162_v5 = vmax.f32 %v4827_v13, 0.0  ;;  %v13715_v13 = vpop.f32.mrf.mxu1  ;;  %v4847_v44 = vadd.f32 %v13509_v52, %v11845_v0  ;;  %v5780_v34 = vadd.f32 %v5426_v60, %v5425_v19  ;;  %v4845_v52 = vadd.f32 %v13506_v8, %v11811_v22 }
 0x53c   : > { %5772 = vadd.xlane.f32.xlu1 %v5771_v15  ;;  %5769 = vadd.xlane.f32.xlu0 %v13397_v12  ;;  %v5163_v15 = vmax.f32 %v4831_v16, 0.0  ;;  %v5166_v1 = vmax.f32 %v4837_v42, 0.0  ;;  %v4853_v16 = vadd.f32 %v13520_v31, %v11845_v0  ;;  %v5429_v33 = vmul.f32 %v11819_v54, %v5161_v9 }
 0x53d   : > { %v5632_v26 = vpop.xlane.xlu0 %5631  ;;  %v5430_v2 = vmul.f32 %v11851_v39, %v5162_v5  ;;  %v13733_v63 = vpop.f32.mrf.mxu1  ;;  %v5170_v5 = vmax.f32 %v4847_v44, 0.0  ;;  %v4855_v42 = vadd.f32 %v13523_v41, %v11811_v22  ;;  %v4863_v8 = vadd.f32 %v13537_v24, %v11845_v0 }
 0x53e   : > { %v5923_v50 = vadd.f32 %v13484_v28, %v5632_v26  ;;  %v5635_v29 = vpop.xlane.xlu1 %5634  ;;  %v16100_v26 = vld [vmem:[#allocation37_spill] sm:$0xff]  ;;  %v5431_v19 = vmul.f32 %v11819_v54, %v5163_v15  ;;  %v5172_v9 = vmax.f32 %v4853_v16, 0.0  ;;  %v4861_v15 = vadd.f32 %v13533_v47, %v11811_v22 }
 0x53f   : > { %v5924_v40 = vadd.f32 %v13484_v28, %v5635_v29  ;;  %v5432_v29 = vmul.f32 %v11851_v39, %v5164_v46  ;;  %v4851_v46 = vadd.f32 %v13516_v45, %v11811_v22  ;;  %v13748_v41 = vpop.f32.mrf.mxu1  ;;  %v4867_v44 = vadd.f32 %v13544_v58, %v11845_v0 }
 0x540   : > { %6052 = vst.msk [vmem:[%s12920_s30 + $0x188] sm:$0xff] %vm6002_vm0, %v5923_v50  ;;  %v4841_v50 = vadd.f32 %v16100_v26, %v11811_v22  ;;  %5778 = vadd.xlane.f32.xlu1 %v5777_v32  ;;  %5775 = vadd.xlane.f32.xlu0 %v5774_v48  ;;  %v4857_v48 = vadd.f32 %v13526_v55, %v11845_v0 }
 0x541   : > { %6053 = vst.msk [vmem:[%s12920_s30 + $0x190] sm:$0xff] %vm6002_vm0, %v5924_v40  ;;  %v5638_v12 = vpop.xlane.xlu0 %5637  ;;  %v5168_v40 = vmax.f32 %v4843_v61, 0.0  ;;  %v5786_v55 = vadd.f32 %v5430_v2, %v5429_v33  ;;  %v5434_v32 = vmul.f32 %v11851_v39, %v5166_v1  ;;  %v5789_v51 = vadd.f32 %v5432_v29, %v5431_v19 }
 0x542   : > { %v5925_v30 = vadd.f32 %v13484_v28, %v5638_v12  ;;  %v5165_v12 = vmax.f32 %v4835_v25, 0.0  ;;  %v5167_v60 = vmax.f32 %v4841_v50, 0.0  ;;  %v5169_v25 = vmax.f32 %v4845_v52, 0.0 }
 0x543   : > { %v5436_v35 = vmul.f32 %v11851_v39, %v5168_v40  ;;  %v5438_v26 = vmul.f32 %v11851_v39, %v5170_v5  ;;  %v5171_v50 = vmax.f32 %v4851_v46, 0.0  ;;  %v4865_v47 = vadd.f32 %v13541_v43, %v11811_v22 }
 0x544   : > { %6054 = vst.msk [vmem:[%s12920_s30 + $0x198] sm:$0xff] %vm6002_vm0, %v5925_v30  ;;  %5784 = vadd.xlane.f32.xlu1 %v5783_v49  ;;  %5781 = vadd.xlane.f32.xlu0 %v5780_v34  ;;  %v5433_v45 = vmul.f32 %v11819_v54, %v5165_v12  ;;  %v5174_v30 = vmax.f32 %v4857_v48, 0.0  ;;  %v5435_v24 = vmul.f32 %v11819_v54, %v5167_v60  ;;  %v5173_v49 = vmax.f32 %v4855_v42, 0.0  ;;  %v13764_v48 = vpop.f32.mrf.mxu1 }
 0x545   : > { %v5176_v34 = vmax.f32 %v4863_v8, 0.0  ;;  %v5440_v1 = vmul.f32 %v11851_v39, %v5172_v9  ;;  %v4873_v40 = vadd.f32 %v13553_v18, %v11845_v0  ;;  %v5437_v58 = vmul.f32 %v11819_v54, %v5169_v25 }
 0x546   : > { %v5795_v16 = vadd.f32 %v5436_v35, %v5435_v24  ;;  %v5792_v33 = vadd.f32 %v5434_v32, %v5433_v45  ;;  %v5442_v12 = vmul.f32 %v11851_v39, %v5174_v30  ;;  %v5175_v52 = vmax.f32 %v4861_v15, 0.0  ;;  %v13778_v35 = vpop.f32.mrf.mxu1 }
 0x547   : > { %v5641_v31 = vpop.xlane.xlu1 %5640  ;;  %v5439_v43 = vmul.f32 %v11819_v54, %v5171_v50  ;;  %v5178_v19 = vmax.f32 %v4867_v44, 0.0  ;;  %v4871_v60 = vadd.f32 %v13550_v57, %v11811_v22  ;;  %v5441_v18 = vmul.f32 %v11819_v54, %v5173_v49 }
 0x548   : > { %v5926_v61 = vadd.f32 %v13484_v28, %v5641_v31  ;;  %5790 = vadd.xlane.f32.xlu1 %v5789_v51  ;;  %5787 = vadd.xlane.f32.xlu0 %v5786_v55  ;;  %v5444_v5 = vmul.f32 %v11851_v39, %v5176_v34  ;;  %v5177_v46 = vmax.f32 %v4865_v47, 0.0  ;;  %v5798_v31 = vadd.f32 %v5438_v26, %v5437_v58 }
 0x549   : > { %v5180_v42 = vmax.f32 %v4873_v40, 0.0  ;;  %v4877_v8 = vadd.f32 %v13562_v4, %v11845_v0  ;;  %v4883_v55 = vadd.f32 %v13571_v6, %v11845_v0  ;;  %v5443_v32 = vmul.f32 %v11819_v54, %v5175_v52 }
 0x54a   : > { %6055 = vst.msk [vmem:[%s12920_s30 + $0x1a0] sm:$0xff] %vm6002_vm0, %v5926_v61  ;;  %v5801_v61 = vadd.f32 %v5440_v1, %v5439_v43  ;;  %v5804_v57 = vadd.f32 %v5442_v12, %v5441_v18  ;;  %v5446_v9 = vmul.f32 %v11851_v39, %v5178_v19  ;;  %v5179_v51 = vmax.f32 %v4871_v60, 0.0 }
 0x54b   : > { %v5644_v2 = vpop.xlane.xlu0 %5643  ;;  %v4875_v45 = vadd.f32 %v13559_v21, %v11811_v22  ;;  %v4881_v25 = vadd.f32 %v13568_v3, %v11811_v22  ;;  %v5445_v4 = vmul.f32 %v11819_v54, %v5177_v46  ;;  %v4887_v6 = vadd.f32 %v13582_v17, %v11845_v0 }
 0x54c   : > { %v5927_v29 = vadd.f32 %v13484_v28, %v5644_v2  ;;  %5796 = vadd.xlane.f32.xlu1 %v5795_v16  ;;  %5793 = vadd.xlane.f32.xlu0 %v5792_v33  ;;  %v4893_v30 = vadd.f32 %v13591_v36, %v11845_v0  ;;  %v5807_v15 = vadd.f32 %v5444_v5, %v5443_v32  ;;  %v5182_v26 = vmax.f32 %v4877_v8, 0.0  ;;  %v13795_v2 = vpop.f32.mrf.mxu1 }
 0x54d   : > { %v5448_v24 = vmul.f32 %v11851_v39, %v5180_v42  ;;  %v5184_v50 = vmax.f32 %v4883_v55, 0.0  ;;  %v4885_v21 = vadd.f32 %v13578_v56, %v11811_v22  ;;  %v4891_v44 = vadd.f32 %v13587_v23, %v11811_v22 }
 0x54e   : > { %6056 = vst.msk [vmem:[%s12920_s30 + $0x1a8] sm:$0xff] %vm6002_vm0, %v5927_v29  ;;  %v5447_v49 = vmul.f32 %v11819_v54, %v5179_v51  ;;  %v5181_v36 = vmax.f32 %v4875_v45, 0.0  ;;  %v5183_v34 = vmax.f32 %v4881_v25, 0.0  ;;  %v5810_v47 = vadd.f32 %v5446_v9, %v5445_v4  ;;  %v13811_v19 = vpop.f32.mrf.mxu1  ;;  %v16101_v45 = vld [vmem:[#allocation35_spill] sm:$0xff] }
 0x54f   : > { %v5186_v29 = vmax.f32 %v4887_v6, 0.0  ;;  %v5188_v1 = vmax.f32 %v4893_v30, 0.0  ;;  %v4897_v56 = vadd.f32 %v13601_v14, %v11845_v0  ;;  %v4903_v40 = vadd.f32 %v13610_v27, %v11845_v0 }
 0x550   : > { %5802 = vadd.xlane.f32.xlu1 %v5801_v61  ;;  %5799 = vadd.xlane.f32.xlu0 %v5798_v31  ;;  %v5450_v23 = vmul.f32 %v11851_v39, %v5182_v26  ;;  %v5452_v16 = vmul.f32 %v11851_v39, %v5184_v50  ;;  %v5185_v33 = vmax.f32 %v4885_v21, 0.0  ;;  %v5813_v58 = vadd.f32 %v5448_v24, %v5447_v49  ;;  %v13826_v51 = vpop.f32.mrf.mxu1  ;;  %v16102_v26 = vld [vmem:[#allocation38_spill] sm:$0xff] }
 0x551   : > { %v5187_v52 = vmax.f32 %v4891_v44, 0.0  ;;  %v4895_v43 = vadd.f32 %v13596_v37, %v11811_v22  ;;  %v4901_v14 = vadd.f32 %v13607_v59, %v11811_v22  ;;  %v5449_v60 = vmul.f32 %v11819_v54, %v5181_v36 }
 0x552   : > { %v5451_v18 = vmul.f32 %v11819_v54, %v5183_v34  ;;  %v5454_v5 = vmul.f32 %v11851_v39, %v5186_v29  ;;  %v5456_v46 = vmul.f32 %v11851_v39, %v5188_v1  ;;  %v5190_v31 = vmax.f32 %v4897_v56, 0.0 }
 0x553   : > { %v5192_v42 = vmax.f32 %v4903_v40, 0.0  ;;  %v4907_v37 = vadd.f32 %v13619_v7, %v11845_v0  ;;  %v4913_v59 = vadd.f32 %v13631_v62, %v11845_v0  ;;  %v5816_v55 = vadd.f32 %v5450_v23, %v5449_v60 }
 0x554   : > { %5808 = vadd.xlane.f32.xlu1 %v5807_v15  ;;  %5805 = vadd.xlane.f32.xlu0 %v5804_v57  ;;  %v5819_v8 = vadd.f32 %v5452_v16, %v5451_v18  ;;  %v5453_v61 = vmul.f32 %v11819_v54, %v5185_v33  ;;  %v5455_v32 = vmul.f32 %v11819_v54, %v5187_v52  ;;  %v5189_v57 = vmax.f32 %v4895_v43, 0.0 }
 0x555   : > { %v5647_v3 = vpop.xlane.xlu1 %5646  ;;  %v5191_v9 = vmax.f32 %v4901_v14, 0.0  ;;  %v4905_v25 = vadd.f32 %v16101_v45, %v11811_v22  ;;  %v4911_v4 = vadd.f32 %v13626_v53, %v11811_v22  ;;  %v5458_v62 = vmul.f32 %v11851_v39, %v5190_v31 }
 0x556   : > { %v5928_v17 = vadd.f32 %v13484_v28, %v5647_v3  ;;  %v5460_v7 = vmul.f32 %v11851_v39, %v5192_v42  ;;  %v5825_v6 = vadd.f32 %v5456_v46, %v5455_v32  ;;  %v5822_v30 = vadd.f32 %v5454_v5, %v5453_v61 }
 0x557   : > { %v5194_v15 = vmax.f32 %v4907_v37, 0.0  ;;  %v5196_v24 = vmax.f32 %v4913_v59, 0.0  ;;  %v4917_v50 = vadd.f32 %v16102_v26, %v11845_v0  ;;  %v4923_v21 = vadd.f32 %v13658_v20, %v11845_v0 }
 0x558   : > { %6057 = vst.msk [vmem:[%s12920_s30 + $0x1b0] sm:$0xff] %vm6002_vm0, %v5928_v17  ;;  %v5650_v12 = vpop.xlane.xlu0 %5649  ;;  %5814 = vadd.xlane.f32.xlu1 %v5813_v58  ;;  %5811 = vadd.xlane.f32.xlu0 %v5810_v47  ;;  %v5457_v53 = vmul.f32 %v11819_v54, %v5189_v57  ;;  %v5459_v44 = vmul.f32 %v11819_v54, %v5191_v9  ;;  %v4950_v17 = vpop.f32.mrf.mxu1  ;;  %v5193_v36 = vmax.f32 %v4905_v25, 0.0  ;;  %v5195_v34 = vmax.f32 %v4911_v4, 0.0  ;;  %v16103_v47 = vld [vmem:[#allocation30_spill] sm:$0xff] }
 0x559   : > { %v5929_v27 = vadd.f32 %v13484_v28, %v5650_v12  ;;  %v4915_v29 = vadd.f32 %v16103_v47, %v11811_v22  ;;  %v4921_v1 = vadd.f32 %v13651_v11, %v11811_v22  ;;  %v4927_v20 = vadd.f32 %v13693_v38, %v11845_v0 }
 0x55a   : > { %v4933_v56 = vadd.f32 %v13733_v63, %v11845_v0  ;;  %v5831_v40 = vadd.f32 %v5460_v7, %v5459_v44  ;;  %v5828_v23 = vadd.f32 %v5458_v62, %v5457_v53  ;;  %v5462_v16 = vmul.f32 %v11851_v39, %v5194_v15  ;;  %v4952_v43 = vpop.f32.mrf.mxu1 }
 0x55b   : > { %6058 = vst.msk [vmem:[%s12920_s30 + $0x1b8] sm:$0xff] %vm6002_vm0, %v5929_v27  ;;  %v5464_v33 = vmul.f32 %v11851_v39, %v5196_v24  ;;  %v5198_v58 = vmax.f32 %v4917_v50, 0.0  ;;  %v5200_v12 = vmax.f32 %v4923_v21, 0.0  ;;  %v4925_v52 = vadd.f32 %v13678_v10, %v11811_v22 }
 0x55c   : > { %5820 = vadd.xlane.f32.xlu1 %v5819_v8  ;;  %5817 = vadd.xlane.f32.xlu0 %v5816_v55  ;;  %v4931_v38 = vadd.f32 %v13715_v13, %v11811_v22  ;;  %v5461_v14 = vmul.f32 %v11819_v54, %v5193_v36  ;;  %v5463_v27 = vmul.f32 %v11819_v54, %v5195_v34  ;;  %v5197_v60 = vmax.f32 %v4915_v29, 0.0 }
 0x55d   : > { %v5199_v18 = vmax.f32 %v4921_v1, 0.0  ;;  %v5202_v5 = vmax.f32 %v4927_v20, 0.0  ;;  %v5204_v46 = vmax.f32 %v4933_v56, 0.0  ;;  %v4937_v31 = vadd.f32 %v13764_v48, %v11845_v0  ;;  %v4954_v48 = vpop.f32.mrf.mxu1 }
 0x55e   : > { %v5653_v3 = vpop.xlane.xlu1 %5652  ;;  %v4943_v10 = vadd.f32 %v13795_v2, %v11845_v0  ;;  %v5466_v13 = vmul.f32 %v11851_v39, %v5198_v58  ;;  %v5468_v42 = vmul.f32 %v11851_v39, %v5200_v12  ;;  %v5837_v37 = vadd.f32 %v5464_v33, %v5463_v27 }
 0x55f   : > { %v5930_v49 = vadd.f32 %v13484_v28, %v5653_v3  ;;  %v5834_v59 = vadd.f32 %v5462_v16, %v5461_v14  ;;  %v5201_v8 = vmax.f32 %v4925_v52, 0.0  ;;  %v5203_v55 = vmax.f32 %v4931_v38, 0.0  ;;  %v4956_v26 = vpop.f32.mrf.mxu1 }
 0x560   : > { %5826 = vadd.xlane.f32.xlu1 %v5825_v6  ;;  %5823 = vadd.xlane.f32.xlu0 %v5822_v30  ;;  %v4935_v61 = vadd.f32 %v13748_v41, %v11811_v22  ;;  %v4941_v32 = vadd.f32 %v13778_v35, %v11811_v22  ;;  %v5465_v57 = vmul.f32 %v11819_v54, %v5197_v60  ;;  %v5206_v25 = vmax.f32 %v4937_v31, 0.0 }
 0x561   : > { %6059 = vst.msk [vmem:[%s12920_s30 + $0x1c0] sm:$0xff] %vm6002_vm0, %v5930_v49  ;;  %v5467_v2 = vmul.f32 %v11819_v54, %v5199_v18  ;;  %v5470_v9 = vmul.f32 %v11851_v39, %v5202_v5  ;;  %v5472_v45 = vmul.f32 %v11851_v39, %v5204_v46  ;;  %v5208_v4 = vmax.f32 %v4943_v10, 0.0 }
 0x562   : > { %v5656_v11 = vpop.xlane.xlu0 %5655  ;;  %v4947_v62 = vadd.f32 %v13826_v51, %v11845_v0  ;;  %v4953_v41 = vadd.f32 %v4952_v43, %v11845_v0  ;;  %v5840_v35 = vadd.f32 %v5466_v13, %v5465_v57  ;;  %v5469_v6 = vmul.f32 %v11819_v54, %v5201_v8 }
 0x563   : > { %v5931_v63 = vadd.f32 %v13484_v28, %v5656_v11  ;;  %v5843_v7 = vadd.f32 %v5468_v42, %v5467_v2  ;;  %v5471_v30 = vmul.f32 %v11819_v54, %v5203_v55  ;;  %v5205_v15 = vmax.f32 %v4935_v61, 0.0 }
 0x564   : > { %5832 = vadd.xlane.f32.xlu1 %v5831_v40  ;;  %5829 = vadd.xlane.f32.xlu0 %v5828_v23  ;;  %v5207_v24 = vmax.f32 %v4941_v32, 0.0  ;;  %v4945_v50 = vadd.f32 %v13811_v19, %v11811_v22  ;;  %v4951_v21 = vadd.f32 %v4950_v17, %v11811_v22  ;;  %v5474_v51 = vmul.f32 %v11851_v39, %v5206_v25 }
 0x565   : > { %6060 = vst.msk [vmem:[%s12920_s30 + $0x1c8] sm:$0xff] %vm6002_vm0, %v5931_v63  ;;  %v5476_v3 = vmul.f32 %v11851_v39, %v5208_v4  ;;  %v5849_v53 = vadd.f32 %v5472_v45, %v5471_v30  ;;  %v5846_v44 = vadd.f32 %v5470_v9, %v5469_v6  ;;  %v5210_v36 = vmax.f32 %v4947_v62, 0.0 }
 0x566   : > { %v5212_v34 = vmax.f32 %v4953_v41, 0.0  ;;  %v4957_v47 = vadd.f32 %v4956_v26, %v11845_v0  ;;  %v5473_v19 = vmul.f32 %v11819_v54, %v5205_v15  ;;  %v5475_v17 = vmul.f32 %v11819_v54, %v5207_v24 }
 0x567   : > { %v5209_v1 = vmax.f32 %v4945_v50, 0.0  ;;  %v5211_v20 = vmax.f32 %v4951_v21, 0.0  ;;  %v4955_v56 = vadd.f32 %v4954_v48, %v11811_v22  ;;  %v5478_v0 = vmul.f32 %v11851_v39, %v5210_v36 }
 0x568   : > { %5838 = vadd.xlane.f32.xlu1 %v5837_v37  ;;  %5835 = vadd.xlane.f32.xlu0 %v5834_v59  ;;  %v5855_v40 = vadd.f32 %v5476_v3, %v5475_v17  ;;  %v5852_v23 = vadd.f32 %v5474_v51, %v5473_v19  ;;  %v5480_v33 = vmul.f32 %v11851_v39, %v5212_v34  ;;  %v5214_v58 = vmax.f32 %v4957_v47, 0.0 }
 0x569   : > { %v5477_v11 = vmul.f32 %v11819_v54, %v5209_v1  ;;  %v5479_v22 = vmul.f32 %v11819_v54, %v5211_v20  ;;  %v5213_v52 = vmax.f32 %v4955_v56, 0.0 }
 0x56a   : > { %v5482_v38 = vmul.f32 %v11851_v39, %v5214_v58 }
 0x56b   : > { %v5861_v43 = vadd.f32 %v5480_v33, %v5479_v22  ;;  %v5858_v63 = vadd.f32 %v5478_v0, %v5477_v11  ;;  %v5481_v14 = vmul.f32 %v11819_v54, %v5213_v52 }
 0x56c   : > { %5844 = vadd.xlane.f32.xlu1 %v5843_v7  ;;  %5841 = vadd.xlane.f32.xlu0 %v5840_v35  ;;  %v5659_v49 = vpop.xlane.xlu1 %5658 }
 0x56d   : > { %v5932_v29 = vadd.f32 %v13484_v28, %v5659_v49  ;;  %v5864_v18 = vadd.f32 %v5482_v38, %v5481_v14 }
 0x56f   : > { %6061 = vst.msk [vmem:[%s12920_s30 + $0x1d0] sm:$0xff] %vm6002_vm0, %v5932_v29 }
 0x570   : > { %5850 = vadd.xlane.f32.xlu1 %v5849_v53  ;;  %5847 = vadd.xlane.f32.xlu0 %v5846_v44  ;;  %v13953_v53 = vld [vmem:[#allocation2] ss:$0 sm:$0xff] }
 0x571   : > { %v5662_v16 = vpop.xlane.xlu0 %5661 }
 0x572   : > { %v5933_v12 = vadd.f32 %v13484_v28, %v5662_v16 }
 0x574   : > { %5856 = vadd.xlane.f32.xlu1 %v5855_v40  ;;  %5853 = vadd.xlane.f32.xlu0 %v5852_v23  ;;  %6062 = vst.msk [vmem:[%s12920_s30 + $0x1d8] sm:$0xff] %vm6002_vm0, %v5933_v12 }
 0x577   : > { %v5665_v27 = vpop.xlane.xlu1 %5664 }
 0x578   : > { %5862 = vadd.xlane.f32.xlu1 %v5861_v43  ;;  %5859 = vadd.xlane.f32.xlu0 %v5858_v63  ;;  %v5934_v60 = vadd.f32 %v13484_v28, %v5665_v27 }
 0x57a   : > { %6063 = vst.msk [vmem:[%s12920_s30 + $0x1e0] sm:$0xff] %vm6002_vm0, %v5934_v60 }
 0x57b   : > { %v5668_v5 = vpop.xlane.xlu0 %5667 }
 0x57c   : > { %5865 = vadd.xlane.f32.xlu0 %v5864_v18  ;;  %v5935_v39 = vadd.f32 %v13484_v28, %v5668_v5 }
 0x57e   : > { %6064 = vst.msk [vmem:[%s12920_s30 + $0x1e8] sm:$0xff] %vm6002_vm0, %v5935_v39 }
 0x581   : > { %v5671_v46 = vpop.xlane.xlu1 %5670 }
 0x582   : > { %v5936_v54 = vadd.f32 %v13484_v28, %v5671_v46 }
 0x584   : > { %6065 = vst.msk [vmem:[%s12920_s30 + $0x1f0] sm:$0xff] %vm6002_vm0, %v5936_v54 }
 0x585   : > { %v5677_v31 = vpop.xlane.xlu1 %5676  ;;  %v5674_v10 = vpop.xlane.xlu0 %5673 }
 0x586   : > { %v5938_v13 = vadd.f32 %v13484_v28, %v5677_v31  ;;  %v5937_v42 = vadd.f32 %v13484_v28, %v5674_v10 }
 0x588   : > { %6067 = vst.msk [vmem:[%s12920_s30 + $0x200] sm:$0xff] %vm6002_vm0, %v5938_v13  ;;  %6066 = vst.msk [vmem:[%s12920_s30 + $0x1f8] sm:$0xff] %vm6002_vm0, %v5937_v42 }
 0x589   : > { %v5683_v37 = vpop.xlane.xlu1 %5682  ;;  %v5680_v59 = vpop.xlane.xlu0 %5679 }
 0x58a   : > { %v5940_v8 = vadd.f32 %v13484_v28, %v5683_v37  ;;  %v5939_v55 = vadd.f32 %v13484_v28, %v5680_v59 }
 0x58c   : > { %6069 = vst.msk [vmem:[%s12920_s30 + $0x210] sm:$0xff] %vm6002_vm0, %v5940_v8  ;;  %6068 = vst.msk [vmem:[%s12920_s30 + $0x208] sm:$0xff] %vm6002_vm0, %v5939_v55 }
 0x58d   : > { %v5689_v61 = vpop.xlane.xlu1 %5688  ;;  %v5686_v32 = vpop.xlane.xlu0 %5685 }
 0x58e   : > { %v5942_v48 = vadd.f32 %v13484_v28, %v5689_v61  ;;  %v5941_v57 = vadd.f32 %v13484_v28, %v5686_v32 }
 0x590   : > { %6071 = vst.msk [vmem:[%s12920_s30 + $0x220] sm:$0xff] %vm6002_vm0, %v5942_v48  ;;  %6070 = vst.msk [vmem:[%s12920_s30 + $0x218] sm:$0xff] %vm6002_vm0, %v5941_v57 }
 0x591   : > { %v5695_v2 = vpop.xlane.xlu1 %5694  ;;  %v5692_v9 = vpop.xlane.xlu0 %5691 }
 0x592   : > { %v5944_v45 = vadd.f32 %v13484_v28, %v5695_v2  ;;  %v5943_v25 = vadd.f32 %v13484_v28, %v5692_v9 }
 0x594   : > { %6073 = vst.msk [vmem:[%s12920_s30 + $0x230] sm:$0xff] %vm6002_vm0, %v5944_v45  ;;  %6072 = vst.msk [vmem:[%s12920_s30 + $0x228] sm:$0xff] %vm6002_vm0, %v5943_v25 }
 0x595   : > { %v5701_v4 = vpop.xlane.xlu1 %5700  ;;  %v5698_v62 = vpop.xlane.xlu0 %5697 }
 0x596   : > { %v5946_v41 = vadd.f32 %v13484_v28, %v5701_v4  ;;  %v5945_v7 = vadd.f32 %v13484_v28, %v5698_v62 }
 0x598   : > { %6075 = vst.msk [vmem:[%s12920_s30 + $0x240] sm:$0xff] %vm6002_vm0, %v5946_v41  ;;  %6074 = vst.msk [vmem:[%s12920_s30 + $0x238] sm:$0xff] %vm6002_vm0, %v5945_v7 }
 0x599   : > { %v5707_v35 = vpop.xlane.xlu1 %5706  ;;  %v5704_v6 = vpop.xlane.xlu0 %5703 }
 0x59a   : > { %v5948_v30 = vadd.f32 %v13484_v28, %v5707_v35  ;;  %v5947_v15 = vadd.f32 %v13484_v28, %v5704_v6 }
 0x59c   : > { %6077 = vst.msk [vmem:[%s12920_s30 + $0x250] sm:$0xff] %vm6002_vm0, %v5948_v30  ;;  %6076 = vst.msk [vmem:[%s12920_s30 + $0x248] sm:$0xff] %vm6002_vm0, %v5947_v15 }
 0x59d   : > { %v5713_v24 = vpop.xlane.xlu1 %5712  ;;  %v5710_v26 = vpop.xlane.xlu0 %5709 }
 0x59e   : > { %v5950_v50 = vadd.f32 %v13484_v28, %v5713_v24  ;;  %v5949_v21 = vadd.f32 %v13484_v28, %v5710_v26 }
 0x5a0   : > { %6079 = vst.msk [vmem:[%s12920_s30 + $0x260] sm:$0xff] %vm6002_vm0, %v5950_v50  ;;  %6078 = vst.msk [vmem:[%s12920_s30 + $0x258] sm:$0xff] %vm6002_vm0, %v5949_v21 }
 0x5a1   : > { %v5719_v51 = vpop.xlane.xlu1 %5718  ;;  %v5716_v3 = vpop.xlane.xlu0 %5715 }
 0x5a2   : > { %v5952_v44 = vadd.f32 %v13953_v53, %v5719_v51  ;;  %v5951_v49 = vadd.f32 %v13953_v53, %v5716_v3 }
 0x5a4   : > { %6081 = vst.msk [vmem:[%s12920_s30 + $0x270] sm:$0xff] %vm6002_vm0, %v5952_v44  ;;  %6080 = vst.msk [vmem:[%s12920_s30 + $0x268] sm:$0xff] %vm6002_vm0, %v5951_v49 }
 0x5a5   : > { %v5725_v36 = vpop.xlane.xlu1 %5724  ;;  %v5722_v28 = vpop.xlane.xlu0 %5721 }
 0x5a6   : > { %v5954_v34 = vadd.f32 %v13953_v53, %v5725_v36  ;;  %v5953_v47 = vadd.f32 %v13953_v53, %v5722_v28 }
 0x5a8   : > { %6083 = vst.msk [vmem:[%s12920_s30 + $0x280] sm:$0xff] %vm6002_vm0, %v5954_v34  ;;  %6082 = vst.msk [vmem:[%s12920_s30 + $0x278] sm:$0xff] %vm6002_vm0, %v5953_v47 }
 0x5a9   : > { %v5731_v29 = vpop.xlane.xlu1 %5730  ;;  %v5728_v19 = vpop.xlane.xlu0 %5727 }
 0x5aa   : > { %v5956_v17 = vadd.f32 %v13953_v53, %v5731_v29  ;;  %v5955_v1 = vadd.f32 %v13953_v53, %v5728_v19 }
 0x5ac   : > { %6085 = vst.msk [vmem:[%s12920_s30 + $0x290] sm:$0xff] %vm6002_vm0, %v5956_v17  ;;  %6084 = vst.msk [vmem:[%s12920_s30 + $0x288] sm:$0xff] %vm6002_vm0, %v5955_v1 }
 0x5ad   : > { %v5737_v20 = vpop.xlane.xlu1 %5736  ;;  %v5734_v56 = vpop.xlane.xlu0 %5733 }
 0x5ae   : > { %v5958_v40 = vadd.f32 %v13953_v53, %v5737_v20  ;;  %v5957_v23 = vadd.f32 %v13953_v53, %v5734_v56 }
 0x5b0   : > { %6087 = vst.msk [vmem:[%s12920_s30 + $0x2a0] sm:$0xff] %vm6002_vm0, %v5958_v40  ;;  %6086 = vst.msk [vmem:[%s12920_s30 + $0x298] sm:$0xff] %vm6002_vm0, %v5957_v23 }
 0x5b1   : > { %v5743_v16 = vpop.xlane.xlu1 %5742  ;;  %v5740_v0 = vpop.xlane.xlu0 %5739 }
 0x5b2   : > { %v5960_v33 = vadd.f32 %v13953_v53, %v5743_v16  ;;  %v5959_v58 = vadd.f32 %v13953_v53, %v5740_v0 }
 0x5b4   : > { %6089 = vst.msk [vmem:[%s12920_s30 + $0x2b0] sm:$0xff] %vm6002_vm0, %v5960_v33  ;;  %6088 = vst.msk [vmem:[%s12920_s30 + $0x2a8] sm:$0xff] %vm6002_vm0, %v5959_v58 }
 0x5b5   : > { %v5749_v12 = vpop.xlane.xlu1 %5748  ;;  %v5746_v11 = vpop.xlane.xlu0 %5745 }
 0x5b6   : > { %v5962_v22 = vadd.f32 %v13953_v53, %v5749_v12  ;;  %v5961_v52 = vadd.f32 %v13953_v53, %v5746_v11 }
 0x5b8   : > { %6091 = vst.msk [vmem:[%s12920_s30 + $0x2c0] sm:$0xff] %vm6002_vm0, %v5962_v22  ;;  %6090 = vst.msk [vmem:[%s12920_s30 + $0x2b8] sm:$0xff] %vm6002_vm0, %v5961_v52 }
 0x5b9   : > { %v5755_v38 = vpop.xlane.xlu1 %5754  ;;  %v5752_v43 = vpop.xlane.xlu0 %5751 }
 0x5ba   : > { %v5964_v63 = vadd.f32 %v13953_v53, %v5755_v38  ;;  %v5963_v14 = vadd.f32 %v13953_v53, %v5752_v43 }
 0x5bc   : > { %6093 = vst.msk [vmem:[%s12920_s30 + $0x2d0] sm:$0xff] %vm6002_vm0, %v5964_v63  ;;  %6092 = vst.msk [vmem:[%s12920_s30 + $0x2c8] sm:$0xff] %vm6002_vm0, %v5963_v14 }
 0x5bd   : > { %v5761_v27 = vpop.xlane.xlu1 %5760  ;;  %v5758_v60 = vpop.xlane.xlu0 %5757 }
 0x5be   : > { %v5966_v18 = vadd.f32 %v13953_v53, %v5761_v27  ;;  %v5965_v5 = vadd.f32 %v13953_v53, %v5758_v60 }
 0x5c0   : > { %6095 = vst.msk [vmem:[%s12920_s30 + $0x2e0] sm:$0xff] %vm6002_vm0, %v5966_v18  ;;  %6094 = vst.msk [vmem:[%s12920_s30 + $0x2d8] sm:$0xff] %vm6002_vm0, %v5965_v5 }
 0x5c1   : > { %v5767_v39 = vpop.xlane.xlu1 %5766  ;;  %v5764_v46 = vpop.xlane.xlu0 %5763 }
 0x5c2   : > { %v5968_v54 = vadd.f32 %v13953_v53, %v5767_v39  ;;  %v5967_v31 = vadd.f32 %v13953_v53, %v5764_v46 }
 0x5c4   : > { %6097 = vst.msk [vmem:[%s12920_s30 + $0x2f0] sm:$0xff] %vm6002_vm0, %v5968_v54  ;;  %6096 = vst.msk [vmem:[%s12920_s30 + $0x2e8] sm:$0xff] %vm6002_vm0, %v5967_v31 }
 0x5c5   : > { %v5773_v10 = vpop.xlane.xlu1 %5772  ;;  %v5770_v13 = vpop.xlane.xlu0 %5769 }
 0x5c6   : > { %v5970_v42 = vadd.f32 %v13953_v53, %v5773_v10  ;;  %v5969_v37 = vadd.f32 %v13953_v53, %v5770_v13 }
 0x5c8   : > { %6099 = vst.msk [vmem:[%s12920_s30 + $0x300] sm:$0xff] %vm6002_vm0, %v5970_v42  ;;  %6098 = vst.msk [vmem:[%s12920_s30 + $0x2f8] sm:$0xff] %vm6002_vm0, %v5969_v37 }
 0x5c9   : > { %v5779_v59 = vpop.xlane.xlu1 %5778  ;;  %v5776_v8 = vpop.xlane.xlu0 %5775 }
 0x5ca   : > { %v5972_v55 = vadd.f32 %v13953_v53, %v5779_v59  ;;  %v5971_v61 = vadd.f32 %v13953_v53, %v5776_v8 }
 0x5cc   : > { %6101 = vst.msk [vmem:[%s12920_s30 + $0x310] sm:$0xff] %vm6002_vm0, %v5972_v55  ;;  %6100 = vst.msk [vmem:[%s12920_s30 + $0x308] sm:$0xff] %vm6002_vm0, %v5971_v61 }
 0x5cd   : > { %v5785_v32 = vpop.xlane.xlu1 %5784  ;;  %v5782_v48 = vpop.xlane.xlu0 %5781 }
 0x5ce   : > { %v5974_v57 = vadd.f32 %v13953_v53, %v5785_v32  ;;  %v5973_v2 = vadd.f32 %v13953_v53, %v5782_v48 }
 0x5d0   : > { %6103 = vst.msk [vmem:[%s12920_s30 + $0x320] sm:$0xff] %vm6002_vm0, %v5974_v57  ;;  %6102 = vst.msk [vmem:[%s12920_s30 + $0x318] sm:$0xff] %vm6002_vm0, %v5973_v2 }
 0x5d1   : > { %v5791_v9 = vpop.xlane.xlu1 %5790  ;;  %v5788_v45 = vpop.xlane.xlu0 %5787 }
 0x5d2   : > { %v5976_v25 = vadd.f32 %v13953_v53, %v5791_v9  ;;  %v5975_v4 = vadd.f32 %v13953_v53, %v5788_v45 }
 0x5d4   : > { %6105 = vst.msk [vmem:[%s12920_s30 + $0x330] sm:$0xff] %vm6002_vm0, %v5976_v25  ;;  %6104 = vst.msk [vmem:[%s12920_s30 + $0x328] sm:$0xff] %vm6002_vm0, %v5975_v4 }
 0x5d5   : > { %v5797_v62 = vpop.xlane.xlu1 %5796  ;;  %v5794_v41 = vpop.xlane.xlu0 %5793 }
 0x5d6   : > { %v5978_v7 = vadd.f32 %v13953_v53, %v5797_v62  ;;  %v5977_v35 = vadd.f32 %v13953_v53, %v5794_v41 }
 0x5d8   : > { %6107 = vst.msk [vmem:[%s12920_s30 + $0x340] sm:$0xff] %vm6002_vm0, %v5978_v7  ;;  %6106 = vst.msk [vmem:[%s12920_s30 + $0x338] sm:$0xff] %vm6002_vm0, %v5977_v35 }
 0x5d9   : > { %v5803_v6 = vpop.xlane.xlu1 %5802  ;;  %v5800_v30 = vpop.xlane.xlu0 %5799 }
 0x5da   : > { %v5980_v15 = vadd.f32 %v13953_v53, %v5803_v6  ;;  %v5979_v24 = vadd.f32 %v13953_v53, %v5800_v30 }
 0x5dc   : > { %6109 = vst.msk [vmem:[%s12920_s30 + $0x350] sm:$0xff] %vm6002_vm0, %v5980_v15  ;;  %6108 = vst.msk [vmem:[%s12920_s30 + $0x348] sm:$0xff] %vm6002_vm0, %v5979_v24 }
 0x5dd   : > { %v5809_v26 = vpop.xlane.xlu1 %5808  ;;  %v5806_v50 = vpop.xlane.xlu0 %5805 }
 0x5de   : > { %v5982_v21 = vadd.f32 %v13953_v53, %v5809_v26  ;;  %v5981_v51 = vadd.f32 %v13953_v53, %v5806_v50 }
 0x5e0   : > { %6111 = vst.msk [vmem:[%s12920_s30 + $0x360] sm:$0xff] %vm6002_vm0, %v5982_v21  ;;  %6110 = vst.msk [vmem:[%s12920_s30 + $0x358] sm:$0xff] %vm6002_vm0, %v5981_v51 }
 0x5e1   : > { %v5815_v3 = vpop.xlane.xlu1 %5814  ;;  %v5812_v44 = vpop.xlane.xlu0 %5811 }
 0x5e2   : > { %v5984_v49 = vadd.f32 %v13953_v53, %v5815_v3  ;;  %v5983_v36 = vadd.f32 %v13953_v53, %v5812_v44 }
 0x5e4   : > { %6113 = vst.msk [vmem:[%s12920_s30 + $0x370] sm:$0xff] %vm6002_vm0, %v5984_v49  ;;  %6112 = vst.msk [vmem:[%s12920_s30 + $0x368] sm:$0xff] %vm6002_vm0, %v5983_v36 }
 0x5e5   : > { %v5821_v28 = vpop.xlane.xlu1 %5820  ;;  %v5818_v34 = vpop.xlane.xlu0 %5817 }
 0x5e6   : > { %v5986_v47 = vadd.f32 %v13953_v53, %v5821_v28  ;;  %v5985_v29 = vadd.f32 %v13953_v53, %v5818_v34 }
 0x5e8   : > { %6115 = vst.msk [vmem:[%s12920_s30 + $0x380] sm:$0xff] %vm6002_vm0, %v5986_v47  ;;  %6114 = vst.msk [vmem:[%s12920_s30 + $0x378] sm:$0xff] %vm6002_vm0, %v5985_v29 }
 0x5e9   : > { %v5827_v19 = vpop.xlane.xlu1 %5826  ;;  %v5824_v17 = vpop.xlane.xlu0 %5823 }
 0x5ea   : > { %v5988_v1 = vadd.f32 %v13953_v53, %v5827_v19  ;;  %v5987_v20 = vadd.f32 %v13953_v53, %v5824_v17 }
 0x5ec   : > { %6117 = vst.msk [vmem:[%s12920_s30 + $0x390] sm:$0xff] %vm6002_vm0, %v5988_v1  ;;  %6116 = vst.msk [vmem:[%s12920_s30 + $0x388] sm:$0xff] %vm6002_vm0, %v5987_v20 }
 0x5ed   : > { %v5833_v56 = vpop.xlane.xlu1 %5832  ;;  %v5830_v40 = vpop.xlane.xlu0 %5829 }
 0x5ee   : > { %v5990_v23 = vadd.f32 %v13953_v53, %v5833_v56  ;;  %v5989_v16 = vadd.f32 %v13953_v53, %v5830_v40 }
 0x5f0   : > { %6119 = vst.msk [vmem:[%s12920_s30 + $0x3a0] sm:$0xff] %vm6002_vm0, %v5990_v23  ;;  %6118 = vst.msk [vmem:[%s12920_s30 + $0x398] sm:$0xff] %vm6002_vm0, %v5989_v16 }
 0x5f1   : > { %v5839_v0 = vpop.xlane.xlu1 %5838  ;;  %v5836_v33 = vpop.xlane.xlu0 %5835 }
 0x5f2   : > { %v5992_v58 = vadd.f32 %v13953_v53, %v5839_v0  ;;  %v5991_v12 = vadd.f32 %v13953_v53, %v5836_v33 }
 0x5f4   : > { %6121 = vst.msk [vmem:[%s12920_s30 + $0x3b0] sm:$0xff] %vm6002_vm0, %v5992_v58  ;;  %6120 = vst.msk [vmem:[%s12920_s30 + $0x3a8] sm:$0xff] %vm6002_vm0, %v5991_v12 }
 0x5f5   : > { %v5845_v11 = vpop.xlane.xlu1 %5844  ;;  %v5842_v22 = vpop.xlane.xlu0 %5841 }
 0x5f6   : > { %v5994_v52 = vadd.f32 %v13953_v53, %v5845_v11  ;;  %v5993_v38 = vadd.f32 %v13953_v53, %v5842_v22 }
 0x5f8   : > { %6123 = vst.msk [vmem:[%s12920_s30 + $0x3c0] sm:$0xff] %vm6002_vm0, %v5994_v52  ;;  %6122 = vst.msk [vmem:[%s12920_s30 + $0x3b8] sm:$0xff] %vm6002_vm0, %v5993_v38 }
 0x5f9   : > { %v5851_v43 = vpop.xlane.xlu1 %5850  ;;  %v5848_v63 = vpop.xlane.xlu0 %5847 }
 0x5fa   : > { %v5996_v14 = vadd.f32 %v13953_v53, %v5851_v43  ;;  %v5995_v27 = vadd.f32 %v13953_v53, %v5848_v63 }
 0x5fc   : > { %6125 = vst.msk [vmem:[%s12920_s30 + $0x3d0] sm:$0xff] %vm6002_vm0, %v5996_v14  ;;  %6124 = vst.msk [vmem:[%s12920_s30 + $0x3c8] sm:$0xff] %vm6002_vm0, %v5995_v27 }
 0x5fd   : > { %v5857_v60 = vpop.xlane.xlu1 %5856  ;;  %v5854_v18 = vpop.xlane.xlu0 %5853 }
 0x5fe   : > { %v5998_v5 = vadd.f32 %v13953_v53, %v5857_v60  ;;  %v5997_v39 = vadd.f32 %v13953_v53, %v5854_v18 }
 0x600   : > { %6127 = vst.msk [vmem:[%s12920_s30 + $0x3e0] sm:$0xff] %vm6002_vm0, %v5998_v5  ;;  %6126 = vst.msk [vmem:[%s12920_s30 + $0x3d8] sm:$0xff] %vm6002_vm0, %v5997_v39 }
 0x601   : > { %v5863_v46 = vpop.xlane.xlu1 %5862  ;;  %v5860_v54 = vpop.xlane.xlu0 %5859 }
 0x602   : > { %v6000_v31 = vadd.f32 %v13953_v53, %v5863_v46  ;;  %v5999_v10 = vadd.f32 %v13953_v53, %v5860_v54 }
 0x604   : > { %6129 = vst.msk [vmem:[%s12920_s30 + $0x3f0] sm:$0xff] %vm6002_vm0, %v6000_v31  ;;  %6128 = vst.msk [vmem:[%s12920_s30 + $0x3e8] sm:$0xff] %vm6002_vm0, %v5999_v10  ;;  %6137 = sbr.rel (!%p7138_p4) target bundleno = 1609 (0x649), region = 52 }
 0x605   : > { %v5866_v13 = vpop.xlane.xlu0 %5865 }
 0x606   : > { %v6001_v42 = vadd.f32 %v13953_v53, %v5866_v13 }
 0x608   : > { %6130 = vst.msk [vmem:[%s12920_s30 + $0x3f8] sm:$0xff] %vm6002_vm0, %v6001_v42 }
 0x609   : > { %s16113_s8 = smov (!%p6140_p8, %s6139_s8), 128 }
 0x60a   : > { %s6641_s17 = sshll.u32 %s16113_s8, 7 }
 0x60b   : > { %p6644_p9 = scmp.eq.s32.totalorder %s6641_s17, 0 }
 0x60c   : > { %s14121_s18 = sshrl.u32 (!%p6644_p9), %s16113_s8, 6 }
 0x60d   : > { %6148 = sbr.rel (%p6644_p9) target bundleno = 1609 (0x649), region = 56  ;;  %p6645_p10 = scmp.le.s32.totalorder (!%p6644_p9), %s14121_s18, 0 }
 0x612   : > { %6555 = sbr.rel (%p6645_p10) target bundleno = 1592 (0x638), region = 132  ;;  %s16104_s6 = smov (!%p6645_p10), %s14115_s15 }
 0x613   : > { %s16105_s10 = smov (!%p6645_p10), %s12920_s30  ;;  %s14130_s11 = smov (!%p6645_p10), 0  }
 0x614   : > { %s14132_s19 = smov (!%p6645_p10), 0  }
 0x617 LB: >> { %v6337_v53 = vld [vmem:[%s7041_s10] sm:$0xff]  ;;  %v6339_v37 = vld [vmem:[%s7041_s10 + $0x8] sm:$0xff]  ;;  %v6341_v59 = vld [vmem:[%s7041_s10 + $0x10] sm:$0xff]  ;;  %s6465_s20 = sadd.s32 1, %s7045_s11  ;;  %s6331_s19 = sadd.s32 1, %s7049_s19   ;;  %s7049_s19 = sphi %s14132_s19, %s6331_s19   ;;  %s7045_s11 = sphi %s14130_s11, %s16108_s11   ;;  %s7041_s10 = sphi %s16105_s10, %s16107_s10   ;;  %s7037_s6 = sphi %s16104_s6, %s16106_s6  }
 0x618   : >> { %6338 = vst [vmem:[%s7037_s6] sm:$0xff] %v6337_v53  ;;  %6340 = vst [vmem:[%s7037_s6 + $0x8] sm:$0xff] %v6339_v37  ;;  %v6343_v8 = vld [vmem:[%s7041_s10 + $0x18] sm:$0xff]  ;;  %v6345_v55 = vld [vmem:[%s7041_s10 + $0x20] sm:$0xff]  ;;  %p6466_p11 = scmp.ge.s32.totalorder %s6465_s20, %s14121_s18  ;;  %p6330_p12 = scmp.ge.s32.totalorder %s6331_s19, %s14121_s18 }
 0x619   : >> { %6342 = vst [vmem:[%s7037_s6 + $0x10] sm:$0xff] %v6341_v59  ;;  %v6347_v61 = vld [vmem:[%s7041_s10 + $0x28] sm:$0xff]  ;;  %6344 = vst [vmem:[%s7037_s6 + $0x18] sm:$0xff] %v6343_v8  ;;  %v6349_v32 = vld [vmem:[%s7041_s10 + $0x30] sm:$0xff] }
 0x61a   : >> { %6346 = vst [vmem:[%s7037_s6 + $0x20] sm:$0xff] %v6345_v55  ;;  %6348 = vst [vmem:[%s7037_s6 + $0x28] sm:$0xff] %v6347_v61  ;;  %v6351_v48 = vld [vmem:[%s7041_s10 + $0x38] sm:$0xff]  ;;  %v6353_v57 = vld [vmem:[%s7041_s10 + $0x40] sm:$0xff]  ;;  %s16115_s20 = smov (%p6466_p11, %s6465_s20), 0 }
 0x61b   : >> { %6350 = vst [vmem:[%s7037_s6 + $0x30] sm:$0xff] %v6349_v32  ;;  %6352 = vst [vmem:[%s7037_s6 + $0x38] sm:$0xff] %v6351_v48  ;;  %v6355_v2 = vld [vmem:[%s7041_s10 + $0x48] sm:$0xff]  ;;  %v6357_v9 = vld [vmem:[%s7041_s10 + $0x50] sm:$0xff]  ;;  %s6646_s21 = sshll.u32 %s16115_s20, 9  ;;  %s16108_s11 = smov %s16115_s20 }
 0x61c   : >> { %6354 = vst [vmem:[%s7037_s6 + $0x40] sm:$0xff] %v6353_v57  ;;  %v6359_v45 = vld [vmem:[%s7041_s10 + $0x58] sm:$0xff]  ;;  %6356 = vst [vmem:[%s7037_s6 + $0x48] sm:$0xff] %v6355_v2  ;;  %v6361_v25 = vld [vmem:[%s7041_s10 + $0x60] sm:$0xff]  ;;  %s14188_s22 = scalar_lea.vmem %s12920_s30, %s6646_s21 [#allocation3]   ;;  %s14191_s16 = scalar_lea.vmem %s14115_s15, %s6646_s21  }
 0x61d   : >> { %6358 = vst [vmem:[%s7037_s6 + $0x50] sm:$0xff] %v6357_v9  ;;  %6360 = vst [vmem:[%s7037_s6 + $0x58] sm:$0xff] %v6359_v45  ;;  %v6363_v4 = vld [vmem:[%s7041_s10 + $0x68] sm:$0xff]  ;;  %v6365_v62 = vld [vmem:[%s7041_s10 + $0x70] sm:$0xff] }
 0x61e   : >> { %6362 = vst [vmem:[%s7037_s6 + $0x60] sm:$0xff] %v6361_v25  ;;  %6364 = vst [vmem:[%s7037_s6 + $0x68] sm:$0xff] %v6363_v4  ;;  %v6367_v41 = vld [vmem:[%s7041_s10 + $0x78] sm:$0xff]  ;;  %v6369_v7 = vld [vmem:[%s7041_s10 + $0x80] sm:$0xff] }
 0x61f   : >> { %6366 = vst [vmem:[%s7037_s6 + $0x70] sm:$0xff] %v6365_v62  ;;  %v6371_v35 = vld [vmem:[%s7041_s10 + $0x88] sm:$0xff]  ;;  %6368 = vst [vmem:[%s7037_s6 + $0x78] sm:$0xff] %v6367_v41  ;;  %v6373_v6 = vld [vmem:[%s7041_s10 + $0x90] sm:$0xff] }
 0x620   : >> { %6370 = vst [vmem:[%s7037_s6 + $0x80] sm:$0xff] %v6369_v7  ;;  %6372 = vst [vmem:[%s7037_s6 + $0x88] sm:$0xff] %v6371_v35  ;;  %v6375_v30 = vld [vmem:[%s7041_s10 + $0x98] sm:$0xff]  ;;  %v6377_v15 = vld [vmem:[%s7041_s10 + $0xa0] sm:$0xff] }
 0x621   : >> { %6374 = vst [vmem:[%s7037_s6 + $0x90] sm:$0xff] %v6373_v6  ;;  %6376 = vst [vmem:[%s7037_s6 + $0x98] sm:$0xff] %v6375_v30  ;;  %v6379_v24 = vld [vmem:[%s7041_s10 + $0xa8] sm:$0xff]  ;;  %v6381_v26 = vld [vmem:[%s7041_s10 + $0xb0] sm:$0xff] }
 0x622   : >> { %6378 = vst [vmem:[%s7037_s6 + $0xa0] sm:$0xff] %v6377_v15  ;;  %v6383_v50 = vld [vmem:[%s7041_s10 + $0xb8] sm:$0xff]  ;;  %6380 = vst [vmem:[%s7037_s6 + $0xa8] sm:$0xff] %v6379_v24  ;;  %v6385_v21 = vld [vmem:[%s7041_s10 + $0xc0] sm:$0xff] }
 0x623   : >> { %6382 = vst [vmem:[%s7037_s6 + $0xb0] sm:$0xff] %v6381_v26  ;;  %6384 = vst [vmem:[%s7037_s6 + $0xb8] sm:$0xff] %v6383_v50  ;;  %v6387_v51 = vld [vmem:[%s7041_s10 + $0xc8] sm:$0xff]  ;;  %v6389_v3 = vld [vmem:[%s7041_s10 + $0xd0] sm:$0xff] }
 0x624   : >> { %6386 = vst [vmem:[%s7037_s6 + $0xc0] sm:$0xff] %v6385_v21  ;;  %6388 = vst [vmem:[%s7037_s6 + $0xc8] sm:$0xff] %v6387_v51  ;;  %v6391_v44 = vld [vmem:[%s7041_s10 + $0xd8] sm:$0xff]  ;;  %v6393_v49 = vld [vmem:[%s7041_s10 + $0xe0] sm:$0xff] }
 0x625   : >> { %6390 = vst [vmem:[%s7037_s6 + $0xd0] sm:$0xff] %v6389_v3  ;;  %v6395_v36 = vld [vmem:[%s7041_s10 + $0xe8] sm:$0xff]  ;;  %6392 = vst [vmem:[%s7037_s6 + $0xd8] sm:$0xff] %v6391_v44  ;;  %v6397_v28 = vld [vmem:[%s7041_s10 + $0xf0] sm:$0xff] }
 0x626   : >> { %6394 = vst [vmem:[%s7037_s6 + $0xe0] sm:$0xff] %v6393_v49  ;;  %6396 = vst [vmem:[%s7037_s6 + $0xe8] sm:$0xff] %v6395_v36  ;;  %v6399_v34 = vld [vmem:[%s7041_s10 + $0xf8] sm:$0xff]  ;;  %v6401_v47 = vld [vmem:[%s7041_s10 + $0x100] sm:$0xff] }
 0x627   : >> { %6398 = vst [vmem:[%s7037_s6 + $0xf0] sm:$0xff] %v6397_v28  ;;  %6400 = vst [vmem:[%s7037_s6 + $0xf8] sm:$0xff] %v6399_v34  ;;  %v6403_v29 = vld [vmem:[%s7041_s10 + $0x108] sm:$0xff]  ;;  %v6405_v19 = vld [vmem:[%s7041_s10 + $0x110] sm:$0xff] }
 0x628   : >> { %6402 = vst [vmem:[%s7037_s6 + $0x100] sm:$0xff] %v6401_v47  ;;  %v6407_v17 = vld [vmem:[%s7041_s10 + $0x118] sm:$0xff]  ;;  %6404 = vst [vmem:[%s7037_s6 + $0x108] sm:$0xff] %v6403_v29  ;;  %v6409_v1 = vld [vmem:[%s7041_s10 + $0x120] sm:$0xff] }
 0x629   : >> { %6406 = vst [vmem:[%s7037_s6 + $0x110] sm:$0xff] %v6405_v19  ;;  %6408 = vst [vmem:[%s7037_s6 + $0x118] sm:$0xff] %v6407_v17  ;;  %v6411_v20 = vld [vmem:[%s7041_s10 + $0x128] sm:$0xff]  ;;  %v6413_v56 = vld [vmem:[%s7041_s10 + $0x130] sm:$0xff] }
 0x62a   : >> { %6410 = vst [vmem:[%s7037_s6 + $0x120] sm:$0xff] %v6409_v1  ;;  %6412 = vst [vmem:[%s7037_s6 + $0x128] sm:$0xff] %v6411_v20  ;;  %v6415_v40 = vld [vmem:[%s7041_s10 + $0x138] sm:$0xff]  ;;  %v6417_v23 = vld [vmem:[%s7041_s10 + $0x140] sm:$0xff] }
 0x62b   : >> { %6414 = vst [vmem:[%s7037_s6 + $0x130] sm:$0xff] %v6413_v56  ;;  %v6419_v16 = vld [vmem:[%s7041_s10 + $0x148] sm:$0xff]  ;;  %6416 = vst [vmem:[%s7037_s6 + $0x138] sm:$0xff] %v6415_v40  ;;  %v6421_v0 = vld [vmem:[%s7041_s10 + $0x150] sm:$0xff] }
 0x62c   : >> { %6418 = vst [vmem:[%s7037_s6 + $0x140] sm:$0xff] %v6417_v23  ;;  %6420 = vst [vmem:[%s7037_s6 + $0x148] sm:$0xff] %v6419_v16  ;;  %v6423_v33 = vld [vmem:[%s7041_s10 + $0x158] sm:$0xff]  ;;  %v6425_v58 = vld [vmem:[%s7041_s10 + $0x160] sm:$0xff] }
 0x62d   : >> { %6422 = vst [vmem:[%s7037_s6 + $0x150] sm:$0xff] %v6421_v0  ;;  %6424 = vst [vmem:[%s7037_s6 + $0x158] sm:$0xff] %v6423_v33  ;;  %v6427_v12 = vld [vmem:[%s7041_s10 + $0x168] sm:$0xff]  ;;  %v6429_v11 = vld [vmem:[%s7041_s10 + $0x170] sm:$0xff] }
 0x62e   : >> { %6426 = vst [vmem:[%s7037_s6 + $0x160] sm:$0xff] %v6425_v58  ;;  %v6431_v22 = vld [vmem:[%s7041_s10 + $0x178] sm:$0xff]  ;;  %6428 = vst [vmem:[%s7037_s6 + $0x168] sm:$0xff] %v6427_v12  ;;  %v6433_v52 = vld [vmem:[%s7041_s10 + $0x180] sm:$0xff] }
 0x62f   : >> { %6430 = vst [vmem:[%s7037_s6 + $0x170] sm:$0xff] %v6429_v11  ;;  %6432 = vst [vmem:[%s7037_s6 + $0x178] sm:$0xff] %v6431_v22  ;;  %v6435_v38 = vld [vmem:[%s7041_s10 + $0x188] sm:$0xff]  ;;  %v6437_v43 = vld [vmem:[%s7041_s10 + $0x190] sm:$0xff] }
 0x630   : >> { %6434 = vst [vmem:[%s7037_s6 + $0x180] sm:$0xff] %v6433_v52  ;;  %6436 = vst [vmem:[%s7037_s6 + $0x188] sm:$0xff] %v6435_v38  ;;  %v6439_v63 = vld [vmem:[%s7041_s10 + $0x198] sm:$0xff]  ;;  %v6441_v14 = vld [vmem:[%s7041_s10 + $0x1a0] sm:$0xff] }
 0x631   : >> { %6438 = vst [vmem:[%s7037_s6 + $0x190] sm:$0xff] %v6437_v43  ;;  %v6443_v27 = vld [vmem:[%s7041_s10 + $0x1a8] sm:$0xff]  ;;  %6440 = vst [vmem:[%s7037_s6 + $0x198] sm:$0xff] %v6439_v63  ;;  %v6445_v60 = vld [vmem:[%s7041_s10 + $0x1b0] sm:$0xff] }
 0x632   : >> { %6442 = vst [vmem:[%s7037_s6 + $0x1a0] sm:$0xff] %v6441_v14  ;;  %6444 = vst [vmem:[%s7037_s6 + $0x1a8] sm:$0xff] %v6443_v27  ;;  %v6447_v18 = vld [vmem:[%s7041_s10 + $0x1b8] sm:$0xff]  ;;  %v6449_v5 = vld [vmem:[%s7041_s10 + $0x1c0] sm:$0xff] }
 0x633   : >> { %6446 = vst [vmem:[%s7037_s6 + $0x1b0] sm:$0xff] %v6445_v60  ;;  %6448 = vst [vmem:[%s7037_s6 + $0x1b8] sm:$0xff] %v6447_v18  ;;  %v6451_v39 = vld [vmem:[%s7041_s10 + $0x1c8] sm:$0xff]  ;;  %v6453_v46 = vld [vmem:[%s7041_s10 + $0x1d0] sm:$0xff]  ;;  %6333 = sbr.rel (!%p6330_p12) target bundleno = 1559 (0x617), region = 138 }
 0x634   : >> { %6450 = vst [vmem:[%s7037_s6 + $0x1c0] sm:$0xff] %v6449_v5  ;;  %v6455_v54 = vld [vmem:[%s7041_s10 + $0x1d8] sm:$0xff]  ;;  %6452 = vst [vmem:[%s7037_s6 + $0x1c8] sm:$0xff] %v6451_v39  ;;  %v6457_v31 = vld [vmem:[%s7041_s10 + $0x1e0] sm:$0xff] }
 0x635   : >> { %6454 = vst [vmem:[%s7037_s6 + $0x1d0] sm:$0xff] %v6453_v46  ;;  %6456 = vst [vmem:[%s7037_s6 + $0x1d8] sm:$0xff] %v6455_v54  ;;  %v6459_v10 = vld [vmem:[%s7041_s10 + $0x1e8] sm:$0xff]  ;;  %v6461_v13 = vld [vmem:[%s7041_s10 + $0x1f0] sm:$0xff] }
 0x636   : >> { %6458 = vst [vmem:[%s7037_s6 + $0x1e0] sm:$0xff] %v6457_v31  ;;  %6460 = vst [vmem:[%s7037_s6 + $0x1e8] sm:$0xff] %v6459_v10  ;;  %v6463_v42 = vld [vmem:[%s7041_s10 + $0x1f8] sm:$0xff]  ;;  %s16107_s10 = smov %s14188_s22 }
 0x637   : >> { %6462 = vst [vmem:[%s7037_s6 + $0x1f0] sm:$0xff] %v6461_v13  ;;  %6464 = vst [vmem:[%s7037_s6 + $0x1f8] sm:$0xff] %v6463_v42  ;;  %s16106_s6 = smov %s14191_s16 }
 0x638 PF: > { %s14296_s23 = sand.u32 63, %s16113_s8   ;;  %s6657_s24 = sshll.u32 %s14121_s18, 9 }
 0x639   : > { %s6476_s25 = scalar_lea.vmem %s12920_s30, %s6657_s24 [#allocation3]   ;;  %s6478_s28 = scalar_lea.vmem %s14115_s15, %s6657_s24  }
 0x63a   : > { %p6651_p13 = scmp.le.s32.totalorder %s14296_s23, 0 }
 0x63b   : > { %s7051_s26 = smov (!%p6651_p13), %s6478_s28   ;;  %s7055_s12 = smov (!%p6651_p13), %s6476_s25  }
 0x63c   : > { %6569 = sbr.rel (%p6651_p13) target bundleno = 1609 (0x649), region = 143  ;;  %s7059_s13 = smov (!%p6651_p13), 0  }
 0x63d   : > { %s7063_s14 = smov (!%p6651_p13), 0  }
 0x641 LB: >> { %v6488_v53 = vld [vmem:[%s7057_s12] sm:$0xff]  ;;  %s6490_s8 = sadd.s32 1, %s7061_s13  ;;  %s6482_s14 = sadd.s32 1, %s7065_s14   ;;  %s7065_s14 = sphi %s7063_s14, %s6482_s14   ;;  %s7061_s13 = sphi %s7059_s13, %s7060_s13   ;;  %s7057_s12 = sphi %s7055_s12, %s6495_s12   ;;  %s7053_s26 = sphi %s7051_s26, %s6496_s26  }
 0x642   : >> { %6489 = vst [vmem:[%s7053_s26] sm:$0xff] %v6488_v53  ;;  %p6491_p0 = scmp.ge.s32.totalorder %s6490_s8, %s14296_s23  ;;  %p6481_p1 = scmp.ge.s32.totalorder %s6482_s14, %s14296_s23 }
 0x644   : >> { %s16117_s8 = smov (%p6491_p0, %s6490_s8), 0  ;;  %6484 = sbr.rel (!%p6481_p1) target bundleno = 1601 (0x641), region = 149 }
 0x645   : >> { %s6652_s30 = sshll.u32 %s16117_s8, 3  ;;  %s7060_s13 = smov %s16117_s8  }
 0x646   : >> { %s6495_s12 = scalar_lea.vmem %s6476_s25, %s6652_s30 [#allocation3]   ;;  %s6496_s26 = scalar_lea.vmem %s6478_s28, %s6652_s30  }
 0x649 PF: > { %p16_p2 = scmp.ge.s32.totalorder %s7128_s29, 5   ;;  %s16109_s26 = smov %s7029_s27 }
 0x64a   : > { %s16110_s27 = smov %s7136_s9  ;;  %s16111_s28 = smov %s7128_s29 }
 0x64b   :  { %18 = sbr.rel (!%p16_p2) target bundleno = 5 (0x5), region = 160 }

</bundles_post_ra>
